<compile_context>
chip_gen: v6e
topology: v6e:2x2x1
jax: 0.10.0
libtpu: 0.0.40
codegen_flags: <defaults>
</compile_context>

<pallas_src>
import functools

import jax
import jax.numpy as jnp
from jax import lax
from jax.experimental import pallas as pl
from jax.experimental.pallas import tpu as pltpu


# ----------------------------- in-kernel math helpers -----------------------------

def _erf(z):
    # Abramowitz & Stegun 7.1.26; |error| < 1.5e-7 (f32-exact for our purposes).
    # exp() goes to the EUP; the short polynomial stays on the VPU.
    a1, a2, a3, a4, a5 = 0.254829592, -0.284496736, 1.421413741, -1.453152027, 1.061405429
    p = 0.3275911
    s = jnp.where(z >= 0.0, 1.0, -1.0)
    az = jnp.abs(z)
    t = 1.0 / (1.0 + p * az)
    poly = ((((a5 * t + a4) * t + a3) * t + a2) * t + a1) * t
    return s * (1.0 - poly * jnp.exp(-az * az))


def _gelu(z):
    # exact (erf-based) GELU, as nn.GELU() default
    return 0.5 * z * (1.0 + _erf(z * 0.7071067811865476))


def _center_rstd(v, eps):
    """LayerNorm core: (v - mean) * rsqrt(var + eps); gamma/beta folded into weights."""
    mu = jnp.mean(v, axis=-1, keepdims=True)
    c = v - mu
    return c * lax.rsqrt(jnp.mean(c * c, axis=-1, keepdims=True) + eps)


# ----------------------------------- the kernel ------------------------------------

def _block_kernel(x_ref, xp_ref,
                  red_ref, exp_ref,
                  wq_ref, bq_ref,
                  wsr_ref, bsr_ref,
                  wk_ref, bk_ref, wv_ref, bv_ref,
                  wp_ref, bp_ref,
                  w1_ref, bf1_ref,
                  wdw_ref, bdw_ref,
                  w2_ref, bf2_ref,
                  mhead_ref, msum_ref,
                  out_ref, attn_ref,
                  *, num_heads, h, w):
    f32, bf16 = jnp.float32, jnp.bfloat16
    x = x_ref[0].astype(f32)                                   # (N, C)
    N, C = x.shape
    inv_c = 1.0 / C

    # ---------------- norm1 (eps=1e-6) + q projection (gamma/beta/scale folded) ----------------
    xh = _center_rstd(x, 1e-6)
    q = jnp.dot(xh.astype(bf16), wq_ref[...], preferred_element_type=f32) + bq_ref[...]

    # ---------------- spatial reduction: sr conv == one fused matmul ----------------
    # xp holds the raw tokens of each (sr x sr) patch, laid out (nr, rr*C).
    # Blocked LayerNorm of each C-chunk of the lane axis via small precomputed
    # bf16 0/1 reduce (rr*C, rr) / expand (rr, rr*C) masks; mean scale 1/C applied
    # in f32 on the VPU so the statistics stay exact.
    xp = xp_ref[0].astype(f32)                                 # (nr, rr*C)
    red = red_ref[...]                                         # (rr*C, rr) bf16 0/1
    expm = exp_ref[...]                                        # (rr, rr*C) bf16 0/1
    mu_s = jnp.dot(xp.astype(bf16), red, preferred_element_type=f32) * inv_c
    mu_e = jnp.dot(mu_s.astype(bf16), expm, preferred_element_type=f32)
    cen = xp - mu_e
    var_s = jnp.dot((cen * cen).astype(bf16), red, preferred_element_type=f32) * inv_c
    rstd_e = jnp.dot(lax.rsqrt(var_s + 1e-6).astype(bf16), expm,
                     preferred_element_type=f32)
    z = cen * rstd_e                                           # norm1 of patch tokens (g/b in wsr)
    xr = jnp.dot(z.astype(bf16), wsr_ref[...], preferred_element_type=f32) + bsr_ref[...]

    # ---------------- attn.norm (eps=1e-5) + split k / v projections ----------------
    xrh = _center_rstd(xr, 1e-5).astype(bf16)
    k = jnp.dot(xrh, wk_ref[...], preferred_element_type=f32) + bk_ref[...]
    v = jnp.dot(xrh, wv_ref[...], preferred_element_type=f32) + bv_ref[...]

    # ---------------- head-batched attention via block-diagonal K/V ----------------
    # kb[hh*nr+m, c] = k[m, c] iff c belongs to head hh (precomputed bf16 mask);
    # logits = q (.) kb contracting on C (no user-level transpose).
    mhead = mhead_ref[...]                                     # (HN, C) bf16 0/1
    k16, v16 = k.astype(bf16), v.astype(bf16)
    if num_heads > 1:
        k16 = jnp.concatenate([k16] * num_heads, axis=0)
        v16 = jnp.concatenate([v16] * num_heads, axis=0)
    kb = k16 * mhead                                           # (HN, C)
    vb = v16 * mhead                                           # (HN, C)

    logits = lax.dot_general(q.astype(bf16), kb, (((1,), (1,)), ((), ())),
                             preferred_element_type=f32)       # (N, HN)

    # per-head softmax: a single global row max is numerically safe (the per-head
    # normalization divides the constant factor back out); per-head denominators
    # are broadcast to every lane of their head with ONE bf16 block-mask matmul.
    m = jnp.max(logits, axis=-1, keepdims=True)
    e = jnp.exp(logits - m)
    d = jnp.dot(e.astype(bf16), msum_ref[...], preferred_element_type=f32)
    p = e * pl.reciprocal(jnp.maximum(d, 1e-30), approx=True)
    attn_ref[0] = p.astype(attn_ref.dtype)                     # single lane-dense bf16 store

    att = jnp.dot(p.astype(bf16), vb, preferred_element_type=f32)            # (N, C)
    att = jnp.dot(att.astype(bf16), wp_ref[...], preferred_element_type=f32) + bp_ref[...]
    x1 = x + att

    # ---------------- norm2 (eps=1e-6, folded) + Mix-FFN ----------------
    xh2 = _center_rstd(x1, 1e-6)
    hid = jnp.dot(xh2.astype(bf16), w1_ref[...], preferred_element_type=f32) + bf1_ref[...]

    # depthwise 3x3 conv (padding=1, groups=hidden) on the flat (h*w, hidden)
    # layout: tap-by-tap accumulation, one roll (XLU) + boundary mask per tap.
    wdw = wdw_ref[...]                                         # (9, hidden)
    ni = lax.broadcasted_iota(jnp.int32, (N, 1), 0)
    xi = ni % w
    ok_l = xi >= 1                                             # x-1 in range
    ok_r = xi <= w - 2                                         # x+1 in range
    ok_t = ni >= w                                             # y-1 in range
    ok_b = ni < N - w                                          # y+1 in range

    acc = hid * wdw[4:5, :] + bdw_ref[...]                     # center tap + bias
    for dy, dx in ((-1, -1), (-1, 0), (-1, 1), (0, -1), (0, 1), (1, -1), (1, 0), (1, 1)):
        widx = (dy + 1) * 3 + (dx + 1)
        tap = pltpu.roll(hid, (-(dy * w + dx)) % N, axis=0)    # tap[i] = hid[i + dy*w + dx]
        ok = None
        if dx == -1:
            ok = ok_l
        elif dx == 1:
            ok = ok_r
        if dy == -1:
            ok = ok_t if ok is None else (ok & ok_t)
        elif dy == 1:
            ok = ok_b if ok is None else (ok & ok_b)
        acc = acc + jnp.where(ok, tap, 0.0) * wdw[widx:widx + 1, :]

    y = jnp.dot(_gelu(acc).astype(bf16), w2_ref[...], preferred_element_type=f32) + bf2_ref[...]
    out_ref[0] = (x1 + y).astype(out_ref.dtype)


# ----------------------------------- wrapper ----------------------------------------

def transformer_block_forward(x, params, h, w, *, num_heads, sr_ratio):
    B, N, C = x.shape
    assert N == h * w
    assert sr_ratio > 1, "this kernel implements the sr_ratio > 1 path"
    assert C % num_heads == 0
    r = sr_ratio
    nr = (h // r) * (w // r)
    rr = r * r
    head_dim = C // num_heads
    scale = float(head_dim) ** -0.5
    HN = num_heads * nr
    hidden = params["w1"].shape[1]
    f32, bf16 = jnp.float32, jnp.bfloat16

    # pure layout glue: raw tokens of each (sr x sr) patch, patch-major / tap-major
    # xp[b, I*(w//r)+J, (i*r+j)*C + c] = x[b, (I*r+i)*w + (J*r+j), c]
    xp = (x.reshape(B, h // r, r, w // r, r, C)
            .transpose(0, 1, 3, 2, 4, 5)
            .reshape(B, nr, rr * C))

    # ---- fold LayerNorm gamma/beta (and the attention scale) into the matmuls ----
    g1, be1 = params["g1"], params["be1"]
    g2, be2 = params["g2"], params["be2"]
    gsr, bsrn = params["gsr"], params["bsrn"]
    g1t = jnp.tile(g1, (1, rr))
    be1t = jnp.tile(be1, (1, rr))

    wq_f = (params["wq"] * g1.T) * scale
    bq_f = (be1 @ params["wq"] + params["bq"]) * scale
    wsr2 = params["wsr"].reshape(rr * C, C)
    wsr_f = wsr2 * g1t.T
    bsr_f = be1t @ wsr2 + params["bsr"]
    wk, wv = params["wkv"][:, :C], params["wkv"][:, C:]
    bk, bv = params["bkv"][:, :C], params["bkv"][:, C:]
    wk_f, bk_f = wk * gsr.T, bsrn @ wk + bk
    wv_f, bv_f = wv * gsr.T, bsrn @ wv + bv
    w1_f = params["w1"] * g2.T
    bf1_f = be2 @ params["w1"] + params["bf1"]

    # ---- constant 0/1 masks (bf16): blocked-LN reduce/expand, head block-diag, head sum ----
    chunk = jnp.arange(rr * C, dtype=jnp.int32) // C
    red = (chunk[:, None] == jnp.arange(rr, dtype=jnp.int32)[None, :]).astype(bf16)
    expm = (jnp.arange(rr, dtype=jnp.int32)[:, None] == chunk[None, :]).astype(bf16)
    hrow = jnp.arange(HN, dtype=jnp.int32) // nr
    mhead = (hrow[:, None] ==
             (jnp.arange(C, dtype=jnp.int32)[None, :] // head_dim)).astype(bf16)
    msum = (hrow[:, None] == hrow[None, :]).astype(bf16)

    # MXU operands in bf16 (f32 accumulation in-kernel); biases / conv params stay f32.
    pargs = [red, expm,
             wq_f.astype(bf16), bq_f,
             wsr_f.astype(bf16), bsr_f,
             wk_f.astype(bf16), bk_f, wv_f.astype(bf16), bv_f,
             params["wp"].astype(bf16), params["bp"],
             w1_f.astype(bf16), bf1_f,
             params["wdw"], params["bdw"],
             params["w2"].astype(bf16), params["bf2"],
             mhead, msum]

    kernel = functools.partial(_block_kernel, num_heads=num_heads, h=h, w=w)

    def const_spec(t):
        nd = t.ndim
        return pl.BlockSpec(t.shape, lambda b, _nd=nd: (0,) * _nd)

    in_specs = [pl.BlockSpec((1, N, C), lambda b: (b, 0, 0)),
                pl.BlockSpec((1, nr, rr * C), lambda b: (b, 0, 0))]
    in_specs += [const_spec(t) for t in pargs]

    out_shape = (jax.ShapeDtypeStruct((B, N, C), x.dtype),
                 jax.ShapeDtypeStruct((B, N, HN), bf16))
    out_specs = (pl.BlockSpec((1, N, C), lambda b: (b, 0, 0)),
                 pl.BlockSpec((1, N, HN), lambda b: (b, 0, 0)))

    # explicit scoped-VMEM budget: double-buffered I/O blocks + parameters + an
    # allowance for the in-kernel f32 temporaries (hid & friends), clamped to a
    # range valid on v5e / v6e / v7x.
    param_bytes = sum(int(t.size) * t.dtype.itemsize for t in pargs)
    io_bytes = ((2 * N * C + nr * rr * C) * x.dtype.itemsize + N * HN * 2 + param_bytes)
    tmp_bytes = 12 * N * max(hidden, HN, rr * C) * 4
    vmem_budget = int(min(max(2 * io_bytes + tmp_bytes, 32 << 20), 64 << 20))

    fn = pl.pallas_call(
        kernel,
        out_shape=out_shape,
        grid_spec=pltpu.PrefetchScalarGridSpec(
            num_scalar_prefetch=0,
            grid=(B,),
            in_specs=in_specs,
            out_specs=out_specs),
        compiler_params=pltpu.CompilerParams(
            dimension_semantics=("parallel",),
            vmem_limit_bytes=vmem_budget),
    )
    y, attn_flat = fn(x, xp, *pargs)
    # lane-dense (B, N, heads*nr) bf16 kernel output -> reference (B, heads, N, nr)
    attn = attn_flat.reshape(B, N, num_heads, nr).transpose(0, 2, 1, 3)
    return y, {"attn": attn}


# ----------------------------- deterministic parameter init -------------------------

def init_params(key, dim, num_heads, sr_ratio):
    assert dim % num_heads == 0
    hidden = dim * 4
    rr = sr_ratio * sr_ratio
    ks = jax.random.split(key, 16)
    f32 = jnp.float32

    def rnd(k, shape, s=0.05):
        return jax.random.normal(k, shape, f32) * s

    return dict(
        # norm1
        g1=jnp.ones((1, dim), f32), be1=jnp.zeros((1, dim), f32),
        # q = Linear(dim, dim)  (weights stored as (in, out))
        wq=rnd(ks[0], (dim, dim)), bq=rnd(ks[1], (1, dim)),
        # sr conv: torch weight (dim, dim, r, r) -> wsr[s=(i*r+j)][c_in, c_out]
        wsr=rnd(ks[2], (rr, dim, dim)), bsr=rnd(ks[3], (1, dim)),
        # attn.norm (LayerNorm(dim), eps=1e-5)
        gsr=jnp.ones((1, dim), f32), bsrn=jnp.zeros((1, dim), f32),
        # kv = Linear(dim, 2*dim); columns [0:dim]=k, [dim:2dim]=v (head-major within)
        wkv=rnd(ks[4], (dim, 2 * dim)), bkv=rnd(ks[5], (1, 2 * dim)),
        # proj
        wp=rnd(ks[6], (dim, dim)), bp=rnd(ks[7], (1, dim)),
        # norm2
        g2=jnp.ones((1, dim), f32), be2=jnp.zeros((1, dim), f32),
        # ffn.fc1
        w1=rnd(ks[8], (dim, hidden)), bf1=rnd(ks[9], (1, hidden)),
        # ffn depthwise 3x3 conv: torch weight (hidden,1,3,3) -> wdw[ki*3+kj, c]
        wdw=rnd(ks[10], (9, hidden)), bdw=rnd(ks[11], (1, hidden)),
        # ffn.fc2
        w2=rnd(ks[12], (hidden, dim)), bf2=rnd(ks[13], (1, dim)),
    )


# ----------------------------------------- main --------------------------------------

if __name__ == "__main__":
    B, h, w, C = 2, 16, 16, 32
    num_heads, sr_ratio = 2, 2
    N = h * w

    key = jax.random.PRNGKey(0)
    kx, kp = jax.random.split(key)
    x = jax.random.normal(kx, (B, N, C), jnp.float32)
    params = init_params(kp, C, num_heads, sr_ratio)

    y, aux = transformer_block_forward(x, params, h, w,
                                       num_heads=num_heads, sr_ratio=sr_ratio)
    jax.block_until_ready((y, aux["attn"]))
    assert y.shape == (B, N, C)
    assert aux["attn"].shape == (B, num_heads, N, (h // sr_ratio) * (w // sr_ratio))
    assert bool(jnp.all(jnp.isfinite(y)))
    assert bool(jnp.all(jnp.isfinite(aux["attn"].astype(jnp.float32))))
    print("KERNEL_OK")
</pallas_src>

<mosaic_0001>
module attributes {stable_mosaic.version = 11 : i64} {
  func.func @_block_kernel(%arg0: i32, %arg1: memref<1x256x32xf32, #tpu.memory_space<vmem>>, %arg2: memref<1x64x128xf32, #tpu.memory_space<vmem>>, %arg3: memref<128x4xbf16, #tpu.memory_space<vmem>>, %arg4: memref<4x128xbf16, #tpu.memory_space<vmem>>, %arg5: memref<32x32xbf16, #tpu.memory_space<vmem>>, %arg6: memref<1x32xf32, #tpu.memory_space<vmem>>, %arg7: memref<128x32xbf16, #tpu.memory_space<vmem>>, %arg8: memref<1x32xf32, #tpu.memory_space<vmem>>, %arg9: memref<32x32xbf16, #tpu.memory_space<vmem>>, %arg10: memref<1x32xf32, #tpu.memory_space<vmem>>, %arg11: memref<32x32xbf16, #tpu.memory_space<vmem>>, %arg12: memref<1x32xf32, #tpu.memory_space<vmem>>, %arg13: memref<32x32xbf16, #tpu.memory_space<vmem>>, %arg14: memref<1x32xf32, #tpu.memory_space<vmem>>, %arg15: memref<32x128xbf16, #tpu.memory_space<vmem>>, %arg16: memref<1x128xf32, #tpu.memory_space<vmem>>, %arg17: memref<9x128xf32, #tpu.memory_space<vmem>>, %arg18: memref<1x128xf32, #tpu.memory_space<vmem>>, %arg19: memref<128x32xbf16, #tpu.memory_space<vmem>>, %arg20: memref<1x32xf32, #tpu.memory_space<vmem>>, %arg21: memref<128x32xbf16, #tpu.memory_space<vmem>>, %arg22: memref<128x128xbf16, #tpu.memory_space<vmem>>, %arg23: memref<1x256x32xf32, #tpu.memory_space<vmem>>, %arg24: memref<1x256x128xbf16, #tpu.memory_space<vmem>>) attributes {dimension_semantics = [#tpu.dimension_semantics<parallel>], iteration_bounds = array<i64: 2>, scalar_prefetch = 0 : i64, scratch_operands = 0 : i64, tpu.core_type = #tpu.core_type<tc>, window_params = [{transform_indices = @transform_0, window_bounds = array<i64: 1, 256, 32>}, {transform_indices = @transform_1, window_bounds = array<i64: 1, 64, 128>}, {pipeline_mode = #tpu.pipeline_mode<synchronous>, transform_indices = @transform_2, window_bounds = array<i64: 128, 4>}, {pipeline_mode = #tpu.pipeline_mode<synchronous>, transform_indices = @transform_3, window_bounds = array<i64: 4, 128>}, {pipeline_mode = #tpu.pipeline_mode<synchronous>, transform_indices = @transform_4, window_bounds = array<i64: 32, 32>}, {pipeline_mode = #tpu.pipeline_mode<synchronous>, transform_indices = @transform_5, window_bounds = array<i64: 1, 32>}, {pipeline_mode = #tpu.pipeline_mode<synchronous>, transform_indices = @transform_6, window_bounds = array<i64: 128, 32>}, {pipeline_mode = #tpu.pipeline_mode<synchronous>, transform_indices = @transform_7, window_bounds = array<i64: 1, 32>}, {pipeline_mode = #tpu.pipeline_mode<synchronous>, transform_indices = @transform_8, window_bounds = array<i64: 32, 32>}, {pipeline_mode = #tpu.pipeline_mode<synchronous>, transform_indices = @transform_9, window_bounds = array<i64: 1, 32>}, {pipeline_mode = #tpu.pipeline_mode<synchronous>, transform_indices = @transform_10, window_bounds = array<i64: 32, 32>}, {pipeline_mode = #tpu.pipeline_mode<synchronous>, transform_indices = @transform_11, window_bounds = array<i64: 1, 32>}, {pipeline_mode = #tpu.pipeline_mode<synchronous>, transform_indices = @transform_12, window_bounds = array<i64: 32, 32>}, {pipeline_mode = #tpu.pipeline_mode<synchronous>, transform_indices = @transform_13, window_bounds = array<i64: 1, 32>}, {pipeline_mode = #tpu.pipeline_mode<synchronous>, transform_indices = @transform_14, window_bounds = array<i64: 32, 128>}, {pipeline_mode = #tpu.pipeline_mode<synchronous>, transform_indices = @transform_15, window_bounds = array<i64: 1, 128>}, {pipeline_mode = #tpu.pipeline_mode<synchronous>, transform_indices = @transform_16, window_bounds = array<i64: 9, 128>}, {pipeline_mode = #tpu.pipeline_mode<synchronous>, transform_indices = @transform_17, window_bounds = array<i64: 1, 128>}, {pipeline_mode = #tpu.pipeline_mode<synchronous>, transform_indices = @transform_18, window_bounds = array<i64: 128, 32>}, {pipeline_mode = #tpu.pipeline_mode<synchronous>, transform_indices = @transform_19, window_bounds = array<i64: 1, 32>}, {pipeline_mode = #tpu.pipeline_mode<synchronous>, transform_indices = @transform_20, window_bounds = array<i64: 128, 32>}, {pipeline_mode = #tpu.pipeline_mode<synchronous>, transform_indices = @transform_21, window_bounds = array<i64: 128, 128>}, {transform_indices = @transform_22, window_bounds = array<i64: 1, 256, 32>}, {transform_indices = @transform_23, window_bounds = array<i64: 1, 256, 128>}]} {
    %c0 = arith.constant 0 : index
    %c0_0 = arith.constant 0 : index
    %c0_1 = arith.constant 0 : index
    %0 = vector.load %arg1[%c0, %c0_0, %c0_1] : memref<1x256x32xf32, #tpu.memory_space<vmem>>, vector<1x256x32xf32>
    %1 = vector.shape_cast %0 : vector<1x256x32xf32> to vector<256x32xf32>
    %cst = arith.constant dense<0.000000e+00> : vector<256xf32>
    %2 = vector.multi_reduction <add>, %1, %cst [1] : vector<256x32xf32> to vector<256xf32>
    %3 = vector.shape_cast %2 : vector<256xf32> to vector<256x1xf32>
    %cst_2 = arith.constant 3.200000e+01 : f32
    %4 = vector.broadcast %cst_2 : f32 to vector<256x1xf32>
    %5 = arith.divf %3, %4 : vector<256x1xf32>
    %6 = vector.broadcast %5 : vector<256x1xf32> to vector<256x32xf32>
    %7 = arith.subf %1, %6 : vector<256x32xf32>
    %8 = arith.mulf %7, %7 : vector<256x32xf32>
    %cst_3 = arith.constant dense<0.000000e+00> : vector<256xf32>
    %9 = vector.multi_reduction <add>, %8, %cst_3 [1] : vector<256x32xf32> to vector<256xf32>
    %10 = vector.shape_cast %9 : vector<256xf32> to vector<256x1xf32>
    %cst_4 = arith.constant 3.200000e+01 : f32
    %11 = vector.broadcast %cst_4 : f32 to vector<256x1xf32>
    %12 = arith.divf %10, %11 : vector<256x1xf32>
    %cst_5 = arith.constant 9.99999997E-7 : f32
    %13 = vector.broadcast %cst_5 : f32 to vector<256x1xf32>
    %14 = arith.addf %12, %13 : vector<256x1xf32>
    %15 = math.rsqrt %14 : vector<256x1xf32>
    %16 = vector.broadcast %15 : vector<256x1xf32> to vector<256x32xf32>
    %17 = arith.mulf %7, %16 : vector<256x32xf32>
    %18 = arith.truncf %17 : vector<256x32xf32> to vector<256x32xbf16>
    %c0_6 = arith.constant 0 : index
    %c0_7 = arith.constant 0 : index
    %19 = vector.load %arg5[%c0_6, %c0_7] : memref<32x32xbf16, #tpu.memory_space<vmem>>, vector<32x32xbf16>
    %cst_8 = arith.constant dense<0.000000e+00> : vector<256x32xf32>
    %20 = tpu.matmul %18, %19, %cst_8 {dimension_numbers = #tpu.dot_dimension_numbers<[1], [0], [0], [1], [0, 0, 1, 1], [], []>} : vector<256x32xbf16>, vector<32x32xbf16>, vector<256x32xf32> -> vector<256x32xf32>
    %c0_9 = arith.constant 0 : index
    %c0_10 = arith.constant 0 : index
    %21 = vector.load %arg6[%c0_9, %c0_10] : memref<1x32xf32, #tpu.memory_space<vmem>>, vector<1x32xf32>
    %22 = vector.broadcast %21 : vector<1x32xf32> to vector<256x32xf32>
    %23 = arith.addf %20, %22 : vector<256x32xf32>
    %c0_11 = arith.constant 0 : index
    %c0_12 = arith.constant 0 : index
    %c0_13 = arith.constant 0 : index
    %24 = vector.load %arg2[%c0_11, %c0_12, %c0_13] : memref<1x64x128xf32, #tpu.memory_space<vmem>>, vector<1x64x128xf32>
    %25 = vector.shape_cast %24 : vector<1x64x128xf32> to vector<64x128xf32>
    %c0_14 = arith.constant 0 : index
    %c0_15 = arith.constant 0 : index
    %26 = vector.load %arg3[%c0_14, %c0_15] : memref<128x4xbf16, #tpu.memory_space<vmem>>, vector<128x4xbf16>
    %c0_16 = arith.constant 0 : index
    %c0_17 = arith.constant 0 : index
    %27 = vector.load %arg4[%c0_16, %c0_17] : memref<4x128xbf16, #tpu.memory_space<vmem>>, vector<4x128xbf16>
    %28 = arith.truncf %25 : vector<64x128xf32> to vector<64x128xbf16>
    %cst_18 = arith.constant dense<0.000000e+00> : vector<64x4xf32>
    %29 = tpu.matmul %28, %26, %cst_18 {dimension_numbers = #tpu.dot_dimension_numbers<[1], [0], [0], [1], [0, 0, 1, 1], [], []>} : vector<64x128xbf16>, vector<128x4xbf16>, vector<64x4xf32> -> vector<64x4xf32>
    %cst_19 = arith.constant 3.125000e-02 : f32
    %30 = vector.broadcast %cst_19 : f32 to vector<64x4xf32>
    %31 = arith.mulf %29, %30 : vector<64x4xf32>
    %32 = arith.truncf %31 : vector<64x4xf32> to vector<64x4xbf16>
    %cst_20 = arith.constant dense<0.000000e+00> : vector<64x128xf32>
    %33 = tpu.matmul %32, %27, %cst_20 {dimension_numbers = #tpu.dot_dimension_numbers<[1], [0], [0], [1], [0, 0, 1, 1], [], []>} : vector<64x4xbf16>, vector<4x128xbf16>, vector<64x128xf32> -> vector<64x128xf32>
    %34 = arith.subf %25, %33 : vector<64x128xf32>
    %35 = arith.mulf %34, %34 : vector<64x128xf32>
    %36 = arith.truncf %35 : vector<64x128xf32> to vector<64x128xbf16>
    %cst_21 = arith.constant dense<0.000000e+00> : vector<64x4xf32>
    %37 = tpu.matmul %36, %26, %cst_21 {dimension_numbers = #tpu.dot_dimension_numbers<[1], [0], [0], [1], [0, 0, 1, 1], [], []>} : vector<64x128xbf16>, vector<128x4xbf16>, vector<64x4xf32> -> vector<64x4xf32>
    %cst_22 = arith.constant 3.125000e-02 : f32
    %38 = vector.broadcast %cst_22 : f32 to vector<64x4xf32>
    %39 = arith.mulf %37, %38 : vector<64x4xf32>
    %cst_23 = arith.constant 9.99999997E-7 : f32
    %40 = vector.broadcast %cst_23 : f32 to vector<64x4xf32>
    %41 = arith.addf %39, %40 : vector<64x4xf32>
    %42 = math.rsqrt %41 : vector<64x4xf32>
    %43 = arith.truncf %42 : vector<64x4xf32> to vector<64x4xbf16>
    %cst_24 = arith.constant dense<0.000000e+00> : vector<64x128xf32>
    %44 = tpu.matmul %43, %27, %cst_24 {dimension_numbers = #tpu.dot_dimension_numbers<[1], [0], [0], [1], [0, 0, 1, 1], [], []>} : vector<64x4xbf16>, vector<4x128xbf16>, vector<64x128xf32> -> vector<64x128xf32>
    %45 = arith.mulf %34, %44 : vector<64x128xf32>
    %46 = arith.truncf %45 : vector<64x128xf32> to vector<64x128xbf16>
    %c0_25 = arith.constant 0 : index
    %c0_26 = arith.constant 0 : index
    %47 = vector.load %arg7[%c0_25, %c0_26] : memref<128x32xbf16, #tpu.memory_space<vmem>>, vector<128x32xbf16>
    %cst_27 = arith.constant dense<0.000000e+00> : vector<64x32xf32>
    %48 = tpu.matmul %46, %47, %cst_27 {dimension_numbers = #tpu.dot_dimension_numbers<[1], [0], [0], [1], [0, 0, 1, 1], [], []>} : vector<64x128xbf16>, vector<128x32xbf16>, vector<64x32xf32> -> vector<64x32xf32>
    %c0_28 = arith.constant 0 : index
    %c0_29 = arith.constant 0 : index
    %49 = vector.load %arg8[%c0_28, %c0_29] : memref<1x32xf32, #tpu.memory_space<vmem>>, vector<1x32xf32>
    %50 = vector.broadcast %49 : vector<1x32xf32> to vector<64x32xf32>
    %51 = arith.addf %48, %50 : vector<64x32xf32>
    %cst_30 = arith.constant dense<0.000000e+00> : vector<64xf32>
    %52 = vector.multi_reduction <add>, %51, %cst_30 [1] : vector<64x32xf32> to vector<64xf32>
    %53 = vector.shape_cast %52 : vector<64xf32> to vector<64x1xf32>
    %cst_31 = arith.constant 3.200000e+01 : f32
    %54 = vector.broadcast %cst_31 : f32 to vector<64x1xf32>
    %55 = arith.divf %53, %54 : vector<64x1xf32>
    %56 = vector.broadcast %55 : vector<64x1xf32> to vector<64x32xf32>
    %57 = arith.subf %51, %56 : vector<64x32xf32>
    %58 = arith.mulf %57, %57 : vector<64x32xf32>
    %cst_32 = arith.constant dense<0.000000e+00> : vector<64xf32>
    %59 = vector.multi_reduction <add>, %58, %cst_32 [1] : vector<64x32xf32> to vector<64xf32>
    %60 = vector.shape_cast %59 : vector<64xf32> to vector<64x1xf32>
    %cst_33 = arith.constant 3.200000e+01 : f32
    %61 = vector.broadcast %cst_33 : f32 to vector<64x1xf32>
    %62 = arith.divf %60, %61 : vector<64x1xf32>
    %cst_34 = arith.constant 9.99999974E-6 : f32
    %63 = vector.broadcast %cst_34 : f32 to vector<64x1xf32>
    %64 = arith.addf %62, %63 : vector<64x1xf32>
    %65 = math.rsqrt %64 : vector<64x1xf32>
    %66 = vector.broadcast %65 : vector<64x1xf32> to vector<64x32xf32>
    %67 = arith.mulf %57, %66 : vector<64x32xf32>
    %68 = arith.truncf %67 : vector<64x32xf32> to vector<64x32xbf16>
    %c0_35 = arith.constant 0 : index
    %c0_36 = arith.constant 0 : index
    %69 = vector.load %arg9[%c0_35, %c0_36] : memref<32x32xbf16, #tpu.memory_space<vmem>>, vector<32x32xbf16>
    %cst_37 = arith.constant dense<0.000000e+00> : vector<64x32xf32>
    %70 = tpu.matmul %68, %69, %cst_37 {dimension_numbers = #tpu.dot_dimension_numbers<[1], [0], [0], [1], [0, 0, 1, 1], [], []>} : vector<64x32xbf16>, vector<32x32xbf16>, vector<64x32xf32> -> vector<64x32xf32>
    %c0_38 = arith.constant 0 : index
    %c0_39 = arith.constant 0 : index
    %71 = vector.load %arg10[%c0_38, %c0_39] : memref<1x32xf32, #tpu.memory_space<vmem>>, vector<1x32xf32>
    %72 = vector.broadcast %71 : vector<1x32xf32> to vector<64x32xf32>
    %73 = arith.addf %70, %72 : vector<64x32xf32>
    %c0_40 = arith.constant 0 : index
    %c0_41 = arith.constant 0 : index
    %74 = vector.load %arg11[%c0_40, %c0_41] : memref<32x32xbf16, #tpu.memory_space<vmem>>, vector<32x32xbf16>
    %cst_42 = arith.constant dense<0.000000e+00> : vector<64x32xf32>
    %75 = tpu.matmul %68, %74, %cst_42 {dimension_numbers = #tpu.dot_dimension_numbers<[1], [0], [0], [1], [0, 0, 1, 1], [], []>} : vector<64x32xbf16>, vector<32x32xbf16>, vector<64x32xf32> -> vector<64x32xf32>
    %c0_43 = arith.constant 0 : index
    %c0_44 = arith.constant 0 : index
    %76 = vector.load %arg12[%c0_43, %c0_44] : memref<1x32xf32, #tpu.memory_space<vmem>>, vector<1x32xf32>
    %77 = vector.broadcast %76 : vector<1x32xf32> to vector<64x32xf32>
    %78 = arith.addf %75, %77 : vector<64x32xf32>
    %c0_45 = arith.constant 0 : index
    %c0_46 = arith.constant 0 : index
    %79 = vector.load %arg21[%c0_45, %c0_46] : memref<128x32xbf16, #tpu.memory_space<vmem>>, vector<128x32xbf16>
    %80 = arith.truncf %73 : vector<64x32xf32> to vector<64x32xbf16>
    %81 = arith.truncf %78 : vector<64x32xf32> to vector<64x32xbf16>
    %82 = tpu.concatenate %80, %80 in 0 : vector<64x32xbf16>, vector<64x32xbf16> -> vector<128x32xbf16>
    %83 = tpu.concatenate %81, %81 in 0 : vector<64x32xbf16>, vector<64x32xbf16> -> vector<128x32xbf16>
    %84 = arith.mulf %82, %79 : vector<128x32xbf16>
    %85 = arith.mulf %83, %79 : vector<128x32xbf16>
    %86 = arith.truncf %23 : vector<256x32xf32> to vector<256x32xbf16>
    %cst_47 = arith.constant dense<0.000000e+00> : vector<256x128xf32>
    %87 = tpu.matmul %86, %84, %cst_47 {dimension_numbers = #tpu.dot_dimension_numbers<[1], [1], [0], [0], [0, 0, 1, 0], [], []>} : vector<256x32xbf16>, vector<128x32xbf16>, vector<256x128xf32> -> vector<256x128xf32>
    %cst_48 = arith.constant dense<0xFF800000> : vector<256xf32>
    %88 = vector.multi_reduction <maximumf>, %87, %cst_48 [1] : vector<256x128xf32> to vector<256xf32>
    %89 = vector.shape_cast %88 : vector<256xf32> to vector<256x1xf32>
    %90 = vector.broadcast %89 : vector<256x1xf32> to vector<256x128xf32>
    %91 = arith.subf %87, %90 : vector<256x128xf32>
    %92 = math.exp %91 : vector<256x128xf32>
    %93 = arith.truncf %92 : vector<256x128xf32> to vector<256x128xbf16>
    %c0_49 = arith.constant 0 : index
    %c0_50 = arith.constant 0 : index
    %94 = vector.load %arg22[%c0_49, %c0_50] : memref<128x128xbf16, #tpu.memory_space<vmem>>, vector<128x128xbf16>
    %cst_51 = arith.constant dense<0.000000e+00> : vector<256x128xf32>
    %95 = tpu.matmul %93, %94, %cst_51 {dimension_numbers = #tpu.dot_dimension_numbers<[1], [0], [0], [1], [0, 0, 1, 1], [], []>} : vector<256x128xbf16>, vector<128x128xbf16>, vector<256x128xf32> -> vector<256x128xf32>
    %cst_52 = arith.constant 1.000000e-30 : f32
    %96 = vector.broadcast %cst_52 : f32 to vector<256x128xf32>
    %97 = arith.maximumf %95, %96 : vector<256x128xf32>
    %98 = tpu.reciprocal %97 {approx = true} : vector<256x128xf32> -> vector<256x128xf32>
    %99 = arith.mulf %92, %98 : vector<256x128xf32>
    %100 = arith.truncf %99 : vector<256x128xf32> to vector<256x128xbf16>
    %c0_53 = arith.constant 0 : index
    %c0_54 = arith.constant 0 : index
    %c0_55 = arith.constant 0 : index
    %101 = vector.load %arg24[%c0_53, %c0_54, %c0_55] : memref<1x256x128xbf16, #tpu.memory_space<vmem>>, vector<1x256x128xbf16>
    %102 = vector.shape_cast %101 : vector<1x256x128xbf16> to vector<256x128xbf16>
    %103 = vector.shape_cast %100 : vector<256x128xbf16> to vector<1x256x128xbf16>
    tpu.vector_store %arg24[%c0_53, %c0_54, %c0_55], %103 {strides = array<i32>} : memref<1x256x128xbf16, #tpu.memory_space<vmem>>, vector<1x256x128xbf16>,
    %104 = arith.truncf %99 : vector<256x128xf32> to vector<256x128xbf16>
    %cst_56 = arith.constant dense<0.000000e+00> : vector<256x32xf32>
    %105 = tpu.matmul %104, %85, %cst_56 {dimension_numbers = #tpu.dot_dimension_numbers<[1], [0], [0], [1], [0, 0, 1, 1], [], []>} : vector<256x128xbf16>, vector<128x32xbf16>, vector<256x32xf32> -> vector<256x32xf32>
    %106 = arith.truncf %105 : vector<256x32xf32> to vector<256x32xbf16>
    %c0_57 = arith.constant 0 : index
    %c0_58 = arith.constant 0 : index
    %107 = vector.load %arg13[%c0_57, %c0_58] : memref<32x32xbf16, #tpu.memory_space<vmem>>, vector<32x32xbf16>
    %cst_59 = arith.constant dense<0.000000e+00> : vector<256x32xf32>
    %108 = tpu.matmul %106, %107, %cst_59 {dimension_numbers = #tpu.dot_dimension_numbers<[1], [0], [0], [1], [0, 0, 1, 1], [], []>} : vector<256x32xbf16>, vector<32x32xbf16>, vector<256x32xf32> -> vector<256x32xf32>
    %c0_60 = arith.constant 0 : index
    %c0_61 = arith.constant 0 : index
    %109 = vector.load %arg14[%c0_60, %c0_61] : memref<1x32xf32, #tpu.memory_space<vmem>>, vector<1x32xf32>
    %110 = vector.broadcast %109 : vector<1x32xf32> to vector<256x32xf32>
    %111 = arith.addf %108, %110 : vector<256x32xf32>
    %112 = arith.addf %1, %111 : vector<256x32xf32>
    %cst_62 = arith.constant dense<0.000000e+00> : vector<256xf32>
    %113 = vector.multi_reduction <add>, %112, %cst_62 [1] : vector<256x32xf32> to vector<256xf32>
    %114 = vector.shape_cast %113 : vector<256xf32> to vector<256x1xf32>
    %cst_63 = arith.constant 3.200000e+01 : f32
    %115 = vector.broadcast %cst_63 : f32 to vector<256x1xf32>
    %116 = arith.divf %114, %115 : vector<256x1xf32>
    %117 = vector.broadcast %116 : vector<256x1xf32> to vector<256x32xf32>
    %118 = arith.subf %112, %117 : vector<256x32xf32>
    %119 = arith.mulf %118, %118 : vector<256x32xf32>
    %cst_64 = arith.constant dense<0.000000e+00> : vector<256xf32>
    %120 = vector.multi_reduction <add>, %119, %cst_64 [1] : vector<256x32xf32> to vector<256xf32>
    %121 = vector.shape_cast %120 : vector<256xf32> to vector<256x1xf32>
    %cst_65 = arith.constant 3.200000e+01 : f32
    %122 = vector.broadcast %cst_65 : f32 to vector<256x1xf32>
    %123 = arith.divf %121, %122 : vector<256x1xf32>
    %cst_66 = arith.constant 9.99999997E-7 : f32
    %124 = vector.broadcast %cst_66 : f32 to vector<256x1xf32>
    %125 = arith.addf %123, %124 : vector<256x1xf32>
    %126 = math.rsqrt %125 : vector<256x1xf32>
    %127 = vector.broadcast %126 : vector<256x1xf32> to vector<256x32xf32>
    %128 = arith.mulf %118, %127 : vector<256x32xf32>
    %129 = arith.truncf %128 : vector<256x32xf32> to vector<256x32xbf16>
    %c0_67 = arith.constant 0 : index
    %c0_68 = arith.constant 0 : index
    %130 = vector.load %arg15[%c0_67, %c0_68] : memref<32x128xbf16, #tpu.memory_space<vmem>>, vector<32x128xbf16>
    %cst_69 = arith.constant dense<0.000000e+00> : vector<256x128xf32>
    %131 = tpu.matmul %129, %130, %cst_69 {dimension_numbers = #tpu.dot_dimension_numbers<[1], [0], [0], [1], [0, 0, 1, 1], [], []>} : vector<256x32xbf16>, vector<32x128xbf16>, vector<256x128xf32> -> vector<256x128xf32>
    %c0_70 = arith.constant 0 : index
    %c0_71 = arith.constant 0 : index
    %132 = vector.load %arg16[%c0_70, %c0_71] : memref<1x128xf32, #tpu.memory_space<vmem>>, vector<1x128xf32>
    %133 = vector.broadcast %132 : vector<1x128xf32> to vector<256x128xf32>
    %134 = arith.addf %131, %133 : vector<256x128xf32>
    %c0_72 = arith.constant 0 : index
    %c0_73 = arith.constant 0 : index
    %135 = vector.load %arg17[%c0_72, %c0_73] : memref<9x128xf32, #tpu.memory_space<vmem>>, vector<9x128xf32>
    %136 = tpu.iota {dimensions = array<i32: 0>} : vector<256x1xi32>
    %c16_i32 = arith.constant 16 : i32
    %c0_i32 = arith.constant 0 : i32
    %137 = arith.cmpi eq, %c16_i32, %c0_i32 : i32
    %c1_i32 = arith.constant 1 : i32
    %138 = arith.select %137, %c1_i32, %c16_i32 : i32
    %139 = vector.broadcast %138 : i32 to vector<256x1xi32>
    %140 = arith.remsi %136, %139 : vector<256x1xi32>
    %c0_i32_74 = arith.constant 0 : i32
    %141 = vector.broadcast %c0_i32_74 : i32 to vector<256x1xi32>
    %142 = arith.cmpi ne, %140, %141 : vector<256x1xi32>
    %c0_i32_75 = arith.constant 0 : i32
    %143 = vector.broadcast %c0_i32_75 : i32 to vector<256x1xi32>
    %144 = arith.cmpi slt, %140, %143 : vector<256x1xi32>
    %c0_i32_76 = arith.constant 0 : i32
    %145 = arith.cmpi slt, %138, %c0_i32_76 : i32
    %146 = vector.broadcast %145 : i1 to vector<256x1xi1>
    %147 = vector.broadcast %146 : vector<256x1xi1> to vector<256x1xi1>
    %148 = arith.xori %144, %147 : vector<256x1xi1>
    %149 = arith.andi %148, %142 : vector<256x1xi1>
    %150 = vector.broadcast %138 : i32 to vector<256x1xi32>
    %151 = arith.addi %140, %150 : vector<256x1xi32>
    %152 = arith.select %149, %151, %140 : vector<256x1xi1>, vector<256x1xi32>
    %c1_i32_77 = arith.constant 1 : i32
    %153 = vector.broadcast %c1_i32_77 : i32 to vector<256x1xi32>
    %154 = arith.cmpi sge, %152, %153 : vector<256x1xi32>
    %c14_i32 = arith.constant 14 : i32
    %155 = vector.broadcast %c14_i32 : i32 to vector<256x1xi32>
    %156 = arith.cmpi sle, %152, %155 : vector<256x1xi32>
    %c16_i32_78 = arith.constant 16 : i32
    %157 = vector.broadcast %c16_i32_78 : i32 to vector<256x1xi32>
    %158 = arith.cmpi sge, %136, %157 : vector<256x1xi32>
    %c240_i32 = arith.constant 240 : i32
    %159 = vector.broadcast %c240_i32 : i32 to vector<256x1xi32>
    %160 = arith.cmpi slt, %136, %159 : vector<256x1xi32>
    %161 = vector.extract_strided_slice %135 {offsets = [4, 0], sizes = [1, 128], strides = [1, 1]} : vector<9x128xf32> to vector<1x128xf32>
    %162 = vector.broadcast %161 : vector<1x128xf32> to vector<256x128xf32>
    %163 = arith.mulf %134, %162 : vector<256x128xf32>
    %c0_79 = arith.constant 0 : index
    %c0_80 = arith.constant 0 : index
    %164 = vector.load %arg18[%c0_79, %c0_80] : memref<1x128xf32, #tpu.memory_space<vmem>>, vector<1x128xf32>
    %165 = vector.broadcast %164 : vector<1x128xf32> to vector<256x128xf32>
    %166 = arith.addf %163, %165 : vector<256x128xf32>
    %c17_i32 = arith.constant 17 : i32
    %167 = tpu.dynamic_rotate %134 by %c17_i32 dim 0 : vector<256x128xf32>, i32 -> vector<256x128xf32>
    %168 = arith.andi %154, %158 : vector<256x1xi1>
    %cst_81 = arith.constant 0.000000e+00 : f32
    %169 = vector.shape_cast %168 : vector<256x1xi1> to vector<256x1xi1>
    %170 = vector.broadcast %169 : vector<256x1xi1> to vector<256x128xi1>
    %171 = vector.broadcast %cst_81 : f32 to vector<256x128xf32>
    %172 = arith.select %170, %167, %171 : vector<256x128xi1>, vector<256x128xf32>
    %173 = vector.extract_strided_slice %135 {offsets = [0, 0], sizes = [1, 128], strides = [1, 1]} : vector<9x128xf32> to vector<1x128xf32>
    %174 = vector.broadcast %173 : vector<1x128xf32> to vector<256x128xf32>
    %175 = arith.mulf %172, %174 : vector<256x128xf32>
    %176 = arith.addf %166, %175 : vector<256x128xf32>
    %c16_i32_82 = arith.constant 16 : i32
    %177 = tpu.dynamic_rotate %134 by %c16_i32_82 dim 0 : vector<256x128xf32>, i32 -> vector<256x128xf32>
    %cst_83 = arith.constant 0.000000e+00 : f32
    %178 = vector.shape_cast %158 : vector<256x1xi1> to vector<256x1xi1>
    %179 = vector.broadcast %178 : vector<256x1xi1> to vector<256x128xi1>
    %180 = vector.broadcast %cst_83 : f32 to vector<256x128xf32>
    %181 = arith.select %179, %177, %180 : vector<256x128xi1>, vector<256x128xf32>
    %182 = vector.extract_strided_slice %135 {offsets = [1, 0], sizes = [1, 128], strides = [1, 1]} : vector<9x128xf32> to vector<1x128xf32>
    %183 = vector.broadcast %182 : vector<1x128xf32> to vector<256x128xf32>
    %184 = arith.mulf %181, %183 : vector<256x128xf32>
    %185 = arith.addf %176, %184 : vector<256x128xf32>
    %c15_i32 = arith.constant 15 : i32
    %186 = tpu.dynamic_rotate %134 by %c15_i32 dim 0 : vector<256x128xf32>, i32 -> vector<256x128xf32>
    %187 = arith.andi %156, %158 : vector<256x1xi1>
    %cst_84 = arith.constant 0.000000e+00 : f32
    %188 = vector.shape_cast %187 : vector<256x1xi1> to vector<256x1xi1>
    %189 = vector.broadcast %188 : vector<256x1xi1> to vector<256x128xi1>
    %190 = vector.broadcast %cst_84 : f32 to vector<256x128xf32>
    %191 = arith.select %189, %186, %190 : vector<256x128xi1>, vector<256x128xf32>
    %192 = vector.extract_strided_slice %135 {offsets = [2, 0], sizes = [1, 128], strides = [1, 1]} : vector<9x128xf32> to vector<1x128xf32>
    %193 = vector.broadcast %192 : vector<1x128xf32> to vector<256x128xf32>
    %194 = arith.mulf %191, %193 : vector<256x128xf32>
    %195 = arith.addf %185, %194 : vector<256x128xf32>
    %c1_i32_85 = arith.constant 1 : i32
    %196 = tpu.dynamic_rotate %134 by %c1_i32_85 dim 0 : vector<256x128xf32>, i32 -> vector<256x128xf32>
    %cst_86 = arith.constant 0.000000e+00 : f32
    %197 = vector.shape_cast %154 : vector<256x1xi1> to vector<256x1xi1>
    %198 = vector.broadcast %197 : vector<256x1xi1> to vector<256x128xi1>
    %199 = vector.broadcast %cst_86 : f32 to vector<256x128xf32>
    %200 = arith.select %198, %196, %199 : vector<256x128xi1>, vector<256x128xf32>
    %201 = vector.extract_strided_slice %135 {offsets = [3, 0], sizes = [1, 128], strides = [1, 1]} : vector<9x128xf32> to vector<1x128xf32>
    %202 = vector.broadcast %201 : vector<1x128xf32> to vector<256x128xf32>
    %203 = arith.mulf %200, %202 : vector<256x128xf32>
    %204 = arith.addf %195, %203 : vector<256x128xf32>
    %c255_i32 = arith.constant 255 : i32
    %205 = tpu.dynamic_rotate %134 by %c255_i32 dim 0 : vector<256x128xf32>, i32 -> vector<256x128xf32>
    %cst_87 = arith.constant 0.000000e+00 : f32
    %206 = vector.shape_cast %156 : vector<256x1xi1> to vector<256x1xi1>
    %207 = vector.broadcast %206 : vector<256x1xi1> to vector<256x128xi1>
    %208 = vector.broadcast %cst_87 : f32 to vector<256x128xf32>
    %209 = arith.select %207, %205, %208 : vector<256x128xi1>, vector<256x128xf32>
    %210 = vector.extract_strided_slice %135 {offsets = [5, 0], sizes = [1, 128], strides = [1, 1]} : vector<9x128xf32> to vector<1x128xf32>
    %211 = vector.broadcast %210 : vector<1x128xf32> to vector<256x128xf32>
    %212 = arith.mulf %209, %211 : vector<256x128xf32>
    %213 = arith.addf %204, %212 : vector<256x128xf32>
    %c241_i32 = arith.constant 241 : i32
    %214 = tpu.dynamic_rotate %134 by %c241_i32 dim 0 : vector<256x128xf32>, i32 -> vector<256x128xf32>
    %215 = arith.andi %154, %160 : vector<256x1xi1>
    %cst_88 = arith.constant 0.000000e+00 : f32
    %216 = vector.shape_cast %215 : vector<256x1xi1> to vector<256x1xi1>
    %217 = vector.broadcast %216 : vector<256x1xi1> to vector<256x128xi1>
    %218 = vector.broadcast %cst_88 : f32 to vector<256x128xf32>
    %219 = arith.select %217, %214, %218 : vector<256x128xi1>, vector<256x128xf32>
    %220 = vector.extract_strided_slice %135 {offsets = [6, 0], sizes = [1, 128], strides = [1, 1]} : vector<9x128xf32> to vector<1x128xf32>
    %221 = vector.broadcast %220 : vector<1x128xf32> to vector<256x128xf32>
    %222 = arith.mulf %219, %221 : vector<256x128xf32>
    %223 = arith.addf %213, %222 : vector<256x128xf32>
    %c240_i32_89 = arith.constant 240 : i32
    %224 = tpu.dynamic_rotate %134 by %c240_i32_89 dim 0 : vector<256x128xf32>, i32 -> vector<256x128xf32>
    %cst_90 = arith.constant 0.000000e+00 : f32
    %225 = vector.shape_cast %160 : vector<256x1xi1> to vector<256x1xi1>
    %226 = vector.broadcast %225 : vector<256x1xi1> to vector<256x128xi1>
    %227 = vector.broadcast %cst_90 : f32 to vector<256x128xf32>
    %228 = arith.select %226, %224, %227 : vector<256x128xi1>, vector<256x128xf32>
    %229 = vector.extract_strided_slice %135 {offsets = [7, 0], sizes = [1, 128], strides = [1, 1]} : vector<9x128xf32> to vector<1x128xf32>
    %230 = vector.broadcast %229 : vector<1x128xf32> to vector<256x128xf32>
    %231 = arith.mulf %228, %230 : vector<256x128xf32>
    %232 = arith.addf %223, %231 : vector<256x128xf32>
    %c239_i32 = arith.constant 239 : i32
    %233 = tpu.dynamic_rotate %134 by %c239_i32 dim 0 : vector<256x128xf32>, i32 -> vector<256x128xf32>
    %234 = arith.andi %156, %160 : vector<256x1xi1>
    %cst_91 = arith.constant 0.000000e+00 : f32
    %235 = vector.shape_cast %234 : vector<256x1xi1> to vector<256x1xi1>
    %236 = vector.broadcast %235 : vector<256x1xi1> to vector<256x128xi1>
    %237 = vector.broadcast %cst_91 : f32 to vector<256x128xf32>
    %238 = arith.select %236, %233, %237 : vector<256x128xi1>, vector<256x128xf32>
    %239 = vector.extract_strided_slice %135 {offsets = [8, 0], sizes = [1, 128], strides = [1, 1]} : vector<9x128xf32> to vector<1x128xf32>
    %240 = vector.broadcast %239 : vector<1x128xf32> to vector<256x128xf32>
    %241 = arith.mulf %238, %240 : vector<256x128xf32>
    %242 = arith.addf %232, %241 : vector<256x128xf32>
    %cst_92 = arith.constant 5.000000e-01 : f32
    %243 = vector.broadcast %cst_92 : f32 to vector<256x128xf32>
    %244 = arith.mulf %243, %242 : vector<256x128xf32>
    %cst_93 = arith.constant 0.707106769 : f32
    %245 = vector.broadcast %cst_93 : f32 to vector<256x128xf32>
    %246 = arith.mulf %242, %245 : vector<256x128xf32>
    %cst_94 = arith.constant 0.000000e+00 : f32
    %247 = vector.broadcast %cst_94 : f32 to vector<256x128xf32>
    %248 = arith.cmpf oge, %246, %247 : vector<256x128xf32>
    %cst_95 = arith.constant 1.000000e+00 : f32
    %cst_96 = arith.constant -1.000000e+00 : f32
    %249 = vector.broadcast %cst_95 : f32 to vector<256x128xf32>
    %250 = vector.broadcast %cst_96 : f32 to vector<256x128xf32>
    %251 = arith.select %248, %249, %250 : vector<256x128xi1>, vector<256x128xf32>
    %252 = math.absf %246 : vector<256x128xf32>
    %cst_97 = arith.constant 0.327591091 : f32
    %253 = vector.broadcast %cst_97 : f32 to vector<256x128xf32>
    %254 = arith.mulf %253, %252 : vector<256x128xf32>
    %cst_98 = arith.constant 1.000000e+00 : f32
    %255 = vector.broadcast %cst_98 : f32 to vector<256x128xf32>
    %256 = arith.addf %255, %254 : vector<256x128xf32>
    %cst_99 = arith.constant 1.000000e+00 : f32
    %257 = vector.broadcast %cst_99 : f32 to vector<256x128xf32>
    %258 = arith.divf %257, %256 : vector<256x128xf32>
    %cst_100 = arith.constant 1.06140542 : f32
    %259 = vector.broadcast %cst_100 : f32 to vector<256x128xf32>
    %260 = arith.mulf %259, %258 : vector<256x128xf32>
    %cst_101 = arith.constant -1.45315206 : f32
    %261 = vector.broadcast %cst_101 : f32 to vector<256x128xf32>
    %262 = arith.addf %260, %261 : vector<256x128xf32>
    %263 = arith.mulf %262, %258 : vector<256x128xf32>
    %cst_102 = arith.constant 1.42141378 : f32
    %264 = vector.broadcast %cst_102 : f32 to vector<256x128xf32>
    %265 = arith.addf %263, %264 : vector<256x128xf32>
    %266 = arith.mulf %265, %258 : vector<256x128xf32>
    %cst_103 = arith.constant -0.284496725 : f32
    %267 = vector.broadcast %cst_103 : f32 to vector<256x128xf32>
    %268 = arith.addf %266, %267 : vector<256x128xf32>
    %269 = arith.mulf %268, %258 : vector<256x128xf32>
    %cst_104 = arith.constant 0.254829586 : f32
    %270 = vector.broadcast %cst_104 : f32 to vector<256x128xf32>
    %271 = arith.addf %269, %270 : vector<256x128xf32>
    %272 = arith.mulf %271, %258 : vector<256x128xf32>
    %cst_105 = arith.constant 0.000000e+00 : f32
    %273 = vector.broadcast %cst_105 : f32 to vector<256x128xf32>
    %274 = arith.subf %273, %252 : vector<256x128xf32>
    %275 = arith.mulf %274, %252 : vector<256x128xf32>
    %276 = math.exp %275 : vector<256x128xf32>
    %277 = arith.mulf %272, %276 : vector<256x128xf32>
    %cst_106 = arith.constant 1.000000e+00 : f32
    %278 = vector.broadcast %cst_106 : f32 to vector<256x128xf32>
    %279 = arith.subf %278, %277 : vector<256x128xf32>
    %280 = arith.mulf %251, %279 : vector<256x128xf32>
    %cst_107 = arith.constant 1.000000e+00 : f32
    %281 = vector.broadcast %cst_107 : f32 to vector<256x128xf32>
    %282 = arith.addf %281, %280 : vector<256x128xf32>
    %283 = arith.mulf %244, %282 : vector<256x128xf32>
    %284 = arith.truncf %283 : vector<256x128xf32> to vector<256x128xbf16>
    %c0_108 = arith.constant 0 : index
    %c0_109 = arith.constant 0 : index
    %285 = vector.load %arg19[%c0_108, %c0_109] : memref<128x32xbf16, #tpu.memory_space<vmem>>, vector<128x32xbf16>
    %cst_110 = arith.constant dense<0.000000e+00> : vector<256x32xf32>
    %286 = tpu.matmul %284, %285, %cst_110 {dimension_numbers = #tpu.dot_dimension_numbers<[1], [0], [0], [1], [0, 0, 1, 1], [], []>} : vector<256x128xbf16>, vector<128x32xbf16>, vector<256x32xf32> -> vector<256x32xf32>
    %c0_111 = arith.constant 0 : index
    %c0_112 = arith.constant 0 : index
    %287 = vector.load %arg20[%c0_111, %c0_112] : memref<1x32xf32, #tpu.memory_space<vmem>>, vector<1x32xf32>
    %288 = vector.broadcast %287 : vector<1x32xf32> to vector<256x32xf32>
    %289 = arith.addf %286, %288 : vector<256x32xf32>
    %290 = arith.addf %112, %289 : vector<256x32xf32>
    %c0_113 = arith.constant 0 : index
    %c0_114 = arith.constant 0 : index
    %c0_115 = arith.constant 0 : index
    %291 = vector.load %arg23[%c0_113, %c0_114, %c0_115] : memref<1x256x32xf32, #tpu.memory_space<vmem>>, vector<1x256x32xf32>
    %292 = vector.shape_cast %291 : vector<1x256x32xf32> to vector<256x32xf32>
    %293 = vector.shape_cast %290 : vector<256x32xf32> to vector<1x256x32xf32>
    tpu.vector_store %arg23[%c0_113, %c0_114, %c0_115], %293 {strides = array<i32>} : memref<1x256x32xf32, #tpu.memory_space<vmem>>, vector<1x256x32xf32>,
    return
  }
  func.func @transform_0(%arg0: i32) -> (i32, i32, i32) {
    %c0_i32 = arith.constant 0 : i32
    %c0_i32_0 = arith.constant 0 : i32
    %c0_i32_1 = arith.constant 0 : i32
    return %arg0, %c0_i32, %c0_i32_0 : i32, i32, i32
  }
  func.func @transform_1(%arg0: i32) -> (i32, i32, i32) {
    %c0_i32 = arith.constant 0 : i32
    %c0_i32_0 = arith.constant 0 : i32
    %c0_i32_1 = arith.constant 0 : i32
    return %arg0, %c0_i32, %c0_i32_0 : i32, i32, i32
  }
  func.func @transform_2(%arg0: i32) -> (i32, i32) {
    %c0_i32 = arith.constant 0 : i32
    %c0_i32_0 = arith.constant 0 : i32
    %c0_i32_1 = arith.constant 0 : i32
    return %c0_i32, %c0_i32_0 : i32, i32
  }
  func.func @transform_3(%arg0: i32) -> (i32, i32) {
    %c0_i32 = arith.constant 0 : i32
    %c0_i32_0 = arith.constant 0 : i32
    %c0_i32_1 = arith.constant 0 : i32
    return %c0_i32, %c0_i32_0 : i32, i32
  }
  func.func @transform_4(%arg0: i32) -> (i32, i32) {
    %c0_i32 = arith.constant 0 : i32
    %c0_i32_0 = arith.constant 0 : i32
    %c0_i32_1 = arith.constant 0 : i32
    return %c0_i32, %c0_i32_0 : i32, i32
  }
  func.func @transform_5(%arg0: i32) -> (i32, i32) {
    %c0_i32 = arith.constant 0 : i32
    %c0_i32_0 = arith.constant 0 : i32
    %c0_i32_1 = arith.constant 0 : i32
    return %c0_i32, %c0_i32_0 : i32, i32
  }
  func.func @transform_6(%arg0: i32) -> (i32, i32) {
    %c0_i32 = arith.constant 0 : i32
    %c0_i32_0 = arith.constant 0 : i32
    %c0_i32_1 = arith.constant 0 : i32
    return %c0_i32, %c0_i32_0 : i32, i32
  }
  func.func @transform_7(%arg0: i32) -> (i32, i32) {
    %c0_i32 = arith.constant 0 : i32
    %c0_i32_0 = arith.constant 0 : i32
    %c0_i32_1 = arith.constant 0 : i32
    return %c0_i32, %c0_i32_0 : i32, i32
  }
  func.func @transform_8(%arg0: i32) -> (i32, i32) {
    %c0_i32 = arith.constant 0 : i32
    %c0_i32_0 = arith.constant 0 : i32
    %c0_i32_1 = arith.constant 0 : i32
    return %c0_i32, %c0_i32_0 : i32, i32
  }
  func.func @transform_9(%arg0: i32) -> (i32, i32) {
    %c0_i32 = arith.constant 0 : i32
    %c0_i32_0 = arith.constant 0 : i32
    %c0_i32_1 = arith.constant 0 : i32
    return %c0_i32, %c0_i32_0 : i32, i32
  }
  func.func @transform_10(%arg0: i32) -> (i32, i32) {
    %c0_i32 = arith.constant 0 : i32
    %c0_i32_0 = arith.constant 0 : i32
    %c0_i32_1 = arith.constant 0 : i32
    return %c0_i32, %c0_i32_0 : i32, i32
  }
  func.func @transform_11(%arg0: i32) -> (i32, i32) {
    %c0_i32 = arith.constant 0 : i32
    %c0_i32_0 = arith.constant 0 : i32
    %c0_i32_1 = arith.constant 0 : i32
    return %c0_i32, %c0_i32_0 : i32, i32
  }
  func.func @transform_12(%arg0: i32) -> (i32, i32) {
    %c0_i32 = arith.constant 0 : i32
    %c0_i32_0 = arith.constant 0 : i32
    %c0_i32_1 = arith.constant 0 : i32
    return %c0_i32, %c0_i32_0 : i32, i32
  }
  func.func @transform_13(%arg0: i32) -> (i32, i32) {
    %c0_i32 = arith.constant 0 : i32
    %c0_i32_0 = arith.constant 0 : i32
    %c0_i32_1 = arith.constant 0 : i32
    return %c0_i32, %c0_i32_0 : i32, i32
  }
  func.func @transform_14(%arg0: i32) -> (i32, i32) {
    %c0_i32 = arith.constant 0 : i32
    %c0_i32_0 = arith.constant 0 : i32
    %c0_i32_1 = arith.constant 0 : i32
    return %c0_i32, %c0_i32_0 : i32, i32
  }
  func.func @transform_15(%arg0: i32) -> (i32, i32) {
    %c0_i32 = arith.constant 0 : i32
    %c0_i32_0 = arith.constant 0 : i32
    %c0_i32_1 = arith.constant 0 : i32
    return %c0_i32, %c0_i32_0 : i32, i32
  }
  func.func @transform_16(%arg0: i32) -> (i32, i32) {
    %c0_i32 = arith.constant 0 : i32
    %c0_i32_0 = arith.constant 0 : i32
    %c0_i32_1 = arith.constant 0 : i32
    return %c0_i32, %c0_i32_0 : i32, i32
  }
  func.func @transform_17(%arg0: i32) -> (i32, i32) {
    %c0_i32 = arith.constant 0 : i32
    %c0_i32_0 = arith.constant 0 : i32
    %c0_i32_1 = arith.constant 0 : i32
    return %c0_i32, %c0_i32_0 : i32, i32
  }
  func.func @transform_18(%arg0: i32) -> (i32, i32) {
    %c0_i32 = arith.constant 0 : i32
    %c0_i32_0 = arith.constant 0 : i32
    %c0_i32_1 = arith.constant 0 : i32
    return %c0_i32, %c0_i32_0 : i32, i32
  }
  func.func @transform_19(%arg0: i32) -> (i32, i32) {
    %c0_i32 = arith.constant 0 : i32
    %c0_i32_0 = arith.constant 0 : i32
    %c0_i32_1 = arith.constant 0 : i32
    return %c0_i32, %c0_i32_0 : i32, i32
  }
  func.func @transform_20(%arg0: i32) -> (i32, i32) {
    %c0_i32 = arith.constant 0 : i32
    %c0_i32_0 = arith.constant 0 : i32
    %c0_i32_1 = arith.constant 0 : i32
    return %c0_i32, %c0_i32_0 : i32, i32
  }
  func.func @transform_21(%arg0: i32) -> (i32, i32) {
    %c0_i32 = arith.constant 0 : i32
    %c0_i32_0 = arith.constant 0 : i32
    %c0_i32_1 = arith.constant 0 : i32
    return %c0_i32, %c0_i32_0 : i32, i32
  }
  func.func @transform_22(%arg0: i32) -> (i32, i32, i32) {
    %c0_i32 = arith.constant 0 : i32
    %c0_i32_0 = arith.constant 0 : i32
    %c0_i32_1 = arith.constant 0 : i32
    return %arg0, %c0_i32, %c0_i32_0 : i32, i32, i32
  }
  func.func @transform_23(%arg0: i32) -> (i32, i32, i32) {
    %c0_i32 = arith.constant 0 : i32
    %c0_i32_0 = arith.constant 0 : i32
    %c0_i32_1 = arith.constant 0 : i32
    return %arg0, %c0_i32, %c0_i32_0 : i32, i32, i32
  }
}

</mosaic_0001>

<bundles_post_ra>
// kernel: tpu_custom_call.1
= control target key start
LH: loop header
LB: loop body
LE: loop exit
PB: predicated region body
PF: predicated region fallthrough
CT: control target
= control target key end

     0   :  { %s14154_s0 = inlined_call_operand.vmem [shape: f32[2,256,32], index: 0, kind: input, shape index: {}]   ;;  %s14155_s1 = inlined_call_operand.vmem [shape: f32[2,64,128], index: 1, kind: input, shape index: {}]   ;;  %s14156_s2 = inlined_call_operand.vmem [shape: bf16[128,4], index: 2, kind: input, shape index: {}]   ;;  %s14157_s3 = inlined_call_operand.vmem [shape: bf16[4,128], index: 3, kind: input, shape index: {}]   ;;  %s14158_s4 = inlined_call_operand.vmem [shape: bf16[32,32], index: 4, kind: input, shape index: {}]   ;;  %s14159_s5 = inlined_call_operand.vmem [shape: f32[1,32], index: 5, kind: input, shape index: {}]   ;;  %s14160_s6 = inlined_call_operand.vmem [shape: bf16[128,32], index: 6, kind: input, shape index: {}]   ;;  %s14161_s7 = inlined_call_operand.vmem [shape: f32[1,32], index: 7, kind: input, shape index: {}]   ;;  %s14162_s8 = inlined_call_operand.vmem [shape: bf16[32,32], index: 8, kind: input, shape index: {}]   ;;  %s14163_s9 = inlined_call_operand.vmem [shape: f32[1,32], index: 9, kind: input, shape index: {}]   ;;  %s14164_s10 = inlined_call_operand.vmem [shape: bf16[32,32], index: 10, kind: input, shape index: {}]   ;;  %s14165_s11 = inlined_call_operand.vmem [shape: f32[1,32], index: 11, kind: input, shape index: {}]   ;;  %s14166_s12 = inlined_call_operand.vmem [shape: bf16[32,32], index: 12, kind: input, shape index: {}]   ;;  %s14167_s13 = inlined_call_operand.vmem [shape: f32[1,32], index: 13, kind: input, shape index: {}]   ;;  %s14168_s14 = inlined_call_operand.vmem [shape: bf16[32,128], index: 14, kind: input, shape index: {}]   ;;  %s14169_s15 = inlined_call_operand.vmem [shape: f32[1,128], index: 15, kind: input, shape index: {}]   ;;  %s14170_s16 = inlined_call_operand.vmem [shape: f32[9,128], index: 16, kind: input, shape index: {}]   ;;  %s14171_s17 = inlined_call_operand.vmem [shape: f32[1,128], index: 17, kind: input, shape index: {}]   ;;  %s14172_s18 = inlined_call_operand.vmem [shape: bf16[128,32], index: 18, kind: input, shape index: {}]   ;;  %s14173_s19 = inlined_call_operand.vmem [shape: f32[1,32], index: 19, kind: input, shape index: {}]   ;;  %s14174_s20 = inlined_call_operand.vmem [shape: bf16[128,32], index: 20, kind: input, shape index: {}]   ;;  %s14175_s21 = inlined_call_operand.vmem [shape: bf16[128,128], index: 21, kind: input, shape index: {}]   ;;  %s14176_s22 = inlined_call_operand.vmem [shape: f32[2,256,32], index: 22, kind: output, shape index: {0}]   ;;  %s14177_s23 = inlined_call_operand.hbm [shape: bf16[2,256,128], index: 23, kind: output, shape index: {1}]  }
   0x1   :  { %14361 = sst [smem:[#allocation175_spill]] %s14154_s0 }
   0x2   :  { %14362 = sst [smem:[#allocation176_spill]] %s14155_s1 }
   0x3   :  { %14363 = sst [smem:[#allocation177_spill]] %s14156_s2 }
   0x4   :  { %14364 = sst [smem:[#allocation178_spill]] %s14157_s3 }
   0x5   :  { %14365 = sst [smem:[#allocation179_spill]] %s14158_s4 }
   0x6   :  { %14366 = sst [smem:[#allocation180_spill]] %s14159_s5 }
   0x7   :  { %14367 = sst [smem:[#allocation181_spill]] %s14160_s6 }
   0x8   :  { %14368 = sst [smem:[#allocation182_spill]] %s14161_s7 }
   0x9   :  { %14369 = sst [smem:[#allocation183_spill]] %s14162_s8 }
   0xa   :  { %14370 = sst [smem:[#allocation184_spill]] %s14163_s9 }
   0xb   :  { %29 = vsyncpa [#allocation3], 0 }
   0xc   :  { %31 = vsyncpa [#allocation3 + $0x1], 0  ;;  %s9595_s4 = smov 0   ;;  %s9597_s30 = smov 0  }
   0xd   :  { %s9599_s24 = smov 0   ;;  %s9601_s25 = smov 0  }
   0xe LB: > { %14371 = sst [smem:[#allocation5_spill]] %s9465_s24  ;;  %s9616_s5 = sadd.s32 4294967295, %s9469_s25   ;;  %s9469_s25 = sphi %s9601_s25, %s14992_s25   ;;  %s9465_s24 = sphi %s9599_s24, %s14994_s24   ;;  %s9461_s30 = sphi %s9597_s30, %s14996_s30   ;;  %s9457_s4 = sphi %s9595_s4, %s14995_s4  }
   0xf   : > { %s7899_s1 = sadd.s32 4294967294, %s9469_s25   ;;  %s9620_s26 = sadd.s32 1, %s9469_s25  }
  0x10   : > { %14372 = sst [smem:[#allocation6_spill]] %s9620_s26  ;;  %s542_s2 = sadd.s32 1, %s9465_s24 }
  0x11   : > { %s539_s6 = ssub.s32 %s9469_s25, %s9620_s26  ;;  %p552_p0 = scmp.ne.s32.totalorder %s9465_s24, %s9461_s30 }
  0x12   : > { %p540_p1 = scmp.eq.s32.totalorder %s539_s6, 0  ;;  %p553_p2 = scmp.eq.s32.totalorder %s9616_s5, 1 }
  0x13   : > { %p558_p3 = scmp.ne.s32.totalorder %s9461_s30, %s9457_s4  ;;  %p559_p4 = scmp.eq.s32.totalorder %s7899_s1, 1 }
  0x14   : > { %s9631_s27 = scalar_select %p540_p1, %s9465_s24, %s542_s2  }
  0x15   : > { %p9633_p5 = por %p553_p2, %p552_p0  ;;  %p9637_p6 = por %p559_p4, %p558_p3 }
  0x16   : > { %14373 = sst [smem:[#allocation7_spill]] %s9631_s27  ;;  %p7902_p7 = scmp.ge.s32.totalorder %s9469_s25, 1 }
  0x17   : > { %s14375_s28 = scalar_select %p9637_p6, 1, 0 }
  0x18   : > { %p653_p8 = scmp.lt.s32.totalorder %s9469_s25, 3 }
  0x19   : > { %14376 = sst [smem:[#allocation8_spill]] %s14375_s28 }
  0x1a   : > { %p654_p9 = pnand %p7902_p7, %p653_p8 }
  0x1c   : > { %657 = sbr.rel (%p654_p9) target bundleno = 3868 (0xf1c), region = 108 }
  0x21   : > { %s14377_s0 = sld [smem:[#allocation177_spill]]  ;;  %p727_p10 = scmp.lt.s32.totalorder %s9616_s5, 1  ;;  %vm14278_vm0 = vcmask 261120   ;;  %vm1608_vm1 = vcmask 1041408   ;;  %vm1595_vm2 = vcmask 31744  }
  0x22   : > { %s14378_s2 = sld [smem:[#allocation175_spill]] }
  0x23   : > { %s9654_s6 = scalar_select %p727_p10, %s9616_s5, 1 }
  0x24   : > { %s14380_s1 = sld [smem:[#allocation178_spill]] }
  0x25   : > { %s14184_s29 = sshll.u32 %s9654_s6, 8  ;;  %s8087_s24 = sshll.u32 %s9654_s6, 6 }
  0x26   : > { %s14381_s3 = sld [smem:[#allocation179_spill]] }
  0x27   : > { %v9646_v0 = vld [vmem:[%s14377_s0 + $0x38] sm:$0xff]   ;;  %v8894_v1 = vld [vmem:[%s14377_s0 + $0x30] sm:$0xff]   ;;  %v8895_v2 = vld [vmem:[%s14377_s0 + $0x28] sm:$0xff]   ;;  %s14382_s27 = sld [smem:[#allocation180_spill]] }
  0x28   : > { %8461 = vmatprep.subr.bf16.mxu1 %v9646_v0  ;;  %s9666_s26 = scalar_lea.vmem %s14378_s2, %s14184_s29  ;;  %v8896_v9 = vld [vmem:[%s14377_s0 + $0x20] sm:$0xff]   ;;  %s14379_s29 = sld [smem:[#allocation176_spill]]  ;;  %v8897_v14 = vld [vmem:[%s14377_s0 + $0x18] sm:$0xff]   ;;  %v8898_v20 = vld [vmem:[%s14377_s0 + $0x10] sm:$0xff]  }
  0x29   : > { %8462 = vmatpush3.bf16.msra.mxu1 %v9646_v0  ;;  %v9669_v3 = vld [vmem:[%s9666_s26] sm:$0xff]  ;;  %v9672_v4 = vld [vmem:[%s9666_s26 + $0x10] sm:$0xff]  ;;  %v9675_v5 = vld [vmem:[%s9666_s26 + $0x8] sm:$0xff]  ;;  %s14385_s8 = sld [smem:[#allocation183_spill]] }
  0x2a   : > { %8463 = vmatprep.subr.bf16.mxu1 %v8894_v1  ;;  %v776_v6 = vsel %vm14278_vm0, %v9669_v3, 0.0  ;;  %v782_v7 = vsel %vm14278_vm0, %v9672_v4, 0.0  ;;  %v9682_v8 = vld [vmem:[%s9666_s26 + $0x18] sm:$0xff]  ;;  %v779_v10 = vsel %vm14278_vm0, %v9675_v5, 0.0  ;;  %v9693_v12 = vld [vmem:[%s9666_s26 + $0x20] sm:$0xff]  ;;  %v9701_v13 = vld [vmem:[%s9666_s26 + $0x28] sm:$0xff] }
  0x2b   : > { %777 = vadd.xlane.f32.xlu0 %v776_v6  ;;  %783 = vadd.xlane.f32.xlu1 %v782_v7  ;;  %v785_v11 = vsel %vm14278_vm0, %v9682_v8, 0.0  ;;  %v788_v15 = vsel %vm14278_vm0, %v9693_v12, 0.0  ;;  %v791_v18 = vsel %vm14278_vm0, %v9701_v13, 0.0  ;;  %v9713_v19 = vld [vmem:[%s9666_s26 + $0x30] sm:$0xff]  ;;  %v9719_v21 = vld [vmem:[%s9666_s26 + $0x38] sm:$0xff]  ;;  %v9722_v23 = vld [vmem:[%s9666_s26 + $0x40] sm:$0xff] }
  0x2c   : > { %v9725_v24 = vld [vmem:[%s9666_s26 + $0x48] sm:$0xff]  ;;  %v9728_v25 = vld [vmem:[%s9666_s26 + $0x50] sm:$0xff]  ;;  %v9731_v26 = vld [vmem:[%s9666_s26 + $0x58] sm:$0xff]  ;;  %v794_v29 = vsel %vm14278_vm0, %v9713_v19, 0.0  ;;  %v797_v33 = vsel %vm14278_vm0, %v9719_v21, 0.0  ;;  %v800_v37 = vsel %vm14278_vm0, %v9722_v23, 0.0 }
  0x2d   : > { %8464 = vmatpush3.bf16.msra.mxu1 %v8894_v1  ;;  %v9734_v27 = vld [vmem:[%s9666_s26 + $0x60] sm:$0xff]  ;;  %v9737_v28 = vld [vmem:[%s9666_s26 + $0x68] sm:$0xff]  ;;  %v9742_v30 = vld [vmem:[%s9666_s26 + $0x70] sm:$0xff]  ;;  %v803_v38 = vsel %vm14278_vm0, %v9725_v24, 0.0  ;;  %v806_v39 = vsel %vm14278_vm0, %v9728_v25, 0.0  ;;  %v809_v44 = vsel %vm14278_vm0, %v9731_v26, 0.0 }
  0x2e   : > { %8465 = vmatprep.subr.bf16.mxu1 %v8895_v2  ;;  %s9698_s28 = scalar_lea.vmem %s14379_s29, %s8087_s24  ;;  %v9745_v31 = vld [vmem:[%s9666_s26 + $0x78] sm:$0xff]  ;;  %v9748_v32 = vld [vmem:[%s9666_s26 + $0x80] sm:$0xff]  ;;  %v9753_v34 = vld [vmem:[%s9666_s26 + $0x88] sm:$0xff]  ;;  %v812_v45 = vsel %vm14278_vm0, %v9734_v27, 0.0  ;;  %v815_v46 = vsel %vm14278_vm0, %v9737_v28, 0.0  ;;  %v818_v47 = vsel %vm14278_vm0, %v9742_v30, 0.0 }
  0x2f   : > { %780 = vadd.xlane.f32.xlu0 %v779_v10  ;;  %786 = vadd.xlane.f32.xlu1 %v785_v11  ;;  %v1441_v16 = vld [vmem:[%s9698_s28] sm:$0xff]  ;;  %v1442_v17 = vld [vmem:[%s9698_s28 + $0x8] sm:$0xff]  ;;  %v9756_v35 = vld [vmem:[%s9666_s26 + $0x90] sm:$0xff]  ;;  %v821_v48 = vsel %vm14278_vm0, %v9745_v31, 0.0  ;;  %v824_v49 = vsel %vm14278_vm0, %v9748_v32, 0.0  ;;  %v827_v50 = vsel %vm14278_vm0, %v9753_v34, 0.0 }
  0x30   : > { %v1466_v22 = vpack.c.bf16 %v1442_v17, %v1441_v16  ;;  %v9759_v36 = vld [vmem:[%s9666_s26 + $0x98] sm:$0xff]  ;;  %v9768_v40 = vld [vmem:[%s9666_s26 + $0xa0] sm:$0xff]  ;;  %v9771_v41 = vld [vmem:[%s9666_s26 + $0xa8] sm:$0xff]  ;;  %v830_v51 = vsel %vm14278_vm0, %v9756_v35, 0.0  ;;  %s14384_s24 = sld [smem:[#allocation182_spill]] }
  0x31   : > { %8466 = vmatpush3.bf16.msra.mxu1 %v8895_v2  ;;  %v9774_v42 = vld [vmem:[%s9666_s26 + $0xb0] sm:$0xff]  ;;  %v8899_v43 = vld [vmem:[%s14377_s0 + $0x8] sm:$0xff]   ;;  %v8900_v52 = vld [vmem:[%s14377_s0] sm:$0xff]   ;;  %v833_v53 = vsel %vm14278_vm0, %v9759_v36, 0.0  ;;  %v836_v54 = vsel %vm14278_vm0, %v9768_v40, 0.0  ;;  %v839_v55 = vsel %vm14278_vm0, %v9771_v41, 0.0 }
  0x32   : > { %8467 = vmatprep.subr.bf16.mxu1 %v8896_v9  ;;  %8477 = vmatprep.mubr.bf16.mxu1 %v1466_v22  ;;  %v842_v56 = vsel %vm14278_vm0, %v9774_v42, 0.0  ;;  %v1443_v57 = vld [vmem:[%s9698_s28 + $0x10] sm:$0xff]  ;;  %v1444_v58 = vld [vmem:[%s9698_s28 + $0x18] sm:$0xff]  ;;  %v1445_v59 = vld [vmem:[%s9698_s28 + $0x20] sm:$0xff]  ;;  %s14386_s9 = sld [smem:[#allocation184_spill]] }
  0x33   : > { %789 = vadd.xlane.f32.xlu0 %v788_v15  ;;  %792 = vadd.xlane.f32.xlu1 %v791_v18  ;;  %v1446_v60 = vld [vmem:[%s9698_s28 + $0x28] sm:$0xff]  ;;  %v1467_v61 = vpack.c.bf16 %v1444_v58, %v1443_v57  ;;  %v1447_v63 = vld [vmem:[%s9698_s28 + $0x30] sm:$0xff]  ;;  %v1448_v1 = vld [vmem:[%s9698_s28 + $0x38] sm:$0xff] }
  0x34   : > { %v1468_v62 = vpack.c.bf16 %v1446_v60, %v1445_v59  ;;  %v1469_v2 = vpack.c.bf16 %v1448_v1, %v1447_v63  ;;  %v9813_v6 = vld [vmem:[%s9666_s26 + $0xb8] sm:$0xff]  ;;  %v9821_v10 = vld [vmem:[%s9666_s26 + $0xc8] sm:$0xff]  ;;  %v9828_v15 = vld [vmem:[%s9666_s26 + $0xd0] sm:$0xff] }
  0x35   : > { %8468 = vmatpush3.bf16.msra.mxu1 %v8896_v9  ;;  %v845_v7 = vsel %vm14278_vm0, %v9813_v6, 0.0  ;;  %v9818_v9 = vld [vmem:[%s9666_s26 + $0xc0] sm:$0xff]  ;;  %v9831_v16 = vld [vmem:[%s9666_s26 + $0xd8] sm:$0xff]  ;;  %v854_v17 = vsel %vm14278_vm0, %v9828_v15, 0.0  ;;  %v9841_v22 = vld [vmem:[%s9666_s26 + $0xe8] sm:$0xff] }
  0x36   : > { %8469 = vmatprep.subr.bf16.mxu1 %v8897_v14  ;;  %v848_v11 = vsel %vm14278_vm0, %v9818_v9, 0.0  ;;  %v857_v18 = vsel %vm14278_vm0, %v9831_v16, 0.0 }
  0x37   : > { %795 = vadd.xlane.f32.xlu0 %v794_v29  ;;  %798 = vadd.xlane.f32.xlu1 %v797_v33  ;;  %v863_v33 = vsel %vm14278_vm0, %v9841_v22, 0.0 }
  0x39   : > { %8470 = vmatpush3.bf16.msra.mxu1 %v8897_v14  ;;  %v851_v14 = vsel %vm14278_vm0, %v9821_v10, 0.0 }
  0x3a   : > { %8471 = vmatprep.subr.bf16.mxu1 %v8898_v20 }
  0x3b   : > { %801 = vadd.xlane.f32.xlu0 %v800_v37  ;;  %804 = vadd.xlane.f32.xlu1 %v803_v38  ;;  %v9848_v37 = vld [vmem:[%s9666_s26 + $0xf0] sm:$0xff]  ;;  %v9851_v38 = vld [vmem:[%s9666_s26 + $0xf8] sm:$0xff] }
  0x3d   : > { %8472 = vmatpush3.bf16.msra.mxu1 %v8898_v20  ;;  %v9838_v20 = vld [vmem:[%s9666_s26 + $0xe0] sm:$0xff] }
  0x3e   : > { %8473 = vmatprep.subr.bf16.mxu1 %v8899_v43  ;;  %v860_v29 = vsel %vm14278_vm0, %v9838_v20, 0.0 }
  0x3f   : > { %807 = vadd.xlane.f32.xlu0 %v806_v39  ;;  %810 = vadd.xlane.f32.xlu1 %v809_v44  ;;  %v866_v39 = vsel %vm14278_vm0, %v9848_v37, 0.0  ;;  %v9860_v44 = vld [vmem:[%s14380_s1] sm:$0x3]  ;;  %s14383_s1 = sld [smem:[#allocation181_spill]] }
  0x41   : > { %8474 = vmatpush3.bf16.msra.mxu1 %v8899_v43  ;;  %v869_v43 = vsel %vm14278_vm0, %v9851_v38, 0.0 }
  0x42   : > { %8475 = vmatprep.subr.bf16.mxu1 %v8900_v52 }
  0x43   : > { %813 = vadd.xlane.f32.xlu0 %v812_v45  ;;  %816 = vadd.xlane.f32.xlu1 %v815_v46  ;;  %v9866_v45 = vsel %vm1608_vm1, %v9860_v44, 0 }
  0x45   : > { %8476 = vmatpush3.bf16.msra.mxu1 %v8900_v52 }
  0x46   : > { %8841 = vmatprep.subr.msk.bf16.mxu1 %vm1608_vm1, %v9860_v44 }
  0x47   : > { %819 = vadd.xlane.f32.xlu0 %v818_v47  ;;  %822 = vadd.xlane.f32.xlu1 %v821_v48 }
  0x48   : > { %8478 = vmatmul.mubr.bf16.vlgmr.msra.gmra.mxu1 %v1467_v61 }
  0x49   : > { %8481 = vmatprep.mubr.bf16.mxu1 %v1468_v62  ;;  %8486 = vmatpush3.bf16.msra.mxu1 %v9866_v45 }
  0x4b   : > { %825 = vadd.xlane.f32.xlu0 %v824_v49  ;;  %828 = vadd.xlane.f32.xlu1 %v827_v50 }
  0x4f   : > { %831 = vadd.xlane.f32.xlu0 %v830_v51  ;;  %834 = vadd.xlane.f32.xlu1 %v833_v53 }
  0x50   : > { %8482 = vmatmul.mubr.bf16.gmra.mxu1 %v1469_v2 }
  0x53   : > { %837 = vadd.xlane.f32.xlu0 %v836_v54  ;;  %840 = vadd.xlane.f32.xlu1 %v839_v55 }
  0x57   : > { %843 = vadd.xlane.f32.xlu0 %v842_v56  ;;  %846 = vadd.xlane.f32.xlu1 %v845_v7 }
  0x5b   : > { %849 = vadd.xlane.f32.xlu0 %v848_v11  ;;  %852 = vadd.xlane.f32.xlu1 %v851_v14 }
  0x5f   : > { %855 = vadd.xlane.f32.xlu0 %v854_v17  ;;  %858 = vadd.xlane.f32.xlu1 %v857_v18 }
  0x63   : > { %861 = vadd.xlane.f32.xlu0 %v860_v29  ;;  %864 = vadd.xlane.f32.xlu1 %v863_v33 }
  0x67   : > { %867 = vadd.xlane.f32.xlu0 %v866_v39  ;;  %870 = vadd.xlane.f32.xlu1 %v869_v43 }
  0xb4   : > { %v778_v46 = vpop.xlane.xlu0 %777  ;;  %v784_v48 = vpop.xlane.xlu1 %783 }
  0xb5   : > { %v873_v47 = vmul.f32 0.03125, %v778_v46  ;;  %v875_v49 = vmul.f32 0.03125, %v784_v48 }
  0xb7   : > { %v9870_v50 = vsub.f32 %v9669_v3, %v873_v47  ;;  %v9873_v51 = vsub.f32 %v9672_v4, %v875_v49 }
  0xb8   : > { %v781_v52 = vpop.xlane.xlu0 %780  ;;  %v787_v54 = vpop.xlane.xlu1 %786 }
  0xb9   : > { %v874_v53 = vmul.f32 0.03125, %v781_v52  ;;  %v937_v55 = vmul.f32 %v9870_v50, %v9870_v50  ;;  %v876_v56 = vmul.f32 0.03125, %v787_v54  ;;  %v939_v57 = vmul.f32 %v9873_v51, %v9873_v51 }
  0xbb   : > { %v9880_v58 = vsub.f32 %v9675_v5, %v874_v53  ;;  %v969_v59 = vsel %vm14278_vm0, %v937_v55, 0.0  ;;  %v9884_v3 = vsub.f32 %v9682_v8, %v876_v56  ;;  %v975_v62 = vsel %vm14278_vm0, %v939_v57, 0.0 }
  0xbc   : > { %970 = vadd.xlane.f32.xlu0 %v969_v59  ;;  %v790_v4 = vpop.xlane.xlu0 %789  ;;  %v793_v61 = vpop.xlane.xlu1 %792 }
  0xbd   : > { %v877_v60 = vmul.f32 0.03125, %v790_v4  ;;  %v938_v63 = vmul.f32 %v9880_v58, %v9880_v58  ;;  %v878_v1 = vmul.f32 0.03125, %v793_v61  ;;  %v940_v2 = vmul.f32 %v9884_v3, %v9884_v3 }
  0xbf   : > { %v9892_v5 = vsub.f32 %v9693_v12, %v877_v60  ;;  %v972_v7 = vsel %vm14278_vm0, %v938_v63, 0.0  ;;  %v9896_v8 = vsub.f32 %v9701_v13, %v878_v1  ;;  %v978_v18 = vsel %vm14278_vm0, %v940_v2, 0.0 }
  0xc0   : > { %976 = vadd.xlane.f32.xlu0 %v975_v62  ;;  %973 = vadd.xlane.f32.xlu1 %v972_v7  ;;  %v796_v11 = vpop.xlane.xlu0 %795  ;;  %v799_v17 = vpop.xlane.xlu1 %798 }
  0xc1   : > { %v879_v14 = vmul.f32 0.03125, %v796_v11  ;;  %v941_v29 = vmul.f32 %v9892_v5, %v9892_v5  ;;  %v880_v33 = vmul.f32 0.03125, %v799_v17  ;;  %v942_v12 = vmul.f32 %v9896_v8, %v9896_v8 }
  0xc3   : > { %v9904_v39 = vsub.f32 %v9713_v19, %v879_v14  ;;  %v981_v13 = vsel %vm14278_vm0, %v941_v29, 0.0  ;;  %v9908_v43 = vsub.f32 %v9719_v21, %v880_v33  ;;  %v984_v49 = vsel %vm14278_vm0, %v942_v12, 0.0 }
  0xc4   : > { %979 = vadd.xlane.f32.xlu1 %v978_v18  ;;  %982 = vadd.xlane.f32.xlu0 %v981_v13  ;;  %v802_v46 = vpop.xlane.xlu0 %801  ;;  %v805_v48 = vpop.xlane.xlu1 %804 }
  0xc5   : > { %v881_v47 = vmul.f32 0.03125, %v802_v46  ;;  %v943_v52 = vmul.f32 %v9904_v39, %v9904_v39  ;;  %v882_v53 = vmul.f32 0.03125, %v805_v48  ;;  %v944_v19 = vmul.f32 %v9908_v43, %v9908_v43 }
  0xc7   : > { %v9916_v54 = vsub.f32 %v9722_v23, %v881_v47  ;;  %v987_v21 = vsel %vm14278_vm0, %v943_v52, 0.0  ;;  %v9920_v55 = vsub.f32 %v9725_v24, %v882_v53  ;;  %v990_v4 = vsel %vm14278_vm0, %v944_v19, 0.0 }
  0xc8   : > { %985 = vadd.xlane.f32.xlu1 %v984_v49  ;;  %988 = vadd.xlane.f32.xlu0 %v987_v21  ;;  %v808_v56 = vpop.xlane.xlu0 %807  ;;  %v811_v59 = vpop.xlane.xlu1 %810 }
  0xc9   : > { %v883_v57 = vmul.f32 0.03125, %v808_v56  ;;  %v945_v60 = vmul.f32 %v9916_v54, %v9916_v54  ;;  %v884_v61 = vmul.f32 0.03125, %v811_v59  ;;  %v946_v23 = vmul.f32 %v9920_v55, %v9920_v55 }
  0xcb   : > { %v9928_v62 = vsub.f32 %v9728_v25, %v883_v57  ;;  %v993_v24 = vsel %vm14278_vm0, %v945_v60, 0.0  ;;  %v9932_v63 = vsub.f32 %v9731_v26, %v884_v61  ;;  %v996_v11 = vsel %vm14278_vm0, %v946_v23, 0.0 }
  0xcc   : > { %991 = vadd.xlane.f32.xlu1 %v990_v4  ;;  %994 = vadd.xlane.f32.xlu0 %v993_v24  ;;  %v814_v1 = vpop.xlane.xlu0 %813  ;;  %v817_v7 = vpop.xlane.xlu1 %816 }
  0xcd   : > { %v885_v2 = vmul.f32 0.03125, %v814_v1  ;;  %v947_v14 = vmul.f32 %v9928_v62, %v9928_v62  ;;  %v886_v17 = vmul.f32 0.03125, %v817_v7  ;;  %v948_v25 = vmul.f32 %v9932_v63, %v9932_v63 }
  0xcf   : > { %v9940_v18 = vsub.f32 %v9734_v27, %v885_v2  ;;  %v999_v26 = vsel %vm14278_vm0, %v947_v14, 0.0  ;;  %v9944_v29 = vsub.f32 %v9737_v28, %v886_v17  ;;  %v1002_v46 = vsel %vm14278_vm0, %v948_v25, 0.0  ;;  %v8901_v14 = vld [vmem:[%s14381_s3 + $0x8] sm:$0xff]  }
  0xd0   : > { %997 = vadd.xlane.f32.xlu1 %v996_v11  ;;  %1000 = vadd.xlane.f32.xlu0 %v999_v26  ;;  %v820_v33 = vpop.xlane.xlu0 %819  ;;  %v823_v13 = vpop.xlane.xlu1 %822 }
  0xd1   : > { %v887_v12 = vmul.f32 0.03125, %v820_v33  ;;  %v949_v47 = vmul.f32 %v9940_v18, %v9940_v18  ;;  %v888_v48 = vmul.f32 0.03125, %v823_v13  ;;  %v950_v27 = vmul.f32 %v9944_v29, %v9944_v29  ;;  %8425 = vmatprep.subr.bf16.mxu0 %v8901_v14 }
  0xd2   : > { %8426 = vmatpush3.bf16.msra.mxu0 %v8901_v14 }
  0xd3   : > { %v9952_v49 = vsub.f32 %v9742_v30, %v887_v12  ;;  %v1005_v28 = vsel %vm14278_vm0, %v949_v47, 0.0  ;;  %v9956_v52 = vsub.f32 %v9745_v31, %v888_v48  ;;  %v1008_v56 = vsel %vm14278_vm0, %v950_v27, 0.0  ;;  %v8902_v48 = vld [vmem:[%s14381_s3] sm:$0xff]  }
  0xd4   : > { %1003 = vadd.xlane.f32.xlu1 %v1002_v46  ;;  %1006 = vadd.xlane.f32.xlu0 %v1005_v28  ;;  %v826_v53 = vpop.xlane.xlu0 %825  ;;  %v829_v21 = vpop.xlane.xlu1 %828 }
  0xd5   : > { %v889_v19 = vmul.f32 0.03125, %v826_v53  ;;  %v951_v57 = vmul.f32 %v9952_v49, %v9952_v49  ;;  %v890_v59 = vmul.f32 0.03125, %v829_v21  ;;  %v952_v30 = vmul.f32 %v9956_v52, %v9956_v52  ;;  %8427 = vmatprep.subr.bf16.mxu0 %v8902_v48 }
  0xd6   : > { %8428 = vmatpush3.bf16.msra.mxu0 %v8902_v48 }
  0xd7   : > { %v9964_v4 = vsub.f32 %v9748_v32, %v889_v19  ;;  %v1011_v31 = vsel %vm14278_vm0, %v951_v57, 0.0  ;;  %v9968_v60 = vsub.f32 %v9753_v34, %v890_v59  ;;  %v1014_v1 = vsel %vm14278_vm0, %v952_v30, 0.0  ;;  %8495 = vmatprep.subr.bf16.mxu0 %v9646_v0 }
  0xd8   : > { %1009 = vadd.xlane.f32.xlu1 %v1008_v56  ;;  %1012 = vadd.xlane.f32.xlu0 %v1011_v31  ;;  %v832_v61 = vpop.xlane.xlu0 %831  ;;  %v835_v24 = vpop.xlane.xlu1 %834 }
  0xd9   : > { %v891_v23 = vmul.f32 0.03125, %v832_v61  ;;  %v953_v2 = vmul.f32 %v9964_v4, %v9964_v4  ;;  %v892_v7 = vmul.f32 0.03125, %v835_v24  ;;  %v954_v32 = vmul.f32 %v9968_v60, %v9968_v60 }
  0xdb   : > { %v9976_v11 = vsub.f32 %v9756_v35, %v891_v23  ;;  %v1017_v34 = vsel %vm14278_vm0, %v953_v2, 0.0  ;;  %v9983_v17 = vsub.f32 %v9759_v36, %v892_v7  ;;  %v1020_v12 = vsel %vm14278_vm0, %v954_v32, 0.0 }
  0xdc   : > { %1015 = vadd.xlane.f32.xlu1 %v1014_v1  ;;  %1018 = vadd.xlane.f32.xlu0 %v1017_v34  ;;  %v838_v25 = vpop.xlane.xlu0 %837  ;;  %v841_v33 = vpop.xlane.xlu1 %840 }
  0xdd   : > { %v893_v26 = vmul.f32 0.03125, %v838_v25  ;;  %v955_v35 = vmul.f32 %v9976_v11, %v9976_v11  ;;  %v894_v13 = vmul.f32 0.03125, %v841_v33  ;;  %v956_v46 = vmul.f32 %v9983_v17, %v9983_v17 }
  0xdf   : > { %v9991_v47 = vsub.f32 %v9768_v40, %v893_v26  ;;  %v1023_v36 = vsel %vm14278_vm0, %v955_v35, 0.0  ;;  %v9998_v27 = vsub.f32 %v9771_v41, %v894_v13  ;;  %v1026_v21 = vsel %vm14278_vm0, %v956_v46, 0.0 }
  0xe0   : > { %1021 = vadd.xlane.f32.xlu1 %v1020_v12  ;;  %1024 = vadd.xlane.f32.xlu0 %v1023_v36  ;;  %v844_v28 = vpop.xlane.xlu0 %843  ;;  %v847_v19 = vpop.xlane.xlu1 %846 }
  0xe1   : > { %v895_v53 = vmul.f32 0.03125, %v844_v28  ;;  %v957_v40 = vmul.f32 %v9991_v47, %v9991_v47  ;;  %v896_v56 = vmul.f32 0.03125, %v847_v19  ;;  %v958_v57 = vmul.f32 %v9998_v27, %v9998_v27 }
  0xe3   : > { %v10006_v59 = vsub.f32 %v9774_v42, %v895_v53  ;;  %v1029_v41 = vsel %vm14278_vm0, %v957_v40, 0.0  ;;  %v10011_v30 = vsub.f32 %v9813_v6, %v896_v56  ;;  %v1032_v24 = vsel %vm14278_vm0, %v958_v57, 0.0 }
  0xe4   : > { %1027 = vadd.xlane.f32.xlu1 %v1026_v21  ;;  %1030 = vadd.xlane.f32.xlu0 %v1029_v41  ;;  %v850_v31 = vpop.xlane.xlu0 %849  ;;  %v853_v23 = vpop.xlane.xlu1 %852 }
  0xe5   : > { %v897_v61 = vmul.f32 0.03125, %v850_v31  ;;  %v959_v1 = vmul.f32 %v10006_v59, %v10006_v59  ;;  %v898_v2 = vmul.f32 0.03125, %v853_v23  ;;  %v960_v42 = vmul.f32 %v10011_v30, %v10011_v30 }
  0xe7   : > { %v10019_v7 = vsub.f32 %v9818_v9, %v897_v61  ;;  %v1035_v0 = vsel %vm14278_vm0, %v959_v1, 0.0  ;;  %v10023_v6 = vsub.f32 %v9821_v10, %v898_v2  ;;  %v1038_v25 = vsel %vm14278_vm0, %v960_v42, 0.0 }
  0xe8   : > { %1033 = vadd.xlane.f32.xlu1 %v1032_v24  ;;  %1036 = vadd.xlane.f32.xlu0 %v1035_v0  ;;  %v856_v32 = vpop.xlane.xlu0 %855  ;;  %v859_v14 = vpop.xlane.xlu1 %858 }
  0xe9   : > { %v899_v34 = vmul.f32 0.03125, %v856_v32  ;;  %v961_v26 = vmul.f32 %v10019_v7, %v10019_v7  ;;  %v900_v33 = vmul.f32 0.03125, %v859_v14  ;;  %v962_v9 = vmul.f32 %v10023_v6, %v10023_v6 }
  0xeb   : > { %v10031_v12 = vsub.f32 %v9828_v15, %v899_v34  ;;  %v1041_v10 = vsel %vm14278_vm0, %v961_v26, 0.0  ;;  %v10035_v35 = vsub.f32 %v9831_v16, %v900_v33  ;;  %v1044_v48 = vsel %vm14278_vm0, %v962_v9, 0.0 }
  0xec   : > { %1039 = vadd.xlane.f32.xlu1 %v1038_v25  ;;  %1042 = vadd.xlane.f32.xlu0 %v1041_v10  ;;  %v862_v13 = vpop.xlane.xlu0 %861  ;;  %v865_v36 = vpop.xlane.xlu1 %864 }
  0xed   : > { %v901_v46 = vmul.f32 0.03125, %v862_v13  ;;  %v963_v28 = vmul.f32 %v10031_v12, %v10031_v12  ;;  %v902_v53 = vmul.f32 0.03125, %v865_v36  ;;  %v964_v15 = vmul.f32 %v10035_v35, %v10035_v35 }
  0xef   : > { %v10043_v19 = vsub.f32 %v9838_v20, %v901_v46  ;;  %v1047_v16 = vsel %vm14278_vm0, %v963_v28, 0.0  ;;  %v10047_v21 = vsub.f32 %v9841_v22, %v902_v53  ;;  %v1050_v41 = vsel %vm14278_vm0, %v964_v15, 0.0 }
  0xf0   : > { %1045 = vadd.xlane.f32.xlu1 %v1044_v48  ;;  %1048 = vadd.xlane.f32.xlu0 %v1047_v16  ;;  %v868_v40 = vpop.xlane.xlu0 %867  ;;  %v871_v57 = vpop.xlane.xlu1 %870 }
  0xf1   : > { %v903_v56 = vmul.f32 0.03125, %v868_v40  ;;  %v965_v31 = vmul.f32 %v10043_v19, %v10043_v19  ;;  %v904_v61 = vmul.f32 0.03125, %v871_v57  ;;  %v966_v20 = vmul.f32 %v10047_v21, %v10047_v21 }
  0xf3   : > { %v10055_v23 = vsub.f32 %v9848_v37, %v903_v56  ;;  %v1053_v22 = vsel %vm14278_vm0, %v965_v31, 0.0  ;;  %v10059_v24 = vsub.f32 %v9851_v38, %v904_v61  ;;  %v1056_v1 = vsel %vm14278_vm0, %v966_v20, 0.0 }
  0xf4   : > { %1051 = vadd.xlane.f32.xlu1 %v1050_v41  ;;  %1054 = vadd.xlane.f32.xlu0 %v1053_v22 }
  0xf5   : > { %v967_v2 = vmul.f32 %v10055_v23, %v10055_v23  ;;  %v968_v42 = vmul.f32 %v10059_v24, %v10059_v24 }
  0xf7   : > { %v1059_v0 = vsel %vm14278_vm0, %v967_v2, 0.0  ;;  %v1062_v37 = vsel %vm14278_vm0, %v968_v42, 0.0 }
  0xf8   : > { %1057 = vadd.xlane.f32.xlu1 %v1056_v1  ;;  %1060 = vadd.xlane.f32.xlu0 %v1059_v0 }
  0xfc   : > { %1063 = vadd.xlane.f32.xlu1 %v1062_v37 }
 0x108   : > { %v8479_v32 = vpop.f32.mrf.mxu1 }
 0x109   : > { %v1585_v9 = vmul.f32 0.03125, %v8479_v32 }
 0x10a   : > { %v1552_v38 = vpop.f32.mrf.mxu1 }
 0x10b   : > { %v1583_v26 = vmul.f32 0.03125, %v1552_v38 }
 0x10c   : > { %v8480_v34 = vpop.f32.mrf.mxu1 }
 0x10d   : > { %v1586_v14 = vmul.f32 0.03125, %v8480_v34 }
 0x10e   : > { %v1555_v25 = vpop.f32.mrf.mxu1 }
 0x10f   : > { %v1584_v33 = vmul.f32 0.03125, %v1555_v25  ;;  %v1592_v46 = vpack.c.bf16 %v1586_v14, %v1585_v9 }
 0x110   : > { %v8483_v10 = vpop.f32.mrf.mxu1 }
 0x111   : > { %v1591_v13 = vpack.c.bf16 %v1584_v33, %v1583_v26  ;;  %v1589_v40 = vmul.f32 0.03125, %v8483_v10 }
 0x112   : > { %v1568_v36 = vpop.f32.mrf.mxu1 }
 0x113   : > { %8487 = vmatprep.mubr.msk.bf16.mxu1 %vm1595_vm2, %v1591_v13  ;;  %v1587_v15 = vmul.f32 0.03125, %v1568_v36 }
 0x114   : > { %v8484_v48 = vpop.f32.mrf.mxu1  ;;  %8488 = vmatmul.mubr.msk.bf16.vlgmr.msra.gmra.mxu1 %vm1595_vm2, %v1592_v46 }
 0x115   : > { %v1590_v28 = vmul.f32 0.03125, %v8484_v48 }
 0x116   : > { %v1571_v53 = vpop.f32.mrf.mxu1 }
 0x117   : > { %v1588_v16 = vmul.f32 0.03125, %v1571_v53  ;;  %v1594_v57 = vpack.c.bf16 %v1590_v28, %v1589_v40 }
 0x119   : > { %v1593_v56 = vpack.c.bf16 %v1588_v16, %v1587_v15 }
 0x11b   : > { %8491 = vmatprep.mubr.msk.bf16.mxu1 %vm1595_vm2, %v1593_v56 }
 0x11c   : > { %8492 = vmatmul.mubr.msk.bf16.gmra.mxu1 %vm1595_vm2, %v1594_v57 }
 0x145   : > { %v971_v41 = vpop.xlane.xlu0 %970 }
 0x146   : > { %v1065_v31 = vmul.f32 0.03125, %v971_v41 }
 0x148   : > { %v1097_v61 = vadd.f32 1e-06, %v1065_v31 }
 0x149   : > { %v974_v20 = vpop.xlane.xlu1 %973  ;;  %v977_v22 = vpop.xlane.xlu0 %976 }
 0x14a   : > { %v1066_v1 = vmul.f32 0.03125, %v974_v20  ;;  %v1067_v2 = vmul.f32 0.03125, %v977_v22  ;;  %8943 = vrsqrt.f32 %v1097_v61 }
 0x14c   : > { %v1098_v42 = vadd.f32 1e-06, %v1066_v1  ;;  %v1099_v0 = vadd.f32 1e-06, %v1067_v2 }
 0x14d   : > { %v980_v37 = vpop.xlane.xlu1 %979  ;;  %v983_v32 = vpop.xlane.xlu0 %982 }
 0x14e   : > { %8945 = vrsqrt.f32 %v1098_v42  ;;  %v1068_v38 = vmul.f32 0.03125, %v980_v37  ;;  %v1069_v34 = vmul.f32 0.03125, %v983_v32 }
 0x14f   : > { %8947 = vrsqrt.f32 %v1099_v0 }
 0x150   : > { %v1100_v14 = vadd.f32 1e-06, %v1068_v38  ;;  %v1101_v25 = vadd.f32 1e-06, %v1069_v34 }
 0x151   : > { %v986_v26 = vpop.xlane.xlu1 %985  ;;  %v989_v33 = vpop.xlane.xlu0 %988 }
 0x152   : > { %8949 = vrsqrt.f32 %v1100_v14  ;;  %v1070_v9 = vmul.f32 0.03125, %v986_v26  ;;  %v1071_v10 = vmul.f32 0.03125, %v989_v33 }
 0x153   : > { %8951 = vrsqrt.f32 %v1101_v25 }
 0x154   : > { %v1102_v13 = vadd.f32 1e-06, %v1070_v9  ;;  %v1103_v46 = vadd.f32 1e-06, %v1071_v10 }
 0x155   : > { %v992_v36 = vpop.xlane.xlu1 %991  ;;  %v995_v48 = vpop.xlane.xlu0 %994 }
 0x156   : > { %8953 = vrsqrt.f32 %v1102_v13  ;;  %v1072_v28 = vmul.f32 0.03125, %v992_v36  ;;  %v1073_v53 = vmul.f32 0.03125, %v995_v48 }
 0x157   : > { %v8944_v15 = vpop.eup %8943  ;;  %8955 = vrsqrt.f32 %v1103_v46 }
 0x158   : > { %v1104_v16 = vadd.f32 1e-06, %v1072_v28  ;;  %v1105_v40 = vadd.f32 1e-06, %v1073_v53  ;;  %v1161_v20 = vmul.f32 %v8944_v15, %v9870_v50 }
 0x159   : > { %v998_v56 = vpop.xlane.xlu1 %997  ;;  %v1001_v57 = vpop.xlane.xlu0 %1000 }
 0x15a   : > { %8957 = vrsqrt.f32 %v1104_v16  ;;  %v1074_v41 = vmul.f32 0.03125, %v998_v56  ;;  %v1075_v31 = vmul.f32 0.03125, %v1001_v57 }
 0x15b   : > { %v8946_v61 = vpop.eup %8945  ;;  %8959 = vrsqrt.f32 %v1105_v40 }
 0x15c   : > { %v8948_v22 = vpop.eup %8947  ;;  %v1106_v1 = vadd.f32 1e-06, %v1074_v41  ;;  %v1107_v2 = vadd.f32 1e-06, %v1075_v31  ;;  %v1162_v42 = vmul.f32 %v8946_v61, %v9880_v58 }
 0x15d   : > { %v1004_v0 = vpop.xlane.xlu1 %1003  ;;  %v1007_v37 = vpop.xlane.xlu0 %1006  ;;  %v1163_v25 = vmul.f32 %v8948_v22, %v9873_v51 }
 0x15e   : > { %8961 = vrsqrt.f32 %v1106_v1  ;;  %v1076_v32 = vmul.f32 0.03125, %v1004_v0  ;;  %v1077_v38 = vmul.f32 0.03125, %v1007_v37  ;;  %v1193_v34 = vpack.c.bf16 %v1162_v42, %v1161_v20 }
 0x15f   : > { %v8950_v14 = vpop.eup %8949  ;;  %8963 = vrsqrt.f32 %v1107_v2 }
 0x160   : > { %v8952_v26 = vpop.eup %8951  ;;  %v1108_v33 = vadd.f32 1e-06, %v1076_v32  ;;  %v1109_v9 = vadd.f32 1e-06, %v1077_v38  ;;  %8429 = vmatprep.mubr.msk.bf16.mxu0 %vm14278_vm0, %v1193_v34  ;;  %v1164_v50 = vmul.f32 %v8950_v14, %v9884_v3  ;;  %v9359_v3 = vld [vmem:[%s14377_s0 + $0x38] sm:$0xff]   ;;  %v9361_v34 = vld [vmem:[%s14377_s0 + $0x28] sm:$0xff]  }
 0x161   : > { %v1010_v10 = vpop.xlane.xlu1 %1009  ;;  %v1013_v13 = vpop.xlane.xlu0 %1012  ;;  %v1165_v28 = vmul.f32 %v8952_v26, %v9892_v5  ;;  %v9360_v5 = vld [vmem:[%s14377_s0 + $0x30] sm:$0xff]  }
 0x162   : > { %8965 = vrsqrt.f32 %v1108_v33  ;;  %v1078_v58 = vmul.f32 0.03125, %v1010_v10  ;;  %v1079_v46 = vmul.f32 0.03125, %v1013_v13  ;;  %v1194_v36 = vpack.c.bf16 %v1164_v50, %v1163_v25 }
 0x163   : > { %v8954_v48 = vpop.eup %8953  ;;  %8967 = vrsqrt.f32 %v1109_v9 }
 0x164   : > { %v1110_v53 = vadd.f32 1e-06, %v1078_v58  ;;  %v1111_v51 = vadd.f32 1e-06, %v1079_v46  ;;  %8430 = vmatmul.mubr.msk.bf16.vlgmr.msra.gmra.mxu0 %vm14278_vm0, %v1194_v36  ;;  %v1166_v15 = vmul.f32 %v8954_v48, %v9896_v8  ;;  %v8956_v16 = vpop.eup %8955  ;;  %v9362_v46 = vld [vmem:[%s14377_s0 + $0x20] sm:$0xff]  }
 0x165   : > { %v1016_v40 = vpop.xlane.xlu1 %1015  ;;  %v1019_v56 = vpop.xlane.xlu0 %1018  ;;  %8496 = vmatpush3.bf16.msra.mxu0 %v9359_v3  ;;  %v1167_v22 = vmul.f32 %v8956_v16, %v9904_v39  ;;  %v9363_v3 = vld [vmem:[%s14377_s0 + $0x18] sm:$0xff]  }
 0x166   : > { %8969 = vrsqrt.f32 %v1110_v53  ;;  %v1080_v57 = vmul.f32 0.03125, %v1016_v40  ;;  %v1081_v41 = vmul.f32 0.03125, %v1019_v56  ;;  %v1195_v31 = vpack.c.bf16 %v1166_v15, %v1165_v28  ;;  %8497 = vmatprep.subr.bf16.mxu0 %v9360_v5 }
 0x167   : > { %v8958_v61 = vpop.eup %8957  ;;  %8971 = vrsqrt.f32 %v1111_v51 }
 0x168   : > { %v1112_v8 = vadd.f32 1e-06, %v1080_v57  ;;  %v1113_v20 = vadd.f32 1e-06, %v1081_v41  ;;  %8433 = vmatprep.mubr.msk.bf16.mxu0 %vm14278_vm0, %v1195_v31  ;;  %v1168_v1 = vmul.f32 %v8958_v61, %v9908_v43  ;;  %v8960_v2 = vpop.eup %8959 }
 0x169   : > { %v1022_v42 = vpop.xlane.xlu1 %1021  ;;  %v1025_v0 = vpop.xlane.xlu0 %1024  ;;  %8498 = vmatpush3.bf16.msra.mxu0 %v9360_v5  ;;  %v1169_v39 = vmul.f32 %v8960_v2, %v9916_v54  ;;  %v9364_v2 = vld [vmem:[%s14377_s0 + $0x10] sm:$0xff]  }
 0x16a   : > { %8973 = vrsqrt.f32 %v1112_v8  ;;  %v1082_v37 = vmul.f32 0.03125, %v1022_v42  ;;  %v1083_v32 = vmul.f32 0.03125, %v1025_v0  ;;  %v1196_v38 = vpack.c.bf16 %v1168_v1, %v1167_v22  ;;  %8499 = vmatprep.subr.bf16.mxu0 %v9361_v34 }
 0x16b   : > { %v8962_v14 = vpop.eup %8961  ;;  %8975 = vrsqrt.f32 %v1113_v20 }
 0x16c   : > { %v1114_v25 = vadd.f32 1e-06, %v1082_v37  ;;  %v1115_v26 = vadd.f32 1e-06, %v1083_v32  ;;  %8434 = vmatmul.mubr.msk.bf16.gmra.mxu0 %vm14278_vm0, %v1196_v38  ;;  %v1170_v43 = vmul.f32 %v8962_v14, %v9920_v55  ;;  %v8964_v33 = vpop.eup %8963 }
 0x16d   : > { %v1028_v9 = vpop.xlane.xlu1 %1027  ;;  %v1031_v50 = vpop.xlane.xlu0 %1030  ;;  %8500 = vmatpush3.bf16.msra.mxu0 %v9361_v34  ;;  %v1171_v54 = vmul.f32 %v8964_v33, %v9928_v62 }
 0x16e   : > { %8977 = vrsqrt.f32 %v1114_v25  ;;  %v1084_v10 = vmul.f32 0.03125, %v1028_v9  ;;  %v1085_v13 = vmul.f32 0.03125, %v1031_v50  ;;  %v1197_v58 = vpack.c.bf16 %v1170_v43, %v1169_v39  ;;  %8501 = vmatprep.subr.bf16.mxu0 %v9362_v46  ;;  %v9365_v39 = vld [vmem:[%s14377_s0 + $0x8] sm:$0xff]  }
 0x16f   : > { %v8966_v36 = vpop.eup %8965  ;;  %8979 = vrsqrt.f32 %v1115_v26 }
 0x170   : > { %v1116_v48 = vadd.f32 1e-06, %v1084_v10  ;;  %v1117_v28 = vadd.f32 1e-06, %v1085_v13  ;;  %8437 = vmatprep.mubr.msk.bf16.mxu0 %vm14278_vm0, %v1197_v58  ;;  %v1172_v55 = vmul.f32 %v8966_v36, %v9932_v63  ;;  %v8968_v53 = vpop.eup %8967 }
 0x171   : > { %v1034_v51 = vpop.xlane.xlu1 %1033  ;;  %v1037_v15 = vpop.xlane.xlu0 %1036  ;;  %8502 = vmatpush3.bf16.msra.mxu0 %v9362_v46  ;;  %v1173_v63 = vmul.f32 %v8968_v53, %v9940_v18 }
 0x172   : > { %8981 = vrsqrt.f32 %v1116_v48  ;;  %v1086_v16 = vmul.f32 0.03125, %v1034_v51  ;;  %v1087_v40 = vmul.f32 0.03125, %v1037_v15  ;;  %v1198_v56 = vpack.c.bf16 %v1172_v55, %v1171_v54  ;;  %8503 = vmatprep.subr.bf16.mxu0 %v9363_v3  ;;  %v9366_v48 = vld [vmem:[%s14377_s0] sm:$0xff]  }
 0x173   : > { %v8970_v57 = vpop.eup %8969  ;;  %8983 = vrsqrt.f32 %v1117_v28 }
 0x174   : > { %v8972_v41 = vpop.eup %8971  ;;  %v1118_v31 = vadd.f32 1e-06, %v1086_v16  ;;  %v1119_v62 = vadd.f32 1e-06, %v1087_v40  ;;  %8438 = vmatmul.mubr.msk.bf16.gmra.mxu0 %vm14278_vm0, %v1198_v56  ;;  %v1174_v5 = vmul.f32 %v8970_v57, %v9944_v29 }
 0x175   : > { %v1040_v61 = vpop.xlane.xlu1 %1039  ;;  %v1043_v8 = vpop.xlane.xlu0 %1042  ;;  %8504 = vmatpush3.bf16.msra.mxu0 %v9363_v3  ;;  %v1175_v0 = vmul.f32 %v8972_v41, %v9952_v49 }
 0x176   : > { %8985 = vrsqrt.f32 %v1118_v31  ;;  %v1088_v20 = vmul.f32 0.03125, %v1040_v61  ;;  %v1089_v22 = vmul.f32 0.03125, %v1043_v8  ;;  %v1199_v1 = vpack.c.bf16 %v1174_v5, %v1173_v63  ;;  %8505 = vmatprep.subr.bf16.mxu0 %v9364_v2 }
 0x177   : > { %v8974_v42 = vpop.eup %8973  ;;  %8987 = vrsqrt.f32 %v1119_v62 }
 0x178   : > { %v8976_v37 = vpop.eup %8975  ;;  %v1120_v18 = vadd.f32 1e-06, %v1088_v20  ;;  %v1121_v32 = vadd.f32 1e-06, %v1089_v22  ;;  %8441 = vmatprep.mubr.msk.bf16.mxu0 %vm14278_vm0, %v1199_v1  ;;  %v1176_v29 = vmul.f32 %v8974_v42, %v9956_v52 }
 0x179   : > { %v1046_v38 = vpop.xlane.xlu1 %1045  ;;  %v1049_v34 = vpop.xlane.xlu0 %1048  ;;  %8506 = vmatpush3.bf16.msra.mxu0 %v9364_v2  ;;  %v1177_v43 = vmul.f32 %v8976_v37, %v9964_v4 }
 0x17a   : > { %8989 = vrsqrt.f32 %v1120_v18  ;;  %v1090_v14 = vmul.f32 0.03125, %v1046_v38  ;;  %v1091_v25 = vmul.f32 0.03125, %v1049_v34  ;;  %v1200_v26 = vpack.c.bf16 %v1176_v29, %v1175_v0  ;;  %8507 = vmatprep.subr.bf16.mxu0 %v9365_v39 }
 0x17b   : > { %v8978_v49 = vpop.eup %8977  ;;  %8991 = vrsqrt.f32 %v1121_v32 }
 0x17c   : > { %v8980_v33 = vpop.eup %8979  ;;  %v1122_v9 = vadd.f32 1e-06, %v1090_v14  ;;  %v1123_v50 = vadd.f32 1e-06, %v1091_v25  ;;  %8442 = vmatmul.mubr.msk.bf16.gmra.mxu0 %vm14278_vm0, %v1200_v26  ;;  %v1178_v52 = vmul.f32 %v8978_v49, %v9968_v60 }
 0x17d   : > { %v1052_v10 = vpop.xlane.xlu1 %1051  ;;  %v1055_v13 = vpop.xlane.xlu0 %1054  ;;  %8508 = vmatpush3.bf16.msra.mxu0 %v9365_v39  ;;  %v1179_v28 = vmul.f32 %v8980_v33, %v9976_v11 }
 0x17e   : > { %8993 = vrsqrt.f32 %v1122_v9  ;;  %v1092_v58 = vmul.f32 0.03125, %v1052_v10  ;;  %v1093_v46 = vmul.f32 0.03125, %v1055_v13  ;;  %v1201_v36 = vpack.c.bf16 %v1178_v52, %v1177_v43  ;;  %8509 = vmatprep.subr.bf16.mxu0 %v9366_v48  ;;  %v9369_v9 = vld [vmem:[%s9698_s28 + $0x10] sm:$0xff]  ;;  %v9370_v52 = vld [vmem:[%s9698_s28 + $0x8] sm:$0xff] }
 0x17f   : > { %v8982_v4 = vpop.eup %8981  ;;  %8995 = vrsqrt.f32 %v1123_v50 }
 0x180   : > { %v8984_v54 = vpop.eup %8983  ;;  %v1124_v55 = vadd.f32 1e-06, %v1092_v58  ;;  %v1125_v53 = vadd.f32 1e-06, %v1093_v46  ;;  %8445 = vmatprep.mubr.msk.bf16.mxu0 %vm14278_vm0, %v1201_v36  ;;  %v1180_v60 = vmul.f32 %v8982_v4, %v9983_v17 }
 0x181   : > { %v1058_v51 = vpop.xlane.xlu1 %1057  ;;  %v1061_v15 = vpop.xlane.xlu0 %1060  ;;  %8510 = vmatpush3.bf16.msra.mxu0 %v9366_v48  ;;  %v1181_v11 = vmul.f32 %v8984_v54, %v9991_v47 }
 0x182   : > { %8997 = vrsqrt.f32 %v1124_v55  ;;  %v1094_v16 = vmul.f32 0.03125, %v1058_v51  ;;  %v1095_v40 = vmul.f32 0.03125, %v1061_v15  ;;  %v1202_v56 = vpack.c.bf16 %v1180_v60, %v1179_v28  ;;  %8842 = vmatprep.subr.msk.bf16.mxu0 %vm1608_vm1, %v9860_v44  ;;  %v9371_v55 = vld [vmem:[%s9698_s28 + $0x20] sm:$0xff]  ;;  %v9372_v60 = vld [vmem:[%s9698_s28 + $0x38] sm:$0xff]  ;;  %v9373_v15 = vld [vmem:[%s9698_s28 + $0x30] sm:$0xff] }
 0x183   : > { %v8986_v3 = vpop.eup %8985  ;;  %8999 = vrsqrt.f32 %v1125_v53 }
 0x184   : > { %v1126_v57 = vadd.f32 1e-06, %v1094_v16  ;;  %v1127_v41 = vadd.f32 1e-06, %v1095_v40  ;;  %8446 = vmatmul.mubr.msk.bf16.gmra.mxu0 %vm14278_vm0, %v1202_v56  ;;  %v1182_v17 = vmul.f32 %v8986_v3, %v9998_v27  ;;  %v8988_v31 = vpop.eup %8987  ;;  %v9374_v56 = vld [vmem:[%s9698_s28 + $0x28] sm:$0xff] }
 0x185   : > { %v1064_v62 = vpop.xlane.xlu1 %1063  ;;  %v1183_v44 = vmul.f32 %v8988_v31, %v10006_v59 }
 0x186   : > { %9001 = vrsqrt.f32 %v1126_v57  ;;  %v1096_v63 = vmul.f32 0.03125, %v1064_v62  ;;  %v1203_v5 = vpack.c.bf16 %v1182_v17, %v1181_v11 }
 0x187   : > { %v8990_v61 = vpop.eup %8989  ;;  %9003 = vrsqrt.f32 %v1127_v41 }
 0x188   : > { %v1128_v8 = vadd.f32 1e-06, %v1096_v63  ;;  %8449 = vmatprep.mubr.msk.bf16.mxu0 %vm14278_vm0, %v1203_v5  ;;  %v1184_v47 = vmul.f32 %v8990_v61, %v10011_v30  ;;  %v8992_v20 = vpop.eup %8991 }
 0x189   : > { %v1185_v27 = vmul.f32 %v8992_v20, %v10019_v7 }
 0x18a   : > { %9005 = vrsqrt.f32 %v1128_v8  ;;  %v1204_v22 = vpack.c.bf16 %v1184_v47, %v1183_v44 }
 0x18b   : > { %v8994_v1 = vpop.eup %8993 }
 0x18c   : > { %8450 = vmatmul.mubr.msk.bf16.gmra.mxu0 %vm14278_vm0, %v1204_v22  ;;  %v1186_v2 = vmul.f32 %v8994_v1, %v10023_v6  ;;  %v8996_v42 = vpop.eup %8995 }
 0x18d   : > { %v1187_v18 = vmul.f32 %v8996_v42, %v10031_v12 }
 0x18e   : > { %v1205_v0 = vpack.c.bf16 %v1186_v2, %v1185_v27 }
 0x18f   : > { %v8998_v37 = vpop.eup %8997 }
 0x190   : > { %8453 = vmatprep.mubr.msk.bf16.mxu0 %vm14278_vm0, %v1205_v0  ;;  %v1188_v59 = vmul.f32 %v8998_v37, %v10035_v35  ;;  %v9000_v30 = vpop.eup %8999 }
 0x191   : > { %v1189_v7 = vmul.f32 %v9000_v30, %v10043_v19  ;;  %v9367_v19 = vld [vmem:[%s9698_s28] sm:$0xff] }
 0x192   : > { %v1206_v32 = vpack.c.bf16 %v1188_v59, %v1187_v18 }
 0x193   : > { %v9002_v29 = vpop.eup %9001 }
 0x194   : > { %8454 = vmatmul.mubr.msk.bf16.gmra.mxu0 %vm14278_vm0, %v1206_v32  ;;  %v1190_v6 = vmul.f32 %v9002_v29, %v10047_v21  ;;  %v9004_v38 = vpop.eup %9003  ;;  %v9368_v21 = vld [vmem:[%s9698_s28 + $0x18] sm:$0xff]  ;;  %s14927_s28 = sshll.u32 %s9654_s6, 8  ;;  %s8121_s6 = sshll.u32 %s9616_s5, 11 }
 0x195   : > { %v1191_v12 = vmul.f32 %v9004_v38, %v10055_v23  ;;  %s9472_s5 = smov [#allocation2]  }
 0x196   : > { %v1207_v34 = vpack.c.bf16 %v1190_v6, %v1189_v7 }
 0x197   : > { %v9006_v14 = vpop.eup %9005 }
 0x198   : > { %8457 = vmatprep.mubr.msk.bf16.mxu0 %vm14278_vm0, %v1207_v34  ;;  %v1192_v35 = vmul.f32 %v9006_v14, %v10059_v24 }
 0x19a   : > { %v1208_v25 = vpack.c.bf16 %v1192_v35, %v1191_v12 }
 0x19c   : > { %8458 = vmatmul.mubr.msk.bf16.gmra.mxu0 %vm14278_vm0, %v1208_v25 }
 0x1d4   : > { %v8489_v26 = vpop.f32.mrf.mxu1 }
 0x1d5   : > { %v10153_v50 = vsub.f32 %v9369_v9, %v8489_v26 }
 0x1d6   : > { %v1646_v39 = vpop.f32.mrf.mxu1 }
 0x1d7   : > { %v10147_v43 = vsub.f32 %v9367_v19, %v1646_v39  ;;  %v1687_v36 = vmul.f32 %v10153_v50, %v10153_v50 }
 0x1d8   : > { %v8490_v49 = vpop.f32.mrf.mxu1 }
 0x1d9   : > { %v10150_v33 = vsub.f32 %v9368_v21, %v8490_v49  ;;  %v1685_v58 = vmul.f32 %v10147_v43, %v10147_v43 }
 0x1da   : > { %v1649_v23 = vpop.f32.mrf.mxu1 }
 0x1db   : > { %v10156_v24 = vsub.f32 %v9370_v52, %v1649_v23  ;;  %v1688_v10 = vmul.f32 %v10150_v33, %v10150_v33 }
 0x1dc   : > { %v8493_v13 = vpop.f32.mrf.mxu1 }
 0x1dd   : > { %v1686_v46 = vmul.f32 %v10156_v24, %v10156_v24  ;;  %v1694_v28 = vpack.c.bf16 %v1688_v10, %v1687_v36  ;;  %v10173_v16 = vsub.f32 %v9373_v15, %v8493_v13  ;;  %v8903_v13 = vld [vmem:[%s14383_s1 + $0x38] sm:$0xff]  }
 0x1de   : > { %v1662_v48 = vpop.f32.mrf.mxu1  ;;  %8529 = vmatprep.subr.bf16.mxu1 %v8903_v13 }
 0x1df   : > { %v1693_v4 = vpack.c.bf16 %v1686_v46, %v1685_v58  ;;  %v10167_v53 = vsub.f32 %v9371_v55, %v1662_v48  ;;  %v1691_v17 = vmul.f32 %v10173_v16, %v10173_v16  ;;  %v8904_v58 = vld [vmem:[%s14383_s1 + $0x30] sm:$0xff]   ;;  %8530 = vmatpush3.bf16.msra.mxu1 %v8903_v13 }
 0x1e0   : > { %v8494_v54 = vpop.f32.mrf.mxu1  ;;  %8531 = vmatprep.subr.bf16.mxu1 %v8904_v58 }
 0x1e1   : > { %v10170_v51 = vsub.f32 %v9372_v60, %v8494_v54  ;;  %8511 = vmatprep.mubr.bf16.mxu0 %v1693_v4  ;;  %v1689_v57 = vmul.f32 %v10167_v53, %v10167_v53  ;;  %v8905_v54 = vld [vmem:[%s14383_s1 + $0x28] sm:$0xff]  }
 0x1e2   : > { %v1665_v40 = vpop.f32.mrf.mxu1  ;;  %8512 = vmatmul.mubr.bf16.vlgmr.msra.gmra.mxu0 %v1694_v28 }
 0x1e3   : > { %v10176_v3 = vsub.f32 %v9374_v56, %v1665_v40  ;;  %8520 = vmatpush3.bf16.msra.mxu0 %v9866_v45  ;;  %v1692_v11 = vmul.f32 %v10170_v51, %v10170_v51  ;;  %v10190_v45 = vld [vmem:[%s14382_s27] ss:$0 sm:$0xff]  ;;  %8532 = vmatpush3.bf16.msra.mxu1 %v8904_v58  ;;  %s724_s27 = sand.u32 1, %s9461_s30  }
 0x1e4   : > { %8533 = vmatprep.subr.bf16.mxu1 %v8905_v54  ;;  %s7903_s0 = sshll.u32 %s724_s27, 7  ;;  %s14050_s2 = scalar_lea.sflag [#allocation3], %s724_s27 }
 0x1e5   : > { %v1690_v41 = vmul.f32 %v10176_v3, %v10176_v3  ;;  %v1696_v62 = vpack.c.bf16 %v1692_v11, %v1691_v17  ;;  %v8906_v11 = vld [vmem:[%s14383_s1 + $0x20] sm:$0xff]   ;;  %s10835_s29 = scalar_lea.vmem [#allocation2], %s7903_s0 }
 0x1e7   : > { %v1695_v31 = vpack.c.bf16 %v1690_v41, %v1689_v57  ;;  %8534 = vmatpush3.bf16.msra.mxu1 %v8905_v54 }
 0x1e8   : > { %8535 = vmatprep.subr.bf16.mxu1 %v8906_v11 }
 0x1e9   : > { %8515 = vmatprep.mubr.bf16.mxu0 %v1695_v31 }
 0x1ea   : > { %8516 = vmatmul.mubr.bf16.gmra.mxu0 %v1696_v62 }
 0x1eb   : > { %8536 = vmatpush3.bf16.msra.mxu1 %v8906_v11 }
 0x224   : > { %v8431_v63 = vpop.f32.mrf.mxu0 }
 0x225   : > { %v10193_v5 = vadd.f32 %v8431_v63, %v10190_v45  ;;  %v8907_v63 = vld [vmem:[%s14383_s1 + $0x18] sm:$0xff]  }
 0x226   : > { %v10195_v61 = vpop.f32.mrf.mxu0  ;;  %8537 = vmatprep.subr.bf16.mxu1 %v8907_v63 }
 0x227   : > { %8538 = vmatpush3.bf16.msra.mxu1 %v8907_v63 }
 0x228   : > { %v8432_v8 = vpop.f32.mrf.mxu0 }
 0x229   : > { %v10198_v44 = vadd.f32 %v8432_v8, %v10190_v45 }
 0x22a   : > { %v10200_v47 = vpop.f32.mrf.mxu0 }
 0x22b   : > { %v2400_v20 = vpack.c.bf16 %v10198_v44, %v10193_v5 }
 0x22c   : > { %v8435_v22 = vpop.f32.mrf.mxu0 }
 0x22d   : > { %v10205_v1 = vadd.f32 %v8435_v22, %v10190_v45 }
 0x22e   : > { %v1330_v27 = vpop.f32.mrf.mxu0 }
 0x22f   : > { %v10208_v2 = vadd.f32 %v10190_v45, %v1330_v27 }
 0x230   : > { %v8436_v42 = vpop.f32.mrf.mxu0 }
 0x231   : > { %v10211_v0 = vadd.f32 %v8436_v42, %v10190_v45 }
 0x232   : > { %v1333_v37 = vpop.f32.mrf.mxu0 }
 0x233   : > { %v10216_v59 = vadd.f32 %v10190_v45, %v1333_v37 }
 0x234   : > { %v8439_v30 = vpop.f32.mrf.mxu0 }
 0x235   : > { %v2401_v32 = vpack.c.bf16 %v10216_v59, %v10208_v2  ;;  %v10221_v29 = vadd.f32 %v8439_v30, %v10190_v45 }
 0x236   : > { %v1346_v7 = vpop.f32.mrf.mxu0 }
 0x237   : > { %v10224_v6 = vadd.f32 %v10190_v45, %v1346_v7 }
 0x238   : > { %v8440_v38 = vpop.f32.mrf.mxu0 }
 0x239   : > { %v10227_v34 = vadd.f32 %v8440_v38, %v10190_v45 }
 0x23a   : > { %v1349_v14 = vpop.f32.mrf.mxu0 }
 0x23b   : > { %v10232_v35 = vadd.f32 %v10190_v45, %v1349_v14  ;;  %v14389_v5 = vpack.c.bf16 %v10227_v34, %v10221_v29 }
 0x23c   : > { %v8443_v25 = vpop.f32.mrf.mxu0 }
 0x23d   : > { %v10237_v39 = vadd.f32 %v8443_v25, %v10190_v45 }
 0x23e   : > { %v1362_v49 = vpop.f32.mrf.mxu0 }
 0x23f   : > { %v10240_v19 = vadd.f32 %v10190_v45, %v1362_v49 }
 0x240   : > { %v8444_v21 = vpop.f32.mrf.mxu0 }
 0x241   : > { %v10243_v9 = vadd.f32 %v8444_v21, %v10190_v45 }
 0x242   : > { %v1365_v23 = vpop.f32.mrf.mxu0 }
 0x243   : > { %v10248_v10 = vadd.f32 %v10190_v45, %v1365_v23 }
 0x244   : > { %v8447_v46 = vpop.f32.mrf.mxu0 }
 0x245   : > { %v10259_v48 = vadd.f32 %v8447_v46, %v10190_v45  ;;  %v14390_v44 = vpack.c.bf16 %v10248_v10, %v10240_v19 }
 0x246   : > { %v1378_v4 = vpop.f32.mrf.mxu0 }
 0x247   : > { %v10262_v28 = vadd.f32 %v10190_v45, %v1378_v4 }
 0x248   : > { %v8448_v55 = vpop.f32.mrf.mxu0 }
 0x249   : > { %v10268_v60 = vadd.f32 %v8448_v55, %v10190_v45 }
 0x24a   : > { %v1381_v15 = vpop.f32.mrf.mxu0 }
 0x24b   : > { %v10273_v56 = vadd.f32 %v10190_v45, %v1381_v15  ;;  %v14393_v2 = vpack.c.bf16 %v10268_v60, %v10259_v48 }
 0x24c   : > { %v8451_v57 = vpop.f32.mrf.mxu0 }
 0x24d   : > { %v10281_v17 = vadd.f32 %v8451_v57, %v10190_v45 }
 0x24e   : > { %v1394_v31 = vpop.f32.mrf.mxu0 }
 0x24f   : > { %v10284_v62 = vadd.f32 %v10190_v45, %v1394_v31 }
 0x250   : > { %v8452_v8 = vpop.f32.mrf.mxu0 }
 0x251   : > { %v10290_v22 = vadd.f32 %v8452_v8, %v10190_v45 }
 0x252   : > { %v1397_v27 = vpop.f32.mrf.mxu0 }
 0x253   : > { %v10295_v37 = vadd.f32 %v10190_v45, %v1397_v27  ;;  %v14395_v59 = vpack.c.bf16 %v10290_v22, %v10281_v17 }
 0x254   : > { %v8455_v30 = vpop.f32.mrf.mxu0 }
 0x255   : > { %v10300_v38 = vadd.f32 %v8455_v30, %v10190_v45 }
 0x256   : > { %v1410_v14 = vpop.f32.mrf.mxu0 }
 0x257   : > { %v10303_v25 = vadd.f32 %v10190_v45, %v1410_v14 }
 0x258   : > { %v8456_v49 = vpop.f32.mrf.mxu0 }
 0x259   : > { %v10306_v21 = vadd.f32 %v8456_v49, %v10190_v45 }
 0x25a   : > { %v1413_v23 = vpop.f32.mrf.mxu0 }
 0x25b   : > { %v10311_v58 = vadd.f32 %v10190_v45, %v1413_v23  ;;  %v14397_v29 = vpack.c.bf16 %v10306_v21, %v10300_v38 }
 0x25c   : > { %v8459_v46 = vpop.f32.mrf.mxu0 }
 0x25d   : > { %v10316_v54 = vadd.f32 %v8459_v46, %v10190_v45 }
 0x25e   : > { %v1426_v55 = vpop.f32.mrf.mxu0 }
 0x25f   : > { %v10319_v15 = vadd.f32 %v10190_v45, %v1426_v55 }
 0x260   : > { %v8460_v11 = vpop.f32.mrf.mxu0 }
 0x261   : > { %v10322_v57 = vadd.f32 %v8460_v11, %v10190_v45 }
 0x262   : > { %v1429_v31 = vpop.f32.mrf.mxu0 }
 0x263   : > { %v10327_v8 = vadd.f32 %v10190_v45, %v1429_v31  ;;  %v14399_v34 = vpack.c.bf16 %v10322_v57, %v10316_v54 }
 0x2a2   : > { %v8513_v30 = vpop.f32.mrf.mxu0 }
 0x2a3   : > { %v1764_v23 = vmul.f32 0.03125, %v8513_v30 }
 0x2a4   : > { %v1731_v14 = vpop.f32.mrf.mxu0 }
 0x2a5   : > { %v1762_v49 = vmul.f32 0.03125, %v1731_v14  ;;  %v1772_v7 = vadd.f32 1e-06, %v1764_v23 }
 0x2a6   : > { %v8514_v46 = vpop.f32.mrf.mxu0 }
 0x2a7   : > { %v1770_v55 = vadd.f32 1e-06, %v1762_v49  ;;  %v1765_v13 = vmul.f32 0.03125, %v8514_v46 }
 0x2a8   : > { %v1734_v4 = vpop.f32.mrf.mxu0 }
 0x2a9   : > { %v1773_v11 = vadd.f32 1e-06, %v1765_v13  ;;  %v1763_v42 = vmul.f32 0.03125, %v1734_v4  ;;  %9007 = vrsqrt.f32 %v1770_v55 }
 0x2aa   : > { %v8517_v40 = vpop.f32.mrf.mxu0 }
 0x2ab   : > { %v1771_v63 = vadd.f32 1e-06, %v1763_v42  ;;  %9009 = vrsqrt.f32 %v1773_v11  ;;  %v1768_v27 = vmul.f32 0.03125, %v8517_v40 }
 0x2ac   : > { %v1747_v31 = vpop.f32.mrf.mxu0 }
 0x2ad   : > { %9011 = vrsqrt.f32 %v1771_v63  ;;  %v1766_v41 = vmul.f32 0.03125, %v1747_v31  ;;  %v1776_v46 = vadd.f32 1e-06, %v1768_v27  ;;  %v8909_v31 = vld [vmem:[%s14383_s1 + $0x8] sm:$0xff]  }
 0x2ae   : > { %9013 = vrsqrt.f32 %v1772_v7  ;;  %v8518_v52 = vpop.f32.mrf.mxu0 }
 0x2af   : > { %v1774_v36 = vadd.f32 1e-06, %v1766_v41  ;;  %v1769_v14 = vmul.f32 0.03125, %v8518_v52 }
 0x2b0   : > { %v1750_v30 = vpop.f32.mrf.mxu0 }
 0x2b1   : > { %v1777_v12 = vadd.f32 1e-06, %v1769_v14  ;;  %v1767_v49 = vmul.f32 0.03125, %v1750_v30  ;;  %9015 = vrsqrt.f32 %v1774_v36  ;;  %v8910_v14 = vld [vmem:[%s14383_s1] sm:$0xff]  }
 0x2b3   : > { %v1775_v13 = vadd.f32 1e-06, %v1767_v49  ;;  %9017 = vrsqrt.f32 %v1777_v12  ;;  %v8908_v12 = vld [vmem:[%s14383_s1 + $0x10] sm:$0xff]   ;;  %s13871_s1 = scalar_lea.vmem %s14176_s22, %s14927_s28  ;;  %s14044_s28 = scalar_lea.hbm %s14177_s23, %s8121_s6 }
 0x2b4   : > { %8539 = vmatprep.subr.bf16.mxu1 %v8908_v12 }
 0x2b5   : > { %9019 = vrsqrt.f32 %v1775_v13  ;;  %8540 = vmatpush3.bf16.msra.mxu1 %v8908_v12 }
 0x2b6   : > { %9021 = vrsqrt.f32 %v1776_v46  ;;  %v9008_v4 = vpop.eup %9007  ;;  %8541 = vmatprep.subr.bf16.mxu1 %v8909_v31 }
 0x2b8   : > { %v9010_v42 = vpop.eup %9009 }
 0x2b9   : > { %8542 = vmatpush3.bf16.msra.mxu1 %v8909_v31 }
 0x2ba   : > { %v9012_v23 = vpop.eup %9011  ;;  %8543 = vmatprep.subr.bf16.mxu1 %v8910_v14 }
 0x2bb   : > { %v9014_v55 = vpop.eup %9013  ;;  %v1786_v63 = vpack.c.bf16 %v9012_v23, %v9008_v4 }
 0x2bc   : > { %v1787_v11 = vpack.c.bf16 %v9010_v42, %v9014_v55 }
 0x2bd   : > { %8521 = vmatprep.mubr.msk.bf16.mxu0 %vm1595_vm2, %v1786_v63  ;;  %8544 = vmatpush3.bf16.msra.mxu1 %v8910_v14 }
 0x2be   : > { %8522 = vmatmul.mubr.msk.bf16.vlgmr.msra.gmra.mxu0 %vm1595_vm2, %v1787_v11  ;;  %v9016_v52 = vpop.eup %9015 }
 0x2c0   : > { %v9018_v40 = vpop.eup %9017 }
 0x2c2   : > { %v9020_v41 = vpop.eup %9019 }
 0x2c3   : > { %v9022_v7 = vpop.eup %9021  ;;  %v1788_v27 = vpack.c.bf16 %v9020_v41, %v9016_v52 }
 0x2c4   : > { %v1789_v36 = vpack.c.bf16 %v9018_v40, %v9022_v7 }
 0x2c5   : > { %8525 = vmatprep.mubr.msk.bf16.mxu0 %vm1595_vm2, %v1788_v27 }
 0x2c6   : > { %8526 = vmatmul.mubr.msk.bf16.gmra.mxu0 %vm1595_vm2, %v1789_v36 }
 0x37e   : > { %v8523_v30 = vpop.f32.mrf.mxu0 }
 0x37f   : > { %v1869_v55 = vmul.f32 %v8523_v30, %v10153_v50  ;;  %v1315_v50 = vadd.f32 %v10190_v45, %v10195_v61 }
 0x380   : > { %v1836_v49 = vpop.f32.mrf.mxu0 }
 0x381   : > { %v1867_v42 = vmul.f32 %v1836_v49, %v10147_v43 }
 0x382   : > { %v8524_v46 = vpop.f32.mrf.mxu0 }
 0x383   : > { %v1870_v13 = vmul.f32 %v8524_v46, %v10150_v33  ;;  %v1318_v33 = vadd.f32 %v10190_v45, %v10200_v47  ;;  %v7945_v47 = vld [vmem:[%s14384_s24] ss:$0 sm:$0xff] }
 0x384   : > { %v1839_v4 = vpop.f32.mrf.mxu0 }
 0x385   : > { %v1868_v23 = vmul.f32 %v1839_v4, %v10156_v24  ;;  %v1876_v52 = vpack.c.bf16 %v1870_v13, %v1869_v55  ;;  %v2399_v14 = vpack.c.bf16 %v1318_v33, %v1315_v50 }
 0x386   : > { %v8527_v63 = vpop.f32.mrf.mxu0 }
 0x387   : > { %v1875_v11 = vpack.c.bf16 %v1868_v23, %v1867_v42  ;;  %v1873_v24 = vmul.f32 %v8527_v63, %v10173_v16 }
 0x388   : > { %v1852_v40 = vpop.f32.mrf.mxu0 }
 0x389   : > { %8545 = vmatprep.mubr.bf16.mxu1 %v1875_v11  ;;  %v1871_v36 = vmul.f32 %v1852_v40, %v10167_v53 }
 0x38a   : > { %v8528_v41 = vpop.f32.mrf.mxu0  ;;  %8546 = vmatmul.mubr.bf16.vlgmr.msra.gmra.mxu1 %v1876_v52 }
 0x38b   : > { %v1874_v7 = vmul.f32 %v8528_v41, %v10170_v51 }
 0x38c   : > { %v1855_v27 = vpop.f32.mrf.mxu0 }
 0x38d   : > { %v1872_v43 = vmul.f32 %v1855_v27, %v10176_v3  ;;  %v1878_v31 = vpack.c.bf16 %v1874_v7, %v1873_v24 }
 0x38f   : > { %v1877_v12 = vpack.c.bf16 %v1872_v43, %v1871_v36 }
 0x391   : > { %8549 = vmatprep.mubr.bf16.mxu1 %v1877_v12 }
 0x392   : > { %8550 = vmatmul.mubr.bf16.gmra.mxu1 %v1878_v31 }
 0x393   : > { %8593 = vmatprep.mubr.msk.bf16.mxu1 %vm14278_vm0, %v2399_v14 }
 0x44a   : > { %v8547_v51 = vpop.f32.mrf.mxu1 }
 0x44b   : > { %v1993_v49 = vadd.f32 %v8547_v51, %v7945_v47 }
 0x44c   : > { %v1984_v53 = vpop.f32.mrf.mxu1 }
 0x44d   : > { %v1985_v30 = vadd.f32 %v7945_v47, %v1984_v53  ;;  %v2021_v42 = vsel %vm14278_vm0, %v1993_v49, 0.0 }
 0x44e   : > { %v8548_v3 = vpop.f32.mrf.mxu1 }
 0x44f   : > { %v2015_v16 = vsel %vm14278_vm0, %v1985_v30, 0.0  ;;  %v1996_v13 = vadd.f32 %v8548_v3, %v7945_v47 }
 0x450   : > { %v1987_v46 = vpop.f32.mrf.mxu1  ;;  %2016 = vadd.xlane.f32.xlu0 %v2015_v16 }
 0x451   : > { %v1988_v45 = vadd.f32 %v7945_v47, %v1987_v46  ;;  %v2024_v52 = vsel %vm14278_vm0, %v1996_v13, 0.0 }
 0x452   : > { %v8551_v61 = vpop.f32.mrf.mxu1 }
 0x453   : > { %v2018_v4 = vsel %vm14278_vm0, %v1988_v45, 0.0  ;;  %v2009_v11 = vadd.f32 %v8551_v61, %v7945_v47 }
 0x454   : > { %2019 = vadd.xlane.f32.xlu1 %v2018_v4  ;;  %2022 = vadd.xlane.f32.xlu0 %v2021_v42  ;;  %v2000_v23 = vpop.f32.mrf.mxu1 }
 0x455   : > { %v2001_v55 = vadd.f32 %v7945_v47, %v2000_v23  ;;  %v2033_v36 = vsel %vm14278_vm0, %v2009_v11, 0.0 }
 0x456   : > { %v8552_v63 = vpop.f32.mrf.mxu1 }
 0x457   : > { %v2027_v40 = vsel %vm14278_vm0, %v2001_v55, 0.0  ;;  %v2012_v27 = vadd.f32 %v8552_v63, %v7945_v47 }
 0x458   : > { %2025 = vadd.xlane.f32.xlu1 %v2024_v52  ;;  %v2003_v41 = vpop.f32.mrf.mxu1  ;;  %2028 = vadd.xlane.f32.xlu0 %v2027_v40 }
 0x459   : > { %v2004_v7 = vadd.f32 %v7945_v47, %v2003_v41  ;;  %v2036_v43 = vsel %vm14278_vm0, %v2012_v27, 0.0 }
 0x45b   : > { %v2030_v33 = vsel %vm14278_vm0, %v2004_v7, 0.0 }
 0x45c   : > { %2031 = vadd.xlane.f32.xlu1 %v2030_v33  ;;  %2034 = vadd.xlane.f32.xlu0 %v2033_v36 }
 0x460   : > { %2037 = vadd.xlane.f32.xlu1 %v2036_v43 }
 0x4d9   : > { %v2017_v24 = vpop.xlane.xlu0 %2016 }
 0x4da   : > { %v2039_v50 = vmul.f32 0.03125, %v2017_v24 }
 0x4dc   : > { %v10368_v12 = vsub.f32 %v1985_v30, %v2039_v50 }
 0x4dd   : > { %v2020_v31 = vpop.xlane.xlu1 %2019  ;;  %v2023_v14 = vpop.xlane.xlu0 %2022 }
 0x4de   : > { %v2040_v51 = vmul.f32 0.03125, %v2020_v31  ;;  %v2041_v53 = vmul.f32 0.03125, %v2023_v14  ;;  %v2055_v47 = vmul.f32 %v10368_v12, %v10368_v12 }
 0x4e0   : > { %v10372_v3 = vsub.f32 %v1988_v45, %v2040_v51  ;;  %v10374_v16 = vsub.f32 %v1993_v49, %v2041_v53  ;;  %v2063_v46 = vsel %vm14278_vm0, %v2055_v47, 0.0 }
 0x4e1   : > { %v2026_v61 = vpop.xlane.xlu1 %2025  ;;  %2064 = vadd.xlane.f32.xlu0 %v2063_v46  ;;  %v2029_v4 = vpop.xlane.xlu0 %2028 }
 0x4e2   : > { %v2042_v42 = vmul.f32 0.03125, %v2026_v61  ;;  %v2043_v23 = vmul.f32 0.03125, %v2029_v4  ;;  %v2056_v30 = vmul.f32 %v10372_v3, %v10372_v3  ;;  %v2057_v63 = vmul.f32 %v10374_v16, %v10374_v16 }
 0x4e4   : > { %v10381_v52 = vsub.f32 %v1996_v13, %v2042_v42  ;;  %v10383_v40 = vsub.f32 %v2001_v55, %v2043_v23  ;;  %v2066_v49 = vsel %vm14278_vm0, %v2056_v30, 0.0  ;;  %v2069_v45 = vsel %vm14278_vm0, %v2057_v63, 0.0  ;;  %v8911_v23 = vld [vmem:[%s14385_s8 + $0x8] sm:$0xff]  }
 0x4e5   : > { %2067 = vadd.xlane.f32.xlu1 %v2066_v49  ;;  %v2032_v41 = vpop.xlane.xlu1 %2031  ;;  %2070 = vadd.xlane.f32.xlu0 %v2069_v45  ;;  %v2035_v33 = vpop.xlane.xlu0 %2034  ;;  %v8913_v30 = vld [vmem:[%s14164_s10 + $0x8] sm:$0xff]  }
 0x4e6   : > { %v2044_v36 = vmul.f32 0.03125, %v2032_v41  ;;  %v2045_v43 = vmul.f32 0.03125, %v2035_v33  ;;  %v2058_v24 = vmul.f32 %v10381_v52, %v10381_v52  ;;  %v2059_v50 = vmul.f32 %v10383_v40, %v10383_v40  ;;  %8553 = vmatprep.subr.bf16.mxu0 %v8911_v23 }
 0x4e7   : > { %8554 = vmatpush3.bf16.msra.mxu0 %v8911_v23 }
 0x4e8   : > { %v10391_v13 = vsub.f32 %v2004_v7, %v2044_v36  ;;  %v10393_v55 = vsub.f32 %v2009_v11, %v2045_v43  ;;  %v2072_v31 = vsel %vm14278_vm0, %v2058_v24, 0.0  ;;  %v2075_v14 = vsel %vm14278_vm0, %v2059_v50, 0.0 }
 0x4e9   : > { %2073 = vadd.xlane.f32.xlu1 %v2072_v31  ;;  %v2038_v51 = vpop.xlane.xlu1 %2037  ;;  %2076 = vadd.xlane.f32.xlu0 %v2075_v14 }
 0x4ea   : > { %v2046_v53 = vmul.f32 0.03125, %v2038_v51  ;;  %v2060_v47 = vmul.f32 %v10391_v13, %v10391_v13  ;;  %v2061_v46 = vmul.f32 %v10393_v55, %v10393_v55 }
 0x4ec   : > { %v10401_v61 = vsub.f32 %v2012_v27, %v2046_v53  ;;  %v2078_v7 = vsel %vm14278_vm0, %v2060_v47, 0.0  ;;  %v2081_v11 = vsel %vm14278_vm0, %v2061_v46, 0.0  ;;  %v8912_v27 = vld [vmem:[%s14385_s8] sm:$0xff]  }
 0x4ed   : > { %2079 = vadd.xlane.f32.xlu1 %v2078_v7  ;;  %2082 = vadd.xlane.f32.xlu0 %v2081_v11 }
 0x4ee   : > { %v2062_v4 = vmul.f32 %v10401_v61, %v10401_v61  ;;  %8555 = vmatprep.subr.bf16.mxu0 %v8912_v27 }
 0x4ef   : > { %8556 = vmatpush3.bf16.msra.mxu0 %v8912_v27 }
 0x4f0   : > { %v2084_v42 = vsel %vm14278_vm0, %v2062_v4, 0.0  ;;  %8565 = vmatprep.subr.bf16.mxu0 %v8913_v30 }
 0x4f1   : > { %2085 = vadd.xlane.f32.xlu1 %v2084_v42 }
 0x56a   : > { %v2065_v63 = vpop.xlane.xlu0 %2064 }
 0x56b   : > { %v2087_v49 = vmul.f32 0.03125, %v2065_v63 }
 0x56d   : > { %v2095_v45 = vadd.f32 1e-05, %v2087_v49 }
 0x56e   : > { %v2068_v41 = vpop.xlane.xlu1 %2067  ;;  %v2071_v33 = vpop.xlane.xlu0 %2070 }
 0x56f   : > { %v2088_v36 = vmul.f32 0.03125, %v2068_v41  ;;  %v2089_v43 = vmul.f32 0.03125, %v2071_v33  ;;  %9023 = vrsqrt.f32 %v2095_v45 }
 0x571   : > { %v2096_v24 = vadd.f32 1e-05, %v2088_v36  ;;  %v2097_v50 = vadd.f32 1e-05, %v2089_v43 }
 0x572   : > { %v2074_v31 = vpop.xlane.xlu1 %2073  ;;  %v2077_v14 = vpop.xlane.xlu0 %2076 }
 0x573   : > { %9025 = vrsqrt.f32 %v2096_v24  ;;  %v2090_v51 = vmul.f32 0.03125, %v2074_v31  ;;  %v2091_v53 = vmul.f32 0.03125, %v2077_v14 }
 0x574   : > { %9027 = vrsqrt.f32 %v2097_v50 }
 0x575   : > { %v2098_v47 = vadd.f32 1e-05, %v2090_v51  ;;  %v2099_v46 = vadd.f32 1e-05, %v2091_v53 }
 0x576   : > { %v2080_v7 = vpop.xlane.xlu1 %2079  ;;  %v2083_v11 = vpop.xlane.xlu0 %2082 }
 0x577   : > { %9029 = vrsqrt.f32 %v2098_v47  ;;  %v2092_v4 = vmul.f32 0.03125, %v2080_v7  ;;  %v2093_v42 = vmul.f32 0.03125, %v2083_v11 }
 0x578   : > { %9031 = vrsqrt.f32 %v2099_v46  ;;  %v8914_v46 = vld [vmem:[%s14164_s10] sm:$0xff]  }
 0x579   : > { %v2100_v23 = vadd.f32 1e-05, %v2092_v4  ;;  %v2101_v27 = vadd.f32 1e-05, %v2093_v42 }
 0x57a   : > { %v2086_v63 = vpop.xlane.xlu1 %2085 }
 0x57b   : > { %9033 = vrsqrt.f32 %v2100_v23  ;;  %v2094_v49 = vmul.f32 0.03125, %v2086_v63  ;;  %v8929_v63 = vld [vmem:[%s14175_s21 + $0x8] sm:$0xff]  }
 0x57c   : > { %9035 = vrsqrt.f32 %v2101_v27  ;;  %v9024_v41 = vpop.eup %9023  ;;  %v8928_v27 = vld [vmem:[%s14175_s21 + $0x10] sm:$0xff]  }
 0x57d   : > { %v2102_v45 = vadd.f32 1e-05, %v2094_v49  ;;  %v2111_v36 = vmul.f32 %v9024_v41, %v10368_v12  ;;  %v8930_v49 = vld [vmem:[%s14175_s21] sm:$0xff]  }
 0x57f   : > { %9037 = vrsqrt.f32 %v2102_v45 }
 0x580   : > { %v9026_v33 = vpop.eup %9025 }
 0x581   : > { %v2112_v43 = vmul.f32 %v9026_v33, %v10372_v3  ;;  %v9028_v24 = vpop.eup %9027 }
 0x582   : > { %v2113_v14 = vmul.f32 %v9028_v24, %v10374_v16 }
 0x583   : > { %v2119_v50 = vpack.c.bf16 %v2112_v43, %v2111_v36 }
 0x584   : > { %v9030_v31 = vpop.eup %9029 }
 0x585   : > { %v2114_v51 = vmul.f32 %v9030_v31, %v10381_v52  ;;  %8557 = vmatprep.mubr.msk.bf16.mxu0 %vm14278_vm0, %v2119_v50  ;;  %v9032_v53 = vpop.eup %9031 }
 0x586   : > { %v2115_v12 = vmul.f32 %v9032_v53, %v10383_v40  ;;  %v8917_v40 = vld [vmem:[%s14175_s21 + $0x38] sm:$0xff]  }
 0x587   : > { %v2120_v47 = vpack.c.bf16 %v2114_v51, %v2113_v14  ;;  %v8922_v53 = vld [vmem:[%s14174_s20 + $0x38] sm:$0xff]  }
 0x588   : > { %v9034_v7 = vpop.eup %9033 }
 0x589   : > { %8558 = vmatmul.mubr.msk.bf16.vlgmr.msra.gmra.mxu0 %vm14278_vm0, %v2120_v47  ;;  %v2116_v3 = vmul.f32 %v9034_v7, %v10391_v13  ;;  %v9036_v11 = vpop.eup %9035  ;;  %v8920_v13 = vld [vmem:[%s14175_s21 + $0x30] sm:$0xff]  }
 0x58a   : > { %8566 = vmatpush3.bf16.msra.mxu0 %v8913_v30  ;;  %v2117_v4 = vmul.f32 %v9036_v11, %v10393_v55  ;;  %v8923_v55 = vld [vmem:[%s14175_s21 + $0x28] sm:$0xff]   ;;  %v8927_v30 = vld [vmem:[%s14175_s21 + $0x18] sm:$0xff]   ;;  %v8925_v11 = vld [vmem:[%s14174_s20 + $0x30] sm:$0xff]  }
 0x58b   : > { %v2121_v16 = vpack.c.bf16 %v2116_v3, %v2115_v12  ;;  %8567 = vmatprep.subr.bf16.mxu0 %v8914_v46 }
 0x58c   : > { %v9038_v52 = vpop.eup %9037 }
 0x58d   : > { %8561 = vmatprep.mubr.msk.bf16.mxu0 %vm14278_vm0, %v2121_v16  ;;  %v2118_v42 = vmul.f32 %v9038_v52, %v10401_v61  ;;  %v8926_v61 = vld [vmem:[%s14175_s21 + $0x20] sm:$0xff]  }
 0x58e   : > { %8568 = vmatpush3.bf16.msra.mxu0 %v8914_v46  ;;  %v7961_v46 = vld [vmem:[%s14165_s11] ss:$0 sm:$0xff] }
 0x58f   : > { %v2122_v23 = vpack.c.bf16 %v2118_v42, %v2117_v4  ;;  %8625 = vmatprep.subr.bf16.mxu0 %v8917_v40 }
 0x591   : > { %8562 = vmatmul.mubr.msk.bf16.gmra.mxu0 %vm14278_vm0, %v2122_v23 }
 0x592   : > { %8569 = vmatprep.mubr.msk.bf16.mxu0 %vm14278_vm0, %v2119_v50  ;;  %v7954_v50 = vld [vmem:[%s14386_s9] ss:$0 sm:$0xff] }
 0x599   : > { %8570 = vmatmul.mubr.msk.bf16.vlgmr.msra.gmra.mxu0 %vm14278_vm0, %v2120_v47 }
 0x59a   : > { %8573 = vmatprep.mubr.msk.bf16.mxu0 %vm14278_vm0, %v2121_v16  ;;  %8626 = vmatpush3.bf16.msra.mxu0 %v8917_v40 }
 0x59b   : > { %8627 = vmatprep.subr.bf16.mxu0 %v8920_v13 }
 0x59e   : > { %8628 = vmatpush3.bf16.msra.mxu0 %v8920_v13 }
 0x59f   : > { %8629 = vmatprep.subr.bf16.mxu0 %v8923_v55 }
 0x5a1   : > { %8574 = vmatmul.mubr.msk.bf16.gmra.mxu0 %vm14278_vm0, %v2122_v23 }
 0x5a2   : > { %8630 = vmatpush3.bf16.msra.mxu0 %v8923_v55 }
 0x5a3   : > { %8631 = vmatprep.subr.bf16.mxu0 %v8926_v61 }
 0x5a6   : > { %8632 = vmatpush3.bf16.msra.mxu0 %v8926_v61 }
 0x5a7   : > { %8633 = vmatprep.subr.bf16.mxu0 %v8927_v30 }
 0x5aa   : > { %8634 = vmatpush3.bf16.msra.mxu0 %v8927_v30 }
 0x5ab   : > { %8635 = vmatprep.subr.bf16.mxu0 %v8928_v27 }
 0x5ae   : > { %8636 = vmatpush3.bf16.msra.mxu0 %v8928_v27 }
 0x5af   : > { %8637 = vmatprep.subr.bf16.mxu0 %v8929_v63 }
 0x5b2   : > { %8638 = vmatpush3.bf16.msra.mxu0 %v8929_v63 }
 0x5b3   : > { %8639 = vmatprep.subr.bf16.mxu0 %v8930_v49 }
 0x5b6   : > { %8640 = vmatpush3.bf16.msra.mxu0 %v8930_v49 }
 0x649   : > { %v8559_v45 = vpop.f32.mrf.mxu0 }
 0x64a   : > { %v2201_v30 = vadd.f32 %v8559_v45, %v7954_v50  ;;  %v8918_v45 = vld [vmem:[%s14174_s20] sm:$0xff]  }
 0x64b   : > { %v2192_v41 = vpop.f32.mrf.mxu0 }
 0x64d   : > { %v8560_v33 = vpop.f32.mrf.mxu0 }
 0x64e   : > { %v2204_v23 = vadd.f32 %v8560_v33, %v7954_v50  ;;  %v8915_v33 = vld [vmem:[%s14174_s20 + $0x8] sm:$0xff]  }
 0x64f   : > { %v2195_v36 = vpop.f32.mrf.mxu0 }
 0x650   : > { %v2328_v49 = vpack.c.bf16 %v2204_v23, %v2201_v30  ;;  %v2196_v23 = vadd.f32 %v7954_v50, %v2195_v36  ;;  %v8921_v36 = vld [vmem:[%s14174_s20 + $0x18] sm:$0xff]  }
 0x651   : > { %v8563_v43 = vpop.f32.mrf.mxu0 }
 0x652   : > { %v2217_v14 = vadd.f32 %v8563_v43, %v7954_v50  ;;  %v8916_v43 = vld [vmem:[%s14174_s20 + $0x28] sm:$0xff]  }
 0x653   : > { %v2208_v24 = vpop.f32.mrf.mxu0 }
 0x654   : > { %v2209_v7 = vadd.f32 %v7954_v50, %v2208_v24 }
 0x655   : > { %v8564_v31 = vpop.f32.mrf.mxu0 }
 0x656   : > { %v2220_v51 = vadd.f32 %v8564_v31, %v7954_v50 }
 0x657   : > { %v2211_v47 = vpop.f32.mrf.mxu0 }
 0x658   : > { %v2330_v12 = vpack.c.bf16 %v2220_v51, %v2217_v14  ;;  %v2212_v3 = vadd.f32 %v7954_v50, %v2211_v47  ;;  %v8919_v47 = vld [vmem:[%s14174_s20 + $0x20] sm:$0xff]  }
 0x659   : > { %v8571_v16 = vpop.f32.mrf.mxu0 }
 0x65a   : > { %v2390_v52 = vmul.bf16 %v8922_v53, %v2330_v12  ;;  %v2329_v4 = vpack.c.bf16 %v2212_v3, %v2209_v7  ;;  %v2289_v42 = vadd.f32 %v8571_v16, %v7961_v46 }
 0x65b   : > { %v2280_v40 = vpop.f32.mrf.mxu0 }
 0x65c   : > { %v2389_v13 = vmul.bf16 %v8925_v11, %v2329_v4  ;;  %v2281_v55 = vadd.f32 %v7961_v46, %v2280_v40  ;;  %8843 = vmatprep.subr.msk.bf16.mxu1 %vm14278_vm0, %v2390_v52  ;;  %v2485_v61 = vsel %vm14278_vm0, %v2390_v52, 0  ;;  %v2388_v52 = vmul.bf16 %v8916_v43, %v2328_v49 }
 0x65d   : > { %v8572_v27 = vpop.f32.mrf.mxu0  ;;  %8578 = vmatpush3.bf16.xpose.msra.mxu1 %v2485_v61 }
 0x65e   : > { %v2292_v63 = vadd.f32 %v8572_v27, %v7961_v46  ;;  %8844 = vmatprep.subr.msk.bf16.mxu1 %vm14278_vm0, %v2389_v13 }
 0x65f   : > { %v2283_v24 = vpop.f32.mrf.mxu0 }
 0x660   : > { %v2332_v31 = vpack.c.bf16 %v2292_v63, %v2289_v42  ;;  %v2284_v14 = vadd.f32 %v7961_v46, %v2283_v24  ;;  %v2482_v42 = vsel %vm14278_vm0, %v2389_v13, 0  ;;  %v2193_v24 = vadd.f32 %v7954_v50, %v2192_v41  ;;  %v8924_v13 = vld [vmem:[%s14174_s20 + $0x10] sm:$0xff]  }
 0x661   : > { %v8575_v51 = vpop.f32.mrf.mxu0 }
 0x662   : > { %v2331_v7 = vpack.c.bf16 %v2284_v14, %v2281_v55  ;;  %v10487_v3 = vmul.bf16 %v8916_v43, %v2332_v31  ;;  %v10489_v16 = vmul.bf16 %v8915_v33, %v2332_v31  ;;  %v2305_v26 = vadd.f32 %v8575_v51, %v7961_v46 }
 0x663   : > { %v2296_v40 = vpop.f32.mrf.mxu0  ;;  %v2327_v31 = vpack.c.bf16 %v2196_v23, %v2193_v24  ;;  %v2479_v51 = vsel %vm14278_vm0, %v2388_v52, 0 }
 0x664   : > { %v2297_v61 = vadd.f32 %v7961_v46, %v2296_v40  ;;  %v10492_v30 = vmul.bf16 %v8919_v47, %v2331_v7  ;;  %v10494_v27 = vmul.bf16 %v8918_v45, %v2331_v7 }
 0x665   : > { %v8576_v63 = vpop.f32.mrf.mxu0  ;;  %8580 = vmatpush3.bf16.xpose.msra.mxu1 %v2482_v42  ;;  %v2387_v50 = vmul.bf16 %v8919_v47, %v2327_v31  ;;  %v2384_v47 = vmul.bf16 %v8915_v33, %v2328_v49  ;;  %v14388_v49 = vpack.c.bf16 %v10232_v35, %v10224_v6  ;;  %v14398_v6 = vpack.c.bf16 %v10327_v8, %v10319_v15 }
 0x666   : > { %v2308_v18 = vadd.f32 %v8576_v63, %v7961_v46  ;;  %8845 = vmatprep.subr.msk.bf16.mxu1 %vm14278_vm0, %v2388_v52  ;;  %v2383_v52 = vmul.bf16 %v8918_v45, %v2327_v31 }
 0x667   : > { %v2299_v55 = vpop.f32.mrf.mxu0 }
 0x668   : > { %v2334_v43 = vpack.c.bf16 %v2308_v18, %v2305_v26  ;;  %v2300_v14 = vadd.f32 %v7961_v46, %v2299_v55  ;;  %v2386_v18 = vmul.bf16 %v8921_v36, %v2330_v12  ;;  %v2476_v26 = vsel %vm14278_vm0, %v2387_v50, 0 }
 0x669   : > { %v2467_v12 = vsel %vm14278_vm0, %v2384_v47, 0 }
 0x66a   : > { %v2333_v7 = vpack.c.bf16 %v2300_v14, %v2297_v61  ;;  %v10503_v40 = vmul.bf16 %v8922_v53, %v2334_v43  ;;  %v10505_v41 = vmul.bf16 %v8921_v36, %v2334_v43  ;;  %v2385_v53 = vmul.bf16 %v8924_v13, %v2329_v4 }
 0x66b   : > { %v2473_v46 = vsel %vm14278_vm0, %v2386_v18, 0  ;;  %v2464_v61 = vsel %vm14278_vm0, %v2383_v52, 0  ;;  %v14387_v4 = vpack.c.bf16 %v10211_v0, %v10205_v1  ;;  %v14392_v1 = vpack.c.bf16 %v10273_v56, %v10262_v28 }
 0x66c   : > { %8673 = vmatprep.subr.bf16.mxu0 %v10503_v40  ;;  %v10509_v23 = vmul.bf16 %v8925_v11, %v2333_v7  ;;  %v10511_v42 = vmul.bf16 %v8924_v13, %v2333_v7  ;;  %v2470_v11 = vsel %vm14278_vm0, %v2385_v53, 0  ;;  %v14394_v0 = vpack.c.bf16 %v10295_v37, %v10284_v62 }
 0x66d   : > { %8582 = vmatpush3.bf16.xpose.msra.mxu1 %v2479_v51 }
 0x66e   : > { %8846 = vmatprep.subr.msk.bf16.mxu1 %vm14278_vm0, %v2387_v50 }
 0x675   : > { %8584 = vmatpush3.bf16.xpose.msra.mxu1 %v2476_v26 }
 0x676   : > { %8847 = vmatprep.subr.msk.bf16.mxu1 %vm14278_vm0, %v2386_v18 }
 0x67d   : > { %8586 = vmatpush3.bf16.xpose.msra.mxu1 %v2473_v46 }
 0x67e   : > { %8848 = vmatprep.subr.msk.bf16.mxu1 %vm14278_vm0, %v2385_v53 }
 0x685   : > { %8588 = vmatpush3.bf16.xpose.msra.mxu1 %v2470_v11 }
 0x686   : > { %8849 = vmatprep.subr.msk.bf16.mxu1 %vm14278_vm0, %v2384_v47 }
 0x68d   : > { %8590 = vmatpush3.bf16.xpose.msra.mxu1 %v2467_v12 }
 0x68e   : > { %8850 = vmatprep.subr.msk.bf16.mxu1 %vm14278_vm0, %v2383_v52 }
 0x695   : > { %8592 = vmatpush3.bf16.xpose.msra.mxu1 %v2464_v61 }
 0x69c   : > { %8594 = vmatmul.mubr.msk.bf16.vlgmr.msra.gmra.mxu1 %vm14278_vm0, %v2400_v20  ;;  %v14391_v20 = vpack.c.bf16 %v10243_v9, %v10237_v39 }
 0x69d   : > { %8597 = vmatprep.mubr.msk.bf16.mxu1 %vm14278_vm0, %v2401_v32  ;;  %v14396_v32 = vpack.c.bf16 %v10311_v58, %v10303_v25 }
 0x6a4   : > { %8598 = vmatmul.mubr.msk.bf16.gmra.mxu1 %vm14278_vm0, %v14387_v4 }
 0x6a5   : > { %8601 = vmatprep.mubr.msk.bf16.mxu1 %vm14278_vm0, %v14388_v49 }
 0x6ac   : > { %8602 = vmatmul.mubr.msk.bf16.gmra.mxu1 %vm14278_vm0, %v14389_v5 }
 0x6ad   : > { %8605 = vmatprep.mubr.msk.bf16.mxu1 %vm14278_vm0, %v14390_v44 }
 0x6b4   : > { %8606 = vmatmul.mubr.msk.bf16.gmra.mxu1 %vm14278_vm0, %v14391_v20 }
 0x6b5   : > { %8609 = vmatprep.mubr.msk.bf16.mxu1 %vm14278_vm0, %v14392_v1 }
 0x6bc   : > { %8610 = vmatmul.mubr.msk.bf16.gmra.mxu1 %vm14278_vm0, %v14393_v2 }
 0x6bd   : > { %8613 = vmatprep.mubr.msk.bf16.mxu1 %vm14278_vm0, %v14394_v0 }
 0x6c4   : > { %8614 = vmatmul.mubr.msk.bf16.gmra.mxu1 %vm14278_vm0, %v14395_v59 }
 0x6c5   : > { %8617 = vmatprep.mubr.msk.bf16.mxu1 %vm14278_vm0, %v14396_v32 }
 0x6cc   : > { %8618 = vmatmul.mubr.msk.bf16.gmra.mxu1 %vm14278_vm0, %v14397_v29 }
 0x6cd   : > { %8621 = vmatprep.mubr.msk.bf16.mxu1 %vm14278_vm0, %v14398_v6 }
 0x6d4   : > { %8622 = vmatmul.mubr.msk.bf16.gmra.mxu1 %vm14278_vm0, %v14399_v34 }
 0x75c   : > { %v10583_v35 = vpop.f32.mrf.mxu1 }
 0x75e   : > { %v10585_v39 = vpop.f32.mrf.mxu1 }
 0x75f   : > { %2648 = vmax.xlane.f32.xlu0 %v10585_v39 }
 0x760   : > { %v10588_v19 = vpop.f32.mrf.mxu1 }
 0x762   : > { %v10590_v9 = vpop.f32.mrf.mxu1 }
 0x763   : > { %2652 = vmax.xlane.f32.xlu0 %v10583_v35  ;;  %2650 = vmax.xlane.f32.xlu1 %v10590_v9 }
 0x764   : > { %v10594_v10 = vpop.f32.mrf.mxu1 }
 0x766   : > { %v10596_v48 = vpop.f32.mrf.mxu1 }
 0x767   : > { %2654 = vmax.xlane.f32.xlu1 %v10588_v19  ;;  %2656 = vmax.xlane.f32.xlu0 %v10596_v48 }
 0x768   : > { %v10600_v28 = vpop.f32.mrf.mxu1 }
 0x76a   : > { %v10602_v60 = vpop.f32.mrf.mxu1 }
 0x76b   : > { %2660 = vmax.xlane.f32.xlu0 %v10594_v10  ;;  %2658 = vmax.xlane.f32.xlu1 %v10602_v60 }
 0x76c   : > { %v10606_v56 = vpop.f32.mrf.mxu1 }
 0x76e   : > { %v10608_v17 = vpop.f32.mrf.mxu1 }
 0x76f   : > { %2662 = vmax.xlane.f32.xlu1 %v10600_v28  ;;  %2664 = vmax.xlane.f32.xlu0 %v10608_v17 }
 0x770   : > { %v10612_v62 = vpop.f32.mrf.mxu1 }
 0x772   : > { %v10614_v22 = vpop.f32.mrf.mxu1 }
 0x773   : > { %2668 = vmax.xlane.f32.xlu0 %v10606_v56  ;;  %2666 = vmax.xlane.f32.xlu1 %v10614_v22 }
 0x774   : > { %v10618_v37 = vpop.f32.mrf.mxu1 }
 0x776   : > { %v10620_v38 = vpop.f32.mrf.mxu1 }
 0x777   : > { %2670 = vmax.xlane.f32.xlu1 %v10612_v62  ;;  %2672 = vmax.xlane.f32.xlu0 %v10620_v38 }
 0x778   : > { %v10624_v25 = vpop.f32.mrf.mxu1 }
 0x77a   : > { %v10626_v21 = vpop.f32.mrf.mxu1 }
 0x77b   : > { %2676 = vmax.xlane.f32.xlu0 %v10618_v37  ;;  %2674 = vmax.xlane.f32.xlu1 %v10626_v21 }
 0x77c   : > { %v10630_v58 = vpop.f32.mrf.mxu1 }
 0x77e   : > { %v10632_v54 = vpop.f32.mrf.mxu1 }
 0x77f   : > { %2678 = vmax.xlane.f32.xlu1 %v10624_v25  ;;  %2680 = vmax.xlane.f32.xlu0 %v10632_v54 }
 0x780   : > { %v10636_v15 = vpop.f32.mrf.mxu1 }
 0x782   : > { %v10638_v57 = vpop.f32.mrf.mxu1 }
 0x783   : > { %2684 = vmax.xlane.f32.xlu0 %v10630_v58  ;;  %2682 = vmax.xlane.f32.xlu1 %v10638_v57 }
 0x784   : > { %v10642_v8 = vpop.f32.mrf.mxu1 }
 0x786   : > { %v10644_v33 = vpop.f32.mrf.mxu1 }
 0x787   : > { %2686 = vmax.xlane.f32.xlu1 %v10636_v15  ;;  %2688 = vmax.xlane.f32.xlu0 %v10644_v33 }
 0x788   : > { %v10648_v45 = vpop.f32.mrf.mxu1 }
 0x78a   : > { %v10650_v63 = vpop.f32.mrf.mxu1 }
 0x78b   : > { %2692 = vmax.xlane.f32.xlu0 %v10642_v8  ;;  %2690 = vmax.xlane.f32.xlu1 %v10650_v63 }
 0x78c   : > { %v10654_v24 = vpop.f32.mrf.mxu1 }
 0x78e   : > { %v10656_v55 = vpop.f32.mrf.mxu1 }
 0x78f   : > { %2694 = vmax.xlane.f32.xlu1 %v10648_v45  ;;  %2696 = vmax.xlane.f32.xlu0 %v10656_v55 }
 0x790   : > { %v10660_v31 = vpop.f32.mrf.mxu1 }
 0x792   : > { %v10662_v36 = vpop.f32.mrf.mxu1 }
 0x793   : > { %2700 = vmax.xlane.f32.xlu0 %v10654_v24  ;;  %2698 = vmax.xlane.f32.xlu1 %v10662_v36 }
 0x794   : > { %v10666_v43 = vpop.f32.mrf.mxu1 }
 0x796   : > { %v10668_v14 = vpop.f32.mrf.mxu1 }
 0x797   : > { %2702 = vmax.xlane.f32.xlu1 %v10660_v31  ;;  %2704 = vmax.xlane.f32.xlu0 %v10668_v14 }
 0x798   : > { %v10672_v13 = vpop.f32.mrf.mxu1 }
 0x79a   : > { %v10674_v7 = vpop.f32.mrf.mxu1 }
 0x79b   : > { %2708 = vmax.xlane.f32.xlu0 %v10666_v43  ;;  %2706 = vmax.xlane.f32.xlu1 %v10674_v7 }
 0x79f   : > { %2710 = vmax.xlane.f32.xlu1 %v10672_v13 }
 0x7e8   : > { %v2649_v50 = vpop.xlane.xlu0 %2648 }
 0x7e9   : > { %v2712_v51 = vsub.f32 %v10585_v39, %v2649_v50 }
 0x7eb   : > { %v2744_v53 = vmul.f32 1.442695, %v2712_v51 }
 0x7ec   : > { %v2653_v18 = vpop.xlane.xlu0 %2652  ;;  %v2651_v26 = vpop.xlane.xlu1 %2650 }
 0x7ed   : > { %v2714_v46 = vsub.f32 %v10583_v35, %v2653_v18  ;;  %v2713_v47 = vsub.f32 %v10590_v9, %v2651_v26  ;;  %9039 = vpow2.f32 %v2744_v53 }
 0x7ef   : > { %v2746_v11 = vmul.f32 1.442695, %v2713_v47  ;;  %v2748_v52 = vmul.f32 1.442695, %v2714_v46 }
 0x7f0   : > { %v2655_v12 = vpop.xlane.xlu1 %2654  ;;  %v2657_v61 = vpop.xlane.xlu0 %2656 }
 0x7f1   : > { %v2715_v4 = vsub.f32 %v10588_v19, %v2655_v12  ;;  %v2716_v49 = vsub.f32 %v10596_v48, %v2657_v61  ;;  %9041 = vpow2.f32 %v2746_v11 }
 0x7f2   : > { %9043 = vpow2.f32 %v2748_v52 }
 0x7f3   : > { %v2750_v5 = vmul.f32 1.442695, %v2715_v4  ;;  %v2752_v1 = vmul.f32 1.442695, %v2716_v49 }
 0x7f4   : > { %v2661_v44 = vpop.xlane.xlu0 %2660  ;;  %v2659_v20 = vpop.xlane.xlu1 %2658 }
 0x7f5   : > { %9045 = vpow2.f32 %v2750_v5  ;;  %v2718_v2 = vsub.f32 %v10594_v10, %v2661_v44  ;;  %v2717_v0 = vsub.f32 %v10602_v60, %v2659_v20 }
 0x7f6   : > { %9047 = vpow2.f32 %v2752_v1 }
 0x7f7   : > { %v2754_v59 = vmul.f32 1.442695, %v2717_v0  ;;  %v2756_v32 = vmul.f32 1.442695, %v2718_v2 }
 0x7f8   : > { %v2663_v29 = vpop.xlane.xlu1 %2662  ;;  %v2665_v6 = vpop.xlane.xlu0 %2664 }
 0x7f9   : > { %v2719_v34 = vsub.f32 %v10600_v28, %v2663_v29  ;;  %v2720_v35 = vsub.f32 %v10608_v17, %v2665_v6  ;;  %9049 = vpow2.f32 %v2754_v59 }
 0x7fa   : > { %9051 = vpow2.f32 %v2756_v32  ;;  %v10690_v50 = vpop.eup %9039 }
 0x7fb   : > { %v2758_v39 = vmul.f32 1.442695, %v2719_v34  ;;  %v2760_v48 = vmul.f32 1.442695, %v2720_v35 }
 0x7fc   : > { %v2669_v19 = vpop.xlane.xlu0 %2668  ;;  %v2667_v9 = vpop.xlane.xlu1 %2666 }
 0x7fd   : > { %9053 = vpow2.f32 %v2758_v39  ;;  %v2722_v10 = vsub.f32 %v10606_v56, %v2669_v19  ;;  %v2721_v60 = vsub.f32 %v10614_v22, %v2667_v9 }
 0x7fe   : > { %v10692_v51 = vpop.eup %9041  ;;  %9055 = vpow2.f32 %v2760_v48 }
 0x7ff   : > { %v2762_v18 = vmul.f32 1.442695, %v2721_v60  ;;  %v2764_v26 = vmul.f32 1.442695, %v2722_v10  ;;  %v2808_v17 = vpack.c.bf16 %v10692_v51, %v10690_v50  ;;  %v10696_v46 = vpop.eup %9043 }
 0x800   : > { %v2671_v28 = vpop.xlane.xlu1 %2670  ;;  %v2673_v53 = vpop.xlane.xlu0 %2672 }
 0x801   : > { %v2723_v47 = vsub.f32 %v10612_v62, %v2671_v28  ;;  %v2724_v56 = vsub.f32 %v10620_v38, %v2673_v53  ;;  %9057 = vpow2.f32 %v2762_v18  ;;  %8641 = vmatprep.mubr.bf16.mxu0 %v2808_v17 }
 0x802   : > { %v10700_v11 = vpop.eup %9045  ;;  %9059 = vpow2.f32 %v2764_v26 }
 0x803   : > { %v2766_v22 = vmul.f32 1.442695, %v2723_v47  ;;  %v2809_v52 = vpack.c.bf16 %v10700_v11, %v10696_v46  ;;  %v2768_v4 = vmul.f32 1.442695, %v2724_v56  ;;  %v10706_v62 = vpop.eup %9047 }
 0x804   : > { %v2677_v12 = vpop.xlane.xlu0 %2676  ;;  %v2675_v61 = vpop.xlane.xlu1 %2674 }
 0x805   : > { %9061 = vpow2.f32 %v2766_v22  ;;  %v2726_v49 = vsub.f32 %v10618_v37, %v2677_v12  ;;  %v2725_v5 = vsub.f32 %v10626_v21, %v2675_v61  ;;  %8642 = vmatmul.mubr.bf16.vlgmr.msra.gmra.mxu0 %v2809_v52 }
 0x806   : > { %8674 = vmatpush3.bf16.msra.mxu0 %v10503_v40  ;;  %v10709_v38 = vpop.eup %9049  ;;  %9063 = vpow2.f32 %v2768_v4 }
 0x807   : > { %v2770_v44 = vmul.f32 1.442695, %v2725_v5  ;;  %8675 = vmatprep.subr.bf16.mxu0 %v10509_v23  ;;  %v2772_v20 = vmul.f32 1.442695, %v2726_v49  ;;  %v2810_v0 = vpack.c.bf16 %v10709_v38, %v10706_v62  ;;  %v10714_v59 = vpop.eup %9051 }
 0x808   : > { %v2679_v1 = vpop.xlane.xlu1 %2678  ;;  %v2681_v2 = vpop.xlane.xlu0 %2680 }
 0x809   : > { %v2727_v37 = vsub.f32 %v10624_v25, %v2679_v1  ;;  %v2728_v21 = vsub.f32 %v10632_v54, %v2681_v2  ;;  %9065 = vpow2.f32 %v2770_v44  ;;  %8645 = vmatprep.mubr.bf16.mxu0 %v2810_v0 }
 0x80a   : > { %v10718_v32 = vpop.eup %9053  ;;  %8676 = vmatpush3.bf16.msra.mxu0 %v10509_v23  ;;  %9067 = vpow2.f32 %v2772_v20 }
 0x80b   : > { %v2774_v40 = vmul.f32 1.442695, %v2727_v37  ;;  %8677 = vmatprep.subr.bf16.mxu0 %v10487_v3  ;;  %v2811_v29 = vpack.c.bf16 %v10718_v32, %v10714_v59  ;;  %v2776_v35 = vmul.f32 1.442695, %v2728_v21  ;;  %v10726_v39 = vpop.eup %9055 }
 0x80c   : > { %v2685_v6 = vpop.xlane.xlu0 %2684  ;;  %v2683_v34 = vpop.xlane.xlu1 %2682 }
 0x80d   : > { %9069 = vpow2.f32 %v2774_v40  ;;  %v2730_v25 = vsub.f32 %v10630_v58, %v2685_v6  ;;  %v2729_v54 = vsub.f32 %v10638_v57, %v2683_v34  ;;  %8646 = vmatmul.mubr.bf16.gmra.mxu0 %v2811_v29 }
 0x80e   : > { %8678 = vmatpush3.bf16.msra.mxu0 %v10487_v3  ;;  %v10729_v23 = vpop.eup %9057  ;;  %9071 = vpow2.f32 %v2776_v35 }
 0x80f   : > { %v2778_v19 = vmul.f32 1.442695, %v2729_v54  ;;  %8679 = vmatprep.subr.bf16.mxu0 %v10492_v30  ;;  %v2780_v9 = vmul.f32 1.442695, %v2730_v25  ;;  %v2812_v60 = vpack.c.bf16 %v10729_v23, %v10726_v39  ;;  %v10734_v18 = vpop.eup %9059 }
 0x810   : > { %v2687_v48 = vpop.xlane.xlu1 %2686  ;;  %v2689_v10 = vpop.xlane.xlu0 %2688 }
 0x811   : > { %v2731_v58 = vsub.f32 %v10636_v15, %v2687_v48  ;;  %v2732_v57 = vsub.f32 %v10644_v33, %v2689_v10  ;;  %9073 = vpow2.f32 %v2778_v19  ;;  %8649 = vmatprep.mubr.bf16.mxu0 %v2812_v60 }
 0x812   : > { %v10738_v26 = vpop.eup %9061  ;;  %8680 = vmatpush3.bf16.msra.mxu0 %v10492_v30  ;;  %9075 = vpow2.f32 %v2780_v9 }
 0x813   : > { %v2782_v3 = vmul.f32 1.442695, %v2731_v58  ;;  %8681 = vmatprep.subr.bf16.mxu0 %v10505_v41  ;;  %v2813_v28 = vpack.c.bf16 %v10738_v26, %v10734_v18  ;;  %v2784_v47 = vmul.f32 1.442695, %v2732_v57  ;;  %v10746_v56 = vpop.eup %9063 }
 0x814   : > { %v2693_v53 = vpop.xlane.xlu0 %2692  ;;  %v2691_v17 = vpop.xlane.xlu1 %2690 }
 0x815   : > { %9077 = vpow2.f32 %v2782_v3  ;;  %v2734_v15 = vsub.f32 %v10642_v8, %v2693_v53  ;;  %v2733_v33 = vsub.f32 %v10650_v63, %v2691_v17  ;;  %8650 = vmatmul.mubr.bf16.gmra.mxu0 %v2813_v28 }
 0x816   : > { %8682 = vmatpush3.bf16.msra.mxu0 %v10505_v41  ;;  %v10749_v30 = vpop.eup %9065  ;;  %9079 = vpow2.f32 %v2784_v47 }
 0x817   : > { %v2786_v22 = vmul.f32 1.442695, %v2733_v33  ;;  %8683 = vmatprep.subr.bf16.mxu0 %v10511_v42  ;;  %v2788_v52 = vmul.f32 1.442695, %v2734_v15  ;;  %v2814_v4 = vpack.c.bf16 %v10749_v30, %v10746_v56  ;;  %v10754_v49 = vpop.eup %9067 }
 0x818   : > { %v2695_v12 = vpop.xlane.xlu1 %2694  ;;  %v2697_v61 = vpop.xlane.xlu0 %2696 }
 0x819   : > { %v2735_v8 = vsub.f32 %v10648_v45, %v2695_v12  ;;  %v2736_v63 = vsub.f32 %v10656_v55, %v2697_v61  ;;  %9081 = vpow2.f32 %v2786_v22  ;;  %8653 = vmatprep.mubr.bf16.mxu0 %v2814_v4 }
 0x81a   : > { %v10758_v5 = vpop.eup %9069  ;;  %8684 = vmatpush3.bf16.msra.mxu0 %v10511_v42  ;;  %9083 = vpow2.f32 %v2788_v52 }
 0x81b   : > { %v2790_v41 = vmul.f32 1.442695, %v2735_v8  ;;  %8685 = vmatprep.subr.bf16.mxu0 %v10489_v16  ;;  %v2815_v44 = vpack.c.bf16 %v10758_v5, %v10754_v49  ;;  %v2792_v2 = vmul.f32 1.442695, %v2736_v63  ;;  %v10766_v0 = vpop.eup %9071 }
 0x81c   : > { %v2701_v20 = vpop.xlane.xlu0 %2700  ;;  %v2699_v1 = vpop.xlane.xlu1 %2698 }
 0x81d   : > { %9085 = vpow2.f32 %v2790_v41  ;;  %v2738_v45 = vsub.f32 %v10654_v24, %v2701_v20  ;;  %v2737_v55 = vsub.f32 %v10662_v36, %v2699_v1  ;;  %8654 = vmatmul.mubr.bf16.gmra.mxu0 %v2815_v44  ;;  %v8931_v41 = vld [vmem:[%s14166_s12 + $0x8] sm:$0xff]   ;;  %v8932_v44 = vld [vmem:[%s14166_s12] sm:$0xff]  }
 0x81e   : > { %8686 = vmatpush3.bf16.msra.mxu0 %v10489_v16  ;;  %v10769_v42 = vpop.eup %9073  ;;  %9087 = vpow2.f32 %v2792_v2  ;;  %8721 = vmatprep.subr.bf16.mxu1 %v8931_v41 }
 0x81f   : > { %v2794_v37 = vmul.f32 1.442695, %v2737_v55  ;;  %8687 = vmatprep.subr.bf16.mxu0 %v10494_v27  ;;  %v2796_v21 = vmul.f32 1.442695, %v2738_v45  ;;  %v2816_v6 = vpack.c.bf16 %v10769_v42, %v10766_v0  ;;  %v10774_v34 = vpop.eup %9075  ;;  %8722 = vmatpush3.bf16.msra.mxu1 %v8931_v41 }
 0x820   : > { %v2703_v40 = vpop.xlane.xlu1 %2702  ;;  %v2705_v29 = vpop.xlane.xlu0 %2704  ;;  %8723 = vmatprep.subr.bf16.mxu1 %v8932_v44 }
 0x821   : > { %v2739_v24 = vsub.f32 %v10660_v31, %v2703_v40  ;;  %v2740_v36 = vsub.f32 %v10668_v14, %v2705_v29  ;;  %9089 = vpow2.f32 %v2794_v37  ;;  %8657 = vmatprep.mubr.bf16.mxu0 %v2816_v6 }
 0x822   : > { %v10778_v35 = vpop.eup %9077  ;;  %8688 = vmatpush3.bf16.msra.mxu0 %v10494_v27  ;;  %9091 = vpow2.f32 %v2796_v21 }
 0x823   : > { %v2798_v16 = vmul.f32 1.442695, %v2739_v24  ;;  %v2817_v25 = vpack.c.bf16 %v10778_v35, %v10774_v34  ;;  %v2800_v9 = vmul.f32 1.442695, %v2740_v36  ;;  %v10785_v14 = vpop.eup %9079  ;;  %8724 = vmatpush3.bf16.msra.mxu1 %v8932_v44 }
 0x824   : > { %v2709_v54 = vpop.xlane.xlu0 %2708  ;;  %v2707_v19 = vpop.xlane.xlu1 %2706 }
 0x825   : > { %9093 = vpow2.f32 %v2798_v16  ;;  %v2742_v48 = vsub.f32 %v10666_v43, %v2709_v54  ;;  %v2741_v31 = vsub.f32 %v10674_v7, %v2707_v19  ;;  %8658 = vmatmul.mubr.bf16.gmra.mxu0 %v2817_v25 }
 0x826   : > { %v10787_v10 = vpop.eup %9081  ;;  %9095 = vpow2.f32 %v2800_v9 }
 0x827   : > { %v2802_v60 = vmul.f32 1.442695, %v2741_v31  ;;  %v2804_v27 = vmul.f32 1.442695, %v2742_v48  ;;  %v2818_v57 = vpack.c.bf16 %v10787_v10, %v10785_v14  ;;  %v10791_v3 = vpop.eup %9083 }
 0x828   : > { %v2711_v58 = vpop.xlane.xlu1 %2710 }
 0x829   : > { %v2743_v28 = vsub.f32 %v10672_v13, %v2711_v58  ;;  %9097 = vpow2.f32 %v2802_v60  ;;  %8661 = vmatprep.mubr.bf16.mxu0 %v2818_v57 }
 0x82a   : > { %v10794_v53 = vpop.eup %9085  ;;  %9099 = vpow2.f32 %v2804_v27 }
 0x82b   : > { %v2806_v43 = vmul.f32 1.442695, %v2743_v28  ;;  %v2819_v7 = vpack.c.bf16 %v10794_v53, %v10791_v3  ;;  %v10798_v17 = vpop.eup %9087 }
 0x82d   : > { %9101 = vpow2.f32 %v2806_v43  ;;  %8662 = vmatmul.mubr.bf16.gmra.mxu0 %v2819_v7 }
 0x82e   : > { %v10800_v47 = vpop.eup %9089 }
 0x82f   : > { %v2820_v15 = vpack.c.bf16 %v10800_v47, %v10798_v17  ;;  %v10804_v33 = vpop.eup %9091 }
 0x831   : > { %8665 = vmatprep.mubr.bf16.mxu0 %v2820_v15 }
 0x832   : > { %v10806_v13 = vpop.eup %9093 }
 0x833   : > { %v2821_v22 = vpack.c.bf16 %v10806_v13, %v10804_v33  ;;  %v10810_v52 = vpop.eup %9095 }
 0x835   : > { %8666 = vmatmul.mubr.bf16.gmra.mxu0 %v2821_v22 }
 0x836   : > { %v10812_v12 = vpop.eup %9097 }
 0x837   : > { %v2822_v61 = vpack.c.bf16 %v10812_v12, %v10810_v52  ;;  %v10816_v4 = vpop.eup %9099 }
 0x839   : > { %8669 = vmatprep.mubr.bf16.mxu0 %v2822_v61 }
 0x83a   : > { %v10818_v8 = vpop.eup %9101 }
 0x83b   : > { %v2823_v63 = vpack.c.bf16 %v10818_v8, %v10816_v4 }
 0x83d   : > { %8670 = vmatmul.mubr.bf16.gmra.mxu0 %v2823_v63 }
 0x8c5   : > { %v8643_v20 = vpop.f32.mrf.mxu0 }
 0x8c6   : > { %v3051_v1 = vmax.f32 %v8643_v20, 1e-30 }
 0x8c7   : > { %v2922_v2 = vpop.f32.mrf.mxu0 }
 0x8c8   : > { %v3049_v45 = vmax.f32 %v2922_v2, 1e-30  ;;  %9103 = vrcp.f32 %v3051_v1 }
 0x8c9   : > { %v8644_v55 = vpop.f32.mrf.mxu0 }
 0x8ca   : > { %v3052_v37 = vmax.f32 %v8644_v55, 1e-30  ;;  %9105 = vrcp.f32 %v3049_v45 }
 0x8cb   : > { %v2925_v21 = vpop.f32.mrf.mxu0 }
 0x8cc   : > { %9107 = vrcp.f32 %v3052_v37  ;;  %v3050_v40 = vmax.f32 %v2925_v21, 1e-30 }
 0x8cd   : > { %v8647_v29 = vpop.f32.mrf.mxu0 }
 0x8ce   : > { %9109 = vrcp.f32 %v3050_v40  ;;  %v3055_v6 = vmax.f32 %v8647_v29, 1e-30 }
 0x8cf   : > { %v2938_v24 = vpop.f32.mrf.mxu0 }
 0x8d0   : > { %v3053_v36 = vmax.f32 %v2938_v24, 1e-30  ;;  %9111 = vrcp.f32 %v3055_v6 }
 0x8d1   : > { %v8648_v16 = vpop.f32.mrf.mxu0 }
 0x8d2   : > { %v3056_v25 = vmax.f32 %v8648_v16, 1e-30  ;;  %9113 = vrcp.f32 %v3053_v36 }
 0x8d3   : > { %v2941_v54 = vpop.f32.mrf.mxu0 }
 0x8d4   : > { %9115 = vrcp.f32 %v3056_v25  ;;  %v3054_v19 = vmax.f32 %v2941_v54, 1e-30 }
 0x8d5   : > { %v8651_v9 = vpop.f32.mrf.mxu0  ;;  %v9104_v31 = vpop.eup %9103 }
 0x8d6   : > { %9117 = vrcp.f32 %v3054_v19  ;;  %v3059_v48 = vmax.f32 %v8651_v9, 1e-30  ;;  %v3115_v7 = vmul.f32 %v9104_v31, %v10696_v46 }
 0x8d7   : > { %v2954_v60 = vpop.f32.mrf.mxu0  ;;  %v9106_v27 = vpop.eup %9105 }
 0x8d8   : > { %v3057_v58 = vmax.f32 %v2954_v60, 1e-30  ;;  %9119 = vrcp.f32 %v3059_v48  ;;  %v3113_v63 = vmul.f32 %v9106_v27, %v10690_v50 }
 0x8d9   : > { %v9108_v57 = vpop.eup %9107  ;;  %v8652_v28 = vpop.f32.mrf.mxu0 }
 0x8da   : > { %v3060_v43 = vmax.f32 %v8652_v28, 1e-30  ;;  %v3116_v15 = vmul.f32 %v9108_v57, %v10700_v11  ;;  %9121 = vrcp.f32 %v3057_v58 }
 0x8db   : > { %v9110_v22 = vpop.eup %9109  ;;  %v2957_v61 = vpop.f32.mrf.mxu0 }
 0x8dc   : > { %9123 = vrcp.f32 %v3060_v43  ;;  %v3058_v41 = vmax.f32 %v2957_v61, 1e-30  ;;  %v3114_v44 = vmul.f32 %v9110_v22, %v10692_v51  ;;  %v3146_v20 = vpack.c.bf16 %v3116_v15, %v3115_v7 }
 0x8dd   : > { %v8655_v1 = vpop.f32.mrf.mxu0  ;;  %v9112_v46 = vpop.eup %9111 }
 0x8de   : > { %9125 = vrcp.f32 %v3058_v41  ;;  %v3063_v2 = vmax.f32 %v8655_v1, 1e-30  ;;  %v3145_v45 = vpack.c.bf16 %v3114_v44, %v3113_v63  ;;  %8202 = vst [vmem:[%s10835_s29 + $0x8] sm:$0xff] %v3146_v20   ;;  %v3119_v40 = vmul.f32 %v9112_v46, %v10714_v59 }
 0x8df   : > { %v2970_v11 = vpop.f32.mrf.mxu0  ;;  %v9114_v55 = vpop.eup %9113 }
 0x8e0   : > { %v3061_v37 = vmax.f32 %v2970_v11, 1e-30  ;;  %8126 = vst [vmem:[%s10835_s29] sm:$0xff] %v3145_v45   ;;  %8689 = vmatprep.mubr.bf16.mxu0 %v3145_v45  ;;  %9127 = vrcp.f32 %v3063_v2  ;;  %v3117_v36 = vmul.f32 %v9114_v55, %v10706_v62 }
 0x8e1   : > { %v9116_v50 = vpop.eup %9115  ;;  %v8656_v21 = vpop.f32.mrf.mxu0  ;;  %8690 = vmatmul.mubr.bf16.vlgmr.msra.gmra.mxu0 %v3146_v20 }
 0x8e2   : > { %v3064_v51 = vmax.f32 %v8656_v21, 1e-30  ;;  %v3120_v29 = vmul.f32 %v9116_v50, %v10718_v32  ;;  %9129 = vrcp.f32 %v3061_v37 }
 0x8e3   : > { %v9118_v6 = vpop.eup %9117  ;;  %v2973_v24 = vpop.f32.mrf.mxu0 }
 0x8e4   : > { %9131 = vrcp.f32 %v3064_v51  ;;  %v3062_v16 = vmax.f32 %v2973_v24, 1e-30  ;;  %v3118_v25 = vmul.f32 %v9118_v6, %v10709_v38  ;;  %v3148_v54 = vpack.c.bf16 %v3120_v29, %v3119_v40 }
 0x8e5   : > { %v8659_v19 = vpop.f32.mrf.mxu0  ;;  %v9120_v31 = vpop.eup %9119 }
 0x8e6   : > { %9133 = vrcp.f32 %v3062_v16  ;;  %v3067_v9 = vmax.f32 %v8659_v19, 1e-30  ;;  %v3147_v48 = vpack.c.bf16 %v3118_v25, %v3117_v36  ;;  %8204 = vst [vmem:[%s10835_s29 + $0x18] sm:$0xff] %v3148_v54   ;;  %v3123_v38 = vmul.f32 %v9120_v31, %v10734_v18 }
 0x8e7   : > { %v2986_v59 = vpop.f32.mrf.mxu0  ;;  %v9122_v60 = vpop.eup %9121 }
 0x8e8   : > { %v3065_v32 = vmax.f32 %v2986_v59, 1e-30  ;;  %8203 = vst [vmem:[%s10835_s29 + $0x10] sm:$0xff] %v3147_v48   ;;  %8693 = vmatprep.mubr.bf16.mxu0 %v3147_v48  ;;  %9135 = vrcp.f32 %v3067_v9  ;;  %v3121_v7 = vmul.f32 %v9122_v60, %v10726_v39 }
 0x8e9   : > { %v9124_v27 = vpop.eup %9123  ;;  %v8660_v58 = vpop.f32.mrf.mxu0  ;;  %8694 = vmatmul.mubr.bf16.gmra.mxu0 %v3148_v54 }
 0x8ea   : > { %v3068_v62 = vmax.f32 %v8660_v58, 1e-30  ;;  %v3124_v57 = vmul.f32 %v9124_v27, %v10738_v26  ;;  %9137 = vrcp.f32 %v3065_v32 }
 0x8eb   : > { %v9126_v28 = vpop.eup %9125  ;;  %v2989_v43 = vpop.f32.mrf.mxu0 }
 0x8ec   : > { %9139 = vrcp.f32 %v3068_v62  ;;  %v3066_v15 = vmax.f32 %v2989_v43, 1e-30  ;;  %v3122_v22 = vmul.f32 %v9126_v28, %v10729_v23  ;;  %v3150_v61 = vpack.c.bf16 %v3124_v57, %v3123_v38 }
 0x8ed   : > { %v8663_v63 = vpop.f32.mrf.mxu0  ;;  %v9128_v20 = vpop.eup %9127 }
 0x8ee   : > { %9141 = vrcp.f32 %v3066_v15  ;;  %v3071_v41 = vmax.f32 %v8663_v63, 1e-30  ;;  %v3149_v44 = vpack.c.bf16 %v3122_v22, %v3121_v7  ;;  %8206 = vst [vmem:[%s10835_s29 + $0x28] sm:$0xff] %v3150_v61   ;;  %v3127_v23 = vmul.f32 %v9128_v20, %v10754_v49 }
 0x8ef   : > { %v3002_v18 = vpop.f32.mrf.mxu0  ;;  %v9130_v1 = vpop.eup %9129 }
 0x8f0   : > { %v3069_v26 = vmax.f32 %v3002_v18, 1e-30  ;;  %8205 = vst [vmem:[%s10835_s29 + $0x20] sm:$0xff] %v3149_v44   ;;  %8697 = vmatprep.mubr.bf16.mxu0 %v3149_v44  ;;  %9143 = vrcp.f32 %v3071_v41  ;;  %v3125_v37 = vmul.f32 %v9130_v1, %v10746_v56 }
 0x8f1   : > { %v9132_v2 = vpop.eup %9131  ;;  %v8664_v45 = vpop.f32.mrf.mxu0  ;;  %8698 = vmatmul.mubr.bf16.gmra.mxu0 %v3150_v61 }
 0x8f2   : > { %v3072_v39 = vmax.f32 %v8664_v45, 1e-30  ;;  %v3128_v46 = vmul.f32 %v9132_v2, %v10758_v5  ;;  %9145 = vrcp.f32 %v3069_v26 }
 0x8f3   : > { %v9134_v11 = vpop.eup %9133  ;;  %v3005_v55 = vpop.f32.mrf.mxu0 }
 0x8f4   : > { %9147 = vrcp.f32 %v3072_v39  ;;  %v3070_v50 = vmax.f32 %v3005_v55, 1e-30  ;;  %v3126_v21 = vmul.f32 %v9134_v11, %v10749_v30  ;;  %v3152_v51 = vpack.c.bf16 %v3128_v46, %v3127_v23 }
 0x8f5   : > { %v8667_v40 = vpop.f32.mrf.mxu0  ;;  %v9136_v24 = vpop.eup %9135 }
 0x8f6   : > { %9149 = vrcp.f32 %v3070_v50  ;;  %v3075_v29 = vmax.f32 %v8667_v40, 1e-30  ;;  %v3151_v6 = vpack.c.bf16 %v3126_v21, %v3125_v37  ;;  %8208 = vst [vmem:[%s10835_s29 + $0x38] sm:$0xff] %v3152_v51   ;;  %v3131_v30 = vmul.f32 %v9136_v24, %v10774_v34 }
 0x8f7   : > { %v3018_v49 = vpop.f32.mrf.mxu0  ;;  %v9138_v36 = vpop.eup %9137 }
 0x8f8   : > { %v3073_v5 = vmax.f32 %v3018_v49, 1e-30  ;;  %8207 = vst [vmem:[%s10835_s29 + $0x30] sm:$0xff] %v3151_v6   ;;  %8701 = vmatprep.mubr.bf16.mxu0 %v3151_v6  ;;  %9151 = vrcp.f32 %v3075_v29  ;;  %v3129_v48 = vmul.f32 %v9138_v36, %v10766_v0 }
 0x8f9   : > { %v9140_v16 = vpop.eup %9139  ;;  %v8668_v25 = vpop.f32.mrf.mxu0  ;;  %8702 = vmatmul.mubr.bf16.gmra.mxu0 %v3152_v51 }
 0x8fa   : > { %v3076_v56 = vmax.f32 %v8668_v25, 1e-30  ;;  %v3132_v54 = vmul.f32 %v9140_v16, %v10778_v35  ;;  %9153 = vrcp.f32 %v3073_v5 }
 0x8fb   : > { %v9142_v19 = vpop.eup %9141  ;;  %v3021_v9 = vpop.f32.mrf.mxu0 }
 0x8fc   : > { %9155 = vrcp.f32 %v3076_v56  ;;  %v3074_v31 = vmax.f32 %v3021_v9, 1e-30  ;;  %v3130_v59 = vmul.f32 %v9142_v19, %v10769_v42  ;;  %v3154_v60 = vpack.c.bf16 %v3132_v54, %v3131_v30 }
 0x8fd   : > { %v8671_v32 = vpop.f32.mrf.mxu0  ;;  %v9144_v62 = vpop.eup %9143 }
 0x8fe   : > { %9157 = vrcp.f32 %v3074_v31  ;;  %v3079_v27 = vmax.f32 %v8671_v32, 1e-30  ;;  %v3153_v58 = vpack.c.bf16 %v3130_v59, %v3129_v48  ;;  %8210 = vst [vmem:[%s10835_s29 + $0x48] sm:$0xff] %v3154_v60   ;;  %v3135_v42 = vmul.f32 %v9144_v62, %v10791_v3 }
 0x8ff   : > { %v3034_v34 = vpop.f32.mrf.mxu0  ;;  %v9146_v38 = vpop.eup %9145 }
 0x900   : > { %v3077_v35 = vmax.f32 %v3034_v34, 1e-30  ;;  %8209 = vst [vmem:[%s10835_s29 + $0x40] sm:$0xff] %v3153_v58   ;;  %8705 = vmatprep.mubr.bf16.mxu0 %v3153_v58  ;;  %9159 = vrcp.f32 %v3079_v27  ;;  %v3133_v22 = vmul.f32 %v9146_v38, %v10785_v14 }
 0x901   : > { %v9148_v57 = vpop.eup %9147  ;;  %v8672_v28 = vpop.f32.mrf.mxu0  ;;  %8706 = vmatmul.mubr.bf16.gmra.mxu0 %v3154_v60 }
 0x902   : > { %v3080_v0 = vmax.f32 %v8672_v28, 1e-30  ;;  %v3136_v43 = vmul.f32 %v9148_v57, %v10794_v53  ;;  %9161 = vrcp.f32 %v3077_v35 }
 0x903   : > { %v9150_v7 = vpop.eup %9149  ;;  %v3037_v15 = vpop.f32.mrf.mxu0 }
 0x904   : > { %9163 = vrcp.f32 %v3080_v0  ;;  %v3078_v61 = vmax.f32 %v3037_v15, 1e-30  ;;  %v3134_v63 = vmul.f32 %v9150_v7, %v10787_v10  ;;  %v3156_v41 = vpack.c.bf16 %v3136_v43, %v3135_v42 }
 0x905   : > { %v9152_v20 = vpop.eup %9151 }
 0x906   : > { %9165 = vrcp.f32 %v3078_v61  ;;  %v3155_v44 = vpack.c.bf16 %v3134_v63, %v3133_v22  ;;  %8212 = vst [vmem:[%s10835_s29 + $0x58] sm:$0xff] %v3156_v41   ;;  %v3139_v53 = vmul.f32 %v9152_v20, %v10804_v33 }
 0x907   : > { %v9154_v18 = vpop.eup %9153 }
 0x908   : > { %8211 = vst [vmem:[%s10835_s29 + $0x50] sm:$0xff] %v3155_v44   ;;  %8709 = vmatprep.mubr.bf16.mxu0 %v3155_v44  ;;  %v3137_v26 = vmul.f32 %v9154_v18, %v10798_v17 }
 0x909   : > { %v9156_v3 = vpop.eup %9155  ;;  %8710 = vmatmul.mubr.bf16.gmra.mxu0 %v3156_v41 }
 0x90a   : > { %v3140_v14 = vmul.f32 %v9156_v3, %v10806_v13 }
 0x90b   : > { %v9158_v1 = vpop.eup %9157 }
 0x90c   : > { %v3138_v10 = vmul.f32 %v9158_v1, %v10800_v47  ;;  %v3158_v2 = vpack.c.bf16 %v3140_v14, %v3139_v53  ;;  %v10900_v1 = vld [vmem:[%s14167_s13] ss:$0 sm:$0xff] }
 0x90d   : > { %v9160_v39 = vpop.eup %9159 }
 0x90e   : > { %v3157_v45 = vpack.c.bf16 %v3138_v10, %v3137_v26  ;;  %8214 = vst [vmem:[%s10835_s29 + $0x68] sm:$0xff] %v3158_v2   ;;  %v3143_v33 = vmul.f32 %v9160_v39, %v10816_v4  ;;  %v9375_v39 = vld [vmem:[%s9666_s26] sm:$0xff] }
 0x90f   : > { %v9162_v23 = vpop.eup %9161 }
 0x910   : > { %8213 = vst [vmem:[%s10835_s29 + $0x60] sm:$0xff] %v3157_v45   ;;  %8713 = vmatprep.mubr.bf16.mxu0 %v3157_v45  ;;  %v3141_v17 = vmul.f32 %v9162_v23, %v10810_v52 }
 0x911   : > { %v9164_v46 = vpop.eup %9163  ;;  %8714 = vmatmul.mubr.bf16.gmra.mxu0 %v3158_v2 }
 0x912   : > { %v3144_v13 = vmul.f32 %v9164_v46, %v10818_v8 }
 0x913   : > { %v9166_v11 = vpop.eup %9165 }
 0x914   : > { %v3142_v47 = vmul.f32 %v9166_v11, %v10812_v12  ;;  %v3160_v55 = vpack.c.bf16 %v3144_v13, %v3143_v33  ;;  %v9376_v13 = vld [vmem:[%s9666_s26 + $0x10] sm:$0xff] }
 0x916   : > { %v3159_v37 = vpack.c.bf16 %v3142_v47, %v3141_v17  ;;  %8216 = vst [vmem:[%s10835_s29 + $0x78] sm:$0xff] %v3160_v55  }
 0x918   : > { %8215 = vst [vmem:[%s10835_s29 + $0x70] sm:$0xff] %v3159_v37   ;;  %8717 = vmatprep.mubr.bf16.mxu0 %v3159_v37  ;;  %v9377_v37 = vld [vmem:[%s9666_s26 + $0x8] sm:$0xff] }
 0x919   : > { %8718 = vmatmul.mubr.bf16.gmra.mxu0 %v3160_v55 }
 0x9a1   : > { %v8691_v50 = vpop.f32.mrf.mxu0 }
 0x9a3   : > { %v3339_v21 = vpop.f32.mrf.mxu0 }
 0x9a5   : > { %v8692_v51 = vpop.f32.mrf.mxu0 }
 0x9a6   : > { %v3467_v6 = vpack.c.bf16 %v8692_v51, %v8691_v50 }
 0x9a7   : > { %v3342_v40 = vpop.f32.mrf.mxu0 }
 0x9a8   : > { %v3466_v29 = vpack.c.bf16 %v3342_v40, %v3339_v21  ;;  %v9378_v21 = vld [vmem:[%s9666_s26 + $0x18] sm:$0xff] }
 0x9a9   : > { %v8695_v4 = vpop.f32.mrf.mxu0 }
 0x9aa   : > { %8725 = vmatprep.mubr.msk.bf16.mxu1 %vm14278_vm0, %v3466_v29 }
 0x9ab   : > { %v3355_v8 = vpop.f32.mrf.mxu0  ;;  %8726 = vmatmul.mubr.msk.bf16.vlgmr.msra.gmra.mxu1 %vm14278_vm0, %v3467_v6 }
 0x9ad   : > { %v8696_v52 = vpop.f32.mrf.mxu0 }
 0x9ae   : > { %v3469_v49 = vpack.c.bf16 %v8696_v52, %v8695_v4 }
 0x9af   : > { %v3358_v12 = vpop.f32.mrf.mxu0 }
 0x9b0   : > { %v3468_v24 = vpack.c.bf16 %v3358_v12, %v3355_v8  ;;  %v9379_v12 = vld [vmem:[%s9666_s26 + $0x20] sm:$0xff] }
 0x9b1   : > { %v8699_v36 = vpop.f32.mrf.mxu0 }
 0x9b2   : > { %8729 = vmatprep.mubr.msk.bf16.mxu1 %vm14278_vm0, %v3468_v24 }
 0x9b3   : > { %v3371_v5 = vpop.f32.mrf.mxu0  ;;  %8730 = vmatmul.mubr.msk.bf16.gmra.mxu1 %vm14278_vm0, %v3469_v49 }
 0x9b5   : > { %v8700_v16 = vpop.f32.mrf.mxu0 }
 0x9b6   : > { %v3471_v30 = vpack.c.bf16 %v8700_v16, %v8699_v36 }
 0x9b7   : > { %v3374_v25 = vpop.f32.mrf.mxu0 }
 0x9b8   : > { %v3470_v56 = vpack.c.bf16 %v3374_v25, %v3371_v5  ;;  %v9380_v5 = vld [vmem:[%s9666_s26 + $0x30] sm:$0xff] }
 0x9b9   : > { %v8703_v54 = vpop.f32.mrf.mxu0 }
 0x9ba   : > { %8733 = vmatprep.mubr.msk.bf16.mxu1 %vm14278_vm0, %v3470_v56 }
 0x9bb   : > { %v3387_v19 = vpop.f32.mrf.mxu0  ;;  %8734 = vmatmul.mubr.msk.bf16.gmra.mxu1 %vm14278_vm0, %v3471_v30 }
 0x9bd   : > { %v8704_v9 = vpop.f32.mrf.mxu0 }
 0x9be   : > { %v3473_v59 = vpack.c.bf16 %v8704_v9, %v8703_v54 }
 0x9bf   : > { %v3390_v48 = vpop.f32.mrf.mxu0 }
 0x9c0   : > { %v3472_v31 = vpack.c.bf16 %v3390_v48, %v3387_v19  ;;  %v9381_v19 = vld [vmem:[%s9666_s26 + $0x28] sm:$0xff] }
 0x9c1   : > { %v8707_v60 = vpop.f32.mrf.mxu0 }
 0x9c2   : > { %8737 = vmatprep.mubr.msk.bf16.mxu1 %vm14278_vm0, %v3472_v31 }
 0x9c3   : > { %v3403_v32 = vpop.f32.mrf.mxu0  ;;  %8738 = vmatmul.mubr.msk.bf16.gmra.mxu1 %vm14278_vm0, %v3473_v59  ;;  %v9382_v59 = vld [vmem:[%s9666_s26 + $0x38] sm:$0xff] }
 0x9c5   : > { %v8708_v27 = vpop.f32.mrf.mxu0 }
 0x9c6   : > { %v3475_v34 = vpack.c.bf16 %v8708_v27, %v8707_v60 }
 0x9c7   : > { %v3406_v58 = vpop.f32.mrf.mxu0 }
 0x9c8   : > { %v3474_v62 = vpack.c.bf16 %v3406_v58, %v3403_v32 }
 0x9c9   : > { %v8711_v38 = vpop.f32.mrf.mxu0 }
 0x9ca   : > { %8741 = vmatprep.mubr.msk.bf16.mxu1 %vm14278_vm0, %v3474_v62 }
 0x9cb   : > { %v3419_v35 = vpop.f32.mrf.mxu0  ;;  %8742 = vmatmul.mubr.msk.bf16.gmra.mxu1 %vm14278_vm0, %v3475_v34  ;;  %v9383_v34 = vld [vmem:[%s9666_s26 + $0x40] sm:$0xff] }
 0x9cd   : > { %v8712_v57 = vpop.f32.mrf.mxu0 }
 0x9ce   : > { %v3477_v42 = vpack.c.bf16 %v8712_v57, %v8711_v38 }
 0x9cf   : > { %v3422_v28 = vpop.f32.mrf.mxu0 }
 0x9d0   : > { %v3476_v0 = vpack.c.bf16 %v3422_v28, %v3419_v35  ;;  %v9384_v35 = vld [vmem:[%s9666_s26 + $0x50] sm:$0xff] }
 0x9d1   : > { %v8715_v43 = vpop.f32.mrf.mxu0 }
 0x9d2   : > { %8745 = vmatprep.mubr.msk.bf16.mxu1 %vm14278_vm0, %v3476_v0 }
 0x9d3   : > { %v3435_v7 = vpop.f32.mrf.mxu0  ;;  %8746 = vmatmul.mubr.msk.bf16.gmra.mxu1 %vm14278_vm0, %v3477_v42 }
 0x9d5   : > { %v8716_v15 = vpop.f32.mrf.mxu0 }
 0x9d6   : > { %v3479_v63 = vpack.c.bf16 %v8716_v15, %v8715_v43 }
 0x9d7   : > { %v3438_v22 = vpop.f32.mrf.mxu0 }
 0x9d8   : > { %v3478_v61 = vpack.c.bf16 %v3438_v22, %v3435_v7  ;;  %v9385_v22 = vld [vmem:[%s9666_s26 + $0x48] sm:$0xff] }
 0x9d9   : > { %v8719_v41 = vpop.f32.mrf.mxu0 }
 0x9da   : > { %8749 = vmatprep.mubr.msk.bf16.mxu1 %vm14278_vm0, %v3478_v61 }
 0x9db   : > { %v3451_v44 = vpop.f32.mrf.mxu0  ;;  %8750 = vmatmul.mubr.msk.bf16.gmra.mxu1 %vm14278_vm0, %v3479_v63 }
 0x9dd   : > { %v8720_v20 = vpop.f32.mrf.mxu0 }
 0x9de   : > { %v3481_v53 = vpack.c.bf16 %v8720_v20, %v8719_v41 }
 0x9df   : > { %v3454_v18 = vpop.f32.mrf.mxu0 }
 0x9e0   : > { %v3480_v3 = vpack.c.bf16 %v3454_v18, %v3451_v44  ;;  %v9386_v44 = vld [vmem:[%s9666_s26 + $0x58] sm:$0xff] }
 0x9e2   : > { %8753 = vmatprep.mubr.msk.bf16.mxu1 %vm14278_vm0, %v3480_v3 }
 0x9e3   : > { %8754 = vmatmul.mubr.msk.bf16.gmra.mxu1 %vm14278_vm0, %v3481_v53 }
 0xa6b   : > { %v8727_v14 = vpop.f32.mrf.mxu1 }
 0xa6c   : > { %v3596_v10 = vadd.f32 %v8727_v14, %v10900_v1 }
 0xa6d   : > { %v3587_v26 = vpop.f32.mrf.mxu1 }
 0xa6e   : > { %v3588_v2 = vadd.f32 %v10900_v1, %v3587_v26  ;;  %v10909_v11 = vadd.f32 %v9376_v13, %v3596_v10  ;;  %v9387_v26 = vld [vmem:[%s9666_s26 + $0x60] sm:$0xff] }
 0xa6f   : > { %v8728_v45 = vpop.f32.mrf.mxu1 }
 0xa70   : > { %v10905_v23 = vadd.f32 %v9375_v39, %v3588_v2  ;;  %v3599_v46 = vadd.f32 %v8728_v45, %v10900_v1  ;;  %14401 = vst [vmem:[#allocation10_spill] sm:$0xff] %v10909_v11  ;;  %v3752_v8 = vsel %vm14278_vm0, %v10909_v11, 0.0  ;;  %v9388_v39 = vld [vmem:[%s9666_s26 + $0x70] sm:$0xff] }
 0xa71   : > { %v3590_v33 = vpop.f32.mrf.mxu1 }
 0xa72   : > { %14400 = vst [vmem:[#allocation9_spill] sm:$0xff] %v10905_v23  ;;  %v3591_v17 = vadd.f32 %v10900_v1, %v3590_v33  ;;  %v3746_v47 = vsel %vm14278_vm0, %v10905_v23, 0.0  ;;  %v10918_v51 = vadd.f32 %v9378_v21, %v3599_v46  ;;  %v9390_v21 = vld [vmem:[%s9666_s26 + $0x78] sm:$0xff] }
 0xa73   : > { %3747 = vadd.xlane.f32.xlu0 %v3746_v47  ;;  %v8731_v55 = vpop.f32.mrf.mxu1 }
 0xa74   : > { %v10915_v50 = vadd.f32 %v9377_v37, %v3591_v17  ;;  %14403 = vst [vmem:[#allocation12_spill] sm:$0xff] %v10918_v51  ;;  %v3612_v29 = vadd.f32 %v8731_v55, %v10900_v1  ;;  %v3755_v36 = vsel %vm14278_vm0, %v10918_v51, 0.0  ;;  %v9389_v55 = vld [vmem:[%s9666_s26 + $0x68] sm:$0xff] }
 0xa75   : > { %v3603_v40 = vpop.f32.mrf.mxu1 }
 0xa76   : > { %14402 = vst [vmem:[#allocation11_spill] sm:$0xff] %v10915_v50  ;;  %v3604_v6 = vadd.f32 %v10900_v1, %v3603_v40  ;;  %v3749_v4 = vsel %vm14278_vm0, %v10915_v50, 0.0  ;;  %v10932_v16 = vadd.f32 %v9380_v5, %v3612_v29 }
 0xa77   : > { %3750 = vadd.xlane.f32.xlu1 %v3749_v4  ;;  %3753 = vadd.xlane.f32.xlu0 %v3752_v8  ;;  %v8732_v52 = vpop.f32.mrf.mxu1 }
 0xa78   : > { %v10927_v24 = vadd.f32 %v9379_v12, %v3604_v6  ;;  %14405 = vst [vmem:[#allocation14_spill] sm:$0xff] %v10932_v16  ;;  %v3615_v25 = vadd.f32 %v8732_v52, %v10900_v1  ;;  %v3764_v58 = vsel %vm14278_vm0, %v10932_v16, 0.0 }
 0xa79   : > { %v3606_v49 = vpop.f32.mrf.mxu1 }
 0xa7a   : > { %14404 = vst [vmem:[#allocation13_spill] sm:$0xff] %v10927_v24  ;;  %v3607_v56 = vadd.f32 %v10900_v1, %v3606_v49  ;;  %v3758_v30 = vsel %vm14278_vm0, %v10927_v24, 0.0  ;;  %v10943_v60 = vadd.f32 %v9382_v59, %v3615_v25  ;;  %v9391_v49 = vld [vmem:[%s9666_s26 + $0x80] sm:$0xff]  ;;  %v9393_v59 = vld [vmem:[%s9666_s26 + $0x88] sm:$0xff] }
 0xa7b   : > { %3756 = vadd.xlane.f32.xlu1 %v3755_v36  ;;  %3759 = vadd.xlane.f32.xlu0 %v3758_v30  ;;  %v8735_v54 = vpop.f32.mrf.mxu1 }
 0xa7c   : > { %v10939_v9 = vadd.f32 %v9381_v19, %v3607_v56  ;;  %v3628_v48 = vadd.f32 %v8735_v54, %v10900_v1  ;;  %14407 = vst [vmem:[#allocation16_spill] sm:$0xff] %v10943_v60  ;;  %v3767_v43 = vsel %vm14278_vm0, %v10943_v60, 0.0  ;;  %v9392_v56 = vld [vmem:[%s9666_s26 + $0x90] sm:$0xff] }
 0xa7d   : > { %v3619_v31 = vpop.f32.mrf.mxu1 }
 0xa7e   : > { %14406 = vst [vmem:[#allocation15_spill] sm:$0xff] %v10939_v9  ;;  %v3620_v32 = vadd.f32 %v10900_v1, %v3619_v31  ;;  %v3761_v27 = vsel %vm14278_vm0, %v10939_v9, 0.0  ;;  %v10954_v57 = vadd.f32 %v9384_v35, %v3628_v48 }
 0xa7f   : > { %3762 = vadd.xlane.f32.xlu1 %v3761_v27  ;;  %3765 = vadd.xlane.f32.xlu0 %v3764_v58  ;;  %v8736_v62 = vpop.f32.mrf.mxu1 }
 0xa80   : > { %v10951_v38 = vadd.f32 %v9383_v34, %v3620_v32  ;;  %14409 = vst [vmem:[#allocation18_spill] sm:$0xff] %v10954_v57  ;;  %v3631_v0 = vadd.f32 %v8736_v62, %v10900_v1  ;;  %v3776_v41 = vsel %vm14278_vm0, %v10954_v57, 0.0  ;;  %v9394_v62 = vld [vmem:[%s9666_s26 + $0x98] sm:$0xff] }
 0xa81   : > { %v3622_v28 = vpop.f32.mrf.mxu1 }
 0xa82   : > { %14408 = vst [vmem:[#allocation17_spill] sm:$0xff] %v10951_v38  ;;  %v3623_v42 = vadd.f32 %v10900_v1, %v3622_v28  ;;  %v3770_v7 = vsel %vm14278_vm0, %v10951_v38, 0.0  ;;  %v10968_v20 = vadd.f32 %v9386_v44, %v3631_v0 }
 0xa83   : > { %3768 = vadd.xlane.f32.xlu1 %v3767_v43  ;;  %3771 = vadd.xlane.f32.xlu0 %v3770_v7  ;;  %v8739_v15 = vpop.f32.mrf.mxu1  ;;  %v9395_v43 = vld [vmem:[%s9666_s26 + $0xa0] sm:$0xff] }
 0xa84   : > { %v10963_v61 = vadd.f32 %v9385_v22, %v3623_v42  ;;  %14411 = vst [vmem:[#allocation20_spill] sm:$0xff] %v10968_v20  ;;  %v3644_v18 = vadd.f32 %v8739_v15, %v10900_v1  ;;  %v3779_v13 = vsel %vm14278_vm0, %v10968_v20, 0.0  ;;  %v9396_v15 = vld [vmem:[%s9666_s26 + $0xb0] sm:$0xff] }
 0xa85   : > { %v3635_v63 = vpop.f32.mrf.mxu1 }
 0xa86   : > { %14410 = vst [vmem:[#allocation19_spill] sm:$0xff] %v10963_v61  ;;  %v3636_v3 = vadd.f32 %v10900_v1, %v3635_v63  ;;  %v3773_v53 = vsel %vm14278_vm0, %v10963_v61, 0.0  ;;  %v10979_v46 = vadd.f32 %v9388_v39, %v3644_v18  ;;  %v9398_v39 = vld [vmem:[%s9666_s26 + $0xb8] sm:$0xff] }
 0xa87   : > { %3774 = vadd.xlane.f32.xlu1 %v3773_v53  ;;  %3777 = vadd.xlane.f32.xlu0 %v3776_v41  ;;  %v8740_v14 = vpop.f32.mrf.mxu1 }
 0xa88   : > { %v10975_v10 = vadd.f32 %v9387_v26, %v3636_v3  ;;  %v3647_v2 = vadd.f32 %v8740_v14, %v10900_v1  ;;  %14413 = vst [vmem:[#allocation22_spill] sm:$0xff] %v10979_v46  ;;  %v3788_v52 = vsel %vm14278_vm0, %v10979_v46, 0.0  ;;  %v9397_v14 = vld [vmem:[%s9666_s26 + $0xa8] sm:$0xff] }
 0xa89   : > { %v3638_v45 = vpop.f32.mrf.mxu1 }
 0xa8a   : > { %14412 = vst [vmem:[#allocation21_spill] sm:$0xff] %v10975_v10  ;;  %v3639_v33 = vadd.f32 %v10900_v1, %v3638_v45  ;;  %v3782_v17 = vsel %vm14278_vm0, %v10975_v10, 0.0  ;;  %v10990_v40 = vadd.f32 %v9390_v21, %v3647_v2  ;;  %v9399_v21 = vld [vmem:[%s9666_s26 + $0xc0] sm:$0xff] }
 0xa8b   : > { %3780 = vadd.xlane.f32.xlu1 %v3779_v13  ;;  %3783 = vadd.xlane.f32.xlu0 %v3782_v17  ;;  %v8743_v47 = vpop.f32.mrf.mxu1 }
 0xa8c   : > { %v10987_v37 = vadd.f32 %v9389_v55, %v3639_v33  ;;  %14415 = vst [vmem:[#allocation24_spill] sm:$0xff] %v10990_v40  ;;  %v3660_v6 = vadd.f32 %v8743_v47, %v10900_v1  ;;  %v3791_v25 = vsel %vm14278_vm0, %v10990_v40, 0.0 }
 0xa8d   : > { %v3651_v29 = vpop.f32.mrf.mxu1 }
 0xa8e   : > { %14414 = vst [vmem:[#allocation23_spill] sm:$0xff] %v10987_v37  ;;  %v3652_v4 = vadd.f32 %v10900_v1, %v3651_v29  ;;  %v3785_v8 = vsel %vm14278_vm0, %v10987_v37, 0.0  ;;  %v11004_v30 = vadd.f32 %v9392_v56, %v3660_v6  ;;  %v9401_v56 = vld [vmem:[%s9666_s26 + $0xc8] sm:$0xff] }
 0xa8f   : > { %3786 = vadd.xlane.f32.xlu1 %v3785_v8  ;;  %3789 = vadd.xlane.f32.xlu0 %v3788_v52  ;;  %v8744_v12 = vpop.f32.mrf.mxu1  ;;  %v9400_v8 = vld [vmem:[%s9666_s26 + $0xd0] sm:$0xff] }
 0xa90   : > { %v10999_v36 = vadd.f32 %v9391_v49, %v3652_v4  ;;  %14417 = vst [vmem:[#allocation26_spill] sm:$0xff] %v11004_v30  ;;  %v3663_v54 = vadd.f32 %v8744_v12, %v10900_v1  ;;  %v3800_v0 = vsel %vm14278_vm0, %v11004_v30, 0.0 }
 0xa91   : > { %v3654_v5 = vpop.f32.mrf.mxu1 }
 0xa92   : > { %14416 = vst [vmem:[#allocation25_spill] sm:$0xff] %v10999_v36  ;;  %v3655_v19 = vadd.f32 %v10900_v1, %v3654_v5  ;;  %v3794_v48 = vsel %vm14278_vm0, %v10999_v36, 0.0  ;;  %v11015_v34 = vadd.f32 %v9394_v62, %v3663_v54 }
 0xa93   : > { %3792 = vadd.xlane.f32.xlu1 %v3791_v25  ;;  %3795 = vadd.xlane.f32.xlu0 %v3794_v48  ;;  %v8747_v31 = vpop.f32.mrf.mxu1 }
 0xa94   : > { %v11011_v32 = vadd.f32 %v9393_v59, %v3655_v19  ;;  %v3676_v27 = vadd.f32 %v8747_v31, %v10900_v1  ;;  %14419 = vst [vmem:[#allocation28_spill] sm:$0xff] %v11015_v34  ;;  %v3803_v18 = vsel %vm14278_vm0, %v11015_v34, 0.0  ;;  %v9402_v19 = vld [vmem:[%s9666_s26 + $0xd8] sm:$0xff] }
 0xa95   : > { %v3667_v58 = vpop.f32.mrf.mxu1 }
 0xa96   : > { %14418 = vst [vmem:[#allocation27_spill] sm:$0xff] %v11011_v32  ;;  %v3668_v35 = vadd.f32 %v10900_v1, %v3667_v58  ;;  %v3797_v28 = vsel %vm14278_vm0, %v11011_v32, 0.0  ;;  %v11026_v22 = vadd.f32 %v9396_v15, %v3676_v27  ;;  %v9404_v15 = vld [vmem:[%s9666_s26 + $0xf0] sm:$0xff] }
 0xa97   : > { %3798 = vadd.xlane.f32.xlu1 %v3797_v28  ;;  %3801 = vadd.xlane.f32.xlu0 %v3800_v0  ;;  %v8748_v42 = vpop.f32.mrf.mxu1  ;;  %v9403_v28 = vld [vmem:[%s9666_s26 + $0xe0] sm:$0xff] }
 0xa98   : > { %v11023_v7 = vadd.f32 %v9395_v43, %v3668_v35  ;;  %14421 = vst [vmem:[#allocation30_spill] sm:$0xff] %v11026_v22  ;;  %v3679_v41 = vadd.f32 %v8748_v42, %v10900_v1  ;;  %v3812_v45 = vsel %vm14278_vm0, %v11026_v22, 0.0 }
 0xa99   : > { %v3670_v63 = vpop.f32.mrf.mxu1 }
 0xa9a   : > { %14420 = vst [vmem:[#allocation29_spill] sm:$0xff] %v11023_v7  ;;  %v3671_v44 = vadd.f32 %v10900_v1, %v3670_v63  ;;  %v3806_v3 = vsel %vm14278_vm0, %v11023_v7, 0.0  ;;  %v11040_v33 = vadd.f32 %v9398_v39, %v3679_v41 }
 0xa9b   : > { %3804 = vadd.xlane.f32.xlu1 %v3803_v18  ;;  %3807 = vadd.xlane.f32.xlu0 %v3806_v3  ;;  %v8751_v53 = vpop.f32.mrf.mxu1  ;;  %v9405_v3 = vld [vmem:[%s9666_s26 + $0xe8] sm:$0xff] }
 0xa9c   : > { %v11035_v26 = vadd.f32 %v9397_v14, %v3671_v44  ;;  %14423 = vst [vmem:[#allocation32_spill] sm:$0xff] %v11040_v33  ;;  %v3692_v13 = vadd.f32 %v8751_v53, %v10900_v1  ;;  %v3815_v49 = vsel %vm14278_vm0, %v11040_v33, 0.0  ;;  %v9406_v14 = vld [vmem:[%s9666_s26 + $0xf8] sm:$0xff]  ;;  %s7800_s26 = sshll.u32 %s10835_s29, 4  ;;  %s9413_s29 = sshll.u32 %s9472_s5, 4  ;;  %s14046_s26 = int_to_ptr.vmem [resolvable:$true] %s7800_s26  ;;  %s9414_s29 = int_to_ptr.vmem [resolvable:$false] %s9413_s29 }
 0xa9d   : > { %v3683_v2 = vpop.f32.mrf.mxu1  ;;  %s9409_s3 = scalar_lea.vmem %s14046_s26, 2048  ;;  %s9415_s8 = scalar_lea.vmem %s9414_s29, 4096 }
 0xa9e   : > { %14422 = vst [vmem:[#allocation31_spill] sm:$0xff] %v11035_v26  ;;  %v3684_v17 = vadd.f32 %v10900_v1, %v3683_v2  ;;  %v3809_v47 = vsel %vm14278_vm0, %v11035_v26, 0.0  ;;  %v11051_v52 = vadd.f32 %v9400_v8, %v3692_v13  ;;  %v8933_v13 = vld [vmem:[%s14168_s14 + $0x8] sm:$0xff]   ;;  %p9410_p11 = scmp.ne.s32.totalorder %s14046_s26, %s9409_s3  ;;  %p9416_p0 = scmp.lt.s32.totalorder %s14046_s26, %s9414_s29 }
 0xa9f   : > { %3810 = vadd.xlane.f32.xlu1 %v3809_v47  ;;  %3813 = vadd.xlane.f32.xlu0 %v3812_v45  ;;  %v8752_v55 = vpop.f32.mrf.mxu1  ;;  %p9417_p1 = scmp.lt.s32.totalorder %s9415_s8, %s9409_s3 }
 0xaa0   : > { %v11047_v29 = vadd.f32 %v9399_v21, %v3684_v17  ;;  %v3695_v6 = vadd.f32 %v8752_v55, %v10900_v1  ;;  %14425 = vst [vmem:[#allocation34_spill] sm:$0xff] %v11051_v52  ;;  %v3824_v62 = vsel %vm14278_vm0, %v11051_v52, 0.0  ;;  %v8934_v17 = vld [vmem:[%s14168_s14] sm:$0xff]   ;;  %8757 = vmatprep.subr.bf16.mxu0 %v8933_v13  ;;  %p9411_p12 = pnand %p9410_p11, %p9633_p5 }
 0xaa1   : > { %v3686_v4 = vpop.f32.mrf.mxu1  ;;  %8758 = vmatpush3.bf16.msra.mxu0 %v8933_v13  ;;  %p9418_p2 = por %p9417_p1, %p9416_p0 }
 0xaa2   : > { %14424 = vst [vmem:[#allocation33_spill] sm:$0xff] %v11047_v29  ;;  %v3687_v12 = vadd.f32 %v10900_v1, %v3686_v4  ;;  %v3818_v5 = vsel %vm14278_vm0, %v11047_v29, 0.0  ;;  %v11062_v48 = vadd.f32 %v9402_v19, %v3695_v6  ;;  %8759 = vmatprep.subr.bf16.mxu0 %v8934_v17  ;;  %p9412_p13 = pneg %p9411_p12 }
 0xaa3   : > { %3816 = vadd.xlane.f32.xlu1 %v3815_v49  ;;  %3819 = vadd.xlane.f32.xlu0 %v3818_v5  ;;  %v8755_v25 = vpop.f32.mrf.mxu1 }
 0xaa4   : > { %v11059_v54 = vadd.f32 %v9401_v56, %v3687_v12  ;;  %14427 = vst [vmem:[#allocation36_spill] sm:$0xff] %v11062_v48  ;;  %v3708_v59 = vadd.f32 %v8755_v25, %v10900_v1  ;;  %v3827_v43 = vsel %vm14278_vm0, %v11062_v48, 0.0  ;;  %p9419_p3 = pnand %p9418_p2, %p9412_p13 }
 0xaa5   : > { %v3699_v31 = vpop.f32.mrf.mxu1  ;;  %8760 = vmatpush3.bf16.msra.mxu0 %v8934_v17 }
 0xaa6   : > { %14426 = vst [vmem:[#allocation35_spill] sm:$0xff] %v11059_v54  ;;  %v3700_v27 = vadd.f32 %v10900_v1, %v3699_v31  ;;  %v3821_v58 = vsel %vm14278_vm0, %v11059_v54, 0.0  ;;  %v11076_v63 = vadd.f32 %v9404_v15, %v3708_v59 }
 0xaa7   : > { %3822 = vadd.xlane.f32.xlu1 %v3821_v58  ;;  %3825 = vadd.xlane.f32.xlu0 %v3824_v62  ;;  %v8756_v35 = vpop.f32.mrf.mxu1 }
 0xaa8   : > { %v11071_v0 = vadd.f32 %v9403_v28, %v3700_v27  ;;  %14429 = vst [vmem:[#allocation38_spill] sm:$0xff] %v11076_v63  ;;  %v3711_v41 = vadd.f32 %v8756_v35, %v10900_v1  ;;  %v3836_v39 = vsel %vm14278_vm0, %v11076_v63, 0.0 }
 0xaa9   : > { %v3702_v42 = vpop.f32.mrf.mxu1 }
 0xaaa   : > { %14428 = vst [vmem:[#allocation37_spill] sm:$0xff] %v11071_v0  ;;  %v3703_v44 = vadd.f32 %v10900_v1, %v3702_v42  ;;  %v3830_v18 = vsel %vm14278_vm0, %v11071_v0, 0.0  ;;  %v11086_v2 = vadd.f32 %v9406_v14, %v3711_v41 }
 0xaab   : > { %3828 = vadd.xlane.f32.xlu1 %v3827_v43  ;;  %3831 = vadd.xlane.f32.xlu0 %v3830_v18 }
 0xaac   : > { %v11083_v53 = vadd.f32 %v9405_v3, %v3703_v44  ;;  %14431 = vst [vmem:[#allocation40_spill] sm:$0xff] %v11086_v2  ;;  %v3839_v1 = vsel %vm14278_vm0, %v11086_v2, 0.0 }
 0xaae   : > { %14430 = vst [vmem:[#allocation39_spill] sm:$0xff] %v11083_v53  ;;  %v3833_v45 = vsel %vm14278_vm0, %v11083_v53, 0.0 }
 0xaaf   : > { %3834 = vadd.xlane.f32.xlu1 %v3833_v45  ;;  %3837 = vadd.xlane.f32.xlu0 %v3836_v39 }
 0xab3   : > { %3840 = vadd.xlane.f32.xlu1 %v3839_v1 }
 0xafc   : > { %v3748_v47 = vpop.xlane.xlu0 %3747 }
 0xafd   : > { %v3842_v55 = vmul.f32 0.03125, %v3748_v47 }
 0xaff   : > { %v11101_v21 = vsub.f32 %v10905_v23, %v3842_v55 }
 0xb00   : > { %v3751_v6 = vpop.xlane.xlu1 %3750  ;;  %v3754_v4 = vpop.xlane.xlu0 %3753 }
 0xb01   : > { %v3843_v8 = vmul.f32 0.03125, %v3751_v6  ;;  %v3844_v12 = vmul.f32 0.03125, %v3754_v4  ;;  %v3906_v49 = vmul.f32 %v11101_v21, %v11101_v21 }
 0xb03   : > { %v11106_v5 = vsub.f32 %v10915_v50, %v3843_v8  ;;  %v11109_v25 = vsub.f32 %v10909_v11, %v3844_v12  ;;  %v3938_v56 = vsel %vm14278_vm0, %v3906_v49, 0.0 }
 0xb04   : > { %v3757_v19 = vpop.xlane.xlu1 %3756  ;;  %v3760_v31 = vpop.xlane.xlu0 %3759  ;;  %3939 = vadd.xlane.f32.xlu0 %v3938_v56 }
 0xb05   : > { %v3845_v59 = vmul.f32 0.03125, %v3757_v19  ;;  %v3846_v27 = vmul.f32 0.03125, %v3760_v31  ;;  %v3907_v58 = vmul.f32 %v11106_v5, %v11106_v5  ;;  %v3908_v62 = vmul.f32 %v11109_v25, %v11109_v25 }
 0xb07   : > { %v11117_v35 = vsub.f32 %v10918_v51, %v3845_v59  ;;  %v11120_v28 = vsub.f32 %v10927_v24, %v3846_v27  ;;  %v3941_v42 = vsel %vm14278_vm0, %v3907_v58, 0.0  ;;  %v3944_v43 = vsel %vm14278_vm0, %v3908_v62, 0.0  ;;  %v8941_v51 = vld [vmem:[%s14172_s18 + $0x8] sm:$0xff]  }
 0xb08   : > { %v3763_v15 = vpop.xlane.xlu1 %3762  ;;  %v3766_v41 = vpop.xlane.xlu0 %3765  ;;  %3942 = vadd.xlane.f32.xlu1 %v3941_v42  ;;  %3945 = vadd.xlane.f32.xlu0 %v3944_v43 }
 0xb09   : > { %v3847_v44 = vmul.f32 0.03125, %v3763_v15  ;;  %v3848_v18 = vmul.f32 0.03125, %v3766_v41  ;;  %v3909_v3 = vmul.f32 %v11117_v35, %v11117_v35  ;;  %v3910_v14 = vmul.f32 %v11120_v28, %v11120_v28 }
 0xb0b   : > { %v11129_v45 = vsub.f32 %v10939_v9, %v3847_v44  ;;  %v11132_v39 = vsub.f32 %v10932_v16, %v3848_v18  ;;  %v3947_v1 = vsel %vm14278_vm0, %v3909_v3, 0.0  ;;  %v3950_v13 = vsel %vm14278_vm0, %v3910_v14, 0.0 }
 0xb0c   : > { %v3769_v17 = vpop.xlane.xlu1 %3768  ;;  %v3772_v47 = vpop.xlane.xlu0 %3771  ;;  %3948 = vadd.xlane.f32.xlu1 %v3947_v1  ;;  %3951 = vadd.xlane.f32.xlu0 %v3950_v13 }
 0xb0d   : > { %v3849_v55 = vmul.f32 0.03125, %v3769_v17  ;;  %v3850_v6 = vmul.f32 0.03125, %v3772_v47  ;;  %v3911_v4 = vmul.f32 %v11129_v45, %v11129_v45  ;;  %v3912_v8 = vmul.f32 %v11132_v39, %v11132_v39 }
 0xb0f   : > { %v11141_v12 = vsub.f32 %v10943_v60, %v3849_v55  ;;  %v11144_v49 = vsub.f32 %v10951_v38, %v3850_v6  ;;  %v3953_v56 = vsel %vm14278_vm0, %v3911_v4, 0.0  ;;  %v3956_v19 = vsel %vm14278_vm0, %v3912_v8, 0.0 }
 0xb10   : > { %v3775_v31 = vpop.xlane.xlu1 %3774  ;;  %v3778_v59 = vpop.xlane.xlu0 %3777  ;;  %3954 = vadd.xlane.f32.xlu1 %v3953_v56  ;;  %3957 = vadd.xlane.f32.xlu0 %v3956_v19 }
 0xb11   : > { %v3851_v27 = vmul.f32 0.03125, %v3775_v31  ;;  %v3852_v58 = vmul.f32 0.03125, %v3778_v59  ;;  %v3913_v62 = vmul.f32 %v11141_v12, %v11141_v12  ;;  %v3914_v42 = vmul.f32 %v11144_v49, %v11144_v49 }
 0xb13   : > { %v11153_v43 = vsub.f32 %v10963_v61, %v3851_v27  ;;  %v11156_v15 = vsub.f32 %v10954_v57, %v3852_v58  ;;  %v3959_v41 = vsel %vm14278_vm0, %v3913_v62, 0.0  ;;  %v3962_v44 = vsel %vm14278_vm0, %v3914_v42, 0.0 }
 0xb14   : > { %v3781_v18 = vpop.xlane.xlu1 %3780  ;;  %v3784_v3 = vpop.xlane.xlu0 %3783  ;;  %3960 = vadd.xlane.f32.xlu1 %v3959_v41  ;;  %3963 = vadd.xlane.f32.xlu0 %v3962_v44 }
 0xb15   : > { %v3853_v14 = vmul.f32 0.03125, %v3781_v18  ;;  %v3854_v1 = vmul.f32 0.03125, %v3784_v3  ;;  %v3915_v13 = vmul.f32 %v11153_v43, %v11153_v43  ;;  %v3916_v17 = vmul.f32 %v11156_v15, %v11156_v15 }
 0xb17   : > { %v11165_v47 = vsub.f32 %v10968_v20, %v3853_v14  ;;  %v11168_v55 = vsub.f32 %v10975_v10, %v3854_v1  ;;  %v3965_v6 = vsel %vm14278_vm0, %v3915_v13, 0.0  ;;  %v3968_v4 = vsel %vm14278_vm0, %v3916_v17, 0.0 }
 0xb18   : > { %v3787_v8 = vpop.xlane.xlu1 %3786  ;;  %v3790_v56 = vpop.xlane.xlu0 %3789  ;;  %3966 = vadd.xlane.f32.xlu1 %v3965_v6  ;;  %3969 = vadd.xlane.f32.xlu0 %v3968_v4 }
 0xb19   : > { %v3855_v19 = vmul.f32 0.03125, %v3787_v8  ;;  %v3856_v31 = vmul.f32 0.03125, %v3790_v56  ;;  %v3917_v59 = vmul.f32 %v11165_v47, %v11165_v47  ;;  %v3918_v27 = vmul.f32 %v11168_v55, %v11168_v55 }
 0xb1b   : > { %v11177_v58 = vsub.f32 %v10987_v37, %v3855_v19  ;;  %v11180_v62 = vsub.f32 %v10979_v46, %v3856_v31  ;;  %v3971_v42 = vsel %vm14278_vm0, %v3917_v59, 0.0  ;;  %v3974_v41 = vsel %vm14278_vm0, %v3918_v27, 0.0 }
 0xb1c   : > { %v3793_v44 = vpop.xlane.xlu1 %3792  ;;  %v3796_v18 = vpop.xlane.xlu0 %3795  ;;  %3972 = vadd.xlane.f32.xlu1 %v3971_v42  ;;  %3975 = vadd.xlane.f32.xlu0 %v3974_v41 }
 0xb1d   : > { %v3857_v3 = vmul.f32 0.03125, %v3793_v44  ;;  %v3858_v14 = vmul.f32 0.03125, %v3796_v18  ;;  %v3919_v1 = vmul.f32 %v11177_v58, %v11177_v58  ;;  %v3920_v13 = vmul.f32 %v11180_v62, %v11180_v62 }
 0xb1f   : > { %v11189_v17 = vsub.f32 %v10990_v40, %v3857_v3  ;;  %v11192_v6 = vsub.f32 %v10999_v36, %v3858_v14  ;;  %v3977_v4 = vsel %vm14278_vm0, %v3919_v1, 0.0  ;;  %v3980_v8 = vsel %vm14278_vm0, %v3920_v13, 0.0 }
 0xb20   : > { %v3799_v56 = vpop.xlane.xlu1 %3798  ;;  %v3802_v19 = vpop.xlane.xlu0 %3801  ;;  %3978 = vadd.xlane.f32.xlu1 %v3977_v4  ;;  %3981 = vadd.xlane.f32.xlu0 %v3980_v8 }
 0xb21   : > { %v3859_v31 = vmul.f32 0.03125, %v3799_v56  ;;  %v3860_v59 = vmul.f32 0.03125, %v3802_v19  ;;  %v3921_v27 = vmul.f32 %v11189_v17, %v11189_v17  ;;  %v3922_v42 = vmul.f32 %v11192_v6, %v11192_v6 }
 0xb23   : > { %v11201_v41 = vsub.f32 %v11011_v32, %v3859_v31  ;;  %v11204_v44 = vsub.f32 %v11004_v30, %v3860_v59  ;;  %v3983_v18 = vsel %vm14278_vm0, %v3921_v27, 0.0  ;;  %v3986_v3 = vsel %vm14278_vm0, %v3922_v42, 0.0 }
 0xb24   : > { %v3805_v14 = vpop.xlane.xlu1 %3804  ;;  %v3808_v1 = vpop.xlane.xlu0 %3807  ;;  %3984 = vadd.xlane.f32.xlu1 %v3983_v18  ;;  %3987 = vadd.xlane.f32.xlu0 %v3986_v3 }
 0xb25   : > { %v3861_v13 = vmul.f32 0.03125, %v3805_v14  ;;  %v3862_v4 = vmul.f32 0.03125, %v3808_v1  ;;  %v3923_v8 = vmul.f32 %v11201_v41, %v11201_v41  ;;  %v3924_v56 = vmul.f32 %v11204_v44, %v11204_v44 }
 0xb27   : > { %v11213_v19 = vsub.f32 %v11015_v34, %v3861_v13  ;;  %v11216_v31 = vsub.f32 %v11023_v7, %v3862_v4  ;;  %v3989_v59 = vsel %vm14278_vm0, %v3923_v8, 0.0  ;;  %v3992_v27 = vsel %vm14278_vm0, %v3924_v56, 0.0 }
 0xb28   : > { %v3811_v42 = vpop.xlane.xlu1 %3810  ;;  %v3814_v18 = vpop.xlane.xlu0 %3813  ;;  %3990 = vadd.xlane.f32.xlu1 %v3989_v59  ;;  %3993 = vadd.xlane.f32.xlu0 %v3992_v27 }
 0xb29   : > { %v3863_v3 = vmul.f32 0.03125, %v3811_v42  ;;  %v3864_v14 = vmul.f32 0.03125, %v3814_v18  ;;  %v3925_v1 = vmul.f32 %v11213_v19, %v11213_v19  ;;  %v3926_v13 = vmul.f32 %v11216_v31, %v11216_v31 }
 0xb2b   : > { %v11225_v32 = vsub.f32 %v11035_v26, %v3863_v3  ;;  %v11228_v4 = vsub.f32 %v11026_v22, %v3864_v14  ;;  %v3995_v8 = vsel %vm14278_vm0, %v3925_v1, 0.0  ;;  %v3998_v56 = vsel %vm14278_vm0, %v3926_v13, 0.0 }
 0xb2c   : > { %v3817_v59 = vpop.xlane.xlu1 %3816  ;;  %v3820_v27 = vpop.xlane.xlu0 %3819  ;;  %3996 = vadd.xlane.f32.xlu1 %v3995_v8  ;;  %3999 = vadd.xlane.f32.xlu0 %v3998_v56 }
 0xb2d   : > { %v3865_v42 = vmul.f32 0.03125, %v3817_v59  ;;  %v3866_v18 = vmul.f32 0.03125, %v3820_v27  ;;  %v3927_v7 = vmul.f32 %v11225_v32, %v11225_v32  ;;  %v3928_v3 = vmul.f32 %v11228_v4, %v11228_v4 }
 0xb2f   : > { %v11237_v26 = vsub.f32 %v11040_v33, %v3865_v42  ;;  %v11240_v14 = vsub.f32 %v11047_v29, %v3866_v18  ;;  %v4001_v1 = vsel %vm14278_vm0, %v3927_v7, 0.0  ;;  %v4004_v13 = vsel %vm14278_vm0, %v3928_v3, 0.0 }
 0xb30   : > { %v3823_v8 = vpop.xlane.xlu1 %3822  ;;  %v3826_v56 = vpop.xlane.xlu0 %3825  ;;  %4002 = vadd.xlane.f32.xlu1 %v4001_v1  ;;  %4005 = vadd.xlane.f32.xlu0 %v4004_v13 }
 0xb31   : > { %v3867_v59 = vmul.f32 0.03125, %v3823_v8  ;;  %v3868_v27 = vmul.f32 0.03125, %v3826_v56  ;;  %v3929_v22 = vmul.f32 %v11237_v26, %v11237_v26  ;;  %v3930_v42 = vmul.f32 %v11240_v14, %v11240_v14 }
 0xb33   : > { %v11249_v33 = vsub.f32 %v11059_v54, %v3867_v59  ;;  %v11252_v18 = vsub.f32 %v11051_v52, %v3868_v27  ;;  %v4007_v7 = vsel %vm14278_vm0, %v3929_v22, 0.0  ;;  %v4010_v3 = vsel %vm14278_vm0, %v3930_v42, 0.0 }
 0xb34   : > { %v3829_v1 = vpop.xlane.xlu1 %3828  ;;  %4008 = vadd.xlane.f32.xlu1 %v4007_v7  ;;  %4011 = vadd.xlane.f32.xlu0 %v4010_v3  ;;  %v3832_v13 = vpop.xlane.xlu0 %3831 }
 0xb35   : > { %v3869_v8 = vmul.f32 0.03125, %v3829_v1  ;;  %v3870_v56 = vmul.f32 0.03125, %v3832_v13  ;;  %v3931_v29 = vmul.f32 %v11249_v33, %v11249_v33  ;;  %v3932_v59 = vmul.f32 %v11252_v18, %v11252_v18 }
 0xb37   : > { %v11261_v54 = vsub.f32 %v11062_v48, %v3869_v8  ;;  %v11264_v27 = vsub.f32 %v11071_v0, %v3870_v56  ;;  %v4013_v22 = vsel %vm14278_vm0, %v3931_v29, 0.0  ;;  %v4016_v42 = vsel %vm14278_vm0, %v3932_v59, 0.0 }
 0xb38   : > { %4014 = vadd.xlane.f32.xlu1 %v4013_v22  ;;  %v3835_v7 = vpop.xlane.xlu1 %3834  ;;  %4017 = vadd.xlane.f32.xlu0 %v4016_v42  ;;  %v3838_v3 = vpop.xlane.xlu0 %3837 }
 0xb39   : > { %v3871_v1 = vmul.f32 0.03125, %v3835_v7  ;;  %v3872_v13 = vmul.f32 0.03125, %v3838_v3  ;;  %v3933_v52 = vmul.f32 %v11261_v54, %v11261_v54  ;;  %v3934_v8 = vmul.f32 %v11264_v27, %v11264_v27 }
 0xb3b   : > { %v11273_v48 = vsub.f32 %v11083_v53, %v3871_v1  ;;  %v11276_v56 = vsub.f32 %v11076_v63, %v3872_v13  ;;  %v4019_v29 = vsel %vm14278_vm0, %v3933_v52, 0.0  ;;  %v4022_v59 = vsel %vm14278_vm0, %v3934_v8, 0.0 }
 0xb3c   : > { %4020 = vadd.xlane.f32.xlu1 %v4019_v29  ;;  %v3841_v22 = vpop.xlane.xlu1 %3840  ;;  %4023 = vadd.xlane.f32.xlu0 %v4022_v59 }
 0xb3d   : > { %v3873_v42 = vmul.f32 0.03125, %v3841_v22  ;;  %v3935_v7 = vmul.f32 %v11273_v48, %v11273_v48  ;;  %v3936_v3 = vmul.f32 %v11276_v56, %v11276_v56 }
 0xb3f   : > { %v11285_v1 = vsub.f32 %v11086_v2, %v3873_v42  ;;  %v4025_v13 = vsel %vm14278_vm0, %v3935_v7, 0.0  ;;  %v4028_v53 = vsel %vm14278_vm0, %v3936_v3, 0.0 }
 0xb40   : > { %4026 = vadd.xlane.f32.xlu1 %v4025_v13  ;;  %4029 = vadd.xlane.f32.xlu0 %v4028_v53 }
 0xb41   : > { %v3937_v52 = vmul.f32 %v11285_v1, %v11285_v1 }
 0xb43   : > { %v4031_v8 = vsel %vm14278_vm0, %v3937_v52, 0.0 }
 0xb44   : > { %4032 = vadd.xlane.f32.xlu1 %v4031_v8 }
 0xb8d   : > { %v3940_v29 = vpop.xlane.xlu0 %3939 }
 0xb8e   : > { %v4034_v59 = vmul.f32 0.03125, %v3940_v29 }
 0xb90   : > { %v4066_v22 = vadd.f32 1e-06, %v4034_v59 }
 0xb91   : > { %v3943_v0 = vpop.xlane.xlu1 %3942  ;;  %v3946_v63 = vpop.xlane.xlu0 %3945 }
 0xb92   : > { %v4035_v34 = vmul.f32 0.03125, %v3943_v0  ;;  %v4036_v42 = vmul.f32 0.03125, %v3946_v63  ;;  %9167 = vrsqrt.f32 %v4066_v22 }
 0xb94   : > { %v4067_v2 = vadd.f32 1e-06, %v4035_v34  ;;  %v4068_v7 = vadd.f32 1e-06, %v4036_v42 }
 0xb95   : > { %v3949_v36 = vpop.xlane.xlu1 %3948  ;;  %v3952_v3 = vpop.xlane.xlu0 %3951 }
 0xb96   : > { %9169 = vrsqrt.f32 %v4067_v2  ;;  %v4037_v53 = vmul.f32 0.03125, %v3949_v36  ;;  %v4038_v13 = vmul.f32 0.03125, %v3952_v3 }
 0xb97   : > { %9171 = vrsqrt.f32 %v4068_v7 }
 0xb98   : > { %v4069_v30 = vadd.f32 1e-06, %v4037_v53  ;;  %v4070_v37 = vadd.f32 1e-06, %v4038_v13 }
 0xb99   : > { %v3955_v52 = vpop.xlane.xlu1 %3954  ;;  %v3958_v8 = vpop.xlane.xlu0 %3957 }
 0xb9a   : > { %9173 = vrsqrt.f32 %v4069_v30  ;;  %v4039_v29 = vmul.f32 0.03125, %v3955_v52  ;;  %v4040_v59 = vmul.f32 0.03125, %v3958_v8 }
 0xb9b   : > { %9175 = vrsqrt.f32 %v4070_v37 }
 0xb9c   : > { %v4071_v40 = vadd.f32 1e-06, %v4039_v29  ;;  %v4072_v0 = vadd.f32 1e-06, %v4040_v59 }
 0xb9d   : > { %v3961_v63 = vpop.xlane.xlu1 %3960  ;;  %v3964_v22 = vpop.xlane.xlu0 %3963 }
 0xb9e   : > { %9177 = vrsqrt.f32 %v4071_v40  ;;  %v4041_v34 = vmul.f32 0.03125, %v3961_v63  ;;  %v4042_v42 = vmul.f32 0.03125, %v3964_v22 }
 0xb9f   : > { %v9168_v10 = vpop.eup %9167  ;;  %9179 = vrsqrt.f32 %v4072_v0 }
 0xba0   : > { %v4073_v36 = vadd.f32 1e-06, %v4041_v34  ;;  %v4074_v2 = vadd.f32 1e-06, %v4042_v42  ;;  %v4130_v52 = vmul.f32 %v9168_v10, %v11101_v21 }
 0xba1   : > { %v3967_v7 = vpop.xlane.xlu1 %3966  ;;  %v3970_v3 = vpop.xlane.xlu0 %3969 }
 0xba2   : > { %9181 = vrsqrt.f32 %v4073_v36  ;;  %v4043_v53 = vmul.f32 0.03125, %v3967_v7  ;;  %v4044_v13 = vmul.f32 0.03125, %v3970_v3 }
 0xba3   : > { %v9170_v30 = vpop.eup %9169  ;;  %9183 = vrsqrt.f32 %v4074_v2 }
 0xba4   : > { %v9172_v37 = vpop.eup %9171  ;;  %v4075_v8 = vadd.f32 1e-06, %v4043_v53  ;;  %v4076_v29 = vadd.f32 1e-06, %v4044_v13  ;;  %v4131_v40 = vmul.f32 %v9170_v30, %v11106_v5 }
 0xba5   : > { %v3973_v59 = vpop.xlane.xlu1 %3972  ;;  %v3976_v63 = vpop.xlane.xlu0 %3975  ;;  %v4132_v36 = vmul.f32 %v9172_v37, %v11109_v25 }
 0xba6   : > { %9185 = vrsqrt.f32 %v4075_v8  ;;  %v4045_v0 = vmul.f32 0.03125, %v3973_v59  ;;  %v4046_v22 = vmul.f32 0.03125, %v3976_v63  ;;  %v4162_v34 = vpack.c.bf16 %v4131_v40, %v4130_v52 }
 0xba7   : > { %v9174_v42 = vpop.eup %9173  ;;  %9187 = vrsqrt.f32 %v4076_v29 }
 0xba8   : > { %v9176_v7 = vpop.eup %9175  ;;  %v4133_v3 = vmul.f32 %v9174_v42, %v11117_v35  ;;  %v4077_v10 = vadd.f32 1e-06, %v4045_v0  ;;  %v4078_v21 = vadd.f32 1e-06, %v4046_v22  ;;  %8761 = vmatprep.mubr.msk.bf16.mxu0 %vm14278_vm0, %v4162_v34 }
 0xba9   : > { %v3979_v2 = vpop.xlane.xlu1 %3978  ;;  %v3982_v53 = vpop.xlane.xlu0 %3981  ;;  %v4134_v52 = vmul.f32 %v9176_v7, %v11120_v28 }
 0xbaa   : > { %v4163_v5 = vpack.c.bf16 %v4133_v3, %v4132_v36  ;;  %9189 = vrsqrt.f32 %v4077_v10  ;;  %v4047_v13 = vmul.f32 0.03125, %v3979_v2  ;;  %v4048_v30 = vmul.f32 0.03125, %v3982_v53 }
 0xbab   : > { %v9178_v8 = vpop.eup %9177  ;;  %9191 = vrsqrt.f32 %v4078_v21 }
 0xbac   : > { %v4079_v40 = vadd.f32 1e-06, %v4047_v13  ;;  %v4080_v25 = vadd.f32 1e-06, %v4048_v30  ;;  %8762 = vmatmul.mubr.msk.bf16.vlgmr.msra.gmra.mxu0 %vm14278_vm0, %v4163_v5  ;;  %v4135_v35 = vmul.f32 %v9178_v8, %v11129_v45  ;;  %v9180_v37 = vpop.eup %9179 }
 0xbad   : > { %v3985_v29 = vpop.xlane.xlu1 %3984  ;;  %v3988_v59 = vpop.xlane.xlu0 %3987  ;;  %v4136_v28 = vmul.f32 %v9180_v37, %v11132_v39 }
 0xbae   : > { %9193 = vrsqrt.f32 %v4079_v40  ;;  %v4049_v63 = vmul.f32 0.03125, %v3985_v29  ;;  %v4050_v0 = vmul.f32 0.03125, %v3988_v59  ;;  %v4164_v22 = vpack.c.bf16 %v4135_v35, %v4134_v52 }
 0xbaf   : > { %v9182_v34 = vpop.eup %9181  ;;  %9195 = vrsqrt.f32 %v4080_v25 }
 0xbb0   : > { %v4081_v42 = vadd.f32 1e-06, %v4049_v63  ;;  %v4082_v36 = vadd.f32 1e-06, %v4050_v0  ;;  %8765 = vmatprep.mubr.msk.bf16.mxu0 %vm14278_vm0, %v4164_v22  ;;  %v4137_v7 = vmul.f32 %v9182_v34, %v11141_v12  ;;  %v9184_v3 = vpop.eup %9183 }
 0xbb1   : > { %v3991_v10 = vpop.xlane.xlu1 %3990  ;;  %v3994_v45 = vpop.xlane.xlu0 %3993  ;;  %v4138_v8 = vmul.f32 %v9184_v3, %v11144_v49 }
 0xbb2   : > { %9197 = vrsqrt.f32 %v4081_v42  ;;  %v4051_v21 = vmul.f32 0.03125, %v3991_v10  ;;  %v4052_v2 = vmul.f32 0.03125, %v3994_v45  ;;  %v4165_v53 = vpack.c.bf16 %v4137_v7, %v4136_v28 }
 0xbb3   : > { %v9186_v5 = vpop.eup %9185  ;;  %9199 = vrsqrt.f32 %v4082_v36 }
 0xbb4   : > { %v4083_v13 = vadd.f32 1e-06, %v4051_v21  ;;  %v4084_v30 = vadd.f32 1e-06, %v4052_v2  ;;  %8766 = vmatmul.mubr.msk.bf16.gmra.mxu0 %vm14278_vm0, %v4165_v53  ;;  %v4139_v52 = vmul.f32 %v9186_v5, %v11153_v43  ;;  %v9188_v39 = vpop.eup %9187 }
 0xbb5   : > { %v3997_v40 = vpop.xlane.xlu1 %3996  ;;  %v4000_v12 = vpop.xlane.xlu0 %3999  ;;  %v4140_v0 = vmul.f32 %v9188_v39, %v11156_v15 }
 0xbb6   : > { %9201 = vrsqrt.f32 %v4083_v13  ;;  %v4053_v25 = vmul.f32 0.03125, %v3997_v40  ;;  %v4054_v35 = vmul.f32 0.03125, %v4000_v12  ;;  %v4166_v37 = vpack.c.bf16 %v4139_v52, %v4138_v8 }
 0xbb7   : > { %v9190_v29 = vpop.eup %9189  ;;  %9203 = vrsqrt.f32 %v4084_v30 }
 0xbb8   : > { %v4085_v59 = vadd.f32 1e-06, %v4053_v25  ;;  %v4086_v63 = vadd.f32 1e-06, %v4054_v35  ;;  %8769 = vmatprep.mubr.msk.bf16.mxu0 %vm14278_vm0, %v4166_v37  ;;  %v4141_v22 = vmul.f32 %v9190_v29, %v11165_v47  ;;  %v9192_v49 = vpop.eup %9191 }
 0xbb9   : > { %v4003_v34 = vpop.xlane.xlu1 %4002  ;;  %v4006_v43 = vpop.xlane.xlu0 %4005  ;;  %v4142_v21 = vmul.f32 %v9192_v49, %v11168_v55 }
 0xbba   : > { %9205 = vrsqrt.f32 %v4085_v59  ;;  %v4055_v42 = vmul.f32 0.03125, %v4003_v34  ;;  %v4056_v36 = vmul.f32 0.03125, %v4006_v43  ;;  %v4167_v28 = vpack.c.bf16 %v4141_v22, %v4140_v0 }
 0xbbb   : > { %v9194_v7 = vpop.eup %9193  ;;  %9207 = vrsqrt.f32 %v4086_v63 }
 0xbbc   : > { %v9196_v3 = vpop.eup %9195  ;;  %v4087_v10 = vadd.f32 1e-06, %v4055_v42  ;;  %v4088_v45 = vadd.f32 1e-06, %v4056_v36  ;;  %8770 = vmatmul.mubr.msk.bf16.gmra.mxu0 %vm14278_vm0, %v4167_v28  ;;  %v4143_v15 = vmul.f32 %v9194_v7, %v11177_v58 }
 0xbbd   : > { %v4009_v2 = vpop.xlane.xlu1 %4008  ;;  %v4012_v47 = vpop.xlane.xlu0 %4011  ;;  %v4144_v8 = vmul.f32 %v9196_v3, %v11180_v62 }
 0xbbe   : > { %9209 = vrsqrt.f32 %v4087_v10  ;;  %v4057_v53 = vmul.f32 0.03125, %v4009_v2  ;;  %v4058_v5 = vmul.f32 0.03125, %v4012_v47  ;;  %v4168_v13 = vpack.c.bf16 %v4143_v15, %v4142_v21 }
 0xbbf   : > { %v9198_v30 = vpop.eup %9197  ;;  %9211 = vrsqrt.f32 %v4088_v45 }
 0xbc0   : > { %v9200_v52 = vpop.eup %9199  ;;  %v4089_v39 = vadd.f32 1e-06, %v4057_v53  ;;  %v4090_v40 = vadd.f32 1e-06, %v4058_v5  ;;  %8773 = vmatprep.mubr.msk.bf16.mxu0 %vm14278_vm0, %v4168_v13  ;;  %v4145_v12 = vmul.f32 %v9198_v30, %v11189_v17 }
 0xbc1   : > { %v4015_v55 = vpop.xlane.xlu1 %4014  ;;  %v4018_v25 = vpop.xlane.xlu0 %4017  ;;  %v4146_v59 = vmul.f32 %v9200_v52, %v11192_v6 }
 0xbc2   : > { %9213 = vrsqrt.f32 %v4089_v39  ;;  %v4059_v58 = vmul.f32 0.03125, %v4015_v55  ;;  %v4060_v35 = vmul.f32 0.03125, %v4018_v25  ;;  %v4169_v37 = vpack.c.bf16 %v4145_v12, %v4144_v8 }
 0xbc3   : > { %v9202_v29 = vpop.eup %9201  ;;  %9215 = vrsqrt.f32 %v4090_v40 }
 0xbc4   : > { %v9204_v63 = vpop.eup %9203  ;;  %v4091_v62 = vadd.f32 1e-06, %v4059_v58  ;;  %v4092_v0 = vadd.f32 1e-06, %v4060_v35  ;;  %8774 = vmatmul.mubr.msk.bf16.gmra.mxu0 %vm14278_vm0, %v4169_v37  ;;  %v4147_v22 = vmul.f32 %v9202_v29, %v11201_v41 }
 0xbc5   : > { %v4021_v49 = vpop.xlane.xlu1 %4020  ;;  %v4024_v34 = vpop.xlane.xlu0 %4023  ;;  %v4148_v28 = vmul.f32 %v9204_v63, %v11204_v44 }
 0xbc6   : > { %9217 = vrsqrt.f32 %v4091_v62  ;;  %v4061_v17 = vmul.f32 0.03125, %v4021_v49  ;;  %v4062_v43 = vmul.f32 0.03125, %v4024_v34  ;;  %v4170_v42 = vpack.c.bf16 %v4147_v22, %v4146_v59 }
 0xbc7   : > { %v9206_v36 = vpop.eup %9205  ;;  %9219 = vrsqrt.f32 %v4092_v0 }
 0xbc8   : > { %v9208_v7 = vpop.eup %9207  ;;  %v4093_v6 = vadd.f32 1e-06, %v4061_v17  ;;  %v4094_v3 = vadd.f32 1e-06, %v4062_v43  ;;  %8777 = vmatprep.mubr.msk.bf16.mxu0 %vm14278_vm0, %v4170_v42  ;;  %v4149_v10 = vmul.f32 %v9206_v36, %v11213_v19 }
 0xbc9   : > { %v4027_v45 = vpop.xlane.xlu1 %4026  ;;  %v4030_v21 = vpop.xlane.xlu0 %4029  ;;  %v4150_v53 = vmul.f32 %v9208_v7, %v11216_v31 }
 0xbca   : > { %9221 = vrsqrt.f32 %v4093_v6  ;;  %v4063_v41 = vmul.f32 0.03125, %v4027_v45  ;;  %v4064_v15 = vmul.f32 0.03125, %v4030_v21  ;;  %v4171_v2 = vpack.c.bf16 %v4149_v10, %v4148_v28  ;;  %v8936_v10 = vld [vmem:[%s14172_s18 + $0x30] sm:$0xff]  }
 0xbcb   : > { %v9210_v47 = vpop.eup %9209  ;;  %9223 = vrsqrt.f32 %v4094_v3  ;;  %v8935_v3 = vld [vmem:[%s14172_s18 + $0x38] sm:$0xff]  }
 0xbcc   : > { %v4095_v5 = vadd.f32 1e-06, %v4063_v41  ;;  %v4096_v44 = vadd.f32 1e-06, %v4064_v15  ;;  %8778 = vmatmul.mubr.msk.bf16.gmra.mxu0 %vm14278_vm0, %v4171_v2  ;;  %v4151_v13 = vmul.f32 %v9210_v47, %v11225_v32  ;;  %v9212_v30 = vpop.eup %9211  ;;  %8793 = vmatprep.subr.bf16.mxu1 %v8935_v3 }
 0xbcd   : > { %v4033_v8 = vpop.xlane.xlu1 %4032  ;;  %v4152_v12 = vmul.f32 %v9212_v30, %v11228_v4  ;;  %8794 = vmatpush3.bf16.msra.mxu1 %v8935_v3 }
 0xbce   : > { %9225 = vrsqrt.f32 %v4095_v5  ;;  %v4065_v19 = vmul.f32 0.03125, %v4033_v8  ;;  %v4172_v52 = vpack.c.bf16 %v4151_v13, %v4150_v53  ;;  %8795 = vmatprep.subr.bf16.mxu1 %v8936_v10 }
 0xbcf   : > { %v9214_v39 = vpop.eup %9213  ;;  %9227 = vrsqrt.f32 %v4096_v44 }
 0xbd0   : > { %v4097_v40 = vadd.f32 1e-06, %v4065_v19  ;;  %8781 = vmatprep.mubr.msk.bf16.mxu0 %vm14278_vm0, %v4172_v52  ;;  %v4153_v31 = vmul.f32 %v9214_v39, %v11237_v26  ;;  %v9216_v55 = vpop.eup %9215 }
 0xbd1   : > { %v4154_v32 = vmul.f32 %v9216_v55, %v11240_v14  ;;  %8796 = vmatpush3.bf16.msra.mxu1 %v8936_v10 }
 0xbd2   : > { %9229 = vrsqrt.f32 %v4097_v40  ;;  %v4173_v25 = vpack.c.bf16 %v4153_v31, %v4152_v12  ;;  %v8937_v12 = vld [vmem:[%s14172_s18 + $0x28] sm:$0xff]  }
 0xbd3   : > { %v9218_v58 = vpop.eup %9217  ;;  %8797 = vmatprep.subr.bf16.mxu1 %v8937_v12 }
 0xbd4   : > { %8782 = vmatmul.mubr.msk.bf16.gmra.mxu0 %vm14278_vm0, %v4173_v25  ;;  %v4155_v35 = vmul.f32 %v9218_v58, %v11249_v33  ;;  %v9220_v37 = vpop.eup %9219 }
 0xbd5   : > { %v4156_v63 = vmul.f32 %v9220_v37, %v11252_v18  ;;  %8798 = vmatpush3.bf16.msra.mxu1 %v8937_v12 }
 0xbd6   : > { %v4174_v29 = vpack.c.bf16 %v4155_v35, %v4154_v32 }
 0xbd7   : > { %v9222_v59 = vpop.eup %9221 }
 0xbd8   : > { %8785 = vmatprep.mubr.msk.bf16.mxu0 %vm14278_vm0, %v4174_v29  ;;  %v4157_v4 = vmul.f32 %v9222_v59, %v11261_v54  ;;  %v9224_v26 = vpop.eup %9223  ;;  %v4412_v54 = vlaneseq }
 0xbd9   : > { %v4158_v22 = vmul.f32 %v9224_v26, %v11264_v27 }
 0xbda   : > { %v4175_v62 = vpack.c.bf16 %v4157_v4, %v4156_v63  ;;  %v11340_v42 = vshrl.u32 %v4412_v54, 7  ;;  %v11416_v63 = vld [vmem:[%s14169_s15] ss:$0 sm:$0xff]  ;;  %v14439_v54 = vmov 0 }
 0xbdb   : > { %v9226_v0 = vpop.eup %9225 }
 0xbdc   : > { %8786 = vmatmul.mubr.msk.bf16.gmra.mxu0 %vm14278_vm0, %v4175_v62  ;;  %v4159_v14 = vmul.f32 %v9226_v0, %v11273_v48  ;;  %v9228_v49 = vpop.eup %9227  ;;  %v5227_v36 = vsub.s32 0, %v11340_v42  ;;  %v4959_v27 = vsub.s32 4, %v11340_v42  ;;  %v4410_v48 = vld [vmem:[%s14170_s16] sm:$0xff]  ;;  %v5391_v28 = vsub.s32 1, %v11340_v42 }
 0xbdd   : > { %v4160_v17 = vmul.f32 %v9228_v49, %v11276_v56  ;;  %v5652_v56 = vsub.s32 2, %v11340_v42  ;;  %v11363_v21 = vadd.s32 8, %v11340_v42  ;;  %v11366_v41 = vadd.s32 16, %v11340_v42 }
 0xbde   : > { %v4176_v33 = vpack.c.bf16 %v4159_v14, %v4158_v22  ;;  %v11350_v7 = vrot.slane %v4410_v48, %v5227_v36  ;;  %v11352_v6 = vrot.slane %v4410_v48, %v4959_v27  ;;  %v11360_v45 = vrot.slane %v4410_v48, %v5391_v28 }
 0xbdf   : > { %v9230_v34 = vpop.eup %9229  ;;  %v4416_v15 = vadd.s32 24, %v11340_v42  ;;  %v11369_v2 = vrot.slane %v4410_v48, %v5652_v56  ;;  %v11372_v47 = vadd.s32 32, %v11340_v42  ;;  %v5816_v53 = vsub.s32 3, %v11340_v42 }
 0xbe0   : > { %8789 = vmatprep.mubr.msk.bf16.mxu0 %vm14278_vm0, %v4176_v33  ;;  %v4161_v18 = vmul.f32 %v9230_v34, %v11285_v1  ;;  %v6340_v1 = vsub.s32 7, %v11340_v42  ;;  %v5980_v5 = vsub.s32 5, %v11340_v42  ;;  %v11379_v13 = vmul.f32 0.0, %v11350_v7 }
 0xbe1   : > { %v11382_v30 = vadd.s32 48, %v11340_v42  ;;  %v6176_v8 = vsub.s32 6, %v11340_v42  ;;  %v11386_v19 = vmul.f32 0.0, %v11360_v45  ;;  %v11389_v52 = vadd.s32 64, %v11340_v42 }
 0xbe2   : > { %v4177_v43 = vpack.c.bf16 %v4161_v18, %v4160_v17  ;;  %v11376_v44 = vrot.slane %v4410_v48, %v6340_v1  ;;  %v11392_v39 = vadd.s32 80, %v11340_v42  ;;  %v11395_v40 = vadd.s32 96, %v11340_v42  ;;  %v8938_v17 = vld [vmem:[%s14172_s18 + $0x20] sm:$0xff]  }
 0xbe3   : > { %v4456_v55 = vand.u32 15, %v11363_v21  ;;  %v4463_v25 = vand.u32 15, %v11366_v41  ;;  %v4470_v58 = vand.u32 15, %v4416_v15  ;;  %v11403_v32 = vadd.s32 112, %v11340_v42  ;;  %8799 = vmatprep.subr.bf16.mxu1 %v8938_v17 }
 0xbe4   : > { %8790 = vmatmul.mubr.msk.bf16.gmra.mxu0 %vm14278_vm0, %v4177_v43  ;;  %v11406_v35 = vmul.f32 0.0, %v11369_v2  ;;  %v4477_v37 = vand.u32 15, %v11372_v47  ;;  %v11409_v29 = vrot.slane %v4410_v48, %v5816_v53  ;;  %v11411_v59 = vrot.slane %v4410_v48, %v5980_v5  ;;  %8800 = vmatpush3.bf16.msra.mxu1 %v8938_v17 }
 0xbe5   : > { %v11419_v62 = vrot.slane %v4410_v48, %v6176_v8  ;;  %v11422_v0 = vadd.s32 128, %v11340_v42  ;;  %v11425_v22 = vadd.s32 144, %v11340_v42  ;;  %vm14300_vm3 = vcmp.lt.s32.totalorder %v11340_v42, 1 }
 0xbe6   : > { %14432 = vst [vmem:[#allocation41_spill] sm:$0xff] %v11411_v59  ;;  %v11432_v34 = vadd.s32 160, %v11340_v42  ;;  %v11442_v36 = vadd.s32 176, %v11340_v42  ;;  %v11445_v27 = vadd.s32 192, %v11340_v42  ;;  %vm14283_vm4 = vcmp.lt.s32.totalorder %v11340_v42, 7 }
 0xbe7   : > { %14433 = vst [vmem:[#allocation42_spill] sm:$0xff] %v11419_v62  ;;  %v11452_v28 = vadd.s32 208, %v11340_v42  ;;  %v11455_v56 = vadd.s32 216, %v11340_v42  ;;  %v11458_v1 = vadd.s32 224, %v11340_v42  ;;  %vm11460_vm5 = vcmp.le.s32.totalorder %v4470_v58, 14  ;;  %v8939_v58 = vld [vmem:[%s14172_s18 + $0x18] sm:$0xff]  }
 0xbe8   : > { %v11467_v15 = vadd.s32 240, %v11340_v42  ;;  %v11474_v8 = vadd.s32 248, %v11340_v42  ;;  %vm11490_vm6 = vcmp.ge.s32.totalorder %v4477_v37, 1  ;;  %vm11503_vm7 = vcmp.ge.s32.totalorder %v4463_v25, 1  ;;  %8801 = vmatprep.subr.bf16.mxu1 %v8939_v58 }
 0xbe9   : > { %v14440_v54 = vsel %vm11490_vm6, 4294967295, %v14439_v54  ;;  %v14442_v41 = vmov 0  ;;  %vm11507_vm8 = vcmp.le.s32.totalorder %v4456_v55, 14  ;;  %v14445_v37 = vmov 0  ;;  %v8940_v55 = vld [vmem:[%s14172_s18 + $0x10] sm:$0xff]   ;;  %8802 = vmatpush3.bf16.msra.mxu1 %v8939_v58 }
 0xbea   : > { %14437 = vst [vmem:[#allocation44_spill] sm:$0xff] %v11474_v8  ;;  %14441 = vst [vmem:[#allocation46_spill] sm:$0xff] %v14440_v54  ;;  %v14443_v41 = vsel %vm11503_vm7, 4294967295, %v14442_v41  ;;  %v14446_v37 = vsel %vm11507_vm8, 4294967295, %v14445_v37  ;;  %8803 = vmatprep.subr.bf16.mxu1 %v8940_v55 }
 0xbeb   : > { %14444 = vst [vmem:[#allocation47_spill] sm:$0xff] %v14443_v41  ;;  %14447 = vst [vmem:[#allocation48_spill] sm:$0xff] %v14446_v37 }
 0xbed   : > { %8804 = vmatpush3.bf16.msra.mxu1 %v8940_v55 }
 0xbee   : > { %8805 = vmatprep.subr.bf16.mxu1 %v8941_v51 }
 0xbf1   : > { %8806 = vmatpush3.bf16.msra.mxu1 %v8941_v51 }
 0xc6c   : > { %v8763_v31 = vpop.f32.mrf.mxu0 }
 0xc6e   : > { %v4283_v4 = vpop.f32.mrf.mxu0 }
 0xc6f   : > { %v11438_v18 = vadd.f32 %v11416_v63, %v4283_v4  ;;  %v11480_v4 = vadd.s32 40, %v11340_v42 }
 0xc70   : > { %v8764_v43 = vpop.f32.mrf.mxu0 }
 0xc71   : > { %14434 = vst [vmem:[#allocation43_spill] sm:$0xff] %v11438_v18  ;;  %v11448_v48 = vadd.f32 %v8764_v43, %v11416_v63  ;;  %v4961_v53 = vmul.f32 %v11352_v6, %v11438_v18  ;;  %14438 = vst [vmem:[#allocation45_spill] sm:$0xff] %v11480_v4  ;;  %v4292_v43 = vadd.f32 %v8763_v31, %v11416_v63  ;;  %v14448_v17 = vrot.slane %v11438_v18, 7 }
 0xc72   : > { %v4286_v3 = vpop.f32.mrf.mxu0  ;;  %v11550_v11 = vmul.f32 %v11360_v45, %v11438_v18  ;;  %v14463_v55 = vrot.slane %v11438_v18, 1 }
 0xc73   : > { %v11484_v12 = vadd.f32 %v11416_v63, %v4286_v3  ;;  %v4964_v21 = vmul.f32 %v11352_v6, %v11448_v48  ;;  %v11500_v3 = vld [vmem:[%s14171_s17] ss:$0 sm:$0xff]  ;;  %v4963_v61 = vmul.f32 %v11352_v6, %v4292_v43  ;;  %v5459_v20 = vrot.slane %v4292_v43, 1 }
 0xc74   : > { %v8767_v47 = vpop.f32.mrf.mxu0  ;;  %v5000_v26 = vadd.f32 %v11500_v3, %v4961_v53  ;;  %v5034_v60 = vrot.slane %v4292_v43, 7  ;;  %v11532_v46 = vmul.f32 %v11360_v45, %v4292_v43  ;;  %v5460_v24 = vrot.slane %v11448_v48, 1  ;;  %14451 = vst [vmem:[#allocation51_spill] sm:$0xff] %v11550_v11 }
 0xc75   : > { %v4962_v49 = vmul.f32 %v11352_v6, %v11484_v12  ;;  %v5033_v31 = vrot.slane %v11484_v12, 7  ;;  %v5458_v25 = vrot.slane %v11484_v12, 1  ;;  %v5003_v57 = vadd.f32 %v11500_v3, %v4964_v21 }
 0xc76   : > { %v4299_v33 = vpop.f32.mrf.mxu0  ;;  %v5261_v5 = vadd.f32 %v11379_v13, %v5000_v26  ;;  %v11546_v23 = vadd.f32 %v11500_v3, %v4963_v61  ;;  %v5396_v26 = vmul.f32 %v11360_v45, %v11484_v12  ;;  %v11574_v12 = vmul.f32 %v11360_v45, %v11448_v48 }
 0xc77   : > { %v5001_v38 = vadd.f32 %v11500_v3, %v4962_v49  ;;  %v5095_v53 = vsel %vm14300_vm3, %v14448_v17, %v5033_v31  ;;  %v5519_v49 = vsel %vm14283_vm4, %v5458_v25, %v5459_v20  ;;  %v11538_v17 = vmul.f32 %v11376_v44, %v4292_v43 }
 0xc78   : > { %v8768_v14 = vpop.f32.mrf.mxu0  ;;  %v5232_v9 = vmul.f32 %v11350_v7, %v5095_v53  ;;  %14450 = vst [vmem:[#allocation50_spill] sm:$0xff] %v11546_v23  ;;  %v5621_v61 = vsel %vm11460_vm5, %v5519_v49, 0.0  ;;  %v11578_v58 = vmul.f32 %v11376_v44, %v11448_v48  ;;  %v5425_v4 = vadd.f32 %v11386_v19, %v5261_v5 }
 0xc79   : > { %14449 = vst [vmem:[#allocation49_spill] sm:$0xff] %v11538_v17  ;;  %v5262_v21 = vadd.f32 %v11379_v13, %v5001_v38  ;;  %v11570_v13 = vadd.f32 %v8767_v47, %v11416_v63  ;;  %v14457_v17 = vand.u32 15, %v11382_v30  ;;  %v11588_v47 = vsel %vm14283_vm4, %v5459_v20, %v5460_v24  ;;  %v8942_v30 = vld [vmem:[%s14172_s18] sm:$0xff]  }
 0xc7a   : > { %v4302_v16 = vpop.f32.mrf.mxu0  ;;  %v5264_v50 = vadd.f32 %v5232_v9, %v5003_v57  ;;  %v14452_v9 = vrot.slane %v11448_v48, 7  ;;  %v11565_v57 = vsel %vm14300_vm3, %v5033_v31, %v5034_v60  ;;  %14456 = vst [vmem:[#allocation55_spill] sm:$0xff] %v11578_v58  ;;  %14461 = vst [vmem:[#allocation57_spill] sm:$0xff] %v11588_v47  ;;  %v11593_v23 = vadd.f32 %v11416_v63, %v4299_v33 }
 0xc7b   : > { %14454 = vst [vmem:[#allocation53_spill] sm:$0xff] %v11565_v57  ;;  %14455 = vst [vmem:[#allocation54_spill] sm:$0xff] %v11570_v13  ;;  %vm11582_vm9 = vcmp.ge.s32.totalorder %v14457_v17, 1  ;;  %v5426_v11 = vadd.f32 %v11386_v19, %v5262_v21  ;;  %v5197_v20 = vsel %vm11490_vm6, %v11565_v57, 0.0  ;;  %v5520_v19 = vsel %vm14283_vm4, %v14463_v55, %v5458_v25  ;;  %8807 = vmatprep.subr.bf16.mxu1 %v8942_v30 }
 0xc7c   : > { %v11555_v43 = vpop.f32.mrf.mxu0  ;;  %v11561_v38 = vsel %vm14300_vm3, %v5034_v60, %v14452_v9  ;;  %v5428_v9 = vadd.f32 %v5396_v26, %v5264_v50  ;;  %v14458_v60 = vmov 0  ;;  %v11596_v50 = vadd.f32 %v8768_v14, %v11416_v63  ;;  %8808 = vmatpush3.bf16.msra.mxu1 %v8942_v30 }
 0xc7d   : > { %14453 = vst [vmem:[#allocation52_spill] sm:$0xff] %v11561_v38  ;;  %v14459_v60 = vsel %vm11582_vm9, 4294967295, %v14458_v60  ;;  %v5657_v33 = vmul.f32 %v11369_v2, %v5621_v61  ;;  %v5821_v14 = vmul.f32 %v11409_v29, %v11561_v38  ;;  %v5784_v17 = vsel %vm11503_vm7, %v11565_v57, 0.0 }
 0xc7e   : > { %14460 = vst [vmem:[#allocation56_spill] sm:$0xff] %v14459_v60  ;;  %v4315_v31 = vpop.f32.mrf.mxu0  ;;  %14462 = vst [vmem:[#allocation58_spill] sm:$0xff] %v11596_v50  ;;  %v5947_v21 = vsel %vm11507_vm8, %v5519_v49, 0.0  ;;  %v4967_v26 = vmul.f32 %v11352_v6, %v11570_v13  ;;  %v5038_v58 = vrot.slane %v11570_v13, 7  ;;  %v5036_v61 = vrot.slane %v11593_v23, 7 }
 0xc7f   : > { %v5689_v25 = vadd.f32 %v5657_v33, %v5428_v9  ;;  %v14228_v55 = vrot.slane %v11593_v23, 1  ;;  %v11627_v57 = vadd.f32 %v11406_v35, %v5425_v4  ;;  %v5233_v49 = vmul.f32 %v11350_v7, %v5197_v20 }
 0xc80   : > { %v11611_v5 = vpop.f32.mrf.mxu0  ;;  %v11631_v37 = vmul.f32 %v11369_v2, %v5520_v19  ;;  %v5687_v8 = vadd.f32 %v11406_v35, %v5426_v11  ;;  %v5819_v9 = vmul.f32 %v11409_v29, %v5095_v53  ;;  %v4965_v33 = vmul.f32 %v11352_v6, %v11593_v23 }
 0xc81   : > { %14464 = vst [vmem:[#allocation59_spill] sm:$0xff] %v11627_v57  ;;  %v11641_v51 = vsel %vm14283_vm4, %v5460_v24, %v14228_v55  ;;  %v11644_v4 = vadd.f32 %v11416_v63, %v4302_v16  ;;  %v11647_v20 = vmul.f32 %v11409_v29, %v5784_v17  ;;  %v11650_v11 = vmul.f32 %v11411_v59, %v5520_v19 }
 0xc82   : > { %v11624_v18 = vpop.f32.mrf.mxu0  ;;  %14465 = vst [vmem:[#allocation60_spill] sm:$0xff] %v11631_v37  ;;  %14466 = vst [vmem:[#allocation61_spill] sm:$0xff] %v11641_v51  ;;  %v11653_v35 = vmul.f32 %v11411_v59, %v5947_v21  ;;  %v5949_v53 = vsel %vm11460_vm5, %v11641_v51, 0.0  ;;  %v14470_v47 = vand.u32 15, %v11389_v52  ;;  %v14471_v24 = vmov 0 }
 0xc83   : > { %14467 = vst [vmem:[#allocation62_spill] sm:$0xff] %v11647_v20  ;;  %14468 = vst [vmem:[#allocation63_spill] sm:$0xff] %v11650_v11  ;;  %v5853_v16 = vadd.f32 %v5821_v14, %v5689_v25  ;;  %v5006_v17 = vadd.f32 %v11500_v3, %v4967_v26  ;;  %v14474_v55 = vrot.slane %v11448_v48, 7  ;;  %v14476_v21 = vrot.slane %v11596_v50, 7 }
 0xc84   : > { %14469 = vst [vmem:[#allocation64_spill] sm:$0xff] %v11653_v35  ;;  %vm11660_vm10 = vcmp.ge.s32.totalorder %v14470_v47, 1  ;;  %v11677_v52 = vpop.f32.mrf.mxu0  ;;  %v11679_v47 = vadd.f32 %v5819_v9, %v5687_v8  ;;  %v11683_v14 = vmul.f32 %v11360_v45, %v11570_v13  ;;  %v11688_v26 = vmul.f32 %v11376_v44, %v11570_v13 }
 0xc85   : > { %v14472_v24 = vsel %vm11660_vm10, 4294967295, %v14471_v24  ;;  %v11669_v19 = vsel %vm14300_vm3, %v14474_v55, %v5036_v61  ;;  %v11675_v51 = vsel %vm14300_vm3, %v5038_v58, %v14476_v21  ;;  %v14480_v25 = vand.u32 15, %v11392_v39 }
 0xc86   : > { %14473 = vst [vmem:[#allocation65_spill] sm:$0xff] %v14472_v24  ;;  %14475 = vst [vmem:[#allocation66_spill] sm:$0xff] %v11669_v19  ;;  %v14481_v55 = vmov 0  ;;  %v5004_v30 = vadd.f32 %v11500_v3, %v4965_v33  ;;  %v5985_v8 = vmul.f32 %v11411_v59, %v5949_v53  ;;  %v5037_v9 = vrot.slane %v11644_v4, 7  ;;  %v11721_v11 = vpop.f32.mrf.mxu0 }
 0xc87   : > { %14477 = vst [vmem:[#allocation67_spill] sm:$0xff] %v11675_v51  ;;  %14478 = vst [vmem:[#allocation68_spill] sm:$0xff] %v11679_v47  ;;  %vm11692_vm11 = vcmp.ge.s32.totalorder %v14480_v25, 1  ;;  %v5462_v21 = vrot.slane %v11644_v4, 1  ;;  %v5199_v48 = vsel %vm11582_vm9, %v11669_v19, 0.0  ;;  %v5234_v39 = vmul.f32 %v11350_v7, %v11561_v38 }
 0xc88   : > { %14479 = vst [vmem:[#allocation69_spill] sm:$0xff] %v11688_v26  ;;  %v14482_v55 = vsel %vm11692_vm11, 4294967295, %v14481_v55  ;;  %v4968_v26 = vmul.f32 %v11352_v6, %v11596_v50  ;;  %v11709_v25 = vadd.f32 %v11555_v43, %v11416_v63  ;;  %v6144_v33 = vsel %vm11503_vm7, %v11669_v19, 0.0  ;;  %v11762_v19 = vpop.f32.mrf.mxu0 }
 0xc89   : > { %14483 = vst [vmem:[#allocation70_spill] sm:$0xff] %v14482_v55  ;;  %v11716_v53 = vsel %vm14300_vm3, %v5036_v61, %v5037_v9  ;;  %v6017_v35 = vadd.f32 %v5985_v8, %v5853_v16  ;;  %v11719_v47 = vadd.f32 %v11416_v63, %v4315_v31  ;;  %v5399_v38 = vmul.f32 %v11360_v45, %v11593_v23 }
 0xc8a   : > { %14484 = vst [vmem:[#allocation71_spill] sm:$0xff] %v11709_v25  ;;  %v11727_v43 = vmul.f32 %v11376_v44, %v11593_v23  ;;  %v11731_v20 = vmul.f32 %v11360_v45, %v11596_v50  ;;  %v5235_v16 = vmul.f32 %v11350_v7, %v5199_v48  ;;  %v5265_v8 = vadd.f32 %v5233_v49, %v5004_v30 }
 0xc8b   : > { %v14486_v31 = vrot.slane %v11570_v13, 1  ;;  %v6181_v57 = vmul.f32 %v11419_v62, %v11716_v53  ;;  %v11747_v59 = vmul.f32 %v11419_v62, %v6144_v33  ;;  %v5007_v61 = vadd.f32 %v11500_v3, %v4968_v26 }
 0xc8c   : > { %14485 = vst [vmem:[#allocation72_spill] sm:$0xff] %v11727_v43  ;;  %v11752_v49 = vsel %vm14300_vm3, %v5037_v9, %v5038_v58  ;;  %v11756_v48 = vmul.f32 %v11376_v44, %v11596_v50  ;;  %v4966_v30 = vmul.f32 %v11352_v6, %v11644_v4  ;;  %v6345_v43 = vmul.f32 %v11376_v44, %v11644_v4 }
 0xc8d   : > { %v11739_v37 = vsel %vm14283_vm4, %v5462_v21, %v14486_v31  ;;  %14488 = vst [vmem:[#allocation74_spill] sm:$0xff] %v11747_v59  ;;  %14489 = vst [vmem:[#allocation75_spill] sm:$0xff] %v11752_v49  ;;  %v6213_v31 = vadd.f32 %v6181_v57, %v6017_v35  ;;  %v4971_v58 = vmul.f32 %v11352_v6, %v11709_v25  ;;  %v5040_v33 = vrot.slane %v11719_v47, 7 }
 0xc8e   : > { %14487 = vst [vmem:[#allocation73_spill] sm:$0xff] %v11739_v37  ;;  %14490 = vst [vmem:[#allocation76_spill] sm:$0xff] %v11756_v48  ;;  %v6505_v26 = vsel %vm11460_vm5, %v11739_v37, 0.0  ;;  %v4969_v9 = vmul.f32 %v11352_v6, %v11719_v47  ;;  %v5267_v48 = vadd.f32 %v5235_v16, %v5006_v17  ;;  %v11773_v57 = vadd.f32 %v11532_v46, %v5265_v8  ;;  %v11785_v37 = vld [vmem:[%s14170_s16 + $0x8] ss:$0 sm:$0xff] }
 0xc8f   : > { %v11777_v35 = vmul.f32 %v11409_v29, %v11675_v51  ;;  %v5201_v10 = vsel %vm11660_vm10, %v11752_v49, 0.0  ;;  %v6377_v54 = vadd.f32 %v6345_v43, %v6213_v31  ;;  %v14493_v17 = vrot.slane %v11596_v50, 7  ;;  %v4334_v31 = vpop.f32.mrf.mxu0 }
 0xc90   : > { %14491 = vst [vmem:[#allocation77_spill] sm:$0xff] %v11773_v57  ;;  %v5008_v13 = vadd.f32 %v11500_v3, %v4969_v9  ;;  %v5237_v16 = vmul.f32 %v11350_v7, %v5201_v10  ;;  %v5005_v8 = vadd.f32 %v11500_v3, %v4966_v30  ;;  %v11802_v43 = vadd.f32 %v11611_v5, %v11416_v63 }
 0xc91   : > { %14492 = vst [vmem:[#allocation78_spill] sm:$0xff] %v11777_v35  ;;  %v11792_v46 = vsel %vm14300_vm3, %v14493_v17, %v5040_v33  ;;  %v6541_v35 = vmul.f32 %v11785_v37, %v6505_v26  ;;  %v5010_v9 = vadd.f32 %v11500_v3, %v4971_v58  ;;  %v11808_v10 = vadd.f32 %v11416_v63, %v11624_v18 }
 0xc92   : > { %14494 = vst [vmem:[#allocation79_spill] sm:$0xff] %v11792_v46  ;;  %v5203_v57 = vsel %vm11692_vm11, %v11792_v46, 0.0  ;;  %14495 = vst [vmem:[#allocation80_spill] sm:$0xff] %v11802_v43  ;;  %v5269_v50 = vadd.f32 %v5237_v16, %v5008_v13  ;;  %v5236_v30 = vmul.f32 %v11350_v7, %v11716_v53  ;;  %v14496_v26 = vrot.slane %v11593_v23, 1 }
 0xc93   : > { %v5239_v17 = vmul.f32 %v11350_v7, %v5203_v57  ;;  %v5042_v5 = vrot.slane %v11709_v25, 7  ;;  %v5043_v58 = vrot.slane %v11802_v43, 7  ;;  %v14498_v57 = vand.u32 15, %v11395_v40 }
 0xc94   : > { %v11816_v59 = vsel %vm14283_vm4, %v14496_v26, %v5462_v21  ;;  %v14499_v13 = vmov 0  ;;  %v11826_v18 = vadd.f32 %v6541_v35, %v6377_v54  ;;  %v5403_v23 = vmul.f32 %v11360_v45, %v11719_v47  ;;  %v11843_v35 = vpop.f32.mrf.mxu0 }
 0xc95   : > { %14497 = vst [vmem:[#allocation81_spill] sm:$0xff] %v11816_v59  ;;  %vm11822_vm12 = vcmp.ge.s32.totalorder %v14498_v57, 1  ;;  %v5271_v16 = vadd.f32 %v5239_v17, %v5010_v9  ;;  %v11831_v62 = vadd.f32 %v11683_v14, %v5269_v50  ;;  %v5400_v21 = vmul.f32 %v11360_v45, %v11644_v4 }
 0xc96   : > { %v14500_v13 = vsel %vm11822_vm12, 4294967295, %v14499_v13  ;;  %v4972_v26 = vmul.f32 %v11352_v6, %v11802_v43  ;;  %v11839_v40 = vsel %vm14300_vm3, %v5042_v5, %v5043_v58  ;;  %v4970_v54 = vmul.f32 %v11352_v6, %v11808_v10 }
 0xc97   : > { %14501 = vst [vmem:[#allocation82_spill] sm:$0xff] %v14500_v13  ;;  %14502 = vst [vmem:[#allocation83_spill] sm:$0xff] %v11831_v62  ;;  %v11845_v9 = vadd.f32 %v5399_v38, %v5267_v48  ;;  %v5266_v17 = vadd.f32 %v5234_v39, %v5005_v8  ;;  %v11847_v50 = vadd.f32 %v5403_v23, %v5271_v16  ;;  %v5041_v14 = vrot.slane %v11808_v10, 7 }
 0xc98   : > { %14503 = vst [vmem:[#allocation84_spill] sm:$0xff] %v11839_v40  ;;  %v11852_v4 = vmul.f32 %v11369_v2, %v11816_v59  ;;  %v5009_v62 = vadd.f32 %v11500_v3, %v4970_v54  ;;  %v5238_v41 = vmul.f32 %v11350_v7, %v11675_v51  ;;  %v14507_v38 = vand.u32 15, %v11403_v32 }
 0xc99   : > { %14504 = vst [vmem:[#allocation85_spill] sm:$0xff] %v11845_v9  ;;  %14505 = vst [vmem:[#allocation86_spill] sm:$0xff] %v11847_v50  ;;  %v14508_v39 = vmov 0  ;;  %v5268_v48 = vadd.f32 %v5236_v30, %v5007_v61  ;;  %v11867_v8 = vmul.f32 0.70710677, %v11826_v18  ;;  %v11871_v16 = vsel %vm14300_vm3, %v5041_v14, %v5042_v5 }
 0xc9a   : > { %14506 = vst [vmem:[#allocation87_spill] sm:$0xff] %v11852_v4  ;;  %vm11862_vm13 = vcmp.ge.s32.totalorder %v14507_v38, 1  ;;  %14511 = vst [vmem:[#allocation89_spill] sm:$0xff] %v11871_v16  ;;  %v11875_v23 = vsel %vm14300_vm3, %v5040_v33, %v5041_v14  ;;  %v11879_v54 = vmul.f32 %v11409_v29, %v11716_v53  ;;  %v5011_v32 = vadd.f32 %v11500_v3, %v4972_v26  ;;  %v4347_v38 = vpop.f32.mrf.mxu0 }
 0xc9b   : > { %v14509_v39 = vsel %vm11862_vm13, 4294967295, %v14508_v39  ;;  %v5240_v61 = vmul.f32 %v11350_v7, %v11875_v23  ;;  %v5270_v30 = vadd.f32 %v5238_v41, %v5009_v62  ;;  %v11885_v57 = vadd.f32 %v11574_v12, %v5266_v17 }
 0xc9c   : > { %14510 = vst [vmem:[#allocation88_spill] sm:$0xff] %v14509_v39  ;;  %14512 = vst [vmem:[#allocation90_spill] sm:$0xff] %v11879_v54  ;;  %v11889_v5 = vmul.f32 %v11785_v37, %v11816_v59  ;;  %v5405_v33 = vmul.f32 %v11360_v45, %v11709_v25  ;;  %v11895_v53 = vadd.f32 %v11677_v52, %v11416_v63  ;;  %v6733_v17 = vand.u32 2147483647, %v11867_v8 }
 0xc9d   : > { %v5272_v14 = vadd.f32 %v5240_v61, %v5011_v32  ;;  %v5404_v62 = vmul.f32 %v11360_v45, %v11808_v10  ;;  %v11901_v41 = vadd.f32 %v11731_v20, %v5270_v30  ;;  %v11903_v12 = vadd.f32 %v5400_v21, %v5268_v48  ;;  %v8780_v48 = vpop.f32.mrf.mxu0 }
 0xc9e   : > { %14513 = vst [vmem:[#allocation91_spill] sm:$0xff] %v11895_v53  ;;  %v11908_v50 = vmul.f32 %v11376_v44, %v11709_v25  ;;  %v11916_v61 = vmul.f32 %v11376_v44, %v11719_v47  ;;  %v11922_v21 = vadd.f32 %v11416_v63, %v11721_v11  ;;  %v5406_v30 = vmul.f32 %v11360_v45, %v11802_v43 }
 0xc9f   : > { %14514 = vst [vmem:[#allocation92_spill] sm:$0xff] %v11901_v41  ;;  %14515 = vst [vmem:[#allocation93_spill] sm:$0xff] %v11903_v12  ;;  %v11918_v20 = vadd.f32 %v5404_v62, %v5272_v14  ;;  %v4975_v26 = vmul.f32 %v11352_v6, %v11895_v53  ;;  %v5205_v32 = vsel %vm11822_vm12, %v11871_v16, 0.0  ;;  %v11933_v52 = vadd.f32 %v11762_v19, %v11416_v63 }
 0xca0   : > { %14516 = vst [vmem:[#allocation94_spill] sm:$0xff] %v11908_v50  ;;  %14517 = vst [vmem:[#allocation95_spill] sm:$0xff] %v11916_v61  ;;  %v4973_v11 = vmul.f32 %v11352_v6, %v11922_v21  ;;  %v5044_v62 = vrot.slane %v11922_v21, 7  ;;  %v14521_v50 = vand.u32 15, %v11422_v0  ;;  %v14522_v41 = vmov 0 }
 0xca1   : > { %14518 = vst [vmem:[#allocation96_spill] sm:$0xff] %v11918_v20  ;;  %14519 = vst [vmem:[#allocation97_spill] sm:$0xff] %v11933_v52  ;;  %v11940_v20 = vadd.f32 %v11416_v63, %v4334_v31  ;;  %v6765_v24 = vmul.f32 0.3275911, %v6733_v17  ;;  %v7181_v61 = vsub.f32 0.0, %v6733_v17  ;;  %v5046_v19 = vrot.slane %v11895_v53, 7 }
 0xca2   : > { %vm11944_vm14 = vcmp.ge.s32.totalorder %v14521_v50, 1  ;;  %v5047_v14 = vrot.slane %v11933_v52, 7  ;;  %v11952_v46 = vmul.f32 %v11376_v44, %v11802_v43  ;;  %v5012_v12 = vadd.f32 %v11500_v3, %v4973_v11  ;;  %v4350_v50 = vpop.f32.mrf.mxu0 }
 0xca3   : > { %14520 = vst [vmem:[#allocation98_spill] sm:$0xff] %v11940_v20  ;;  %v14523_v41 = vsel %vm11944_vm14, 4294967295, %v14522_v41  ;;  %v11957_v31 = vsel %vm14300_vm3, %v5043_v58, %v5044_v62  ;;  %v5241_v0 = vmul.f32 %v11350_v7, %v5205_v32  ;;  %v11962_v60 = vmul.f32 %v11409_v29, %v11839_v40 }
 0xca4   : > { %14524 = vst [vmem:[#allocation99_spill] sm:$0xff] %v14523_v41  ;;  %14525 = vst [vmem:[#allocation100_spill] sm:$0xff] %v11952_v46  ;;  %v5014_v4 = vadd.f32 %v11500_v3, %v4975_v26  ;;  %v5207_v43 = vsel %vm11862_vm13, %v11957_v31, 0.0  ;;  %v11970_v11 = vsel %vm14300_vm3, %v5046_v19, %v5047_v14  ;;  %v14529_v58 = vand.u32 15, %v11425_v22 }
 0xca5   : > { %14526 = vst [vmem:[#allocation101_spill] sm:$0xff] %v11957_v31  ;;  %14527 = vst [vmem:[#allocation102_spill] sm:$0xff] %v11962_v60  ;;  %v14530_v46 = vmov 0  ;;  %v5243_v32 = vmul.f32 %v11350_v7, %v5207_v43  ;;  %v5273_v9 = vadd.f32 %v5241_v0, %v5012_v12  ;;  %v4976_v26 = vmul.f32 %v11352_v6, %v11933_v52  ;;  %v8783_v12 = vpop.f32.mrf.mxu0 }
 0xca6   : > { %14528 = vst [vmem:[#allocation103_spill] sm:$0xff] %v11970_v11  ;;  %vm11974_vm15 = vcmp.ge.s32.totalorder %v14529_v58, 1  ;;  %v4974_v60 = vmul.f32 %v11352_v6, %v11940_v20  ;;  %v6797_v25 = vadd.f32 1.0, %v6765_v24  ;;  %v7213_v51 = vmul.f32 %v7181_v61, %v6733_v17 }
 0xca7   : > { %v14531_v46 = vsel %vm11974_vm15, 4294967295, %v14530_v46  ;;  %v5045_v49 = vrot.slane %v11940_v20, 7  ;;  %v5242_v22 = vmul.f32 %v11350_v7, %v11839_v40  ;;  %v5275_v58 = vadd.f32 %v5243_v32, %v5014_v4 }
 0xca8   : > { %14532 = vst [vmem:[#allocation104_spill] sm:$0xff] %v14531_v46  ;;  %v5407_v59 = vmul.f32 %v11360_v45, %v11922_v21  ;;  %v11988_v54 = vadd.f32 %v5405_v33, %v5273_v9  ;;  %v5013_v43 = vadd.f32 %v11500_v3, %v4974_v60  ;;  %v12001_v17 = vadd.f32 %v11843_v35, %v11416_v63 }
 0xca9   : > { %v11993_v0 = vsel %vm14300_vm3, %v5045_v49, %v5046_v19  ;;  %v11997_v24 = vsel %vm14300_vm3, %v5044_v62, %v5045_v49  ;;  %v12004_v4 = vadd.f32 %v11416_v63, %v4347_v38  ;;  %v5015_v60 = vadd.f32 %v11500_v3, %v4976_v26 }
 0xcaa   : > { %14533 = vst [vmem:[#allocation105_spill] sm:$0xff] %v11993_v0  ;;  %14534 = vst [vmem:[#allocation106_spill] sm:$0xff] %v11997_v24  ;;  %v12006_v9 = vadd.f32 %v5407_v59, %v5275_v58  ;;  %v5244_v33 = vmul.f32 %v11350_v7, %v11997_v24  ;;  %v5274_v61 = vadd.f32 %v5242_v22, %v5013_v43  ;;  %v7248_v19 = vmul.f32 1.442695, %v7213_v51  ;;  %v4363_v51 = vpop.f32.mrf.mxu0 }
 0xcab   : > { %14535 = vst [vmem:[#allocation107_spill] sm:$0xff] %v12001_v17  ;;  %v12017_v35 = vmul.f32 %v11376_v44, %v11808_v10  ;;  %v5408_v59 = vmul.f32 %v11360_v45, %v11940_v20  ;;  %v12024_v26 = vadd.f32 %v8780_v48, %v11416_v63  ;;  %v4979_v22 = vmul.f32 %v11352_v6, %v12001_v17 }
 0xcac   : > { %14536 = vst [vmem:[#allocation108_spill] sm:$0xff] %v12006_v9  ;;  %v5276_v38 = vadd.f32 %v5244_v33, %v5015_v60  ;;  %v12021_v62 = vadd.f32 %v5406_v30, %v5274_v61  ;;  %v4977_v58 = vmul.f32 %v11352_v6, %v12004_v4  ;;  %v5048_v43 = vrot.slane %v12004_v4, 7  ;;  %v8784_v32 = vpop.f32.mrf.mxu0 }
 0xcad   : > { %14538 = vst [vmem:[#allocation110_spill] sm:$0xff] %v12024_v26  ;;  %v5209_v60 = vsel %vm11944_vm14, %v11993_v0, 0.0  ;;  %9231 = vrcp.f32 %v6797_v25  ;;  %v12036_v30 = vmul.f32 %v11409_v29, %v11875_v23  ;;  %v5409_v48 = vmul.f32 %v11360_v45, %v11895_v53 }
 0xcae   : > { %14537 = vst [vmem:[#allocation109_spill] sm:$0xff] %v12021_v62  ;;  %v12040_v33 = vadd.f32 %v5408_v59, %v5276_v38  ;;  %v14541_v61 = vand.u32 15, %v11432_v34  ;;  %v14542_v49 = vmov 0  ;;  %v5016_v62 = vadd.f32 %v11500_v3, %v4977_v58  ;;  %v4366_v40 = vpop.f32.mrf.mxu0 }
 0xcaf   : > { %14539 = vst [vmem:[#allocation111_spill] sm:$0xff] %v12036_v30  ;;  %v12052_v25 = vsel %vm14300_vm3, %v5047_v14, %v5048_v43  ;;  %v5245_v55 = vmul.f32 %v11350_v7, %v5209_v60  ;;  %v12057_v38 = vmul.f32 %v11376_v44, %v11895_v53  ;;  %v5050_v34 = vrot.slane %v12001_v17, 7 }
 0xcb0   : > { %14540 = vst [vmem:[#allocation112_spill] sm:$0xff] %v12040_v33  ;;  %vm12044_vm1 = vcmp.ge.s32.totalorder %v14541_v61, 1  ;;  %14545 = vst [vmem:[#allocation114_spill] sm:$0xff] %v12052_v25  ;;  %v5211_v59 = vsel %vm11974_vm15, %v12052_v25, 0.0  ;;  %v5051_v61 = vrot.slane %v12024_v26, 7  ;;  %9233 = vpow2.f32 %v7248_v19 }
 0xcb1   : > { %v14543_v49 = vsel %vm12044_vm1, 4294967295, %v14542_v49  ;;  %14546 = vst [vmem:[#allocation115_spill] sm:$0xff] %v12057_v38  ;;  %v5018_v58 = vadd.f32 %v11500_v3, %v4979_v22  ;;  %v5247_v14 = vmul.f32 %v11350_v7, %v5211_v59  ;;  %v5277_v33 = vadd.f32 %v5245_v55, %v5016_v62 }
 0xcb2   : > { %14544 = vst [vmem:[#allocation113_spill] sm:$0xff] %v14543_v49  ;;  %v12069_v38 = vmul.f32 %v11376_v44, %v11922_v21  ;;  %v12073_v9 = vsel %vm14300_vm3, %v5050_v34, %v5051_v61  ;;  %v12076_v53 = vadd.f32 %v11416_v63, %v4350_v50  ;;  %v14550_v19 = vand.u32 15, %v11442_v36 }
 0xcb3   : > { %14548 = vst [vmem:[#allocation117_spill] sm:$0xff] %v12073_v9  ;;  %v14551_v22 = vmov 0  ;;  %v5279_v55 = vadd.f32 %v5247_v14, %v5018_v58  ;;  %v5411_v62 = vmul.f32 %v11360_v45, %v12004_v4  ;;  %v12086_v59 = vadd.f32 %v5409_v48, %v5277_v33 }
 0xcb4   : > { %14547 = vst [vmem:[#allocation116_spill] sm:$0xff] %v12069_v38  ;;  %14549 = vst [vmem:[#allocation118_spill] sm:$0xff] %v12076_v53  ;;  %vm12080_vm2 = vcmp.ge.s32.totalorder %v14550_v19, 1  ;;  %v4980_v60 = vmul.f32 %v11352_v6, %v12024_v26  ;;  %v5410_v38 = vmul.f32 %v11360_v45, %v11933_v52  ;;  %v4978_v36 = vmul.f32 %v11352_v6, %v12076_v53 }
 0xcb5   : > { %v14552_v22 = vsel %vm12080_vm2, 4294967295, %v14551_v22  ;;  %14554 = vst [vmem:[#allocation120_spill] sm:$0xff] %v12086_v59  ;;  %v5049_v19 = vrot.slane %v12076_v53, 7  ;;  %v12101_v48 = vmul.f32 %v11376_v44, %v11933_v52  ;;  %v12103_v33 = vadd.f32 %v5411_v62, %v5279_v55 }
 0xcb6   : > { %14553 = vst [vmem:[#allocation119_spill] sm:$0xff] %v14552_v22  ;;  %v12106_v14 = vadd.f32 %v8783_v12, %v11416_v63  ;;  %v5017_v50 = vadd.f32 %v11500_v3, %v4978_v36  ;;  %v5246_v58 = vmul.f32 %v11350_v7, %v11970_v11  ;;  %v12121_v55 = vmul.f32 %v11409_v29, %v11970_v11 }
 0xcb7   : > { %14555 = vst [vmem:[#allocation121_spill] sm:$0xff] %v12101_v48  ;;  %14556 = vst [vmem:[#allocation122_spill] sm:$0xff] %v12103_v33  ;;  %v12111_v59 = vsel %vm14300_vm3, %v5049_v19, %v5050_v34  ;;  %v12115_v16 = vsel %vm14300_vm3, %v5048_v43, %v5049_v19  ;;  %v5019_v62 = vadd.f32 %v11500_v3, %v4980_v60  ;;  %v8787_v48 = vpop.f32.mrf.mxu0  ;;  %v14606_v25 = vand.u32 15, %v11467_v15 }
 0xcb8   : > { %14557 = vst [vmem:[#allocation123_spill] sm:$0xff] %v12106_v14  ;;  %14558 = vst [vmem:[#allocation124_spill] sm:$0xff] %v12111_v59  ;;  %v5248_v36 = vmul.f32 %v11350_v7, %v12115_v16  ;;  %v12129_v34 = vmul.f32 %v11376_v44, %v11940_v20  ;;  %v5278_v43 = vadd.f32 %v5246_v58, %v5017_v50  ;;  %v5213_v60 = vsel %vm12044_vm1, %v12111_v59, 0.0 }
 0xcb9   : > { %14559 = vst [vmem:[#allocation125_spill] sm:$0xff] %v12115_v16  ;;  %14560 = vst [vmem:[#allocation126_spill] sm:$0xff] %v12121_v55  ;;  %v5412_v19 = vmul.f32 %v11360_v45, %v12076_v53  ;;  %v12134_v33 = vadd.f32 %v11416_v63, %v4363_v51  ;;  %v4983_v12 = vmul.f32 %v11352_v6, %v12106_v14  ;;  %v4379_v0 = vpop.f32.mrf.mxu0  ;;  %v14600_v59 = vmov 0 }
 0xcba   : > { %14561 = vst [vmem:[#allocation127_spill] sm:$0xff] %v12129_v34  ;;  %v5280_v55 = vadd.f32 %v5248_v36, %v5019_v62  ;;  %v12142_v11 = vadd.f32 %v8784_v32, %v11416_v63  ;;  %v12147_v58 = vadd.f32 %v5410_v38, %v5278_v43  ;;  %v14565_v36 = vand.u32 15, %v11445_v27  ;;  %v12158_v13 = vpop.eup %9231 }
 0xcbb   : > { %14562 = vst [vmem:[#allocation128_spill] sm:$0xff] %v12134_v33  ;;  %v4981_v51 = vmul.f32 %v11352_v6, %v12134_v33  ;;  %v5052_v62 = vrot.slane %v12134_v33, 7  ;;  %v14566_v34 = vmov 0  ;;  %v12162_v32 = vmul.f32 %v11409_v29, %v11997_v24 }
 0xcbc   : > { %14563 = vst [vmem:[#allocation129_spill] sm:$0xff] %v12142_v11  ;;  %14564 = vst [vmem:[#allocation130_spill] sm:$0xff] %v12147_v58  ;;  %vm12154_vm5 = vcmp.ge.s32.totalorder %v14565_v36, 1  ;;  %v12164_v50 = vadd.f32 %v5412_v19, %v5280_v55  ;;  %v5054_v38 = vrot.slane %v12106_v14, 7  ;;  %v12168_v43 = vadd.f32 %v11416_v63, %v4366_v40 }
 0xcbd   : > { %v14567_v34 = vsel %vm12154_vm5, 4294967295, %v14566_v34  ;;  %14569 = vst [vmem:[#allocation132_spill] sm:$0xff] %v12162_v32  ;;  %v5020_v58 = vadd.f32 %v11500_v3, %v4981_v51  ;;  %v12173_v27 = vsel %vm14300_vm3, %v5051_v61, %v5052_v62  ;;  %v5249_v36 = vmul.f32 %v11350_v7, %v5213_v60  ;;  %v12184_v51 = vpop.eup %9233 }
 0xcbe   : > { %14568 = vst [vmem:[#allocation131_spill] sm:$0xff] %v14567_v34  ;;  %14570 = vst [vmem:[#allocation133_spill] sm:$0xff] %v12164_v50  ;;  %v5055_v39 = vrot.slane %v12142_v11, 7  ;;  %v5413_v55 = vmul.f32 %v11360_v45, %v12001_v17  ;;  %v5022_v50 = vadd.f32 %v11500_v3, %v4983_v12  ;;  %v5215_v40 = vsel %vm12080_vm2, %v12173_v27, 0.0 }
 0xcbf   : > { %14571 = vst [vmem:[#allocation134_spill] sm:$0xff] %v12168_v43  ;;  %14572 = vst [vmem:[#allocation135_spill] sm:$0xff] %v12173_v27  ;;  %v5251_v61 = vmul.f32 %v11350_v7, %v5215_v40  ;;  %v5281_v32 = vadd.f32 %v5249_v36, %v5020_v58  ;;  %v4984_v60 = vmul.f32 %v11352_v6, %v12142_v11  ;;  %v5053_v31 = vrot.slane %v12168_v43, 7 }
 0xcc0   : > { %v12191_v52 = vsel %vm14300_vm3, %v5054_v38, %v5055_v39  ;;  %v12195_v19 = vmul.f32 %v11376_v44, %v12001_v17  ;;  %v4982_v24 = vmul.f32 %v11352_v6, %v12168_v43  ;;  %v14575_v58 = vand.u32 15, %v11452_v28  ;;  %v8788_v17 = vpop.f32.mrf.mxu0 }
 0xcc1   : > { %14573 = vst [vmem:[#allocation136_spill] sm:$0xff] %v12191_v52  ;;  %v14576_v36 = vmov 0  ;;  %v12209_v40 = vmul.f32 %v11376_v44, %v12004_v4  ;;  %v5283_v20 = vadd.f32 %v5251_v61, %v5022_v50  ;;  %v12213_v12 = vadd.f32 %v5413_v55, %v5281_v32 }
 0xcc2   : > { %14574 = vst [vmem:[#allocation137_spill] sm:$0xff] %v12195_v19  ;;  %vm12203_vm0 = vcmp.ge.s32.totalorder %v14575_v58, 1  ;;  %v5415_v19 = vmul.f32 %v11360_v45, %v12134_v33  ;;  %v5021_v30 = vadd.f32 %v11500_v3, %v4982_v24  ;;  %v12218_v28 = vsel %vm14300_vm3, %v5053_v31, %v5054_v38  ;;  %v4382_v50 = vpop.f32.mrf.mxu0 }
 0xcc3   : > { %v14577_v36 = vsel %vm12203_vm0, 4294967295, %v14576_v36  ;;  %14579 = vst [vmem:[#allocation139_spill] sm:$0xff] %v12209_v40  ;;  %14580 = vst [vmem:[#allocation140_spill] sm:$0xff] %v12213_v12  ;;  %v12222_v58 = vsel %vm14300_vm3, %v5052_v62, %v5053_v31  ;;  %v5250_v40 = vmul.f32 %v11350_v7, %v12073_v9  ;;  %v5023_v55 = vadd.f32 %v11500_v3, %v4984_v60 }
 0xcc4   : > { %14578 = vst [vmem:[#allocation138_spill] sm:$0xff] %v14577_v36  ;;  %14581 = vst [vmem:[#allocation141_spill] sm:$0xff] %v12218_v28  ;;  %v12229_v32 = vadd.f32 %v5415_v19, %v5283_v20  ;;  %v5252_v24 = vmul.f32 %v11350_v7, %v12222_v58  ;;  %v5414_v38 = vmul.f32 %v11360_v45, %v12024_v26  ;;  %v14590_v12 = vand.u32 15, %v11455_v56  ;;  %v14702_v36 = vld [vmem:[#allocation73_spill] sm:$0xff] }
 0xcc5   : > { %14582 = vst [vmem:[#allocation142_spill] sm:$0xff] %v12222_v58  ;;  %v5282_v61 = vadd.f32 %v5250_v40, %v5021_v30  ;;  %v12237_v31 = vadd.f32 %v8787_v48, %v11416_v63  ;;  %v12240_v62 = vadd.f32 %v11416_v63, %v4379_v0  ;;  %v12245_v20 = vmul.f32 %v11376_v44, %v12024_v26 }
 0xcc6   : > { %14583 = vst [vmem:[#allocation143_spill] sm:$0xff] %v12229_v32  ;;  %v5284_v19 = vadd.f32 %v5252_v24, %v5023_v55  ;;  %v5416_v60 = vmul.f32 %v11360_v45, %v12168_v43  ;;  %v12251_v30 = vmul.f32 %v11409_v29, %v12073_v9  ;;  %v5217_v0 = vsel %vm12154_vm5, %v12218_v28, 0.0  ;;  %v8791_v32 = vpop.f32.mrf.mxu0 }
 0xcc7   : > { %14584 = vst [vmem:[#allocation144_spill] sm:$0xff] %v12237_v31  ;;  %14585 = vst [vmem:[#allocation145_spill] sm:$0xff] %v12240_v62  ;;  %v12253_v48 = vadd.f32 %v5414_v38, %v5282_v61  ;;  %v12259_v40 = vadd.f32 %v8788_v17, %v11416_v63  ;;  %vm12263_vm4 = vcmp.le.s32.totalorder %v14590_v12, 14  ;;  %v14591_v55 = vmov 0 }
 0xcc8   : > { %14586 = vst [vmem:[#allocation146_spill] sm:$0xff] %v12245_v20  ;;  %14587 = vst [vmem:[#allocation147_spill] sm:$0xff] %v12251_v30  ;;  %v14592_v55 = vsel %vm12263_vm4, 4294967295, %v14591_v55  ;;  %v12270_v30 = vmul.f32 %v11376_v44, %v12076_v53  ;;  %v12272_v38 = vadd.f32 %v5416_v60, %v5284_v19  ;;  %v4985_v61 = vmul.f32 %v11352_v6, %v12240_v62  ;;  %v4395_v41 = vpop.f32.mrf.mxu0 }
 0xcc9   : > { %14588 = vst [vmem:[#allocation148_spill] sm:$0xff] %v12253_v48  ;;  %14589 = vst [vmem:[#allocation149_spill] sm:$0xff] %v12259_v40  ;;  %v5417_v17 = vmul.f32 %v11360_v45, %v12106_v14  ;;  %v4987_v56 = vmul.f32 %v11352_v6, %v12237_v31  ;;  %v5056_v12 = vrot.slane %v12240_v62, 7  ;;  %v12282_v48 = vadd.f32 %v11416_v63, %v4382_v50 }
 0xcca   : > { %14593 = vst [vmem:[#allocation150_spill] sm:$0xff] %v14592_v55  ;;  %14594 = vst [vmem:[#allocation151_spill] sm:$0xff] %v12270_v30  ;;  %v12289_v19 = vmul.f32 %v11409_v29, %v12115_v16  ;;  %v5024_v60 = vadd.f32 %v11500_v3, %v4985_v61  ;;  %v5058_v9 = vrot.slane %v12237_v31, 7  ;;  %v5059_v46 = vrot.slane %v12259_v40, 7 }
 0xccb   : > { %14595 = vst [vmem:[#allocation152_spill] sm:$0xff] %v12272_v38  ;;  %14596 = vst [vmem:[#allocation153_spill] sm:$0xff] %v12282_v48  ;;  %v5253_v38 = vmul.f32 %v11350_v7, %v5217_v0  ;;  %v12297_v50 = vsel %vm14300_vm3, %v5055_v39, %v5056_v12  ;;  %v14599_v24 = vand.u32 15, %v11458_v1  ;;  %v12308_v0 = vmul.f32 %v11376_v44, %v12106_v14 }
 0xccc   : > { %14597 = vst [vmem:[#allocation154_spill] sm:$0xff] %v12289_v19  ;;  %14598 = vst [vmem:[#allocation155_spill] sm:$0xff] %v12297_v50  ;;  %v5219_v61 = vsel %vm12203_vm0, %v12297_v50, 0.0  ;;  %v4988_v39 = vmul.f32 %v11352_v6, %v12259_v40  ;;  %v5026_v19 = vadd.f32 %v11500_v3, %v4987_v56  ;;  %v4986_v14 = vmul.f32 %v11352_v6, %v12282_v48 }
 0xccd   : > { %vm12302_vm15 = vcmp.ge.s32.totalorder %v14599_v24, 1  ;;  %14603 = vst [vmem:[#allocation157_spill] sm:$0xff] %v12308_v0  ;;  %v5285_v20 = vadd.f32 %v5253_v38, %v5024_v60  ;;  %v5255_v1 = vmul.f32 %v11350_v7, %v5219_v61  ;;  %v12319_v24 = vsel %vm14300_vm3, %v5058_v9, %v5059_v46 }
 0xcce   : > { %v14601_v59 = vsel %vm12302_vm15, 4294967295, %v14600_v59  ;;  %14604 = vst [vmem:[#allocation158_spill] sm:$0xff] %v12319_v24  ;;  %v5419_v30 = vmul.f32 %v11360_v45, %v12240_v62  ;;  %v5057_v60 = vrot.slane %v12282_v48, 7  ;;  %v5025_v61 = vadd.f32 %v11500_v3, %v4986_v14 }
 0xccf   : > { %14602 = vst [vmem:[#allocation156_spill] sm:$0xff] %v14601_v59  ;;  %v12326_v38 = vadd.f32 %v5417_v17, %v5285_v20  ;;  %v5287_v56 = vadd.f32 %v5255_v1, %v5026_v19  ;;  %v5254_v26 = vmul.f32 %v11350_v7, %v12191_v52  ;;  %vm12335_vm3 = vcmp.ge.s32.totalorder %v14606_v25, 1 }
 0xcd0   : > { %v14607_v0 = vmov 0  ;;  %v5418_v20 = vmul.f32 %v11360_v45, %v12142_v11  ;;  %v5027_v17 = vadd.f32 %v11500_v3, %v4988_v39  ;;  %vm14610_vm14 = vcmp.lt.s32.totalorder %v11340_v42, 1 }
 0xcd1   : > { %14605 = vst [vmem:[#allocation159_spill] sm:$0xff] %v12326_v38  ;;  %v14608_v0 = vsel %vm12335_vm3, 4294967295, %v14607_v0  ;;  %v12344_v19 = vsel %vm14610_vm14, %v5057_v60, %v5058_v9  ;;  %vm14612_vm13 = vmmov %vm14610_vm14  ;;  %v12350_v1 = vadd.f32 %v5419_v30, %v5287_v56  ;;  %v5286_v25 = vadd.f32 %v5254_v26, %v5025_v61 }
 0xcd2   : > { %14609 = vst [vmem:[#allocation160_spill] sm:$0xff] %v14608_v0  ;;  %14611 = vst [vmem:[#allocation161_spill] sm:$0xff] %v12344_v19  ;;  %v12348_v14 = vsel %vm14612_vm13, %v5056_v12, %v5057_v60  ;;  %v14615_v16 = vrot.slane %v12237_v31, 1  ;;  %v14616_v38 = vrot.slane %v12282_v48, 1  ;;  %vm14617_vm12 = vcmp.lt.s32.totalorder %v11340_v42, 7  ;;  %v8792_v60 = vpop.f32.mrf.mxu0 }
 0xcd3   : > { %14613 = vst [vmem:[#allocation162_spill] sm:$0xff] %v12348_v14  ;;  %14614 = vst [vmem:[#allocation163_spill] sm:$0xff] %v12350_v1  ;;  %v5256_v15 = vmul.f32 %v11350_v7, %v12348_v14  ;;  %v12368_v30 = vmul.f32 %v11376_v44, %v12134_v33  ;;  %v12378_v61 = vadd.f32 %v8791_v32, %v11416_v63  ;;  %vm14631_vm14 = vcmp.lt.s32.totalorder %v11340_v42, 7 }
 0xcd4   : > { %v12360_v39 = vsel %vm14617_vm12, %v14616_v38, %v14615_v16  ;;  %v5420_v16 = vmul.f32 %v11360_v45, %v12282_v48  ;;  %v12375_v38 = vadd.f32 %v5418_v20, %v5286_v25  ;;  %v12383_v9 = vmul.f32 %v11409_v29, %v12191_v52  ;;  %v4398_v52 = vpop.f32.mrf.mxu0 }
 0xcd5   : > { %14618 = vst [vmem:[#allocation164_spill] sm:$0xff] %v12360_v39  ;;  %14619 = vst [vmem:[#allocation165_spill] sm:$0xff] %v12368_v30  ;;  %v5645_v26 = vsel %vm12263_vm4, %v12360_v39, 0.0  ;;  %v5288_v56 = vadd.f32 %v5256_v15, %v5027_v17  ;;  %v12387_v1 = vmul.f32 %v11376_v44, %v12142_v11  ;;  %v14623_v15 = vand.u32 15, %v11340_v42 }
 0xcd6   : > { %14620 = vst [vmem:[#allocation166_spill] sm:$0xff] %v12375_v38  ;;  %14621 = vst [vmem:[#allocation167_spill] sm:$0xff] %v12383_v9  ;;  %v5681_v25 = vmul.f32 %v11369_v2, %v5645_v26  ;;  %v12398_v12 = vadd.f32 %v11416_v63, %v4395_v41  ;;  %v12401_v38 = vadd.f32 %v8792_v60, %v11416_v63  ;;  %v5221_v26 = vsel %vm12302_vm15, %v12344_v19, 0.0 }
 0xcd7   : > { %14622 = vst [vmem:[#allocation168_spill] sm:$0xff] %v12387_v1  ;;  %vm12392_vm12 = vcmp.ge.s32.totalorder %v14623_v15, 1  ;;  %v5452_v32 = vadd.f32 %v5420_v16, %v5288_v56  ;;  %v12408_v17 = vmul.f32 %v11409_v29, %v12222_v58  ;;  %v5845_v15 = vmul.f32 %v11409_v29, %v12319_v24 }
 0xcd8   : > { %14626 = vst [vmem:[#allocation169_spill] sm:$0xff] %v12398_v12  ;;  %v4991_v60 = vmul.f32 %v11352_v6, %v12378_v61  ;;  %v4989_v56 = vmul.f32 %v11352_v6, %v12398_v12  ;;  %v5060_v16 = vrot.slane %v12398_v12, 7  ;;  %v12422_v39 = vmul.f32 %v11376_v44, %v12168_v43  ;;  %v14727_v43 = vld [vmem:[#allocation78_spill] sm:$0xff] }
 0xcd9   : > { %14627 = vst [vmem:[#allocation170_spill] sm:$0xff] %v12408_v17  ;;  %v5713_v41 = vadd.f32 %v5681_v25, %v5452_v32  ;;  %v14323_v1 = vrot.slane %v12398_v12, 1  ;;  %v5063_v22 = vrot.slane %v12401_v38, 7  ;;  %v5257_v17 = vmul.f32 %v11350_v7, %v5221_v26 }
 0xcda   : > { %14628 = vst [vmem:[#allocation171_spill] sm:$0xff] %v12422_v39  ;;  %v5028_v25 = vadd.f32 %v11500_v3, %v4989_v56  ;;  %v12430_v28 = vsel %vm14612_vm13, %v5059_v46, %v5060_v16  ;;  %v5421_v30 = vmul.f32 %v11360_v45, %v12237_v31  ;;  %v5030_v46 = vadd.f32 %v11500_v3, %v4991_v60  ;;  %v14633_v39 = vld [vmem:[#allocation44_spill] sm:$0xff] }
 0xcdb   : > { %v5877_v32 = vadd.f32 %v5845_v15, %v5713_v41  ;;  %14629 = vst [vmem:[#allocation172_spill] sm:$0xff] %v12430_v28  ;;  %v5223_v9 = vsel %vm12335_vm3, %v12430_v28, 0.0  ;;  %v14630_v15 = vrot.slane %v12259_v40, 1  ;;  %v14634_v11 = vand.u32 15, %v14633_v39 }
 0xcdc   : > { %v5259_v26 = vmul.f32 %v11350_v7, %v5223_v9  ;;  %v5289_v56 = vadd.f32 %v5257_v17, %v5028_v25  ;;  %v12456_v58 = vadd.f32 %v11416_v63, %v4398_v52  ;;  %v5423_v27 = vmul.f32 %v11360_v45, %v12398_v12  ;;  %v14648_v25 = vld [vmem:[#allocation50_spill] sm:$0xff] }
 0xcdd   : > { %v12445_v41 = vsel %vm14631_vm14, %v14630_v15, %v14323_v1  ;;  %vm12451_vm13 = vcmp.le.s32.totalorder %v14634_v11, 14  ;;  %v14637_v60 = vrot.slane %v12378_v61, 7  ;;  %vm14638_vm14 = vcmp.lt.s32.totalorder %v11340_v42, 1  ;;  %v14639_v11 = vld [vmem:[#allocation43_spill] sm:$0xff] }
 0xcde   : > { %14632 = vst [vmem:[#allocation173_spill] sm:$0xff] %v12445_v41  ;;  %v5973_v15 = vsel %vm12263_vm4, %v12445_v41, 0.0  ;;  %v14640_v39 = vrot.slane %v14639_v11, 7  ;;  %vm14641_vm2 = vmmov %vm14638_vm14  ;;  %v5291_v63 = vadd.f32 %v5259_v26, %v5030_v46  ;;  %v12473_v52 = vadd.f32 %v5421_v30, %v5289_v56  ;;  %v14647_v46 = vld [vmem:[#allocation41_spill] sm:$0xff] }
 0xcdf   : > { %v12467_v9 = vsel %vm14638_vm14, %v14637_v60, %v5063_v22  ;;  %v12481_v41 = vmul.f32 %v11376_v44, %v12237_v31  ;;  %v12486_v0 = vmul.f32 %v11376_v44, %v12240_v62  ;;  %v6009_v26 = vmul.f32 %v14647_v46, %v5973_v15 }
 0xce0   : > { %v5096_v17 = vsel %vm14641_vm2, %v5063_v22, %v14640_v39  ;;  %14642 = vst [vmem:[#allocation44_spill] sm:$0xff] %v12473_v52  ;;  %v12489_v30 = vadd.f32 %v5423_v27, %v5291_v63  ;;  %v4992_v56 = vmul.f32 %v11352_v6, %v12401_v38  ;;  %v14330_v52 = vrot.slane %v12456_v58, 7  ;;  %v14652_v27 = vld [vmem:[#allocation59_spill] sm:$0xff] }
 0xce1   : > { %v5195_v1 = vsel %vm11503_vm7, %v5096_v17, 0.0  ;;  %v5782_v55 = vsel %vm12392_vm12, %v5096_v17, 0.0  ;;  %14644 = vst [vmem:[#allocation43_spill] sm:$0xff] %v12481_v41  ;;  %14645 = vst [vmem:[#allocation47_spill] sm:$0xff] %v12486_v0  ;;  %v5422_v17 = vmul.f32 %v11360_v45, %v12259_v40  ;;  %v4990_v41 = vmul.f32 %v11352_v6, %v12456_v58  ;;  %v14704_v0 = vld [vmem:[#allocation90_spill] sm:$0xff] }
 0xce2   : > { %v5231_v22 = vmul.f32 %v11350_v7, %v5195_v1  ;;  %14646 = vst [vmem:[#allocation174_spill] sm:$0xff] %v12489_v30  ;;  %v5818_v39 = vmul.f32 %v11409_v29, %v5782_v55  ;;  %v14331_v15 = vrot.slane %v12456_v58, 1  ;;  %v6041_v63 = vadd.f32 %v6009_v26, %v5877_v32  ;;  %v14649_v55 = vld [vmem:[#allocation51_spill] sm:$0xff]  ;;  %vm14650_vm7 = vmmov %vm14641_vm2  ;;  %v14657_v26 = vld [vmem:[#allocation60_spill] sm:$0xff] }
 0xce3   : > { %v5029_v31 = vadd.f32 %v11500_v3, %v4990_v41  ;;  %v12512_v6 = vsel %vm14650_vm7, %v5060_v16, %v14330_v52  ;;  %vm14654_vm2 = vcmp.lt.s32.totalorder %v11340_v42, 7  ;;  %v12530_v16 = vmul.f32 %v11376_v44, %v12259_v40 }
 0xce4   : > { %v5263_v60 = vadd.f32 %v5231_v22, %v14648_v25  ;;  %14651 = vst [vmem:[#allocation41_spill] sm:$0xff] %v12512_v6  ;;  %v5258_v22 = vmul.f32 %v11350_v7, %v12319_v24  ;;  %v5031_v25 = vadd.f32 %v11500_v3, %v4992_v56  ;;  %v5850_v1 = vadd.f32 %v5818_v39, %v14652_v27  ;;  %v14658_v39 = vld [vmem:[#allocation53_spill] sm:$0xff]  ;;  %vm14693_vm7 = vmmov %vm14654_vm2 }
 0xce5   : > { %v5260_v32 = vmul.f32 %v11350_v7, %v12512_v6  ;;  %14656 = vst [vmem:[#allocation51_spill] sm:$0xff] %v12530_v16  ;;  %v6142_v27 = vsel %vm12392_vm12, %v14658_v39, 0.0  ;;  %v14665_v7 = vld [vmem:[#allocation62_spill] sm:$0xff]  ;;  %vm14678_vm12 = vmmov %vm14654_vm2 }
 0xce6   : > { %v5427_v30 = vadd.f32 %v14649_v55, %v5263_v60  ;;  %v14653_v60 = vrot.slane %v12378_v61, 1  ;;  %v5290_v3 = vadd.f32 %v5258_v22, %v5029_v31  ;;  %v14664_v22 = vld [vmem:[#allocation42_spill] sm:$0xff] }
 0xce7   : > { %v5292_v52 = vadd.f32 %v5260_v32, %v5031_v25  ;;  %v14666_v25 = vld [vmem:[#allocation57_spill] sm:$0xff] }
 0xce8   : > { %v12526_v41 = vsel %vm14654_vm2, %v14331_v15, %v14653_v60  ;;  %v5688_v55 = vadd.f32 %v14657_v26, %v5427_v30  ;;  %v5424_v60 = vmul.f32 %v11360_v45, %v12456_v58  ;;  %v14659_v15 = vld [vmem:[#allocation45_spill] sm:$0xff]  ;;  %v12548_v31 = vadd.f32 %v5422_v17, %v5290_v3  ;;  %v14667_v45 = vld [vmem:[#allocation63_spill] sm:$0xff] }
 0xce9   : > { %14655 = vst [vmem:[#allocation50_spill] sm:$0xff] %v12526_v41  ;;  %v5649_v56 = vsel %vm12451_vm13, %v12526_v41, 0.0  ;;  %v14660_v24 = vand.u32 15, %v14659_v15  ;;  %v6205_v26 = vmul.f32 %v14664_v22, %v12512_v6  ;;  %v5984_v32 = vmul.f32 %v14647_v46, %v14666_v25  ;;  %v14668_v15 = vld [vmem:[#allocation68_spill] sm:$0xff] }
 0xcea   : > { %14663 = vst [vmem:[#allocation59_spill] sm:$0xff] %v12548_v31  ;;  %v5685_v30 = vmul.f32 %v11369_v2, %v5649_v56  ;;  %v5852_v20 = vadd.f32 %v14665_v7, %v5688_v55  ;;  %v5456_v39 = vadd.f32 %v5424_v60, %v5292_v52  ;;  %v6014_v41 = vadd.f32 %v14667_v45, %v5850_v1  ;;  %v14672_v31 = vld [vmem:[#allocation52_spill] sm:$0xff]  ;;  %v14673_v1 = vld [vmem:[#allocation61_spill] sm:$0xff] }
 0xceb   : > { %vm12544_vm14 = vcmp.le.s32.totalorder %v14660_v24, 14  ;;  %v14669_v24 = vld [vmem:[#allocation64_spill] sm:$0xff]  ;;  %v12561_v17 = vmul.f32 %v11376_v44, %v12282_v48  ;;  %v12563_v3 = vadd.f32 %v6205_v26, %v6041_v63  ;;  %v6178_v56 = vmul.f32 %v14664_v22, %v6142_v27 }
 0xcec   : > { %v6015_v34 = vadd.f32 %v14669_v24, %v14668_v15  ;;  %v6179_v55 = vmul.f32 %v14664_v22, %v14672_v31  ;;  %v5849_v52 = vmul.f32 %v11409_v29, %v12467_v9  ;;  %v5717_v7 = vadd.f32 %v5685_v30, %v5456_v39  ;;  %v14681_v39 = vld [vmem:[#allocation74_spill] sm:$0xff] }
 0xced   : > { %14670 = vst [vmem:[#allocation60_spill] sm:$0xff] %v12561_v17  ;;  %14671 = vst [vmem:[#allocation53_spill] sm:$0xff] %v12563_v3  ;;  %v6016_v60 = vadd.f32 %v5984_v32, %v5852_v20  ;;  %v6503_v15 = vsel %vm11507_vm8, %v14673_v1, 0.0  ;;  %v5808_v24 = vsel %vm12203_vm0, %v12344_v19, 0.0  ;;  %v12578_v63 = vmul.f32 %v11409_v29, %v12348_v14  ;;  %v14682_v19 = vld [vmem:[#allocation49_spill] sm:$0xff] }
 0xcee   : > { %v6210_v27 = vadd.f32 %v6178_v56, %v6014_v41  ;;  %v6211_v26 = vadd.f32 %v6179_v55, %v6015_v34  ;;  %v14676_v31 = vrot.slane %v14639_v11, 1  ;;  %v14677_v6 = vrot.slane %v12401_v38, 1  ;;  %vm14689_vm8 = vmmov %vm14654_vm2 }
 0xcef   : > { %14675 = vst [vmem:[#allocation45_spill] sm:$0xff] %v12578_v63  ;;  %v12588_v20 = vadd.f32 %v5849_v52, %v5717_v7  ;;  %v6212_v32 = vadd.f32 %v14681_v39, %v6016_v60  ;;  %v6538_v45 = vmul.f32 %v11785_v37, %v14666_v25  ;;  %v14683_v63 = vld [vmem:[#allocation55_spill] sm:$0xff]  ;;  %v6539_v34 = vmul.f32 %v11785_v37, %v6503_v15  ;;  %v14687_v7 = vld [vmem:[#allocation58_spill] sm:$0xff] }
 0xcf0   : > { %v12586_v30 = vsel %vm14678_vm12, %v14677_v6, %v14676_v31  ;;  %v6374_v40 = vadd.f32 %v14682_v19, %v6210_v27  ;;  %v6375_v41 = vadd.f32 %v14683_v63, %v6211_v26  ;;  %v6893_v11 = vmul.f32 1.0614054, %v12158_v13  ;;  %v14685_v6 = vld [vmem:[#allocation72_spill] sm:$0xff]  ;;  %v14691_v63 = vld [vmem:[#allocation54_spill] sm:$0xff] }
 0xcf1   : > { %14679 = vst [vmem:[#allocation42_spill] sm:$0xff] %v12586_v30  ;;  %14680 = vst [vmem:[#allocation62_spill] sm:$0xff] %v12588_v20  ;;  %v12598_v56 = vmul.f32 %v11409_v29, %v5808_v24  ;;  %v6376_v55 = vadd.f32 %v14685_v6, %v6212_v32  ;;  %v14686_v52 = vrot.slane %v11719_v47, 1  ;;  %v14688_v60 = vrot.slane %v14687_v7, 1 }
 0xcf2   : > { %v14692_v27 = vrot.slane %v14691_v63, 1  ;;  %v12619_v24 = vmul.f32 %v11376_v44, %v12378_v61  ;;  %v6570_v26 = vadd.f32 %v6538_v45, %v6374_v40  ;;  %v6571_v39 = vadd.f32 %v6539_v34, %v6375_v41 }
 0xcf3   : > { %14684 = vst [vmem:[#allocation57_spill] sm:$0xff] %v12598_v56  ;;  %v12607_v31 = vsel %vm14689_vm8, %v14688_v60, %v14686_v52  ;;  %v14690_v19 = vmov %v14688_v60  ;;  %v6925_v32 = vadd.f32 -1.4531521, %v6893_v11  ;;  %v12626_v52 = vmul.f32 %v11376_v44, %v12398_v12 }
 0xcf4   : > { %v12615_v15 = vsel %vm14693_vm7, %v14692_v27, %v14690_v19  ;;  %14694 = vst [vmem:[#allocation63_spill] sm:$0xff] %v12619_v24  ;;  %v5977_v7 = vsel %vm12451_vm13, %v12586_v30, 0.0  ;;  %v6572_v60 = vadd.f32 %v11889_v5, %v6376_v55  ;;  %v12635_v45 = vmul.f32 0.70710677, %v6570_v26  ;;  %v14698_v27 = vld [vmem:[#allocation77_spill] sm:$0xff] }
 0xcf5   : > { %14695 = vst [vmem:[#allocation68_spill] sm:$0xff] %v12626_v52  ;;  %v12637_v41 = vmul.f32 0.70710677, %v6571_v39  ;;  %v5623_v34 = vsel %vm12544_vm14, %v14673_v1, 0.0  ;;  %v5658_v11 = vmul.f32 %v11369_v2, %v14666_v25  ;;  %vm6669_vm13 = vcmp.ge.f32.partialorder %v11867_v8, 0.0 }
 0xcf6   : > { %v12644_v19 = vmul.f32 0.70710677, %v6572_v60  ;;  %v6957_v5 = vmul.f32 %v12158_v13, %v6925_v32  ;;  %v12649_v49 = vmul.f32 %v14647_v46, %v5977_v7  ;;  %v12653_v55 = vmul.f32 %v14664_v22, %v12467_v9 }
 0xcf7   : > { %v6730_v63 = vand.u32 2147483647, %v12635_v45  ;;  %v6731_v1 = vand.u32 2147483647, %v12637_v41  ;;  %v5690_v6 = vadd.f32 %v5658_v11, %v14698_v27  ;;  %v12659_v25 = vmul.f32 0.5, %v11826_v18  ;;  %v14700_v18 = vld [vmem:[#allocation66_spill] sm:$0xff] }
 0xcf8   : > { %14696 = vst [vmem:[#allocation64_spill] sm:$0xff] %v12649_v49  ;;  %14697 = vst [vmem:[#allocation52_spill] sm:$0xff] %v12653_v55  ;;  %v6732_v8 = vand.u32 2147483647, %v12644_v19  ;;  %v5659_v32 = vmul.f32 %v11369_v2, %v5623_v34  ;;  %v14346_v24 = vmov -1.0   ;;  %v5662_v9 = vmul.f32 %v11369_v2, %v12615_v15 }
 0xcf9   : > { %v6762_v40 = vmul.f32 0.3275911, %v6730_v63  ;;  %v6763_v7 = vmul.f32 0.3275911, %v6731_v1  ;;  %v12664_v49 = vsel %vm6669_vm13, 1.0, %v14346_v24  ;;  %v14701_v55 = vsel %vm11490_vm6, %v14700_v18, 0.0 }
 0xcfa   : > { %v6764_v20 = vmul.f32 0.3275911, %v6732_v8  ;;  %v6989_v30 = vadd.f32 1.4214138, %v6957_v5  ;;  %v5691_v11 = vadd.f32 %v5659_v32, %v11885_v57  ;;  %v5822_v59 = vmul.f32 %v11409_v29, %v14701_v55  ;;  %v14703_v5 = vld [vmem:[#allocation83_spill] sm:$0xff] }
 0xcfb   : > { %v12674_v34 = vmul.f32 0.5, %v6570_v26  ;;  %v6794_v52 = vadd.f32 1.0, %v6762_v40  ;;  %v6795_v28 = vadd.f32 1.0, %v6763_v7  ;;  %v5951_v24 = vsel %vm12544_vm14, %v14702_v36, 0.0 }
 0xcfc   : > { %v12679_v56 = vmul.f32 0.5, %v6571_v39  ;;  %v12681_v17 = vmul.f32 0.5, %v6572_v60  ;;  %v7021_v57 = vmul.f32 %v12158_v13, %v6989_v30  ;;  %v12685_v32 = vadd.f32 %v5662_v9, %v14703_v5  ;;  %v14705_v39 = vld [vmem:[#allocation81_spill] sm:$0xff]  ;;  %v14706_v5 = vld [vmem:[#allocation75_spill] sm:$0xff] }
 0xcfd   : > { %9235 = vrcp.f32 %v6794_v52  ;;  %v7178_v18 = vsub.f32 0.0, %v6730_v63  ;;  %v6796_v55 = vadd.f32 1.0, %v6764_v20  ;;  %v5854_v26 = vadd.f32 %v5822_v59, %v5690_v6 }
 0xcfe   : > { %9237 = vrcp.f32 %v6795_v28  ;;  %v7179_v40 = vsub.f32 0.0, %v6731_v1  ;;  %v7053_v7 = vadd.f32 -0.28449672, %v7021_v57  ;;  %v5855_v14 = vadd.f32 %v14704_v0, %v5691_v11  ;;  %v14707_v28 = vld [vmem:[#allocation67_spill] sm:$0xff] }
 0xcff   : > { %vm6666_vm2 = vcmp.ge.f32.partialorder %v12635_v45, 0.0  ;;  %vm6667_vm12 = vcmp.ge.f32.partialorder %v12637_v41, 0.0  ;;  %v5986_v60 = vmul.f32 %v14647_v46, %v14705_v39  ;;  %v5987_v30 = vmul.f32 %v14647_v46, %v5951_v24 }
 0xd00   : > { %v7085_v9 = vmul.f32 %v12158_v13, %v7053_v7  ;;  %v7180_v52 = vsub.f32 0.0, %v6732_v8  ;;  %v6146_v59 = vsel %vm11490_vm6, %v14706_v5, 0.0  ;;  %v6183_v20 = vmul.f32 %v14664_v22, %v14707_v28  ;;  %vm14711_vm6 = vmmov %vm14693_vm7  ;;  %v14718_v28 = vld [vmem:[#allocation76_spill] sm:$0xff] }
 0xd01   : > { %9239 = vrcp.f32 %v6796_v55  ;;  %v6018_v0 = vadd.f32 %v5986_v60, %v5854_v26  ;;  %v6019_v6 = vadd.f32 %v5987_v30, %v5855_v14  ;;  %v6182_v11 = vmul.f32 %v14664_v22, %v6146_v59  ;;  %v14708_v26 = vld [vmem:[#allocation71_spill] sm:$0xff]  ;;  %vm14735_vm13 = vmmov %vm14711_vm6 }
 0xd02   : > { %v7210_v57 = vmul.f32 %v7178_v18, %v6730_v63  ;;  %v7211_v50 = vmul.f32 %v7179_v40, %v6731_v1  ;;  %v7117_v39 = vadd.f32 0.2548296, %v7085_v9  ;;  %v6507_v24 = vsel %vm12544_vm14, %v12607_v31, 0.0  ;;  %vm14714_vm14 = vmmov %vm14711_vm6  ;;  %v14715_v40 = vld [vmem:[#allocation85_spill] sm:$0xff]  ;;  %v14716_v30 = vld [vmem:[#allocation87_spill] sm:$0xff] }
 0xd03   : > { %v6214_v7 = vadd.f32 %v6182_v11, %v6018_v0  ;;  %v6215_v48 = vadd.f32 %v6183_v20, %v6019_v6  ;;  %v6542_v27 = vmul.f32 %v11785_v37, %v12615_v15  ;;  %v4420_v3 = vadd.s32 56, %v11340_v42 }
 0xd04   : > { %v6543_v55 = vmul.f32 %v11785_v37, %v6507_v24  ;;  %v14709_v14 = vrot.slane %v14708_v26, 1  ;;  %v14710_v60 = vrot.slane %v11808_v10, 1  ;;  %v14713_v1 = vrot.slane %v11719_v47, 1  ;;  %v14717_v37 = vld [vmem:[#allocation69_spill] sm:$0xff] }
 0xd05   : > { %v5692_v9 = vadd.f32 %v14716_v30, %v14715_v40  ;;  %v6378_v59 = vadd.f32 %v14717_v37, %v6214_v7  ;;  %v6379_v20 = vadd.f32 %v14718_v28, %v6215_v48  ;;  %v4498_v0 = vand.u32 15, %v4420_v3  ;;  %v14723_v3 = vld [vmem:[#allocation86_spill] sm:$0xff] }
 0xd06   : > { %v12713_v63 = vsel %vm14711_vm6, %v14710_v60, %v14709_v14  ;;  %v14712_v16 = vmov %v14710_v60  ;;  %v7242_v11 = vmul.f32 1.442695, %v7210_v57  ;;  %v7149_v10 = vmul.f32 %v12158_v13, %v7117_v39 }
 0xd07   : > { %v12721_v18 = vsel %vm14714_vm14, %v14713_v1, %v14712_v16  ;;  %v7212_v24 = vmul.f32 %v7180_v52, %v6732_v8  ;;  %v14720_v14 = vsel %vm11582_vm9, %v14706_v5, 0.0  ;;  %v12735_v16 = vadd.f32 %v6542_v27, %v6378_v59 }
 0xd08   : > { %v5664_v6 = vmul.f32 %v11369_v2, %v12721_v18  ;;  %v5824_v60 = vmul.f32 %v11409_v29, %v14720_v14  ;;  %v12737_v1 = vadd.f32 %v6543_v55, %v6379_v20  ;;  %vm12739_vm8 = vcmp.le.s32.totalorder %v4498_v0, 14 }
 0xd09   : > { %v7244_v57 = vmul.f32 1.442695, %v7211_v50  ;;  %v5988_v13 = vmul.f32 %v14647_v46, %v12615_v15  ;;  %v5625_v8 = vsel %vm12739_vm8, %v14702_v36, 0.0  ;;  %v14724_v5 = vmov -1.0  }
 0xd0a   : > { %v12744_v7 = vadd.f32 %v5664_v6, %v14723_v3  ;;  %v5856_v52 = vadd.f32 %v5824_v60, %v5692_v9  ;;  %v12754_v39 = vsel %vm6666_vm2, 1.0, %v14724_v5  ;;  %vm6668_vm7 = vcmp.ge.f32.partialorder %v12644_v19, 0.0  ;;  %v12763_v55 = vpop.eup %9235  ;;  %v14725_v6 = vld [vmem:[#allocation93_spill] sm:$0xff]  ;;  %v14726_v60 = vld [vmem:[#allocation79_spill] sm:$0xff] }
 0xd0b   : > { %v12758_v27 = vmul.f32 0.70710677, %v12735_v16  ;;  %v12761_v50 = vmul.f32 0.70710677, %v12737_v1  ;;  %v12768_v36 = vsel %vm6667_vm12, 1.0, %v14724_v5  ;;  %v7309_v45 = vmul.f32 %v12184_v51, %v7149_v10  ;;  %v12771_v30 = vpop.eup %9237 }
 0xd0c   : > { %v7246_v15 = vmul.f32 1.442695, %v7212_v24  ;;  %v6020_v40 = vadd.f32 %v5988_v13, %v5856_v52  ;;  %v6890_v19 = vmul.f32 1.0614054, %v12763_v55  ;;  %9241 = vpow2.f32 %v7242_v11 }
 0xd0d   : > { %v6734_v9 = vand.u32 2147483647, %v12758_v27  ;;  %v5661_v37 = vmul.f32 %v11369_v2, %v5625_v8  ;;  %v6891_v59 = vmul.f32 1.0614054, %v12771_v30  ;;  %9243 = vpow2.f32 %v7244_v57 }
 0xd0e   : > { %v12778_v41 = vsel %vm6668_vm7, 1.0, %v14724_v5  ;;  %v5953_v51 = vsel %vm12739_vm8, %v12607_v31, 0.0  ;;  %v6922_v28 = vadd.f32 -1.4531521, %v6890_v19  ;;  %v6735_v20 = vand.u32 2147483647, %v12761_v50  ;;  %v12785_v10 = vpop.eup %9239 }
 0xd0f   : > { %v6766_v0 = vmul.f32 0.3275911, %v6734_v9  ;;  %v5693_v11 = vadd.f32 %v5661_v37, %v14725_v6  ;;  %v6923_v24 = vadd.f32 -1.4531521, %v6891_v59  ;;  %9245 = vpow2.f32 %v7246_v15 }
 0xd10   : > { %v7341_v14 = vsub.f32 1.0, %v7309_v45  ;;  %v6148_v3 = vsel %vm11582_vm9, %v14726_v60, 0.0  ;;  %v6954_v57 = vmul.f32 %v12763_v55, %v6922_v28  ;;  %v6892_v13 = vmul.f32 1.0614054, %v12785_v10  ;;  %vm14732_vm9 = vmmov %vm14711_vm6 }
 0xd11   : > { %v6767_v8 = vmul.f32 0.3275911, %v6735_v20  ;;  %v6798_v52 = vadd.f32 1.0, %v6766_v0  ;;  %v6955_v19 = vmul.f32 %v12771_v30, %v6923_v24  ;;  %v7182_v62 = vsub.f32 0.0, %v6734_v9  ;;  %vm14751_vm14 = vmmov %vm14732_vm9 }
 0xd12   : > { %v5857_v37 = vadd.f32 %v14727_v43, %v5693_v11  ;;  %v5989_v6 = vmul.f32 %v14647_v46, %v5953_v51  ;;  %v6986_v59 = vadd.f32 1.4214138, %v6954_v57  ;;  %v6924_v15 = vadd.f32 -1.4531521, %v6892_v13 }
 0xd13   : > { %v6799_v45 = vadd.f32 1.0, %v6767_v8  ;;  %9247 = vrcp.f32 %v6798_v52  ;;  %v6987_v33 = vadd.f32 1.4214138, %v6955_v19  ;;  %v7183_v47 = vsub.f32 0.0, %v6735_v20 }
 0xd14   : > { %v6021_v53 = vadd.f32 %v5989_v6, %v5857_v37  ;;  %v6184_v28 = vmul.f32 %v14664_v22, %v6148_v3  ;;  %v7018_v12 = vmul.f32 %v12763_v55, %v6986_v59  ;;  %v6956_v0 = vmul.f32 %v12785_v10, %v6924_v15  ;;  %v14728_v6 = vld [vmem:[#allocation95_spill] sm:$0xff]  ;;  %v14730_v15 = vld [vmem:[#allocation80_spill] sm:$0xff] }
 0xd15   : > { %9249 = vrcp.f32 %v6799_v45  ;;  %v6185_v24 = vmul.f32 %v14664_v22, %v11875_v23  ;;  %v7019_v43 = vmul.f32 %v12771_v30, %v6987_v33  ;;  %v7373_v51 = vmul.f32 %v7341_v14, %v12664_v49  ;;  %v12809_v23 = vld [vmem:[%s14170_s16 + $0x8] ss:$0 sm:$0xff] }
 0xd16   : > { %v7214_v11 = vmul.f32 %v7182_v62, %v6734_v9  ;;  %v6216_v57 = vadd.f32 %v6184_v28, %v6020_v40  ;;  %v7050_v13 = vadd.f32 -0.28449672, %v7018_v12  ;;  %v6988_v8 = vadd.f32 1.4214138, %v6956_v0 }
 0xd17   : > { %v6217_v52 = vadd.f32 %v6185_v24, %v6021_v53  ;;  %v6509_v3 = vsel %vm12739_vm8, %v12713_v63, 0.0  ;;  %v7051_v19 = vadd.f32 -0.28449672, %v7019_v43  ;;  %v7215_v37 = vmul.f32 %v7183_v47, %v6735_v20 }
 0xd18   : > { %v6380_v59 = vadd.f32 %v14728_v6, %v6216_v57  ;;  %v6544_v33 = vmul.f32 %v12809_v23, %v12721_v18  ;;  %v7082_v62 = vmul.f32 %v12763_v55, %v7050_v13  ;;  %v7020_v53 = vmul.f32 %v12785_v10, %v6988_v8 }
 0xd19   : > { %v6381_v12 = vadd.f32 %v12017_v35, %v6217_v52  ;;  %v6545_v49 = vmul.f32 %v12809_v23, %v6509_v3  ;;  %v9242_v48 = vpop.eup %9241  ;;  %v7083_v40 = vmul.f32 %v12771_v30, %v7051_v19  ;;  %v4422_v20 = vadd.s32 72, %v11340_v42 }
 0xd1a   : > { %v12818_v9 = vadd.f32 %v6544_v33, %v6380_v59  ;;  %v14729_v14 = vrot.slane %v11922_v21, 1  ;;  %v14731_v45 = vrot.slane %v14730_v15, 1  ;;  %v9244_v28 = vpop.eup %9243  ;;  %v7114_v0 = vadd.f32 0.2548296, %v7082_v62 }
 0xd1b   : > { %v7052_v35 = vadd.f32 -0.28449672, %v7020_v53  ;;  %v12829_v24 = vadd.f32 %v6545_v49, %v6381_v12  ;;  %v14734_v57 = vrot.slane %v14708_v26, 1  ;;  %v12841_v8 = vmul.f32 %v11376_v44, %v12401_v38 }
 0xd1c   : > { %v12827_v47 = vsel %vm14732_vm9, %v14731_v45, %v14729_v14  ;;  %v14733_v43 = vmov %v14731_v45  ;;  %v7115_v52 = vadd.f32 0.2548296, %v7083_v40  ;;  %v7250_v3 = vmul.f32 1.442695, %v7214_v11  ;;  %v9246_v6 = vpop.eup %9245 }
 0xd1d   : > { %v12837_v13 = vsel %vm14735_vm13, %v14734_v57, %v14733_v43  ;;  %v12844_v19 = vmul.f32 0.70710677, %v12818_v9  ;;  %v7146_v59 = vmul.f32 %v12763_v55, %v7114_v0  ;;  %v7084_v33 = vmul.f32 %v12785_v10, %v7052_v35 }
 0xd1e   : > { %v7252_v62 = vmul.f32 1.442695, %v7215_v37  ;;  %v12849_v26 = vmul.f32 0.70710677, %v12829_v24  ;;  %v7147_v53 = vmul.f32 %v12771_v30, %v7115_v52  ;;  %v12854_v12 = vmul.f32 %v14647_v46, %v12721_v18 }
 0xd1f   : > { %v6736_v11 = vand.u32 2147483647, %v12844_v19  ;;  %v4512_v49 = vand.u32 15, %v4422_v20  ;;  %v7306_v40 = vmul.f32 %v9242_v48, %v7146_v59  ;;  %v7116_v14 = vadd.f32 0.2548296, %v7084_v33 }
 0xd20   : > { %v7405_v15 = vadd.f32 1.0, %v7373_v51  ;;  %vm6670_vm2 = vcmp.ge.f32.partialorder %v12758_v27, 0.0  ;;  %v12858_v55 = vpop.eup %9247  ;;  %v7307_v37 = vmul.f32 %v9244_v28, %v7147_v53  ;;  %9251 = vpow2.f32 %v7250_v3 }
 0xd21   : > { %v6737_v45 = vand.u32 2147483647, %v12849_v26  ;;  %v6768_v0 = vmul.f32 0.3275911, %v6736_v11  ;;  %v7338_v30 = vsub.f32 1.0, %v7306_v40  ;;  %v7148_v35 = vmul.f32 %v12785_v10, %v7116_v14 }
 0xd22   : > { %vm6671_vm12 = vcmp.ge.f32.partialorder %v12761_v50, 0.0  ;;  %v6894_v18 = vmul.f32 1.0614054, %v12858_v55  ;;  %9253 = vpow2.f32 %v7252_v62  ;;  %v12864_v48 = vpop.eup %9249  ;;  %v7339_v51 = vsub.f32 1.0, %v7307_v37 }
 0xd23   : > { %v6769_v20 = vmul.f32 0.3275911, %v6737_v45  ;;  %v6800_v43 = vadd.f32 1.0, %v6768_v0  ;;  %vm12866_vm6 = vcmp.le.s32.totalorder %v4512_v49, 14  ;;  %v7370_v28 = vmul.f32 %v7338_v30, %v12754_v39 }
 0xd24   : > { %v7308_v52 = vmul.f32 %v9246_v6, %v7148_v35  ;;  %v6895_v3 = vmul.f32 1.0614054, %v12864_v48  ;;  %v6926_v10 = vadd.f32 -1.4531521, %v6894_v18  ;;  %v7371_v59 = vmul.f32 %v7339_v51, %v12768_v36 }
 0xd25   : > { %v6801_v33 = vadd.f32 1.0, %v6769_v20  ;;  %9255 = vrcp.f32 %v6800_v43  ;;  %v7184_v62 = vsub.f32 0.0, %v6736_v11  ;;  %v7402_v53 = vadd.f32 1.0, %v7370_v28 }
 0xd26   : > { %v7340_v40 = vsub.f32 1.0, %v7308_v52  ;;  %v6927_v14 = vadd.f32 -1.4531521, %v6895_v3  ;;  %v6958_v37 = vmul.f32 %v12858_v55, %v6926_v10  ;;  %v7403_v49 = vadd.f32 1.0, %v7371_v59 }
 0xd27   : > { %v12877_v0 = vsel %vm6670_vm2, 1.0, %v14724_v5  ;;  %9257 = vrcp.f32 %v6801_v33  ;;  %v7185_v39 = vsub.f32 0.0, %v6737_v45  ;;  %v7434_v6 = vmul.f32 %v7402_v53, %v12674_v34  ;;  %v14740_v33 = vld [vmem:[#allocation92_spill] sm:$0xff] }
 0xd28   : > { %v7372_v36 = vmul.f32 %v7340_v40, %v12778_v41  ;;  %v6959_v30 = vmul.f32 %v12864_v48, %v6927_v14  ;;  %v6990_v35 = vadd.f32 1.4214138, %v6958_v37  ;;  %v7435_v18 = vmul.f32 %v7403_v49, %v12679_v56 }
 0xd29   : > { %v7437_v51 = vmul.f32 %v7405_v15, %v12659_v25  ;;  %v7216_v20 = vmul.f32 %v7184_v62, %v6736_v11  ;;  %v5627_v27 = vsel %vm12866_vm6, %v12607_v31, 0.0  ;;  %v7217_v41 = vmul.f32 %v7185_v39, %v6737_v45  ;;  %v14741_v39 = vld [vmem:[#allocation111_spill] sm:$0xff] }
 0xd2a   : > { %v7404_v43 = vadd.f32 1.0, %v7372_v36  ;;  %v6991_v28 = vadd.f32 1.4214138, %v6959_v30  ;;  %v7022_v52 = vmul.f32 %v12858_v55, %v6990_v35  ;;  %v5663_v34 = vmul.f32 %v11369_v2, %v5627_v27  ;;  %v14742_v35 = vld [vmem:[#allocation89_spill] sm:$0xff] }
 0xd2b   : > { %v7466_v3 = vpack.c.bf16 %v7435_v18, %v7434_v6  ;;  %v5666_v10 = vmul.f32 %v11369_v2, %v12837_v13  ;;  %v14739_v56 = vsel %vm11660_vm10, %v14726_v60, 0.0  ;;  %v6703_v45 = vsel %vm6671_vm12, 1.0, %v14724_v5 }
 0xd2c   : > { %v5826_v25 = vmul.f32 %v11409_v29, %v14739_v56  ;;  %v7436_v11 = vmul.f32 %v7404_v43, %v12681_v17  ;;  %v7023_v31 = vmul.f32 %v12864_v48, %v6991_v28  ;;  %v7054_v15 = vadd.f32 -0.28449672, %v7022_v52  ;;  %v14743_v52 = vld [vmem:[#allocation84_spill] sm:$0xff] }
 0xd2d   : > { %v5695_v62 = vadd.f32 %v5663_v34, %v14740_v33  ;;  %8809 = vmatprep.mubr.bf16.mxu1 %v7466_v3  ;;  %v12903_v53 = vadd.f32 %v5666_v10, %v11988_v54  ;;  %v5955_v60 = vsel %vm12866_vm6, %v12713_v63, 0.0  ;;  %v9252_v17 = vpop.eup %9251  ;;  %v7254_v30 = vmul.f32 1.442695, %v7216_v20 }
 0xd2e   : > { %v5858_v40 = vadd.f32 %v5826_v25, %v12685_v32  ;;  %v7467_v14 = vpack.c.bf16 %v7437_v51, %v7436_v11  ;;  %v7055_v37 = vadd.f32 -0.28449672, %v7023_v31  ;;  %v7086_v49 = vmul.f32 %v12858_v55, %v7054_v15  ;;  %v14744_v25 = vld [vmem:[#allocation91_spill] sm:$0xff]  ;;  %v14746_v11 = vld [vmem:[#allocation98_spill] sm:$0xff] }
 0xd2f   : > { %v5859_v6 = vadd.f32 %v14741_v39, %v5695_v62  ;;  %v9254_v36 = vpop.eup %9253  ;;  %v5991_v50 = vmul.f32 %v14647_v46, %v5955_v60  ;;  %v6150_v32 = vsel %vm11660_vm10, %v14742_v35, 0.0  ;;  %v7256_v51 = vmul.f32 1.442695, %v7217_v41  ;;  %vm14748_vm10 = vmmov %vm14732_vm9  ;;  %v14752_v39 = vld [vmem:[#allocation94_spill] sm:$0xff] }
 0xd30   : > { %v6022_v54 = vadd.f32 %v12854_v12, %v5858_v40  ;;  %8810 = vmatmul.mubr.bf16.vlgmr.msra.gmra.mxu1 %v7467_v14  ;;  %v7087_v18 = vmul.f32 %v12864_v48, %v7055_v37  ;;  %v7118_v27 = vadd.f32 0.2548296, %v7086_v49  ;;  %v6186_v43 = vmul.f32 %v14664_v22, %v6150_v32  ;;  %vm14769_vm13 = vmmov %vm14748_vm10 }
 0xd31   : > { %v6023_v28 = vadd.f32 %v5991_v50, %v5859_v6  ;;  %v6187_v34 = vmul.f32 %v14664_v22, %v14743_v52  ;;  %v6511_v20 = vsel %vm12866_vm6, %v12827_v47, 0.0  ;;  %v4424_v12 = vadd.s32 88, %v11340_v42 }
 0xd32   : > { %v12924_v3 = vpop.eup %9255  ;;  %v7119_v10 = vadd.f32 0.2548296, %v7087_v18  ;;  %v7150_v59 = vmul.f32 %v12858_v55, %v7118_v27  ;;  %v6218_v56 = vadd.f32 %v6186_v43, %v6022_v54  ;;  %v14745_v41 = vrot.slane %v14744_v25, 1  ;;  %v14753_v18 = vld [vmem:[#allocation100_spill] sm:$0xff] }
 0xd33   : > { %v14747_v31 = vrot.slane %v14746_v11, 1  ;;  %v6896_v33 = vmul.f32 1.0614054, %v12924_v3  ;;  %v6219_v57 = vadd.f32 %v6187_v34, %v6023_v28  ;;  %v4526_v62 = vand.u32 15, %v4424_v12 }
 0xd34   : > { %v14750_v60 = vrot.slane %v11922_v21, 1  ;;  %v12944_v14 = vpop.eup %9257  ;;  %v7151_v37 = vmul.f32 %v12864_v48, %v7119_v10  ;;  %v7310_v49 = vmul.f32 %v9252_v17, %v7150_v59  ;;  %v6382_v6 = vadd.f32 %v14752_v39, %v6218_v56 }
 0xd35   : > { %v12933_v15 = vsel %vm14748_vm10, %v14747_v31, %v14745_v41  ;;  %v14749_v40 = vmov %v14747_v31  ;;  %v6546_v50 = vmul.f32 %v12809_v23, %v12837_v13  ;;  %v6897_v54 = vmul.f32 1.0614054, %v12944_v14 }
 0xd36   : > { %v12942_v55 = vsel %vm14751_vm14, %v14750_v60, %v14749_v40  ;;  %v6928_v32 = vadd.f32 -1.4531521, %v6896_v33  ;;  %v6383_v27 = vadd.f32 %v14753_v18, %v6219_v57  ;;  %v6547_v21 = vmul.f32 %v12809_v23, %v6511_v20  ;;  %vm14794_vm14 = vmmov %vm14748_vm10 }
 0xd37   : > { %v7311_v43 = vmul.f32 %v9254_v36, %v7151_v37  ;;  %v7342_v28 = vsub.f32 1.0, %v7310_v49  ;;  %v12953_v52 = vadd.f32 %v6546_v50, %v6382_v6  ;;  %vm12955_vm8 = vcmp.le.s32.totalorder %v4526_v62, 14 }
 0xd38   : > { %v6929_v48 = vadd.f32 -1.4531521, %v6897_v54  ;;  %v6960_v17 = vmul.f32 %v12924_v3, %v6928_v32  ;;  %9259 = vpow2.f32 %v7254_v30  ;;  %v12960_v12 = vadd.f32 %v6547_v21, %v6383_v27  ;;  %v14756_v54 = vld [vmem:[#allocation96_spill] sm:$0xff] }
 0xd39   : > { %v7343_v10 = vsub.f32 1.0, %v7311_v43  ;;  %v7374_v59 = vmul.f32 %v7342_v28, %v12877_v0  ;;  %9261 = vpow2.f32 %v7256_v51  ;;  %v12964_v20 = vmul.f32 0.70710677, %v12953_v52 }
 0xd3a   : > { %v6961_v36 = vmul.f32 %v12944_v14, %v6929_v48  ;;  %v6992_v56 = vadd.f32 1.4214138, %v6960_v17  ;;  %v12968_v41 = vmul.f32 0.70710677, %v12960_v12  ;;  %v5629_v11 = vsel %vm12955_vm8, %v12713_v63, 0.0  ;;  %v14757_v17 = vld [vmem:[#allocation108_spill] sm:$0xff] }
 0xd3b   : > { %v12975_v30 = vmul.f32 %v11376_v44, %v12456_v58  ;;  %v7375_v31 = vmul.f32 %v7343_v10, %v6703_v45  ;;  %v7406_v0 = vadd.f32 1.0, %v7374_v59  ;;  %v6738_v51 = vand.u32 2147483647, %v12964_v20 }
 0xd3c   : > { %v6606_v33 = vmul.f32 0.5, %v12735_v16  ;;  %v6607_v57 = vmul.f32 0.5, %v12737_v1  ;;  %v6993_v62 = vadd.f32 1.4214138, %v6961_v36  ;;  %v7024_v40 = vmul.f32 %v12924_v3, %v6992_v56 }
 0xd3d   : > { %v7407_v60 = vadd.f32 1.0, %v7375_v31  ;;  %v12982_v37 = vand.u32 2147483647, %v12968_v41  ;;  %v5665_v63 = vmul.f32 %v11369_v2, %v5629_v11  ;;  %v5668_v49 = vmul.f32 %v11369_v2, %v12942_v55 }
 0xd3e   : > { %vm6672_vm7 = vcmp.ge.f32.partialorder %v12844_v19, 0.0  ;;  %v7025_v45 = vmul.f32 %v12944_v14, %v6993_v62  ;;  %v7056_v39 = vadd.f32 -0.28449672, %v7024_v40  ;;  %v6770_v16 = vmul.f32 0.3275911, %v6738_v51 }
 0xd3f   : > { %v7438_v6 = vmul.f32 %v7406_v0, %v6606_v33  ;;  %v7439_v1 = vmul.f32 %v7407_v60, %v6607_v57  ;;  %v6771_v50 = vmul.f32 0.3275911, %v12982_v37  ;;  %v5697_v32 = vadd.f32 %v5665_v63, %v14756_v54  ;;  %v14760_v33 = vld [vmem:[#allocation102_spill] sm:$0xff] }
 0xd40   : > { %vm6673_vm9 = vcmp.ge.f32.partialorder %v12849_v26, 0.0  ;;  %v7057_v18 = vadd.f32 -0.28449672, %v7025_v45  ;;  %v7088_v27 = vmul.f32 %v12924_v3, %v7056_v39  ;;  %v6802_v21 = vadd.f32 1.0, %v6770_v16 }
 0xd41   : > { %v7468_v43 = vpack.c.bf16 %v7439_v1, %v7438_v6  ;;  %v6803_v28 = vadd.f32 1.0, %v6771_v50  ;;  %v7186_v48 = vsub.f32 0.0, %v6738_v51  ;;  %v12994_v10 = vadd.f32 %v5668_v49, %v14757_v17  ;;  %v14762_v50 = vld [vmem:[#allocation106_spill] sm:$0xff] }
 0xd42   : > { %v6704_v59 = vsel %vm6672_vm7, 1.0, %v14724_v5  ;;  %v7089_v36 = vmul.f32 %v12944_v14, %v7057_v18  ;;  %v7120_v56 = vadd.f32 0.2548296, %v7088_v27  ;;  %9263 = vrcp.f32 %v6802_v21 }
 0xd43   : > { %8813 = vmatprep.mubr.bf16.mxu1 %v7468_v43  ;;  %v6705_v26 = vsel %vm6673_vm9, 1.0, %v14724_v5  ;;  %9265 = vrcp.f32 %v6803_v28  ;;  %v14759_v31 = vsel %vm11692_vm11, %v14742_v35, 0.0  ;;  %v5861_v57 = vadd.f32 %v14760_v33, %v5697_v32 }
 0xd44   : > { %v5828_v0 = vmul.f32 %v11409_v29, %v14759_v31  ;;  %v7121_v62 = vadd.f32 0.2548296, %v7089_v36  ;;  %v7152_v19 = vmul.f32 %v12924_v3, %v7120_v56  ;;  %v5992_v40 = vmul.f32 %v14647_v46, %v12837_v13  ;;  %v14761_v3 = vld [vmem:[#allocation101_spill] sm:$0xff] }
 0xd45   : > { %v5957_v60 = vsel %vm12955_vm8, %v12827_v47, 0.0  ;;  %v9260_v63 = vpop.eup %9259  ;;  %v7187_v49 = vsub.f32 0.0, %v12982_v37  ;;  %v7218_v45 = vmul.f32 %v7186_v48, %v6738_v51  ;;  %v6152_v13 = vsel %vm11692_vm11, %v14761_v3, 0.0  ;;  %v14764_v56 = vld [vmem:[#allocation97_spill] sm:$0xff]  ;;  %vm14766_vm11 = vmmov %vm14748_vm10 }
 0xd46   : > { %v5860_v35 = vadd.f32 %v5828_v0, %v12744_v7  ;;  %v5993_v39 = vmul.f32 %v14647_v46, %v5957_v60  ;;  %v9262_v16 = vpop.eup %9261  ;;  %v7153_v6 = vmul.f32 %v12944_v14, %v7121_v62  ;;  %v7312_v1 = vmul.f32 %v9260_v63, %v7152_v19  ;;  %v14770_v19 = vld [vmem:[#allocation82_spill] sm:$0xff]  ;;  %v14773_v63 = vld [vmem:[#allocation116_spill] sm:$0xff] }
 0xd47   : > { %v6189_v54 = vmul.f32 %v14664_v22, %v14762_v50  ;;  %v6188_v27 = vmul.f32 %v14664_v22, %v6152_v13  ;;  %v6513_v7 = vsel %vm12955_vm8, %v12933_v15, 0.0  ;;  %v6548_v14 = vmul.f32 %v12809_v23, %v12942_v55  ;;  %vm14797_vm8 = vmmov %vm14748_vm10 }
 0xd48   : > { %v6024_v32 = vadd.f32 %v5992_v40, %v5860_v35  ;;  %v6025_v18 = vadd.f32 %v5993_v39, %v5861_v57  ;;  %v7313_v51 = vmul.f32 %v9262_v16, %v7153_v6  ;;  %v7344_v21 = vsub.f32 1.0, %v7312_v1  ;;  %v14774_v39 = vld [vmem:[#allocation127_spill] sm:$0xff] }
 0xd49   : > { %v6549_v43 = vmul.f32 %v12809_v23, %v6513_v7  ;;  %v4426_v17 = vadd.s32 104, %v11340_v42  ;;  %v14763_v36 = vrot.slane %v12004_v4, 1  ;;  %v14765_v11 = vrot.slane %v14764_v56, 1 }
 0xd4a   : > { %v6220_v28 = vadd.f32 %v6188_v27, %v6024_v32  ;;  %v6221_v48 = vadd.f32 %v6189_v54, %v6025_v18  ;;  %v7345_v34 = vsub.f32 1.0, %v7313_v51  ;;  %v7376_v0 = vmul.f32 %v7344_v21, %v6704_v59  ;;  %v14777_v18 = vld [vmem:[#allocation120_spill] sm:$0xff] }
 0xd4b   : > { %v13036_v31 = vsel %vm14766_vm11, %v14765_v11, %v14763_v36  ;;  %v14767_v33 = vmov %v14765_v11  ;;  %v14768_v57 = vrot.slane %v14744_v25, 1  ;;  %vm14771_vm2 = vnez %v14770_v19 }
 0xd4c   : > { %v14772_v40 = vsel %vm14771_vm2, %v14761_v3, 0.0  ;;  %v6384_v35 = vadd.f32 %v14773_v63, %v6220_v28  ;;  %v6385_v16 = vadd.f32 %v14774_v39, %v6221_v48  ;;  %v4540_v6 = vand.u32 15, %v4426_v17  ;;  %v14790_v3 = vld [vmem:[#allocation107_spill] sm:$0xff] }
 0xd4d   : > { %v13044_v62 = vsel %vm14769_vm13, %v14768_v57, %v14767_v33  ;;  %v5830_v60 = vmul.f32 %v11409_v29, %v14772_v40  ;;  %v7377_v1 = vmul.f32 %v7345_v34, %v6705_v26  ;;  %v7408_v25 = vadd.f32 1.0, %v7376_v0 }
 0xd4e   : > { %v5670_v59 = vmul.f32 %v11369_v2, %v13044_v62  ;;  %v7219_v13 = vmul.f32 %v7187_v49, %v12982_v37  ;;  %v13057_v54 = vadd.f32 %v6548_v14, %v6384_v35  ;;  %v13059_v32 = vadd.f32 %v6549_v43, %v6385_v16 }
 0xd4f   : > { %v5862_v50 = vadd.f32 %v5830_v60, %v12903_v53  ;;  %vm13061_vm12 = vcmp.le.s32.totalorder %v4540_v6, 14  ;;  %v6608_v7 = vmul.f32 0.5, %v12818_v9  ;;  %v6609_v26 = vmul.f32 0.5, %v12829_v24  ;;  %v13073_v37 = vpop.eup %9263  ;;  %v14782_v9 = vld [vmem:[#allocation169_spill] sm:$0xff] }
 0xd50   : > { %v13066_v27 = vadd.f32 %v5670_v59, %v14777_v18  ;;  %v7409_v51 = vadd.f32 1.0, %v7377_v1  ;;  %v5631_v53 = vsel %vm13061_vm12, %v12827_v47, 0.0  ;;  %v14778_v49 = vrot.slane %v12378_v61, 7  ;;  %v13097_v17 = vpop.eup %9265  ;;  %v14784_v6 = vld [vmem:[#allocation109_spill] sm:$0xff] }
 0xd51   : > { %v14779_v21 = vrot.slane %v12456_v58, 7  ;;  %vm14780_vm6 = vcmp.lt.s32.totalorder %v11340_v42, 1  ;;  %v14781_v43 = vrot.slane %v12456_v58, 1  ;;  %v14783_v28 = vrot.slane %v14782_v9, 1 }
 0xd52   : > { %v13092_v47 = vmul.f32 0.70710677, %v13057_v54  ;;  %v13095_v48 = vmul.f32 0.70710677, %v13059_v32  ;;  %v7440_v36 = vmul.f32 %v7408_v25, %v6608_v7  ;;  %v7441_v56 = vmul.f32 %v7409_v51, %v6609_v26 }
 0xd53   : > { %v13081_v14 = vsel %vm14780_vm6, %v14779_v21, %v14778_v49  ;;  %v13089_v24 = vsel %vm14748_vm10, %v14783_v28, %v14781_v43  ;;  %v6898_v11 = vmul.f32 1.0614054, %v13073_v37  ;;  %v7258_v34 = vmul.f32 1.442695, %v7218_v45  ;;  %v14786_v49 = vld [vmem:[#allocation132_spill] sm:$0xff]  ;;  %vm14815_vm6 = vmmov %vm14797_vm8 }
 0xd54   : > { %v6899_v58 = vmul.f32 1.0614054, %v13097_v17  ;;  %v7260_v0 = vmul.f32 1.442695, %v7219_v13  ;;  %v6740_v33 = vand.u32 2147483647, %v13092_v47  ;;  %v5667_v57 = vmul.f32 %v11369_v2, %v5631_v53 }
 0xd55   : > { %v7469_v40 = vpack.c.bf16 %v7441_v56, %v7440_v36  ;;  %v6930_v60 = vadd.f32 -1.4531521, %v6898_v11  ;;  %v5994_v63 = vmul.f32 %v14647_v46, %v12942_v55  ;;  %v5959_v35 = vsel %vm13061_vm12, %v12933_v15, 0.0  ;;  %v14785_v13 = vld [vmem:[#allocation105_spill] sm:$0xff]  ;;  %v14787_v11 = vld [vmem:[#allocation103_spill] sm:$0xff] }
 0xd56   : > { %v6931_v39 = vadd.f32 -1.4531521, %v6899_v58  ;;  %v6741_v16 = vand.u32 2147483647, %v13095_v48  ;;  %v6772_v45 = vmul.f32 0.3275911, %v6740_v33  ;;  %v5699_v59 = vadd.f32 %v5667_v57, %v14784_v6 }
 0xd57   : > { %8814 = vmatmul.mubr.bf16.gmra.mxu1 %v7469_v40  ;;  %v6962_v1 = vmul.f32 %v13073_v37, %v6930_v60  ;;  %9267 = vpow2.f32 %v7258_v34  ;;  %v6026_v25 = vadd.f32 %v5994_v63, %v5862_v50  ;;  %v6154_v18 = vsel %vm14771_vm2, %v14785_v13, 0.0 }
 0xd58   : > { %v6963_v55 = vmul.f32 %v13097_v17, %v6931_v39  ;;  %9269 = vpow2.f32 %v7260_v0  ;;  %v6773_v7 = vmul.f32 0.3275911, %v6741_v16  ;;  %v6804_v26 = vadd.f32 1.0, %v6772_v45  ;;  %v14788_v45 = vld [vmem:[#allocation115_spill] sm:$0xff] }
 0xd59   : > { %v6994_v51 = vadd.f32 1.4214138, %v6962_v1  ;;  %v7188_v53 = vsub.f32 0.0, %v6740_v33  ;;  %v5863_v21 = vadd.f32 %v14786_v49, %v5699_v59  ;;  %v5995_v43 = vmul.f32 %v14647_v46, %v5959_v35  ;;  %v14789_v1 = vld [vmem:[#allocation121_spill] sm:$0xff] }
 0xd5a   : > { %v6995_v9 = vadd.f32 1.4214138, %v6963_v55  ;;  %v6805_v28 = vadd.f32 1.0, %v6773_v7  ;;  %9271 = vrcp.f32 %v6804_v26  ;;  %v6190_v50 = vmul.f32 %v14664_v22, %v6154_v18 }
 0xd5b   : > { %v13119_v36 = vmul.f32 0.5, %v12953_v52  ;;  %v7026_v19 = vmul.f32 %v13073_v37, %v6994_v51  ;;  %v6027_v56 = vadd.f32 %v5995_v43, %v5863_v21  ;;  %v6191_v34 = vmul.f32 %v14664_v22, %v14787_v11 }
 0xd5c   : > { %v13125_v58 = vmul.f32 0.5, %v12960_v12  ;;  %v7027_v0 = vmul.f32 %v13097_v17, %v6995_v9  ;;  %9273 = vrcp.f32 %v6805_v28  ;;  %v6222_v57 = vadd.f32 %v6190_v50, %v6026_v25 }
 0xd5d   : > { %v7058_v40 = vadd.f32 -0.28449672, %v7026_v19  ;;  %v7189_v60 = vsub.f32 0.0, %v6741_v16  ;;  %v6223_v63 = vadd.f32 %v6191_v34, %v6027_v56  ;;  %v6515_v52 = vsel %vm13061_vm12, %v13036_v31, 0.0  ;;  %vm14812_vm12 = vmmov %vm14797_vm8 }
 0xd5e   : > { %v7059_v35 = vadd.f32 -0.28449672, %v7027_v0  ;;  %v7220_v39 = vmul.f32 %v7188_v53, %v6740_v33  ;;  %v6386_v6 = vadd.f32 %v14788_v45, %v6222_v57  ;;  %v6550_v59 = vmul.f32 %v12809_v23, %v13044_v62  ;;  %v14792_v33 = vld [vmem:[#allocation118_spill] sm:$0xff] }
 0xd5f   : > { %v7090_v12 = vmul.f32 %v13073_v37, %v7058_v40  ;;  %v6387_v18 = vadd.f32 %v14789_v1, %v6223_v63  ;;  %v6551_v25 = vmul.f32 %v12809_v23, %v6515_v52  ;;  %v4428_v55 = vadd.s32 120, %v11340_v42 }
 0xd60   : > { %v7091_v7 = vmul.f32 %v13097_v17, %v7059_v35  ;;  %v13139_v26 = vadd.f32 %v6550_v59, %v6386_v6  ;;  %v14791_v51 = vrot.slane %v14790_v3, 1  ;;  %v14793_v53 = vrot.slane %v14792_v33, 1 }
 0xd61   : > { %v14796_v43 = vrot.slane %v12004_v4, 1  ;;  %vm6674_vm7 = vcmp.ge.f32.partialorder %v12964_v20, 0.0  ;;  %v7122_v28 = vadd.f32 0.2548296, %v7090_v12  ;;  %v13158_v50 = vadd.f32 %v6551_v25, %v6387_v18 }
 0xd62   : > { %v13147_v49 = vsel %vm14794_vm14, %v14793_v53, %v14791_v51  ;;  %v14795_v21 = vmov %v14793_v53  ;;  %v4554_v19 = vand.u32 15, %v4428_v55  ;;  %vm6675_vm9 = vcmp.ge.f32.partialorder %v12968_v41, 0.0 }
 0xd63   : > { %v13155_v9 = vsel %vm14797_vm8, %v14796_v43, %v14795_v21  ;;  %v7123_v56 = vadd.f32 0.2548296, %v7091_v7  ;;  %v7221_v11 = vmul.f32 %v7189_v60, %v6741_v16  ;;  %v13162_v34 = vmul.f32 0.70710677, %v13139_v26  ;;  %v14800_v43 = vld [vmem:[#allocation112_spill] sm:$0xff] }
 0xd64   : > { %v7154_v0 = vmul.f32 %v13073_v37, %v7122_v28  ;;  %v7262_v4 = vmul.f32 1.442695, %v7220_v39  ;;  %v13166_v57 = vmul.f32 0.70710677, %v13158_v50  ;;  %vm13168_vm11 = vcmp.le.s32.totalorder %v4554_v19, 14  ;;  %v9268_v20 = vpop.eup %9267 }
 0xd65   : > { %v6706_v63 = vsel %vm6674_vm7, 1.0, %v14724_v5  ;;  %v7155_v41 = vmul.f32 %v13097_v17, %v7123_v56  ;;  %v6742_v16 = vand.u32 2147483647, %v13162_v34  ;;  %v5633_v60 = vsel %vm13168_vm11, %v12933_v15, 0.0  ;;  %v9270_v37 = vpop.eup %9269 }
 0xd66   : > { %v6707_v52 = vsel %vm6675_vm9, 1.0, %v14724_v5  ;;  %v7314_v35 = vmul.f32 %v9268_v20, %v7154_v0  ;;  %v5996_v39 = vmul.f32 %v14647_v46, %v13044_v62  ;;  %v6743_v45 = vand.u32 2147483647, %v13166_v57  ;;  %v14801_v20 = vld [vmem:[#allocation88_spill] sm:$0xff] }
 0xd67   : > { %v7315_v6 = vmul.f32 %v9270_v37, %v7155_v41  ;;  %v13183_v59 = vmul.f32 0.5, %v13057_v54  ;;  %v7264_v17 = vmul.f32 1.442695, %v7221_v11  ;;  %v6774_v12 = vmul.f32 0.3275911, %v6742_v16  ;;  %v13185_v1 = vpop.eup %9271 }
 0xd68   : > { %v7346_v18 = vsub.f32 1.0, %v7314_v35  ;;  %9275 = vpow2.f32 %v7262_v4  ;;  %v6775_v15 = vmul.f32 0.3275911, %v6743_v45  ;;  %v5669_v25 = vmul.f32 %v11369_v2, %v5633_v60 }
 0xd69   : > { %v7347_v55 = vsub.f32 1.0, %v7315_v6  ;;  %v6900_v7 = vmul.f32 1.0614054, %v13185_v1  ;;  %v6806_v51 = vadd.f32 1.0, %v6774_v12  ;;  %v5672_v62 = vmul.f32 %v11369_v2, %v13155_v9  ;;  %v13191_v33 = vpop.eup %9273  ;;  %v14804_v6 = vld [vmem:[#allocation122_spill] sm:$0xff] }
 0xd6a   : > { %v7378_v54 = vmul.f32 %v7346_v18, %v6706_v63  ;;  %v6807_v53 = vadd.f32 1.0, %v6775_v15  ;;  %v7190_v21 = vsub.f32 0.0, %v6742_v16  ;;  %v5701_v28 = vadd.f32 %v5669_v25, %v14800_v43  ;;  %v14805_v15 = vld [vmem:[#allocation126_spill] sm:$0xff] }
 0xd6b   : > { %v7379_v19 = vmul.f32 %v7347_v55, %v6707_v52  ;;  %v6901_v56 = vmul.f32 1.0614054, %v13191_v33  ;;  %v6932_v11 = vadd.f32 -1.4531521, %v6900_v7  ;;  %9277 = vrcp.f32 %v6806_v51  ;;  %v14806_v43 = vld [vmem:[#allocation114_spill] sm:$0xff] }
 0xd6c   : > { %v7410_v0 = vadd.f32 1.0, %v7378_v54  ;;  %9279 = vrcp.f32 %v6807_v53  ;;  %v7191_v4 = vsub.f32 0.0, %v6743_v45  ;;  %vm14802_vm13 = vnez %v14801_v20 }
 0xd6d   : > { %v14803_v41 = vsel %vm14802_vm13, %v14785_v13, 0.0  ;;  %v7411_v37 = vadd.f32 1.0, %v7379_v19  ;;  %v6933_v63 = vadd.f32 -1.4531521, %v6901_v56  ;;  %v6964_v35 = vmul.f32 %v13185_v1, %v6932_v11 }
 0xd6e   : > { %v5832_v60 = vmul.f32 %v11409_v29, %v14803_v41  ;;  %v13202_v12 = vadd.f32 %v5672_v62, %v14804_v6  ;;  %9281 = vpow2.f32 %v7264_v17  ;;  %v7222_v52 = vmul.f32 %v7190_v21, %v6742_v16 }
 0xd6f   : > { %v5865_v25 = vadd.f32 %v14805_v15, %v5701_v28  ;;  %v7442_v55 = vmul.f32 %v7410_v0, %v13119_v36  ;;  %v7443_v7 = vmul.f32 %v7411_v37, %v13125_v58  ;;  %v6965_v13 = vmul.f32 %v13191_v33, %v6933_v63  ;;  %v14807_v28 = vld [vmem:[#allocation125_spill] sm:$0xff]  ;;  %v14810_v63 = vld [vmem:[#allocation110_spill] sm:$0xff] }
 0xd70   : > { %v5864_v18 = vadd.f32 %v5832_v60, %v12994_v10  ;;  %v6996_v51 = vadd.f32 1.4214138, %v6964_v35  ;;  %v7223_v54 = vmul.f32 %v7191_v4, %v6743_v45  ;;  %v5961_v53 = vsel %vm13168_vm11, %v13036_v31, 0.0  ;;  %v14808_v60 = vld [vmem:[#allocation128_spill] sm:$0xff] }
 0xd71   : > { %v6156_v16 = vsel %vm14802_vm13, %v14806_v43, 0.0  ;;  %v7470_v10 = vpack.c.bf16 %v7443_v7, %v7442_v55  ;;  %vm6676_vm2 = vcmp.ge.f32.partialorder %v13092_v47, 0.0  ;;  %v6997_v17 = vadd.f32 1.4214138, %v6965_v13  ;;  %vm14835_vm13 = vmmov %vm14815_vm6 }
 0xd72   : > { %v6028_v62 = vadd.f32 %v5996_v39, %v5864_v18  ;;  %v7028_v36 = vmul.f32 %v13185_v1, %v6996_v51  ;;  %v5997_v58 = vmul.f32 %v14647_v46, %v5961_v53  ;;  %v7266_v21 = vmul.f32 1.442695, %v7222_v52  ;;  %v14816_v51 = vld [vmem:[#allocation139_spill] sm:$0xff] }
 0xd73   : > { %v6192_v45 = vmul.f32 %v14664_v22, %v6156_v16  ;;  %v6193_v19 = vmul.f32 %v14664_v22, %v14807_v28  ;;  %v6517_v39 = vsel %vm13168_vm11, %v13147_v49, 0.0  ;;  %8817 = vmatprep.mubr.bf16.mxu1 %v7470_v10  ;;  %v7029_v56 = vmul.f32 %v13191_v33, %v6997_v17  ;;  %v14817_v10 = vld [vmem:[#allocation99_spill] sm:$0xff]  ;;  %vm14832_vm11 = vmmov %vm14815_vm6 }
 0xd74   : > { %v7060_v11 = vadd.f32 -0.28449672, %v7028_v36  ;;  %v6029_v0 = vadd.f32 %v5997_v58, %v5865_v25  ;;  %v6552_v4 = vmul.f32 %v12809_v23, %v13155_v9  ;;  %v4430_v41 = vadd.s32 136, %v11340_v42 }
 0xd75   : > { %v6224_v20 = vadd.f32 %v6192_v45, %v6028_v62  ;;  %v14809_v37 = vrot.slane %v14808_v60, 1  ;;  %v14811_v35 = vrot.slane %v14810_v63, 1  ;;  %v14814_v52 = vrot.slane %v14790_v3, 1  ;;  %v9276_v15 = vpop.eup %9275  ;;  %v14820_v45 = vld [vmem:[#allocation151_spill] sm:$0xff] }
 0xd76   : > { %v7061_v25 = vadd.f32 -0.28449672, %v7029_v56  ;;  %v7092_v55 = vmul.f32 %v13185_v1, %v7060_v11  ;;  %v6225_v7 = vadd.f32 %v6193_v19, %v6029_v0  ;;  %v6553_v62 = vmul.f32 %v12809_v23, %v6517_v39  ;;  %v14821_v19 = vld [vmem:[#allocation140_spill] sm:$0xff] }
 0xd77   : > { %v13234_v6 = vsel %vm14812_vm12, %v14811_v35, %v14809_v37  ;;  %v14813_v40 = vmov %v14811_v35  ;;  %v6388_v53 = vadd.f32 %v14816_v51, %v6224_v20  ;;  %v4568_v16 = vand.u32 15, %v4430_v41 }
 0xd78   : > { %v13242_v18 = vsel %vm14815_vm6, %v14814_v52, %v14813_v40  ;;  %vm14818_vm10 = vnez %v14817_v10  ;;  %v7093_v36 = vmul.f32 %v13191_v33, %v7061_v25  ;;  %v7124_v58 = vadd.f32 0.2548296, %v7092_v55  ;;  %v13259_v11 = vpop.eup %9277 }
 0xd79   : > { %v5674_v13 = vmul.f32 %v11369_v2, %v13242_v18  ;;  %v14819_v3 = vsel %vm14818_vm10, %v14806_v43, 0.0  ;;  %v6389_v28 = vadd.f32 %v14820_v45, %v6225_v7  ;;  %v7268_v0 = vmul.f32 1.442695, %v7223_v54  ;;  %v13268_v41 = vpop.eup %9279 }
 0xd7a   : > { %v5834_v17 = vmul.f32 %v11409_v29, %v14819_v3  ;;  %v13261_v20 = vadd.f32 %v6552_v4, %v6388_v53  ;;  %vm13263_vm14 = vcmp.le.s32.totalorder %v4568_v16, 14  ;;  %v7125_v37 = vadd.f32 0.2548296, %v7093_v36 }
 0xd7b   : > { %v13257_v56 = vadd.f32 %v5674_v13, %v14821_v19  ;;  %v7156_v63 = vmul.f32 %v13185_v1, %v7124_v58  ;;  %v6902_v35 = vmul.f32 1.0614054, %v13259_v11  ;;  %v13272_v40 = vadd.f32 %v6553_v62, %v6389_v28  ;;  %v9282_v25 = vpop.eup %9281  ;;  %v14824_v19 = vld [vmem:[#allocation130_spill] sm:$0xff] }
 0xd7c   : > { %v5866_v43 = vadd.f32 %v5834_v17, %v13066_v27  ;;  %v6613_v52 = vmul.f32 0.5, %v13059_v32  ;;  %vm6677_vm8 = vcmp.ge.f32.partialorder %v13095_v48, 0.0  ;;  %v6903_v54 = vmul.f32 1.0614054, %v13268_v41 }
 0xd7d   : > { %v13278_v4 = vmul.f32 0.70710677, %v13261_v20  ;;  %v7157_v27 = vmul.f32 %v13191_v33, %v7125_v37  ;;  %v7316_v55 = vmul.f32 %v9276_v15, %v7156_v63  ;;  %v6934_v7 = vadd.f32 -1.4531521, %v6902_v35 }
 0xd7e   : > { %v5635_v1 = vsel %vm13263_vm14, %v13036_v31, 0.0  ;;  %v6708_v32 = vsel %vm6676_vm2, 1.0, %v14724_v5  ;;  %v6935_v13 = vadd.f32 -1.4531521, %v6903_v54  ;;  %9283 = vpow2.f32 %v7266_v21 }
 0xd7f   : > { %v13288_v51 = vmul.f32 0.70710677, %v13272_v40  ;;  %v7317_v53 = vmul.f32 %v9282_v25, %v7157_v27  ;;  %v7348_v62 = vsub.f32 1.0, %v7316_v55  ;;  %v6966_v16 = vmul.f32 %v13259_v11, %v6934_v7 }
 0xd80   : > { %9285 = vpow2.f32 %v7268_v0  ;;  %v6967_v33 = vmul.f32 %v13268_v41, %v6935_v13  ;;  %v6744_v15 = vand.u32 2147483647, %v13278_v4  ;;  %v5671_v47 = vmul.f32 %v11369_v2, %v5635_v1  ;;  %v14825_v1 = vld [vmem:[#allocation124_spill] sm:$0xff] }
 0xd81   : > { %v13294_v31 = vand.u32 2147483647, %v13288_v51  ;;  %v6709_v21 = vsel %vm6677_vm8, 1.0, %v14724_v5  ;;  %v7349_v3 = vsub.f32 1.0, %v7317_v53  ;;  %v7380_v17 = vmul.f32 %v7348_v62, %v6708_v32  ;;  %v14826_v62 = vld [vmem:[#allocation154_spill] sm:$0xff] }
 0xd82   : > { %v6998_v36 = vadd.f32 1.4214138, %v6966_v16  ;;  %v6999_v58 = vadd.f32 1.4214138, %v6967_v33  ;;  %v6776_v45 = vmul.f32 0.3275911, %v6744_v15  ;;  %v5703_v0 = vadd.f32 %v5671_v47, %v14824_v19 }
 0xd83   : > { %v6777_v28 = vmul.f32 0.3275911, %v13294_v31  ;;  %v7381_v37 = vmul.f32 %v7349_v3, %v6709_v21  ;;  %v7412_v63 = vadd.f32 1.0, %v7380_v17  ;;  %vm6678_vm7 = vcmp.ge.f32.partialorder %v13162_v34, 0.0 }
 0xd84   : > { %v7030_v35 = vmul.f32 %v13259_v11, %v6998_v36  ;;  %vm6679_vm9 = vcmp.ge.f32.partialorder %v13166_v57, 0.0  ;;  %v7031_v48 = vmul.f32 %v13268_v41, %v6999_v58  ;;  %v6808_v54 = vadd.f32 1.0, %v6776_v45 }
 0xd85   : > { %v6809_v25 = vadd.f32 1.0, %v6777_v28  ;;  %v7413_v27 = vadd.f32 1.0, %v7381_v37  ;;  %v5998_v7 = vmul.f32 %v14647_v46, %v13155_v9  ;;  %v6158_v32 = vsel %vm14818_vm10, %v14825_v1, 0.0  ;;  %vm14853_vm10 = vmmov %vm14832_vm11 }
 0xd86   : > { %v7062_v55 = vadd.f32 -0.28449672, %v7030_v35  ;;  %v7063_v13 = vadd.f32 -0.28449672, %v7031_v48  ;;  %9287 = vrcp.f32 %v6808_v54  ;;  %v7192_v53 = vsub.f32 0.0, %v6744_v15 }
 0xd87   : > { %v5867_v16 = vadd.f32 %v14826_v62, %v5703_v0  ;;  %v7444_v33 = vmul.f32 %v7412_v63, %v13183_v59  ;;  %v7445_v47 = vmul.f32 %v7413_v27, %v6613_v52  ;;  %9289 = vrcp.f32 %v6809_v25 }
 0xd88   : > { %v7094_v21 = vmul.f32 %v13259_v11, %v7062_v55  ;;  %v6710_v3 = vsel %vm6678_vm7, 1.0, %v14724_v5  ;;  %v7095_v9 = vmul.f32 %v13268_v41, %v7063_v13  ;;  %v5963_v10 = vsel %vm13263_vm14, %v13147_v49, 0.0  ;;  %v14830_v13 = vld [vmem:[#allocation134_spill] sm:$0xff] }
 0xd89   : > { %v6030_v17 = vadd.f32 %v5998_v7, %v5866_v43  ;;  %v7471_v36 = vpack.c.bf16 %v7445_v47, %v7444_v33  ;;  %v6711_v59 = vsel %vm6679_vm9, 1.0, %v14724_v5  ;;  %v5999_v58 = vmul.f32 %v14647_v46, %v5963_v10  ;;  %v14827_v43 = vld [vmem:[#allocation117_spill] sm:$0xff] }
 0xd8a   : > { %v7126_v52 = vadd.f32 0.2548296, %v7094_v21  ;;  %v7127_v45 = vadd.f32 0.2548296, %v7095_v9  ;;  %v7193_v28 = vsub.f32 0.0, %v13294_v31  ;;  %v7224_v34 = vmul.f32 %v7192_v53, %v6744_v15  ;;  %v14836_v47 = vld [vmem:[#allocation137_spill] sm:$0xff] }
 0xd8b   : > { %v6194_v19 = vmul.f32 %v14664_v22, %v6158_v32  ;;  %v9284_v0 = vpop.eup %9283  ;;  %8818 = vmatmul.mubr.bf16.gmra.mxu1 %v7471_v36  ;;  %v6031_v63 = vadd.f32 %v5999_v58, %v5867_v16  ;;  %v6195_v35 = vmul.f32 %v14664_v22, %v14827_v43  ;;  %v6519_v57 = vsel %vm13263_vm14, %v13234_v6, 0.0  ;;  %v14837_v36 = vld [vmem:[#allocation146_spill] sm:$0xff]  ;;  %v14843_v43 = vld [vmem:[#allocation143_spill] sm:$0xff]  ;;  %vm14857_vm14 = vmmov %vm14853_vm10 }
 0xd8c   : > { %v7158_v37 = vmul.f32 %v13259_v11, %v7126_v52  ;;  %v7159_v54 = vmul.f32 %v13268_v41, %v7127_v45  ;;  %v6554_v15 = vmul.f32 %v12809_v23, %v13242_v18  ;;  %v4432_v27 = vadd.s32 152, %v11340_v42  ;;  %v14828_v11 = vld [vmem:[#allocation123_spill] sm:$0xff]  ;;  %v14838_v45 = vld [vmem:[#allocation104_spill] sm:$0xff] }
 0xd8d   : > { %v9286_v48 = vpop.eup %9285  ;;  %v6226_v25 = vadd.f32 %v6194_v19, %v6030_v17  ;;  %v6227_v7 = vadd.f32 %v6195_v35, %v6031_v63  ;;  %v14829_v32 = vrot.slane %v14828_v11, 1  ;;  %v14831_v53 = vrot.slane %v14830_v13, 1 }
 0xd8e   : > { %v7318_v55 = vmul.f32 %v9284_v0, %v7158_v37  ;;  %v14834_v41 = vrot.slane %v14808_v60, 1  ;;  %v7319_v33 = vmul.f32 %v9286_v48, %v7159_v54  ;;  %v4582_v9 = vand.u32 15, %v4432_v27 }
 0xd8f   : > { %v13343_v62 = vsel %vm14832_vm11, %v14831_v53, %v14829_v32  ;;  %v14833_v39 = vmov %v14831_v53  ;;  %v6390_v21 = vadd.f32 %v14836_v47, %v6226_v25  ;;  %v6391_v52 = vadd.f32 %v14837_v36, %v6227_v7 }
 0xd90   : > { %v13351_v16 = vsel %vm14835_vm13, %v14834_v41, %v14833_v39  ;;  %v7350_v17 = vsub.f32 1.0, %v7318_v55  ;;  %v6555_v58 = vmul.f32 %v12809_v23, %v6519_v57  ;;  %vm14839_vm2 = vnez %v14838_v45 }
 0xd91   : > { %v5676_v10 = vmul.f32 %v11369_v2, %v13351_v16  ;;  %v14840_v60 = vsel %vm14839_vm2, %v14825_v1, 0.0  ;;  %v7351_v0 = vsub.f32 1.0, %v7319_v33  ;;  %v13363_v37 = vadd.f32 %v6554_v15, %v6390_v21 }
 0xd92   : > { %v5836_v19 = vmul.f32 %v11409_v29, %v14840_v60  ;;  %vm13365_vm12 = vcmp.le.s32.totalorder %v4582_v9, 14  ;;  %v7382_v48 = vmul.f32 %v7350_v17, %v6710_v3  ;;  %v7225_v54 = vmul.f32 %v7193_v28, %v13294_v31  ;;  %v14845_v17 = vld [vmem:[#allocation133_spill] sm:$0xff] }
 0xd93   : > { %v13370_v35 = vadd.f32 %v5676_v10, %v14843_v43  ;;  %v13373_v23 = vadd.f32 %v6555_v58, %v6391_v52  ;;  %v5812_v25 = vsel %vm12335_vm3, %v13081_v14, 0.0  ;;  %v7383_v15 = vmul.f32 %v7351_v0, %v6711_v59  ;;  %v13385_v7 = vpop.eup %9287  ;;  %v14846_v43 = vld [vmem:[#allocation147_spill] sm:$0xff] }
 0xd94   : > { %v5868_v57 = vadd.f32 %v5836_v19, %v13202_v12  ;;  %v13380_v27 = vmul.f32 0.70710677, %v13363_v37  ;;  %v5637_v55 = vsel %vm13365_vm12, %v13147_v49, 0.0  ;;  %v6614_v31 = vmul.f32 0.5, %v13139_v26  ;;  %v13391_v32 = vpop.eup %9289 }
 0xd95   : > { %v7414_v3 = vadd.f32 1.0, %v7382_v48  ;;  %v7270_v28 = vmul.f32 1.442695, %v7224_v34  ;;  %v13389_v12 = vmul.f32 0.70710677, %v13373_v23  ;;  %v6615_v59 = vmul.f32 0.5, %v13158_v50 }
 0xd96   : > { %v7415_v13 = vadd.f32 1.0, %v7383_v15  ;;  %v6904_v53 = vmul.f32 1.0614054, %v13385_v7  ;;  %v6746_v39 = vand.u32 2147483647, %v13380_v27  ;;  %v6000_v26 = vmul.f32 %v14647_v46, %v13242_v18 }
 0xd97   : > { %v6905_v49 = vmul.f32 1.0614054, %v13391_v32  ;;  %v7272_v41 = vmul.f32 1.442695, %v7225_v54  ;;  %v5673_v34 = vmul.f32 %v11369_v2, %v5637_v55  ;;  %v7446_v33 = vmul.f32 %v7414_v3, %v6614_v31 }
 0xd98   : > { %v7447_v47 = vmul.f32 %v7415_v13, %v6615_v59  ;;  %v6936_v21 = vadd.f32 -1.4531521, %v6904_v53  ;;  %v6747_v9 = vand.u32 2147483647, %v13389_v12  ;;  %v6778_v50 = vmul.f32 0.3275911, %v6746_v39 }
 0xd99   : > { %v6937_v10 = vadd.f32 -1.4531521, %v6905_v49  ;;  %v5705_v36 = vadd.f32 %v5673_v34, %v14845_v17  ;;  %v5965_v52 = vsel %vm13365_vm12, %v13234_v6, 0.0  ;;  %9291 = vpow2.f32 %v7270_v28  ;;  %v14847_v34 = vld [vmem:[#allocation135_spill] sm:$0xff] }
 0xd9a   : > { %v7472_v58 = vpack.c.bf16 %v7447_v47, %v7446_v33  ;;  %v6968_v60 = vmul.f32 %v13385_v7, %v6936_v21  ;;  %v6779_v18 = vmul.f32 0.3275911, %v6747_v9  ;;  %9293 = vpow2.f32 %v7272_v41  ;;  %v14848_v47 = vld [vmem:[#allocation142_spill] sm:$0xff] }
 0xd9b   : > { %v6969_v19 = vmul.f32 %v13391_v32, %v6937_v10  ;;  %v6810_v0 = vadd.f32 1.0, %v6778_v50  ;;  %v5869_v48 = vadd.f32 %v14846_v43, %v5705_v36  ;;  %v7194_v55 = vsub.f32 0.0, %v6746_v39  ;;  %v14851_v43 = vld [vmem:[#allocation129_spill] sm:$0xff] }
 0xd9c   : > { %8821 = vmatprep.mubr.bf16.mxu1 %v7472_v58  ;;  %v7000_v54 = vadd.f32 1.4214138, %v6968_v60  ;;  %v6811_v15 = vadd.f32 1.0, %v6779_v18  ;;  %v6001_v31 = vmul.f32 %v14647_v46, %v5965_v52  ;;  %v7195_v59 = vsub.f32 0.0, %v6747_v9  ;;  %v13428_v58 = vld [vmem:[%s14170_s16 + $0x8] ss:$0 sm:$0xff] }
 0xd9d   : > { %v7001_v3 = vadd.f32 1.4214138, %v6969_v19  ;;  %9295 = vrcp.f32 %v6810_v0  ;;  %v6032_v13 = vadd.f32 %v6000_v26, %v5868_v57  ;;  %v13411_v28 = vmul.f32 %v11369_v2, %v13089_v24  ;;  %v14849_v19 = vld [vmem:[#allocation145_spill] sm:$0xff] }
 0xd9e   : > { %v7032_v53 = vmul.f32 %v13385_v7, %v7000_v54  ;;  %9297 = vrcp.f32 %v6811_v15  ;;  %v6033_v49 = vadd.f32 %v6001_v31, %v5869_v48  ;;  %vm6680_vm6 = vcmp.ge.f32.partialorder %v13278_v4, 0.0  ;;  %v14854_v54 = vld [vmem:[#allocation171_spill] sm:$0xff] }
 0xd9f   : > { %v7033_v41 = vmul.f32 %v13391_v32, %v7001_v3  ;;  %v6160_v33 = vsel %vm14839_vm2, %v14847_v34, 0.0  ;;  %v6197_v21 = vmul.f32 %v14664_v22, %v14848_v47  ;;  %v7226_v26 = vmul.f32 %v7194_v55, %v6746_v39 }
 0xda0   : > { %v7064_v57 = vadd.f32 -0.28449672, %v7032_v53  ;;  %v6196_v10 = vmul.f32 %v14664_v22, %v6160_v33  ;;  %v6521_v50 = vsel %vm13365_vm12, %v13343_v62, 0.0  ;;  %v7227_v36 = vmul.f32 %v7195_v59, %v6747_v9  ;;  %v14869_v59 = vld [vmem:[#allocation153_spill] sm:$0xff] }
 0xda1   : > { %v7065_v17 = vadd.f32 -0.28449672, %v7033_v41  ;;  %v6229_v52 = vadd.f32 %v6197_v21, %v6033_v49  ;;  %v6557_v45 = vmul.f32 %v13428_v58, %v6521_v50  ;;  %v4434_v39 = vadd.s32 168, %v11340_v42  ;;  %v14860_v41 = vld [vmem:[#allocation165_spill] sm:$0xff] }
 0xda2   : > { %v7096_v60 = vmul.f32 %v13385_v7, %v7064_v57  ;;  %v6228_v18 = vadd.f32 %v6196_v10, %v6032_v13  ;;  %v14850_v0 = vrot.slane %v14849_v19, 1  ;;  %v14852_v63 = vrot.slane %v14851_v43, 1 }
 0xda3   : > { %v7097_v48 = vmul.f32 %v13391_v32, %v7065_v17  ;;  %v6393_v15 = vadd.f32 %v14854_v54, %v6229_v52  ;;  %v14856_v31 = vrot.slane %v14828_v11, 1  ;;  %v14859_v13 = vsel %vm12044_vm1, %v14847_v34, 0.0 }
 0xda4   : > { %v13439_v9 = vsel %vm14853_vm10, %v14852_v63, %v14850_v0  ;;  %v14855_v55 = vmov %v14852_v63  ;;  %v5838_v53 = vmul.f32 %v11409_v29, %v14859_v13  ;;  %v7128_v49 = vadd.f32 0.2548296, %v7096_v60  ;;  %v14861_v60 = vld [vmem:[#allocation159_spill] sm:$0xff] }
 0xda5   : > { %v13449_v3 = vsel %vm14857_vm14, %v14856_v31, %v14855_v55  ;;  %v6392_v33 = vadd.f32 %v14860_v41, %v6228_v18  ;;  %v6556_v47 = vmul.f32 %v13428_v58, %v13351_v16  ;;  %v7129_v11 = vadd.f32 0.2548296, %v7097_v48 }
 0xda6   : > { %v5678_v21 = vmul.f32 %v11369_v2, %v13449_v3  ;;  %v13461_v57 = vadd.f32 %v6557_v45, %v6393_v15  ;;  %v4596_v10 = vand.u32 15, %v4434_v39  ;;  %v5870_v50 = vadd.f32 %v5838_v53, %v13257_v56  ;;  %v9292_v0 = vpop.eup %9291 }
 0xda7   : > { %v6616_v17 = vmul.f32 0.5, %v13261_v20  ;;  %v7160_v34 = vmul.f32 %v13385_v7, %v7128_v49  ;;  %v13466_v52 = vadd.f32 %v6556_v47, %v6392_v33  ;;  %vm6681_vm8 = vcmp.ge.f32.partialorder %v13288_v51, 0.0  ;;  %v9294_v39 = vpop.eup %9293 }
 0xda8   : > { %v13469_v18 = vadd.f32 %v5678_v21, %v14861_v60  ;;  %v7161_v43 = vmul.f32 %v13391_v32, %v7129_v11  ;;  %v7274_v63 = vmul.f32 1.442695, %v7226_v26  ;;  %v13474_v45 = vmul.f32 0.70710677, %v13461_v57 }
 0xda9   : > { %v6617_v56 = vmul.f32 0.5, %v13272_v40  ;;  %v6712_v20 = vsel %vm6680_vm6, 1.0, %v14724_v5  ;;  %v7320_v7 = vmul.f32 %v9292_v0, %v7160_v34  ;;  %v13481_v48 = vmul.f32 0.70710677, %v13466_v52 }
 0xdaa   : > { %v7321_v54 = vmul.f32 %v9294_v39, %v7161_v43  ;;  %v7276_v15 = vmul.f32 1.442695, %v7227_v36  ;;  %v6749_v51 = vand.u32 2147483647, %v13474_v45  ;;  %vm13484_vm7 = vcmp.le.s32.totalorder %v4596_v10, 14  ;;  %v13488_v26 = vpop.eup %9295 }
 0xdab   : > { %v6713_v40 = vsel %vm6681_vm8, 1.0, %v14724_v5  ;;  %v7352_v55 = vsub.f32 1.0, %v7320_v7  ;;  %v6002_v4 = vmul.f32 %v14647_v46, %v13351_v16  ;;  %v6748_v31 = vand.u32 2147483647, %v13481_v48  ;;  %v13494_v13 = vpop.eup %9297 }
 0xdac   : > { %v7353_v53 = vsub.f32 1.0, %v7321_v54  ;;  %v6906_v36 = vmul.f32 1.0614054, %v13488_v26  ;;  %9299 = vpow2.f32 %v7274_v63  ;;  %v6781_v49 = vmul.f32 0.3275911, %v6749_v51 }
 0xdad   : > { %v7384_v41 = vmul.f32 %v7352_v55, %v6712_v20  ;;  %v6907_v33 = vmul.f32 1.0614054, %v13494_v13  ;;  %v6780_v47 = vmul.f32 0.3275911, %v6748_v31  ;;  %v5639_v21 = vsel %vm13484_vm7, %v13234_v6, 0.0 }
 0xdae   : > { %v7385_v11 = vmul.f32 %v7353_v53, %v6713_v40  ;;  %v6938_v10 = vadd.f32 -1.4531521, %v6906_v36  ;;  %9301 = vpow2.f32 %v7276_v15  ;;  %v6813_v16 = vadd.f32 1.0, %v6781_v49  ;;  %v14864_v53 = vld [vmem:[#allocation148_spill] sm:$0xff]  ;;  %v14865_v49 = vld [vmem:[#allocation53_spill] sm:$0xff] }
 0xdaf   : > { %v7416_v34 = vadd.f32 1.0, %v7384_v41  ;;  %v6939_v60 = vadd.f32 -1.4531521, %v6907_v33  ;;  %v6812_v0 = vadd.f32 1.0, %v6780_v47  ;;  %v7196_v43 = vsub.f32 0.0, %v6748_v31 }
 0xdb0   : > { %v7417_v39 = vadd.f32 1.0, %v7385_v11  ;;  %v6970_v63 = vmul.f32 %v13488_v26, %v6938_v10  ;;  %9303 = vrcp.f32 %v6813_v16  ;;  %v5675_v20 = vmul.f32 %v11369_v2, %v5639_v21  ;;  %v14866_v16 = vld [vmem:[#allocation170_spill] sm:$0xff] }
 0xdb1   : > { %v6971_v7 = vmul.f32 %v13494_v13, %v6939_v60  ;;  %9305 = vrcp.f32 %v6812_v0  ;;  %v7197_v54 = vsub.f32 0.0, %v6749_v51  ;;  %v5967_v6 = vsel %vm13484_vm7, %v13343_v62, 0.0 }
 0xdb2   : > { %v7448_v15 = vmul.f32 %v7416_v34, %v6616_v17  ;;  %v7449_v40 = vmul.f32 %v7417_v39, %v6617_v56  ;;  %v7002_v55 = vadd.f32 1.4214138, %v6970_v63  ;;  %v5707_v36 = vadd.f32 %v5675_v20, %v14864_v53  ;;  %v14867_v34 = vld [vmem:[#allocation141_spill] sm:$0xff]  ;;  %v14868_v39 = vld [vmem:[#allocation136_spill] sm:$0xff] }
 0xdb3   : > { %v13510_v41 = vadd.f32 %v12975_v30, %v14865_v49  ;;  %v7003_v33 = vadd.f32 1.4214138, %v6971_v7  ;;  %v7228_v47 = vmul.f32 %v7196_v43, %v6748_v31  ;;  %v6034_v21 = vadd.f32 %v6002_v4, %v5870_v50 }
 0xdb4   : > { %v7473_v11 = vpack.c.bf16 %v7449_v40, %v7448_v15  ;;  %v7034_v10 = vmul.f32 %v13488_v26, %v7002_v55  ;;  %v5871_v60 = vadd.f32 %v14866_v16, %v5707_v36  ;;  %v6003_v0 = vmul.f32 %v14647_v46, %v5967_v6 }
 0xdb5   : > { %vm6682_vm9 = vcmp.ge.f32.partialorder %v13380_v27, 0.0  ;;  %v7035_v17 = vmul.f32 %v13494_v13, %v7003_v33  ;;  %v7229_v56 = vmul.f32 %v7197_v54, %v6749_v51  ;;  %v6162_v30 = vsel %vm12044_vm1, %v14867_v34, 0.0  ;;  %vm14872_vm1 = vmmov %vm14853_vm10 }
 0xdb6   : > { %v6199_v31 = vmul.f32 %v14664_v22, %v14868_v39  ;;  %8822 = vmatmul.mubr.bf16.gmra.mxu1 %v7473_v11  ;;  %v7066_v50 = vadd.f32 -0.28449672, %v7034_v10  ;;  %v6035_v4 = vadd.f32 %v6003_v0, %v5871_v60  ;;  %v6198_v43 = vmul.f32 %v14664_v22, %v6162_v30  ;;  %v14873_v10 = vld [vmem:[#allocation119_spill] sm:$0xff]  ;;  %v14876_v0 = vld [vmem:[#allocation157_spill] sm:$0xff]  ;;  %vm14892_vm6 = vmmov %vm14872_vm1 }
 0xdb7   : > { %v6523_v63 = vsel %vm13484_vm7, %v13439_v9, 0.0  ;;  %v7067_v20 = vadd.f32 -0.28449672, %v7035_v17  ;;  %v6558_v51 = vmul.f32 %v13428_v58, %v13449_v3  ;;  %v4436_v7 = vadd.s32 184, %v11340_v42  ;;  %v14878_v39 = vld [vmem:[#allocation163_spill] sm:$0xff] }
 0xdb8   : > { %v14870_v54 = vrot.slane %v14869_v59, 1  ;;  %v14871_v6 = vrot.slane %v14849_v19, 1  ;;  %v7098_v40 = vmul.f32 %v13488_v26, %v7066_v50  ;;  %v6230_v55 = vadd.f32 %v6198_v43, %v6034_v21  ;;  %v14877_v21 = vld [vmem:[#allocation168_spill] sm:$0xff] }
 0xdb9   : > { %v6231_v53 = vadd.f32 %v6199_v31, %v6035_v4  ;;  %v9300_v36 = vpop.eup %9299  ;;  %v7099_v49 = vmul.f32 %v13494_v13, %v7067_v20  ;;  %v6559_v33 = vmul.f32 %v13428_v58, %v6523_v63  ;;  %v4610_v11 = vand.u32 15, %v4436_v7  ;;  %v14888_v63 = vld [vmem:[#allocation149_spill] sm:$0xff] }
 0xdba   : > { %v13535_v15 = vsel %vm14872_vm1, %v14871_v6, %v14870_v54  ;;  %vm14874_vm11 = vnez %v14873_v10  ;;  %v7130_v60 = vadd.f32 0.2548296, %v7098_v40  ;;  %v6394_v17 = vadd.f32 %v14876_v0, %v6230_v55  ;;  %v14884_v10 = vld [vmem:[#allocation162_spill] sm:$0xff] }
 0xdbb   : > { %v5680_v32 = vmul.f32 %v11369_v2, %v13535_v15  ;;  %v14875_v19 = vsel %vm14874_vm11, %v14867_v34, 0.0  ;;  %v6395_v30 = vadd.f32 %v14877_v21, %v6231_v53  ;;  %v9302_v50 = vpop.eup %9301  ;;  %v7131_v4 = vadd.f32 0.2548296, %v7099_v49 }
 0xdbc   : > { %v5840_v16 = vmul.f32 %v11409_v29, %v14875_v19  ;;  %v6004_v43 = vmul.f32 %v14647_v46, %v13449_v3  ;;  %vm13554_vm13 = vcmp.le.s32.totalorder %v4610_v11, 14  ;;  %v7162_v20 = vmul.f32 %v13488_v26, %v7130_v60  ;;  %v14881_v19 = vld [vmem:[#allocation152_spill] sm:$0xff] }
 0xdbd   : > { %v13550_v31 = vadd.f32 %v5680_v32, %v14878_v39  ;;  %v13560_v7 = vadd.f32 %v6558_v51, %v6394_v17  ;;  %v13562_v59 = vadd.f32 %v6559_v33, %v6395_v30  ;;  %v5641_v54 = vsel %vm13554_vm13, %v13343_v62, 0.0  ;;  %v13567_v6 = vpop.eup %9303 }
 0xdbe   : > { %v5872_v34 = vadd.f32 %v5840_v16, %v13370_v35  ;;  %vm6683_vm2 = vcmp.ge.f32.partialorder %v13389_v12, 0.0  ;;  %v7163_v3 = vmul.f32 %v13494_v13, %v7131_v4  ;;  %v7278_v40 = vmul.f32 1.442695, %v7228_v47  ;;  %v13571_v53 = vpop.eup %9305 }
 0xdbf   : > { %v7322_v35 = vmul.f32 %v9300_v36, %v7162_v20  ;;  %v6909_v26 = vmul.f32 1.0614054, %v13567_v6  ;;  %v7280_v51 = vmul.f32 1.442695, %v7229_v56  ;;  %v5677_v32 = vmul.f32 %v11369_v2, %v5641_v54  ;;  %v14882_v20 = vld [vmem:[#allocation167_spill] sm:$0xff] }
 0xdc0   : > { %v6036_v55 = vadd.f32 %v6004_v43, %v5872_v34  ;;  %v7323_v49 = vmul.f32 %v9302_v50, %v7163_v3  ;;  %v6908_v33 = vmul.f32 1.0614054, %v13571_v53  ;;  %v13577_v62 = vmul.f32 0.70710677, %v13560_v7 }
 0xdc1   : > { %v13580_v11 = vmul.f32 0.70710677, %v13562_v59  ;;  %v6714_v13 = vsel %vm6682_vm9, 1.0, %v14724_v5  ;;  %v7354_v47 = vsub.f32 1.0, %v7322_v35  ;;  %v6941_v36 = vadd.f32 -1.4531521, %v6909_v26 }
 0xdc2   : > { %v5709_v16 = vadd.f32 %v5677_v32, %v14881_v19  ;;  %v6715_v56 = vsel %vm6683_vm2, 1.0, %v14724_v5  ;;  %v7355_v60 = vsub.f32 1.0, %v7323_v49  ;;  %v6940_v0 = vadd.f32 -1.4531521, %v6908_v33  ;;  %v14883_v33 = vld [vmem:[#allocation155_spill] sm:$0xff] }
 0xdc3   : > { %9307 = vpow2.f32 %v7278_v40  ;;  %v7386_v17 = vmul.f32 %v7354_v47, %v6714_v13  ;;  %v6973_v21 = vmul.f32 %v13567_v6, %v6941_v36  ;;  %v5969_v27 = vsel %vm13554_vm13, %v13439_v9, 0.0 }
 0xdc4   : > { %9309 = vpow2.f32 %v7280_v51  ;;  %v7387_v30 = vmul.f32 %v7355_v60, %v6715_v56  ;;  %v6972_v39 = vmul.f32 %v13571_v53, %v6940_v0  ;;  %v6750_v50 = vand.u32 2147483647, %v13577_v62 }
 0xdc5   : > { %v6751_v4 = vand.u32 2147483647, %v13580_v11  ;;  %v6618_v12 = vmul.f32 0.5, %v13363_v37  ;;  %v7418_v43 = vadd.f32 1.0, %v7386_v17  ;;  %v7005_v34 = vadd.f32 1.4214138, %v6973_v21 }
 0xdc6   : > { %v5873_v54 = vadd.f32 %v14882_v20, %v5709_v16  ;;  %v6619_v3 = vmul.f32 0.5, %v13373_v23  ;;  %v7419_v40 = vadd.f32 1.0, %v7387_v30  ;;  %v7004_v35 = vadd.f32 1.4214138, %v6972_v39 }
 0xdc7   : > { %v6782_v26 = vmul.f32 0.3275911, %v6750_v50  ;;  %v7037_v51 = vmul.f32 %v13567_v6, %v7005_v34  ;;  %v6783_v32 = vmul.f32 0.3275911, %v6751_v4  ;;  %v6005_v49 = vmul.f32 %v14647_v46, %v5969_v27  ;;  %v14885_v34 = vld [vmem:[#allocation164_spill] sm:$0xff] }
 0xdc8   : > { %v6164_v13 = vsel %vm14874_vm11, %v14883_v33, 0.0  ;;  %v7450_v47 = vmul.f32 %v7418_v43, %v6618_v12  ;;  %v7451_v37 = vmul.f32 %v7419_v40, %v6619_v3  ;;  %v7036_v36 = vmul.f32 %v13571_v53, %v7004_v35 }
 0xdc9   : > { %v6814_v19 = vadd.f32 1.0, %v6782_v26  ;;  %v7069_v16 = vadd.f32 -0.28449672, %v7037_v51  ;;  %v6815_v56 = vadd.f32 1.0, %v6783_v32  ;;  %v7198_v23 = vsub.f32 0.0, %v6750_v50  ;;  %v14886_v51 = vld [vmem:[#allocation47_spill] sm:$0xff] }
 0xdca   : > { %v6037_v60 = vadd.f32 %v6005_v49, %v5873_v54  ;;  %v7474_v0 = vpack.c.bf16 %v7451_v37, %v7450_v47  ;;  %v7068_v17 = vadd.f32 -0.28449672, %v7036_v36  ;;  %v6200_v21 = vmul.f32 %v14664_v22, %v6164_v13  ;;  %v14887_v37 = vld [vmem:[#allocation60_spill] sm:$0xff] }
 0xdcb   : > { %9311 = vrcp.f32 %v6814_v19  ;;  %vm6685_vm12 = vcmp.ge.f32.partialorder %v13474_v45, 0.0  ;;  %v7101_v27 = vmul.f32 %v13567_v6, %v7069_v16  ;;  %v6201_v30 = vmul.f32 %v14664_v22, %v14884_v10  ;;  %v14890_v16 = vld [vmem:[#allocation144_spill] sm:$0xff] }
 0xdcc   : > { %9313 = vrcp.f32 %v6815_v56  ;;  %8825 = vmatprep.mubr.bf16.mxu1 %v7474_v0  ;;  %v7100_v39 = vmul.f32 %v13571_v53, %v7068_v17  ;;  %v7199_v12 = vsub.f32 0.0, %v6751_v4  ;;  %v6232_v43 = vadd.f32 %v6200_v21, %v6036_v55 }
 0xdcd   : > { %v6525_v20 = vsel %vm13554_vm13, %v14885_v34, 0.0  ;;  %v7133_v54 = vadd.f32 0.2548296, %v7101_v27  ;;  %v7230_v3 = vmul.f32 %v7198_v23, %v6750_v50  ;;  %v6233_v40 = vadd.f32 %v6201_v30, %v6037_v60 }
 0xdce   : > { %v6560_v35 = vmul.f32 %v13428_v58, %v13535_v15  ;;  %v7132_v26 = vadd.f32 0.2548296, %v7100_v39  ;;  %v6396_v32 = vadd.f32 %v14886_v51, %v6232_v43  ;;  %v6561_v49 = vmul.f32 %v13428_v58, %v6525_v20  ;;  %v14895_v43 = vld [vmem:[#allocation57_spill] sm:$0xff] }
 0xdcf   : > { %v4438_v13 = vadd.s32 200, %v11340_v42  ;;  %v7165_v55 = vmul.f32 %v13567_v6, %v7133_v54  ;;  %v6397_v36 = vadd.f32 %v14887_v37, %v6233_v40  ;;  %v14889_v19 = vrot.slane %v14888_v63, 1 }
 0xdd0   : > { %v9308_v47 = vpop.eup %9307  ;;  %v14891_v50 = vrot.slane %v14890_v16, 1  ;;  %v14894_v60 = vsel %vm12154_vm5, %v14883_v33, 0.0  ;;  %vm6684_vm10 = vcmp.ge.f32.partialorder %v13481_v48, 0.0  ;;  %v7164_v6 = vmul.f32 %v13571_v53, %v7132_v26 }
 0xdd1   : > { %v5842_v0 = vmul.f32 %v11409_v29, %v14894_v60  ;;  %v9310_v17 = vpop.eup %9309  ;;  %v13636_v21 = vadd.f32 %v6560_v35, %v6396_v32  ;;  %v4624_v27 = vand.u32 15, %v4438_v13  ;;  %v13638_v30 = vadd.f32 %v6561_v49, %v6397_v36 }
 0xdd2   : > { %v13627_v56 = vsel %vm14892_vm6, %v14891_v50, %v14889_v19  ;;  %v7325_v10 = vmul.f32 %v9310_v17, %v7165_v55  ;;  %v5876_v20 = vadd.f32 %v14895_v43, %v13550_v31  ;;  %v7324_v54 = vmul.f32 %v9308_v47, %v7164_v6  ;;  %v14898_v19 = vld [vmem:[#allocation166_spill] sm:$0xff] }
 0xdd3   : > { %v5874_v39 = vadd.f32 %v5842_v0, %v13469_v18  ;;  %v7231_v33 = vmul.f32 %v7199_v12, %v6751_v4  ;;  %v13644_v40 = vmul.f32 0.70710677, %v13636_v21  ;;  %vm13646_vm14 = vcmp.le.s32.totalorder %v4624_v27, 14 }
 0xdd4   : > { %v7357_v53 = vsub.f32 1.0, %v7325_v10  ;;  %v7282_v35 = vmul.f32 1.442695, %v7230_v3  ;;  %v13651_v26 = vmul.f32 0.70710677, %v13638_v30  ;;  %v5643_v18 = vsel %vm13646_vm14, %v13439_v9, 0.0 }
 0xdd5   : > { %v6621_v31 = vmul.f32 0.5, %v13461_v57  ;;  %v6717_v4 = vsel %vm6685_vm12, 1.0, %v14724_v5  ;;  %v7356_v12 = vsub.f32 1.0, %v7324_v54  ;;  %v6752_v32 = vand.u32 2147483647, %v13644_v40 }
 0xdd6   : > { %v6716_v3 = vsel %vm6684_vm10, 1.0, %v14724_v5  ;;  %v7389_v49 = vmul.f32 %v7357_v53, %v6717_v4  ;;  %v6753_v13 = vand.u32 2147483647, %v13651_v26  ;;  %v5679_v47 = vmul.f32 %v11369_v2, %v5643_v18  ;;  %v14899_v18 = vld [vmem:[#allocation44_spill] sm:$0xff] }
 0xdd7   : > { %v6620_v9 = vmul.f32 0.5, %v13466_v52  ;;  %v7388_v55 = vmul.f32 %v7356_v12, %v6716_v3  ;;  %v7284_v57 = vmul.f32 1.442695, %v7231_v33  ;;  %v6784_v37 = vmul.f32 0.3275911, %v6752_v32 }
 0xdd8   : > { %v13667_v36 = vpop.eup %9311  ;;  %v7421_v45 = vadd.f32 1.0, %v7389_v49  ;;  %9315 = vpow2.f32 %v7282_v35  ;;  %v6785_v63 = vmul.f32 0.3275911, %v6753_v13  ;;  %v5711_v16 = vadd.f32 %v5679_v47, %v14898_v19  ;;  %v14901_v19 = vld [vmem:[#allocation161_spill] sm:$0xff] }
 0xdd9   : > { %v13670_v50 = vpop.eup %9313  ;;  %v7420_v48 = vadd.f32 1.0, %v7388_v55  ;;  %v6910_v60 = vmul.f32 1.0614054, %v13667_v36  ;;  %v6816_v0 = vadd.f32 1.0, %v6784_v37  ;;  %v5682_v17 = vmul.f32 %v11369_v2, %v13627_v56 }
 0xdda   : > { %v7453_v52 = vmul.f32 %v7421_v45, %v6621_v31  ;;  %v6911_v6 = vmul.f32 1.0614054, %v13670_v50  ;;  %v6817_v27 = vadd.f32 1.0, %v6785_v63  ;;  %v7200_v10 = vsub.f32 0.0, %v6752_v32  ;;  %v14900_v31 = vld [vmem:[#allocation45_spill] sm:$0xff] }
 0xddb   : > { %v7452_v43 = vmul.f32 %v7420_v48, %v6620_v9  ;;  %v6942_v54 = vadd.f32 -1.4531521, %v6910_v60  ;;  %v6006_v33 = vmul.f32 %v14647_v46, %v13535_v15  ;;  %9317 = vrcp.f32 %v6816_v0 }
 0xddc   : > { %v6943_v53 = vadd.f32 -1.4531521, %v6911_v6  ;;  %9319 = vrcp.f32 %v6817_v27  ;;  %v7201_v35 = vsub.f32 0.0, %v6753_v13  ;;  %v13679_v4 = vadd.f32 %v5682_v17, %v14899_v18  ;;  %v14902_v17 = vld [vmem:[#allocation158_spill] sm:$0xff]  ;;  %v14903_v6 = vld [vmem:[#allocation173_spill] sm:$0xff] }
 0xddd   : > { %v7475_v12 = vpack.c.bf16 %v7453_v52, %v7452_v43  ;;  %v6974_v3 = vmul.f32 %v13667_v36, %v6942_v54  ;;  %9321 = vpow2.f32 %v7284_v57  ;;  %v5875_v49 = vadd.f32 %v14900_v31, %v5711_v16  ;;  %v14907_v18 = vld [vmem:[#allocation50_spill] sm:$0xff]  ;;  %v14909_v31 = vld [vmem:[#allocation43_spill] sm:$0xff] }
 0xdde   : > { %v6975_v47 = vmul.f32 %v13670_v50, %v6943_v53  ;;  %v7232_v9 = vmul.f32 %v7200_v10, %v6752_v32  ;;  %v5971_v15 = vsel %vm13646_vm14, %v14885_v34, 0.0  ;;  %v6008_v55 = vmul.f32 %v14647_v46, %v13627_v56 }
 0xddf   : > { %8826 = vmatmul.mubr.bf16.gmra.mxu1 %v7475_v12  ;;  %v7006_v37 = vadd.f32 1.4214138, %v6974_v3  ;;  %v6007_v45 = vmul.f32 %v14647_v46, %v5971_v15  ;;  %v6038_v63 = vadd.f32 %v6006_v33, %v5874_v39  ;;  %v6166_v57 = vsel %vm12154_vm5, %v14901_v19, 0.0 }
 0xde0   : > { %vm6686_vm8 = vcmp.ge.f32.partialorder %v13577_v62, 0.0  ;;  %v7007_v16 = vadd.f32 1.4214138, %v6975_v47  ;;  %v7233_v32 = vmul.f32 %v7201_v35, %v6753_v13  ;;  %v6040_v48 = vadd.f32 %v6008_v55, %v5876_v20  ;;  %v14905_v20 = vld [vmem:[#allocation172_spill] sm:$0xff] }
 0xde1   : > { %v6202_v60 = vmul.f32 %v14664_v22, %v6166_v57  ;;  %v7038_v34 = vmul.f32 %v13667_v36, %v7006_v37  ;;  %v6039_v0 = vadd.f32 %v6007_v45, %v5875_v49  ;;  %v6203_v52 = vmul.f32 %v14664_v22, %v14902_v17  ;;  %v14910_v37 = vld [vmem:[#allocation51_spill] sm:$0xff] }
 0xde2   : > { %v6527_v39 = vsel %vm13646_vm14, %v14903_v6, 0.0  ;;  %v7039_v23 = vmul.f32 %v13670_v50, %v7007_v16  ;;  %v6562_v10 = vmul.f32 %v13428_v58, %v13627_v56  ;;  %v14906_v43 = vsel %vm12203_vm0, %v14905_v20, 0.0  ;;  %vm14913_vm0 = vmmov %vm14872_vm1 }
 0xde3   : > { %v6234_v27 = vadd.f32 %v6202_v60, %v6038_v63  ;;  %v6204_v54 = vmul.f32 %v14664_v22, %v14906_v43  ;;  %v7070_v33 = vadd.f32 -0.28449672, %v7038_v34  ;;  %v6235_v53 = vadd.f32 %v6203_v52, %v6039_v0  ;;  %v14914_v34 = vld [vmem:[#allocation68_spill] sm:$0xff] }
 0xde4   : > { %v6563_v35 = vmul.f32 %v13428_v58, %v6527_v39  ;;  %v6529_v51 = vsel %vm12263_vm4, %v14907_v18, 0.0  ;;  %v7071_v3 = vadd.f32 -0.28449672, %v7039_v23  ;;  %v6564_v63 = vmul.f32 %v13428_v58, %v13089_v24 }
 0xde5   : > { %v6398_v49 = vadd.f32 %v14909_v31, %v6234_v27  ;;  %v6236_v47 = vadd.f32 %v6204_v54, %v6040_v48  ;;  %v6565_v56 = vmul.f32 %v13428_v58, %v6529_v51  ;;  %v9316_v15 = vpop.eup %9315  ;;  %v7102_v55 = vmul.f32 %v13667_v36, %v7070_v33 }
 0xde6   : > { %v6399_v45 = vadd.f32 %v14910_v37, %v6235_v53  ;;  %v14911_v19 = vrot.slane %v12401_v38, 1  ;;  %v14912_v57 = vrot.slane %v12378_v61, 1  ;;  %v7103_v48 = vmul.f32 %v13670_v50, %v7071_v3  ;;  %v14915_v38 = vld [vmem:[#allocation174_spill] sm:$0xff] }
 0xde7   : > { %v13728_v60 = vadd.f32 %v6562_v10, %v6398_v49  ;;  %v6400_v0 = vadd.f32 %v14914_v34, %v6236_v47  ;;  %v13732_v17 = vadd.f32 %v6565_v56, %v13510_v41  ;;  %vm6687_vm4 = vcmp.ge.f32.partialorder %v13580_v11, 0.0 }
 0xde8   : > { %v13725_v16 = vsel %vm14913_vm0, %v14912_v57, %v14911_v19  ;;  %v7134_v52 = vadd.f32 0.2548296, %v7102_v55  ;;  %v13735_v39 = vadd.f32 %v6563_v35, %v6399_v45  ;;  %v13739_v61 = vadd.f32 %v13411_v28, %v14915_v38  ;;  %v13741_v23 = vpop.eup %9317 }
 0xde9   : > { %v7135_v27 = vadd.f32 0.2548296, %v7103_v48  ;;  %v7286_v13 = vmul.f32 1.442695, %v7232_v9  ;;  %v13744_v10 = vmul.f32 0.70710677, %v13728_v60  ;;  %v13746_v43 = vadd.f32 %v6564_v63, %v6400_v0  ;;  %v13748_v41 = vpop.eup %9319 }
 0xdea   : > { %v6622_v54 = vmul.f32 0.5, %v13560_v7  ;;  %v7166_v33 = vmul.f32 %v13667_v36, %v7134_v52  ;;  %v6912_v53 = vmul.f32 1.0614054, %v13741_v23  ;;  %v13754_v28 = vmul.f32 0.70710677, %v13735_v39  ;;  %v9322_v35 = vpop.eup %9321 }
 0xdeb   : > { %v7167_v12 = vmul.f32 %v13670_v50, %v7135_v27  ;;  %v6913_v9 = vmul.f32 1.0614054, %v13748_v41  ;;  %v7288_v51 = vmul.f32 1.442695, %v7233_v32  ;;  %v6754_v3 = vand.u32 2147483647, %v13744_v10 }
 0xdec   : > { %v6718_v31 = vsel %vm6686_vm8, 1.0, %v14724_v5  ;;  %v6719_v7 = vsel %vm6687_vm4, 1.0, %v14724_v5  ;;  %v7326_v36 = vmul.f32 %v9316_v15, %v7166_v33  ;;  %v6944_v49 = vadd.f32 -1.4531521, %v6912_v53 }
 0xded   : > { %v7327_v47 = vmul.f32 %v9322_v35, %v7167_v12  ;;  %v6945_v56 = vadd.f32 -1.4531521, %v6913_v9  ;;  %9323 = vpow2.f32 %v7286_v13  ;;  %v6755_v50 = vand.u32 2147483647, %v13754_v28  ;;  %v14916_v12 = vld [vmem:[#allocation41_spill] sm:$0xff] }
 0xdee   : > { %v7358_v55 = vsub.f32 1.0, %v7326_v36  ;;  %v6976_v32 = vmul.f32 %v13741_v23, %v6944_v49  ;;  %v6786_v37 = vmul.f32 0.3275911, %v6754_v3  ;;  %v4442_v45 = vadd.s32 232, %v11340_v42 }
 0xdef   : > { %v7359_v63 = vsub.f32 1.0, %v7327_v47  ;;  %v6977_v62 = vmul.f32 %v13748_v41, %v6945_v56  ;;  %9325 = vpow2.f32 %v7288_v51  ;;  %v6787_v19 = vmul.f32 0.3275911, %v6755_v50 }
 0xdf0   : > { %v7390_v11 = vmul.f32 %v7358_v55, %v6718_v31  ;;  %v7008_v57 = vadd.f32 1.4214138, %v6976_v32  ;;  %v6818_v15 = vadd.f32 1.0, %v6786_v37  ;;  %v7202_v48 = vsub.f32 0.0, %v6754_v3 }
 0xdf1   : > { %v7391_v34 = vmul.f32 %v7359_v63, %v6719_v7  ;;  %v7009_v0 = vadd.f32 1.4214138, %v6977_v62  ;;  %v6819_v52 = vadd.f32 1.0, %v6787_v19  ;;  %v7203_v38 = vsub.f32 0.0, %v6755_v50 }
 0xdf2   : > { %v7422_v27 = vadd.f32 1.0, %v7390_v11  ;;  %v7040_v13 = vmul.f32 %v13741_v23, %v7008_v57  ;;  %9327 = vrcp.f32 %v6818_v15  ;;  %v4652_v33 = vand.u32 15, %v4442_v45 }
 0xdf3   : > { %v6623_v42 = vmul.f32 0.5, %v13562_v59  ;;  %v7423_v53 = vadd.f32 1.0, %v7391_v34  ;;  %v7041_v35 = vmul.f32 %v13748_v41, %v7009_v0  ;;  %9329 = vrcp.f32 %v6819_v52 }
 0xdf4   : > { %v5847_v9 = vmul.f32 %v11409_v29, %v14916_v12  ;;  %v13775_v51 = vmul.f32 0.5, %v13636_v21  ;;  %v7072_v31 = vadd.f32 -0.28449672, %v7040_v13  ;;  %v7234_v7 = vmul.f32 %v7202_v48, %v6754_v3 }
 0xdf5   : > { %v7454_v36 = vmul.f32 %v7422_v27, %v6622_v54  ;;  %v7455_v49 = vmul.f32 %v7423_v53, %v6623_v42  ;;  %v7073_v47 = vadd.f32 -0.28449672, %v7041_v35  ;;  %v7235_v56 = vmul.f32 %v7203_v38, %v6755_v50 }
 0xdf6   : > { %v7104_v55 = vmul.f32 %v13741_v23, %v7072_v31  ;;  %v13779_v59 = vmul.f32 0.70710677, %v13746_v43  ;;  %v13782_v32 = vmul.f32 0.70710677, %v13732_v17  ;;  %vm13784_vm5 = vcmp.le.s32.totalorder %v4652_v33, 14  ;;  %v14921_v33 = vld [vmem:[#allocation59_spill] sm:$0xff] }
 0xdf7   : > { %v7476_v21 = vpack.c.bf16 %v7455_v49, %v7454_v36  ;;  %v6625_v45 = vmul.f32 0.5, %v13638_v30  ;;  %v7105_v54 = vmul.f32 %v13748_v41, %v7073_v47  ;;  %v5647_v3 = vsel %vm13784_vm5, %v14903_v6, 0.0 }
 0xdf8   : > { %v5848_v50 = vmul.f32 %v11409_v29, %v5812_v25  ;;  %v7136_v63 = vadd.f32 0.2548296, %v7104_v55  ;;  %v7290_v62 = vmul.f32 1.442695, %v7234_v7  ;;  %v6756_v19 = vand.u32 2147483647, %v13779_v59 }
 0xdf9   : > { %8829 = vmatprep.mubr.bf16.mxu1 %v7476_v21  ;;  %v7137_v11 = vadd.f32 0.2548296, %v7105_v54  ;;  %v7292_v57 = vmul.f32 1.442695, %v7235_v56  ;;  %v13800_v30 = vand.u32 2147483647, %v13782_v32  ;;  %v5683_v0 = vmul.f32 %v11369_v2, %v5647_v3 }
 0xdfa   : > { %v14920_v6 = vsel %vm12302_vm15, %v14905_v20, 0.0  ;;  %v9324_v48 = vpop.eup %9323  ;;  %vm6688_vm3 = vcmp.ge.f32.partialorder %v13644_v40, 0.0  ;;  %v7168_v25 = vmul.f32 %v13741_v23, %v7136_v63  ;;  %v6788_v34 = vmul.f32 0.3275911, %v6756_v19 }
 0xdfb   : > { %v5846_v1 = vmul.f32 %v11409_v29, %v14920_v6  ;;  %vm6689_vm7 = vcmp.ge.f32.partialorder %v13651_v26, 0.0  ;;  %v7169_v52 = vmul.f32 %v13748_v41, %v7137_v11  ;;  %v6789_v38 = vmul.f32 0.3275911, %v13800_v30 }
 0xdfc   : > { %v9326_v13 = vpop.eup %9325  ;;  %v7328_v20 = vmul.f32 %v9324_v48, %v7168_v25  ;;  %9331 = vpow2.f32 %v7290_v62  ;;  %v6820_v29 = vadd.f32 1.0, %v6788_v34  ;;  %v5715_v42 = vadd.f32 %v5683_v0, %v14921_v33  ;;  %v14922_v0 = vld [vmem:[#allocation52_spill] sm:$0xff] }
 0xdfd   : > { %v5878_v27 = vadd.f32 %v5846_v1, %v13679_v4  ;;  %v7329_v53 = vmul.f32 %v9326_v13, %v7169_v52  ;;  %9333 = vpow2.f32 %v7292_v57  ;;  %v6821_v23 = vadd.f32 1.0, %v6789_v38  ;;  %v14923_v52 = vld [vmem:[#allocation42_spill] sm:$0xff] }
 0xdfe   : > { %v5880_v35 = vadd.f32 %v5848_v50, %v13739_v61  ;;  %v6720_v2 = vsel %vm6688_vm3, 1.0, %v14724_v5  ;;  %v7360_v41 = vsub.f32 1.0, %v7328_v20  ;;  %9335 = vrcp.f32 %v6820_v29  ;;  %v13852_v20 = vld [vmem:[%s14173_s19] ss:$0 sm:$0xff] }
 0xdff   : > { %v5879_v12 = vadd.f32 %v5847_v9, %v5715_v42  ;;  %v13819_v31 = vpop.eup %9327  ;;  %v6721_v4 = vsel %vm6689_vm7, 1.0, %v14724_v5  ;;  %v7361_v7 = vsub.f32 1.0, %v7329_v53  ;;  %9337 = vrcp.f32 %v6821_v23  ;;  %v14924_v42 = vld [vmem:[#allocation62_spill] sm:$0xff]  ;;  %v14925_v53 = vld [vmem:[#allocation64_spill] sm:$0xff] }
 0xe00   : > { %v5975_v36 = vsel %vm13784_vm5, %v14907_v18, 0.0  ;;  %v13827_v61 = vpop.eup %9329  ;;  %v7392_v49 = vmul.f32 %v7360_v41, %v6720_v2  ;;  %v6914_v40 = vmul.f32 1.0614054, %v13819_v31  ;;  %v7204_v47 = vsub.f32 0.0, %v6756_v19 }
 0xe01   : > { %v6010_v9 = vmul.f32 %v14647_v46, %v13089_v24  ;;  %v7393_v56 = vmul.f32 %v7361_v7, %v6721_v4  ;;  %v6915_v55 = vmul.f32 1.0614054, %v13827_v61  ;;  %v7205_v26 = vsub.f32 0.0, %v13800_v30 }
 0xe02   : > { %v6011_v21 = vmul.f32 %v14647_v46, %v5975_v36  ;;  %v7424_v54 = vadd.f32 1.0, %v7392_v49  ;;  %v6946_v3 = vadd.f32 -1.4531521, %v6914_v40  ;;  %v6012_v18 = vmul.f32 %v14647_v46, %v13725_v16 }
 0xe03   : > { %v6042_v50 = vadd.f32 %v6010_v9, %v5878_v27  ;;  %v7425_v63 = vadd.f32 1.0, %v7393_v56  ;;  %v6947_v62 = vadd.f32 -1.4531521, %v6915_v55  ;;  %v6170_v24 = vsel %vm12302_vm15, %v13081_v14, 0.0 }
 0xe04   : > { %v6043_v11 = vadd.f32 %v6011_v21, %v5879_v12  ;;  %v7456_v57 = vmul.f32 %v7424_v54, %v13775_v51  ;;  %v6978_v6 = vmul.f32 %v13819_v31, %v6946_v3  ;;  %v6044_v1 = vadd.f32 %v6012_v18, %v5880_v35  ;;  %v8811_v51 = vpop.f32.mrf.mxu1 }
 0xe05   : > { %v6206_v48 = vmul.f32 %v14664_v22, %v6170_v24  ;;  %v7457_v25 = vmul.f32 %v7425_v63, %v6625_v45  ;;  %v6979_v34 = vmul.f32 %v13827_v61, %v6947_v62  ;;  %v6531_v38 = vsel %vm13784_vm5, %v14923_v52, 0.0 }
 0xe06   : > { %v6239_v46 = vadd.f32 %v14922_v0, %v6043_v11  ;;  %v7010_v27 = vadd.f32 1.4214138, %v6978_v6  ;;  %v7236_v13 = vmul.f32 %v7204_v47, %v6756_v19  ;;  %v6567_v14 = vmul.f32 %v13428_v58, %v6531_v38  ;;  %v14926_v19 = vld [vmem:[#allocation63_spill] sm:$0xff] }
 0xe07   : > { %v6238_v15 = vadd.f32 %v6206_v48, %v6042_v50  ;;  %v7477_v45 = vpack.c.bf16 %v7457_v25, %v7456_v57  ;;  %v7011_v29 = vadd.f32 1.4214138, %v6979_v34  ;;  %v6045_v37 = vadd.f32 %v14925_v53, %v14924_v42 }
 0xe08   : > { %v6403_v33 = vadd.f32 %v12841_v8, %v6239_v46  ;;  %v7042_v23 = vmul.f32 %v13819_v31, %v7010_v27  ;;  %v6566_v2 = vmul.f32 %v13428_v58, %v13725_v16  ;;  %v7237_v4 = vmul.f32 %v7205_v26, %v13800_v30  ;;  %v14928_v26 = vld [vmem:[#allocation10_spill] sm:$0xff] }
 0xe09   : > { %v6402_v35 = vadd.f32 %v14926_v19, %v6238_v15  ;;  %v9332_v41 = vpop.eup %9331  ;;  %8830 = vmatmul.mubr.bf16.gmra.mxu1 %v7477_v45  ;;  %v7043_v12 = vmul.f32 %v13827_v61, %v7011_v29  ;;  %v7596_v8 = vadd.f32 %v8811_v51, %v13852_v20  ;;  %v13874_v49 = vmul.f32 0.5, %v13728_v60 }
 0xe0a   : > { %v13863_v7 = vadd.f32 %v6567_v14, %v6403_v33  ;;  %v9334_v36 = vpop.eup %9333  ;;  %v7074_v16 = vadd.f32 -0.28449672, %v7042_v23  ;;  %v7294_v40 = vmul.f32 1.442695, %v7236_v13  ;;  %v6208_v55 = vmul.f32 0.0, %v14664_v22 }
 0xe0b   : > { %v13876_v47 = vadd.f32 %v6566_v2, %v6402_v35  ;;  %v13878_v30 = vpop.eup %9335  ;;  %v7075_v9 = vadd.f32 -0.28449672, %v7043_v12  ;;  %v7716_v21 = vadd.f32 %v7596_v8, %v14928_v26  ;;  %vm6690_vm15 = vcmp.ge.f32.partialorder %v13744_v10, 0.0 }
 0xe0c   : > { %v13881_v56 = vmul.f32 0.70710677, %v13863_v7  ;;  %v13885_v54 = vpop.eup %9337  ;;  %v7106_v60 = vmul.f32 %v13819_v31, %v7074_v16  ;;  %v6916_v3 = vmul.f32 1.0614054, %v13878_v30  ;;  %v7296_v62 = vmul.f32 1.442695, %v7237_v4 }
 0xe0d   : > { %v13891_v18 = vmul.f32 0.70710677, %v13876_v47  ;;  %v7107_v50 = vmul.f32 %v13827_v61, %v7075_v9  ;;  %v6917_v63 = vmul.f32 1.0614054, %v13885_v54  ;;  %vm14929_vm9 = vcmask 261120  }
 0xe0e   : > { %v13896_v22 = vand.u32 2147483647, %v13881_v56  ;;  %7748 = vst.msk [vmem:[%s13871_s1 + $0x10] sm:$0xff] %vm14929_vm9, %v7716_v21  ;;  %vm6691_vm1 = vcmp.ge.f32.partialorder %v13754_v28, 0.0  ;;  %v7138_v11 = vadd.f32 0.2548296, %v7106_v60  ;;  %9339 = vpow2.f32 %v7294_v40  ;;  %vm14931_vm2 = vmmov %vm14929_vm9 }
 0xe0f   : > { %v6948_v24 = vadd.f32 -1.4531521, %v6916_v3  ;;  %v7139_v57 = vadd.f32 0.2548296, %v7107_v50  ;;  %v6949_v6 = vadd.f32 -1.4531521, %v6917_v63  ;;  %v6240_v48 = vadd.f32 %v6208_v55, %v6044_v1  ;;  %vm14933_vm12 = vmmov %vm14931_vm2 }
 0xe10   : > { %v6372_v25 = vmul.f32 0.0, %v11376_v44  ;;  %v7170_v34 = vmul.f32 %v13819_v31, %v7138_v11  ;;  %v13905_v46 = vand.u32 2147483647, %v13891_v18  ;;  %v6791_v52 = vmul.f32 0.3275911, %v13896_v22  ;;  %vm14935_vm6 = vmmov %vm14931_vm2 }
 0xe11   : > { %v6980_v0 = vmul.f32 %v13878_v30, %v6948_v24  ;;  %v7171_v38 = vmul.f32 %v13827_v61, %v7139_v57  ;;  %v6981_v27 = vmul.f32 %v13885_v54, %v6949_v6  ;;  %9341 = vpow2.f32 %v7296_v62  ;;  %v7587_v61 = vpop.f32.mrf.mxu1  ;;  %v14930_v57 = vld [vmem:[#allocation9_spill] sm:$0xff]  ;;  %vm14937_vm10 = vmmov %vm14931_vm2 }
 0xe12   : > { %v6241_v13 = vadd.f32 %v6208_v55, %v6045_v37  ;;  %v7330_v15 = vmul.f32 %v9332_v41, %v7170_v34  ;;  %v6790_v1 = vmul.f32 0.3275911, %v13905_v46  ;;  %v6823_v44 = vadd.f32 1.0, %v6791_v52  ;;  %vm14940_vm14 = vmmov %vm14931_vm2 }
 0xe13   : > { %v7012_v14 = vadd.f32 1.4214138, %v6980_v0  ;;  %v7331_v51 = vmul.f32 %v9334_v36, %v7171_v38  ;;  %v7013_v31 = vadd.f32 1.4214138, %v6981_v27  ;;  %v6404_v45 = vadd.f32 %v6372_v25, %v6240_v48  ;;  %v8812_v9 = vpop.f32.mrf.mxu1  ;;  %vm14942_vm8 = vmmov %vm14931_vm2 }
 0xe14   : > { %v6568_v29 = vmul.f32 0.0, %v13428_v58  ;;  %v7362_v33 = vsub.f32 1.0, %v7330_v15  ;;  %v6822_v53 = vadd.f32 1.0, %v6790_v1  ;;  %9343 = vrcp.f32 %v6823_v44  ;;  %v14932_v1 = vld [vmem:[#allocation12_spill] sm:$0xff]  ;;  %vm14943_vm0 = vmmov %vm14931_vm2 }
 0xe15   : > { %v7044_v42 = vmul.f32 %v13878_v30, %v7012_v14  ;;  %v6722_v37 = vsel %vm6690_vm15, 1.0, %v14724_v5  ;;  %v6723_v23 = vsel %vm6691_vm1, 1.0, %v14724_v5  ;;  %v7363_v19 = vsub.f32 1.0, %v7331_v51  ;;  %v7590_v34 = vpop.f32.mrf.mxu1  ;;  %vm14945_vm15 = vmmov %vm14943_vm0 }
 0xe16   : > { %v7045_v35 = vmul.f32 %v13885_v54, %v7013_v31  ;;  %v7394_v2 = vmul.f32 %v7362_v33, %v6722_v37  ;;  %9345 = vrcp.f32 %v6822_v53  ;;  %v6405_v58 = vadd.f32 %v6372_v25, %v6241_v13  ;;  %vm14947_vm9 = vmmov %vm14943_vm0 }
 0xe17   : > { %v7076_v41 = vadd.f32 -0.28449672, %v7044_v42  ;;  %v6627_v12 = vmul.f32 0.5, %v13735_v39  ;;  %v7395_v4 = vmul.f32 %v7363_v19, %v6723_v23  ;;  %v13921_v36 = vadd.f32 %v6568_v29, %v6404_v45  ;;  %vm14949_vm1 = vmmov %vm14943_vm0 }
 0xe18   : > { %v7077_v8 = vadd.f32 -0.28449672, %v7045_v35  ;;  %v7426_v16 = vadd.f32 1.0, %v7394_v2  ;;  %v13924_v40 = vadd.f32 %v6568_v29, %v6405_v58  ;;  %v7588_v28 = vadd.f32 %v13852_v20, %v7587_v61  ;;  %v8815_v29 = vpop.f32.mrf.mxu1  ;;  %v14934_v61 = vld [vmem:[#allocation11_spill] sm:$0xff] }
 0xe19   : > { %v7108_v10 = vmul.f32 %v13878_v30, %v7076_v41  ;;  %v7427_v55 = vadd.f32 1.0, %v7395_v4  ;;  %vm6692_vm11 = vcmp.ge.f32.partialorder %v13779_v59, 0.0  ;;  %v7207_v21 = vsub.f32 0.0, %v13896_v22 }
 0xe1a   : > { %v7109_v26 = vmul.f32 %v13885_v54, %v7077_v8  ;;  %v7458_v39 = vmul.f32 %v7426_v16, %v13874_v49  ;;  %v7206_v3 = vsub.f32 0.0, %v13905_v46  ;;  %v13933_v50 = vmul.f32 0.70710677, %v13921_v36  ;;  %v7603_v2 = vpop.f32.mrf.mxu1  ;;  %v14936_v8 = vld [vmem:[#allocation14_spill] sm:$0xff] }
 0xe1b   : > { %v7140_v60 = vadd.f32 0.2548296, %v7108_v10  ;;  %v9340_v63 = vpop.eup %9339  ;;  %v7459_v62 = vmul.f32 %v7427_v55, %v6627_v12  ;;  %v13936_v24 = vmul.f32 0.70710677, %v13924_v40  ;;  %v7714_v6 = vadd.f32 %v7588_v28, %v14930_v57 }
 0xe1c   : > { %v7141_v11 = vadd.f32 0.2548296, %v7109_v26  ;;  %v13941_v25 = vand.u32 2147483647, %v13933_v50  ;;  %v7599_v49 = vadd.f32 %v8812_v9, %v13852_v20  ;;  %vm6693_vm13 = vcmp.ge.f32.partialorder %v13782_v32, 0.0  ;;  %v8816_v55 = vpop.f32.mrf.mxu1 }
 0xe1d   : > { %v7172_v48 = vmul.f32 %v13878_v30, %v7140_v60  ;;  %v7478_v0 = vpack.c.bf16 %v7459_v62, %v7458_v39  ;;  %v7239_v38 = vmul.f32 %v7207_v21, %v13896_v22  ;;  %7746 = vst.msk [vmem:[%s13871_s1] sm:$0xff] %vm14931_vm2, %v7714_v6  ;;  %v6724_v30 = vsel %vm6692_vm11, 1.0, %v14724_v5  ;;  %v14938_v6 = vld [vmem:[#allocation13_spill] sm:$0xff]  ;;  %vm14951_vm11 = vmmov %vm14943_vm0 }
 0xe1e   : > { %v7173_v52 = vmul.f32 %v13885_v54, %v7141_v11  ;;  %v9342_v27 = vpop.eup %9341  ;;  %v13953_v15 = vand.u32 2147483647, %v13936_v24  ;;  %v6792_v14 = vmul.f32 0.3275911, %v13941_v25  ;;  %v7238_v54 = vmul.f32 %v7206_v3, %v13905_v46  ;;  %v7606_v62 = vpop.f32.mrf.mxu1  ;;  %vm14955_vm2 = vmmov %vm14943_vm0 }
 0xe1f   : > { %v7332_v13 = vmul.f32 %v9340_v63, %v7172_v48  ;;  %8833 = vmatprep.mubr.bf16.mxu1 %v7478_v0  ;;  %v7717_v22 = vadd.f32 %v7599_v49, %v14932_v1  ;;  %v7591_v44 = vadd.f32 %v13852_v20, %v7590_v34  ;;  %v6725_v51 = vsel %vm6693_vm13, 1.0, %v14724_v5  ;;  %v14939_v0 = vld [vmem:[#allocation16_spill] sm:$0xff]  ;;  %vm14953_vm13 = vmmov %vm14943_vm0 }
 0xe20   : > { %v7333_v32 = vmul.f32 %v9342_v27, %v7173_v52  ;;  %v6793_v59 = vmul.f32 0.3275911, %v13953_v15  ;;  %v6824_v45 = vadd.f32 1.0, %v6792_v14  ;;  %v7300_v53 = vmul.f32 1.442695, %v7239_v38 }
 0xe21   : > { %v7364_v31 = vsub.f32 1.0, %v7332_v13  ;;  %v13961_v33 = vpop.eup %9343  ;;  %7749 = vst.msk [vmem:[%s13871_s1 + $0x18] sm:$0xff] %vm14933_vm12, %v7717_v22  ;;  %v7715_v46 = vadd.f32 %v7591_v44, %v14934_v61  ;;  %v7612_v37 = vadd.f32 %v8815_v29, %v13852_v20  ;;  %v6628_v58 = vmul.f32 0.5, %v13746_v43  ;;  %vm14957_vm12 = vmmov %vm14943_vm0 }
 0xe22   : > { %v7365_v42 = vsub.f32 1.0, %v7333_v32  ;;  %v6919_v19 = vmul.f32 1.0614054, %v13961_v33  ;;  %v6825_v35 = vadd.f32 1.0, %v6793_v59  ;;  %9347 = vrcp.f32 %v6824_v45 }
 0xe23   : > { %v7396_v23 = vmul.f32 %v7364_v31, %v6724_v30  ;;  %v9346_v41 = vpop.eup %9345  ;;  %v7298_v4 = vmul.f32 1.442695, %v7238_v54  ;;  %7747 = vst.msk [vmem:[%s13871_s1 + $0x8] sm:$0xff] %vm14935_vm6, %v7715_v46  ;;  %v7720_v16 = vadd.f32 %v7612_v37, %v14936_v8  ;;  %v6629_v26 = vmul.f32 0.5, %v13732_v17  ;;  %v14941_v30 = vld [vmem:[#allocation15_spill] sm:$0xff]  ;;  %vm14959_vm6 = vmmov %vm14943_vm0 }
 0xe24   : > { %v7397_v12 = vmul.f32 %v7365_v42, %v6725_v51  ;;  %v6918_v28 = vmul.f32 1.0614054, %v9346_v41  ;;  %v6951_v9 = vadd.f32 -1.4531521, %v6919_v19  ;;  %9349 = vrcp.f32 %v6825_v35 }
 0xe25   : > { %v7428_v10 = vadd.f32 1.0, %v7396_v23  ;;  %9351 = vpow2.f32 %v7300_v53  ;;  %7752 = vst.msk [vmem:[%s13871_s1 + $0x30] sm:$0xff] %vm14937_vm10, %v7720_v16  ;;  %v7604_v39 = vadd.f32 %v13852_v20, %v7603_v2  ;;  %v7208_v3 = vsub.f32 0.0, %v13941_v25 }
 0xe26   : > { %v7429_v21 = vadd.f32 1.0, %v7397_v12  ;;  %v6950_v43 = vadd.f32 -1.4531521, %v6918_v28  ;;  %v6983_v60 = vmul.f32 %v13961_v33, %v6951_v9  ;;  %v7615_v63 = vadd.f32 %v8816_v55, %v13852_v20 }
 0xe27   : > { %v7460_v11 = vmul.f32 %v7428_v10, %v6628_v58  ;;  %v7718_v17 = vadd.f32 %v7604_v39, %v14938_v6  ;;  %v7607_v48 = vadd.f32 %v13852_v20, %v7606_v62  ;;  %9353 = vpow2.f32 %v7298_v4 }
 0xe28   : > { %v7461_v57 = vmul.f32 %v7429_v21, %v6629_v26  ;;  %v6982_v49 = vmul.f32 %v9346_v41, %v6950_v43  ;;  %v7015_v34 = vadd.f32 1.4214138, %v6983_v60  ;;  %v7721_v52 = vadd.f32 %v7615_v63, %v14939_v0 }
 0xe29   : > { %v7209_v27 = vsub.f32 0.0, %v13953_v15  ;;  %7750 = vst.msk [vmem:[%s13871_s1 + $0x20] sm:$0xff] %vm14940_vm14, %v7718_v17  ;;  %v7719_v13 = vadd.f32 %v7607_v48, %v14941_v30  ;;  %v7240_v54 = vmul.f32 %v7208_v3, %v13941_v25  ;;  %vm6695_vm4 = vcmp.ge.f32.partialorder %v13881_v56, 0.0 }
 0xe2a   : > { %v7479_v38 = vpack.c.bf16 %v7461_v57, %v7460_v11  ;;  %v7014_v14 = vadd.f32 1.4214138, %v6982_v49  ;;  %v7047_v32 = vmul.f32 %v13961_v33, %v7015_v34  ;;  %7753 = vst.msk [vmem:[%s13871_s1 + $0x38] sm:$0xff] %vm14942_vm8, %v7721_v52  ;;  %vm6694_vm5 = vcmp.ge.f32.partialorder %v13891_v18, 0.0 }
 0xe2b   : > { %7751 = vst.msk [vmem:[%s13871_s1 + $0x28] sm:$0xff] %vm14943_vm0, %v7719_v13  ;;  %v7241_v44 = vmul.f32 %v7209_v27, %v13953_v15  ;;  %v7302_v45 = vmul.f32 1.442695, %v7240_v54  ;;  %v6727_v9 = vsel %vm6695_vm4, 1.0, %v14724_v5  ;;  %v6631_v56 = vmul.f32 0.5, %v13863_v7 }
 0xe2c   : > { %8834 = vmatmul.mubr.bf16.gmra.mxu1 %v7479_v38  ;;  %v7046_v1 = vmul.f32 %v9346_v41, %v7014_v14  ;;  %v7079_v22 = vadd.f32 -0.28449672, %v7047_v32  ;;  %v6630_v18 = vmul.f32 0.5, %v13876_v47  ;;  %vm6696_vm3 = vcmp.ge.f32.partialorder %v13933_v50, 0.0 }
 0xe2d   : > { %v7304_v46 = vmul.f32 1.442695, %v7241_v44  ;;  %9355 = vpow2.f32 %v7302_v45  ;;  %vm6697_vm7 = vcmp.ge.f32.partialorder %v13936_v24, 0.0  ;;  %v6728_v13 = vsel %vm6696_vm3, 1.0, %v14724_v5 }
 0xe2e   : > { %v7078_v51 = vadd.f32 -0.28449672, %v7046_v1  ;;  %v7111_v31 = vmul.f32 %v13961_v33, %v7079_v22  ;;  %v6729_v54 = vsel %vm6697_vm7, 1.0, %v14724_v5  ;;  %v6632_v44 = vmul.f32 0.5, %v13921_v36  ;;  %v14946_v36 = vld [vmem:[#allocation17_spill] sm:$0xff] }
 0xe2f   : > { %v9348_v59 = vpop.eup %9347  ;;  %9357 = vpow2.f32 %v7304_v46 }
 0xe30   : > { %v7110_v29 = vmul.f32 %v9346_v41, %v7078_v51  ;;  %v7143_v42 = vadd.f32 0.2548296, %v7111_v31  ;;  %v6920_v53 = vmul.f32 1.0614054, %v9348_v59  ;;  %v6633_v51 = vmul.f32 0.5, %v13924_v40 }
 0xe31   : > { %v9350_v61 = vpop.eup %9349 }
 0xe32   : > { %v9352_v37 = vpop.eup %9351  ;;  %v7142_v23 = vadd.f32 0.2548296, %v7110_v29  ;;  %v7175_v25 = vmul.f32 %v13961_v33, %v7143_v42  ;;  %v6921_v19 = vmul.f32 1.0614054, %v9350_v61  ;;  %v6952_v35 = vadd.f32 -1.4531521, %v6920_v53 }
 0xe34   : > { %v7174_v15 = vmul.f32 %v9346_v41, %v7142_v23  ;;  %v7335_v2 = vmul.f32 %v9352_v37, %v7175_v25  ;;  %v6953_v58 = vadd.f32 -1.4531521, %v6921_v19  ;;  %v6984_v12 = vmul.f32 %v9348_v59, %v6952_v35  ;;  %v9354_v4 = vpop.eup %9353  ;;  %v14948_v25 = vld [vmem:[#allocation20_spill] sm:$0xff] }
 0xe35   : > { %v6726_v41 = vsel %vm6694_vm5, 1.0, %v14724_v5  ;;  %v14944_v5 = vld [vmem:[#allocation18_spill] sm:$0xff] }
 0xe36   : > { %v7334_v8 = vmul.f32 %v9354_v4, %v7174_v15  ;;  %v7367_v16 = vsub.f32 1.0, %v7335_v2  ;;  %v6985_v10 = vmul.f32 %v9350_v61, %v6953_v58  ;;  %v7016_v28 = vadd.f32 1.4214138, %v6984_v12  ;;  %v14950_v15 = vld [vmem:[#allocation19_spill] sm:$0xff] }
 0xe38   : > { %v7366_v33 = vsub.f32 1.0, %v7334_v8  ;;  %v7399_v55 = vmul.f32 %v7367_v16, %v6727_v9  ;;  %v7017_v26 = vadd.f32 1.4214138, %v6985_v10  ;;  %v7048_v21 = vmul.f32 %v9348_v59, %v7016_v28  ;;  %v14952_v8 = vld [vmem:[#allocation22_spill] sm:$0xff]  ;;  %v14954_v9 = vld [vmem:[#allocation21_spill] sm:$0xff] }
 0xe3a   : > { %v7398_v39 = vmul.f32 %v7366_v33, %v6726_v41  ;;  %v7431_v43 = vadd.f32 1.0, %v7399_v55  ;;  %v7049_v60 = vmul.f32 %v9350_v61, %v7017_v26  ;;  %v7080_v3 = vadd.f32 -0.28449672, %v7048_v21  ;;  %v9356_v49 = vpop.eup %9355  ;;  %v14956_v21 = vld [vmem:[#allocation24_spill] sm:$0xff] }
 0xe3c   : > { %v7430_v63 = vadd.f32 1.0, %v7398_v39  ;;  %v7463_v62 = vmul.f32 %v7431_v43, %v6631_v56  ;;  %v7081_v11 = vadd.f32 -0.28449672, %v7049_v60  ;;  %v7112_v57 = vmul.f32 %v9348_v59, %v7080_v3  ;;  %v9358_v7 = vpop.eup %9357  ;;  %v14958_v39 = vld [vmem:[#allocation23_spill] sm:$0xff] }
 0xe3e   : > { %v7462_v6 = vmul.f32 %v7430_v63, %v6630_v18  ;;  %v7113_v17 = vmul.f32 %v9350_v61, %v7081_v11  ;;  %v7144_v48 = vadd.f32 0.2548296, %v7112_v57 }
 0xe40   : > { %v7480_v34 = vpack.c.bf16 %v7463_v62, %v7462_v6  ;;  %v7145_v0 = vadd.f32 0.2548296, %v7113_v17  ;;  %v7176_v52 = vmul.f32 %v9348_v59, %v7144_v48 }
 0xe42   : > { %8837 = vmatprep.mubr.bf16.mxu1 %v7480_v34  ;;  %v7177_v38 = vmul.f32 %v9350_v61, %v7145_v0  ;;  %v7336_v27 = vmul.f32 %v9356_v49, %v7176_v52 }
 0xe44   : > { %v7337_v47 = vmul.f32 %v9358_v7, %v7177_v38  ;;  %v7368_v30 = vsub.f32 1.0, %v7336_v27 }
 0xe46   : > { %v7369_v14 = vsub.f32 1.0, %v7337_v47  ;;  %v7400_v32 = vmul.f32 %v7368_v30, %v6728_v13 }
 0xe48   : > { %v7401_v1 = vmul.f32 %v7369_v14, %v6729_v54  ;;  %v7432_v22 = vadd.f32 1.0, %v7400_v32 }
 0xe4a   : > { %v7433_v50 = vadd.f32 1.0, %v7401_v1  ;;  %v7464_v31 = vmul.f32 %v7432_v22, %v6632_v44 }
 0xe4b   : > { %v8819_v45 = vpop.f32.mrf.mxu1 }
 0xe4c   : > { %v7465_v59 = vmul.f32 %v7433_v50, %v6633_v51  ;;  %v7628_v29 = vadd.f32 %v8819_v45, %v13852_v20 }
 0xe4d   : > { %v7619_v42 = vpop.f32.mrf.mxu1 }
 0xe4e   : > { %v7481_v24 = vpack.c.bf16 %v7465_v59, %v7464_v31  ;;  %v7724_v53 = vadd.f32 %v7628_v29, %v14944_v5  ;;  %v7620_v61 = vadd.f32 %v13852_v20, %v7619_v42 }
 0xe4f   : > { %v8820_v46 = vpop.f32.mrf.mxu1 }
 0xe50   : > { %8838 = vmatmul.mubr.bf16.gmra.mxu1 %v7481_v24  ;;  %7756 = vst.msk [vmem:[%s13871_s1 + $0x50] sm:$0xff] %vm14945_vm15, %v7724_v53  ;;  %v7722_v40 = vadd.f32 %v7620_v61, %v14946_v36  ;;  %v7631_v37 = vadd.f32 %v8820_v46, %v13852_v20 }
 0xe51   : > { %v7622_v23 = vpop.f32.mrf.mxu1 }
 0xe52   : > { %7754 = vst.msk [vmem:[%s13871_s1 + $0x40] sm:$0xff] %vm14947_vm9, %v7722_v40  ;;  %v7725_v19 = vadd.f32 %v7631_v37, %v14948_v25  ;;  %v7623_v35 = vadd.f32 %v13852_v20, %v7622_v23 }
 0xe54   : > { %7757 = vst.msk [vmem:[%s13871_s1 + $0x58] sm:$0xff] %vm14949_vm1, %v7725_v19  ;;  %v7723_v2 = vadd.f32 %v7623_v35, %v14950_v15 }
 0xe56   : > { %7755 = vst.msk [vmem:[%s13871_s1 + $0x48] sm:$0xff] %vm14951_vm11, %v7723_v2 }
 0xe76   : > { %v8823_v58 = vpop.f32.mrf.mxu1 }
 0xe77   : > { %v7644_v12 = vadd.f32 %v8823_v58, %v13852_v20 }
 0xe78   : > { %v7635_v4 = vpop.f32.mrf.mxu1 }
 0xe79   : > { %v7728_v16 = vadd.f32 %v7644_v12, %v14952_v8  ;;  %v7636_v10 = vadd.f32 %v13852_v20, %v7635_v4 }
 0xe7a   : > { %v8824_v28 = vpop.f32.mrf.mxu1 }
 0xe7b   : > { %7760 = vst.msk [vmem:[%s13871_s1 + $0x70] sm:$0xff] %vm14953_vm13, %v7728_v16  ;;  %v7726_v33 = vadd.f32 %v7636_v10, %v14954_v9  ;;  %v7647_v55 = vadd.f32 %v8824_v28, %v13852_v20 }
 0xe7c   : > { %v7638_v26 = vpop.f32.mrf.mxu1 }
 0xe7d   : > { %7758 = vst.msk [vmem:[%s13871_s1 + $0x60] sm:$0xff] %vm14955_vm2, %v7726_v33  ;;  %v7729_v56 = vadd.f32 %v7647_v55, %v14956_v21  ;;  %v7639_v41 = vadd.f32 %v13852_v20, %v7638_v26 }
 0xe7f   : > { %7761 = vst.msk [vmem:[%s13871_s1 + $0x78] sm:$0xff] %vm14957_vm12, %v7729_v56  ;;  %v7727_v43 = vadd.f32 %v7639_v41, %v14958_v39 }
 0xe81   : > { %7759 = vst.msk [vmem:[%s13871_s1 + $0x68] sm:$0xff] %vm14959_vm6, %v7727_v43 }
 0xe82   : > { %9422 = shalt.err (!%p9419_p3)
}
 0xe83   : > { %s9423_s27 = scalar_lea.hbm %s14044_s28, 2048  ;;  %s9427_s24 = scalar_lea.hbm %s14177_s23, 4096 }
 0xe84   : > { %p9424_p4 = scmp.ne.s32.totalorder %s14044_s28, %s9423_s27  ;;  %p9428_p9 = scmp.lt.s32.totalorder %s14044_s28, %s14177_s23 }
 0xe85   : > { %p9429_p10 = scmp.lt.s32.totalorder %s9427_s24, %s9423_s27 }
 0xe86   : > { %p9425_p7 = pnand %p9424_p4, %p9633_p5 }
 0xe87   : > { %p9430_p11 = por %p9429_p10, %p9428_p9 }
 0xe88   : > { %p9426_p8 = pneg %p9425_p7 }
 0xe8a   : > { %p9431_p12 = pnand %p9430_p11, %p9426_p8 }
 0xe8c   : > { %9434 = shalt.err (!%p9431_p12)
}
 0xe8d   : > { %s9473_s8 = smov 64   ;;  %s9474_s3 = smov 4   ;;  %v14960_v63 = vld [vmem:[#allocation26_spill] sm:$0xff]  ;;  %vm14961_vm10 = vmmov %vm14943_vm0  ;;  %v14962_v6 = vld [vmem:[#allocation25_spill] sm:$0xff] }
 0xe8e   : > { %8851 = dma.vmem_to_hbm [thread:$0]  (%p9633_p5), %s14046_s26, 2048, %s14044_s28, %s14050_s2, %s9473_s8, %s9473_s8, %s9474_s3   ;;  %vm14963_vm14 = vmmov %vm14943_vm0  ;;  %v14964_v34 = vld [vmem:[#allocation28_spill] sm:$0xff]  ;;  %v14966_v7 = vld [vmem:[#allocation27_spill] sm:$0xff] }
 0xe8f   : > { %vm14965_vm8 = vmmov %vm14943_vm0  ;;  %v14967_v13 = vld [vmem:[#allocation30_spill] sm:$0xff]  ;;  %v14969_v1 = vld [vmem:[#allocation29_spill] sm:$0xff] }
 0xe90   : > { %vm14968_vm4 = vmmov %vm14943_vm0  ;;  %v14971_v50 = vld [vmem:[#allocation32_spill] sm:$0xff]  ;;  %v14973_v24 = vld [vmem:[#allocation31_spill] sm:$0xff] }
 0xe91   : > { %vm14970_vm5 = vmmov %vm14943_vm0  ;;  %v14975_v53 = vld [vmem:[#allocation34_spill] sm:$0xff]  ;;  %v14977_v40 = vld [vmem:[#allocation33_spill] sm:$0xff] }
 0xe92   : > { %vm14972_vm3 = vmmov %vm14943_vm0  ;;  %v14979_v19 = vld [vmem:[#allocation36_spill] sm:$0xff]  ;;  %v14981_v2 = vld [vmem:[#allocation35_spill] sm:$0xff] }
 0xe93   : > { %vm14974_vm7 = vmmov %vm14943_vm0  ;;  %v14983_v16 = vld [vmem:[#allocation38_spill] sm:$0xff]  ;;  %v14985_v33 = vld [vmem:[#allocation37_spill] sm:$0xff] }
 0xe94   : > { %vm14976_vm15 = vmmov %vm14943_vm0  ;;  %v14987_v56 = vld [vmem:[#allocation40_spill] sm:$0xff]  ;;  %v14989_v43 = vld [vmem:[#allocation39_spill] sm:$0xff] }
 0xe95   : > { %vm14978_vm9 = vmmov %vm14943_vm0 }
 0xe96   : > { %vm14980_vm1 = vmmov %vm14943_vm0 }
 0xe97   : > { %vm14982_vm11 = vmmov %vm14943_vm0 }
 0xe98   : > { %vm14984_vm13 = vmmov %vm14943_vm0 }
 0xe99   : > { %vm14986_vm2 = vmmov %vm14943_vm0 }
 0xe9a   : > { %vm14988_vm12 = vmmov %vm14943_vm0 }
 0xe9b   : > { %vm14990_vm6 = vmmov %vm14943_vm0 }
 0xe9f   : > { %v8827_v60 = vpop.f32.mrf.mxu1 }
 0xea0   : > { %v7660_v3 = vadd.f32 %v8827_v60, %v13852_v20 }
 0xea1   : > { %v7651_v18 = vpop.f32.mrf.mxu1 }
 0xea2   : > { %v7732_v62 = vadd.f32 %v7660_v3, %v14960_v63  ;;  %v7652_v11 = vadd.f32 %v13852_v20, %v7651_v18 }
 0xea3   : > { %v8828_v57 = vpop.f32.mrf.mxu1 }
 0xea4   : > { %7764 = vst.msk [vmem:[%s13871_s1 + $0x90] sm:$0xff] %vm14961_vm10, %v7732_v62  ;;  %v7730_v17 = vadd.f32 %v7652_v11, %v14962_v6  ;;  %v7663_v48 = vadd.f32 %v8828_v57, %v13852_v20 }
 0xea5   : > { %v7654_v49 = vpop.f32.mrf.mxu1 }
 0xea6   : > { %7762 = vst.msk [vmem:[%s13871_s1 + $0x80] sm:$0xff] %vm14963_vm14, %v7730_v17  ;;  %v7733_v0 = vadd.f32 %v7663_v48, %v14964_v34  ;;  %v7655_v52 = vadd.f32 %v13852_v20, %v7654_v49 }
 0xea8   : > { %7765 = vst.msk [vmem:[%s13871_s1 + $0x98] sm:$0xff] %vm14965_vm8, %v7733_v0  ;;  %v7731_v38 = vadd.f32 %v7655_v52, %v14966_v7 }
 0xeaa   : > { %7763 = vst.msk [vmem:[%s13871_s1 + $0x88] sm:$0xff] %vm14943_vm0, %v7731_v38 }
 0xec9   : > { %v8831_v27 = vpop.f32.mrf.mxu1 }
 0xeca   : > { %v7676_v47 = vadd.f32 %v8831_v27, %v13852_v20 }
 0xecb   : > { %v7667_v30 = vpop.f32.mrf.mxu1 }
 0xecc   : > { %v7736_v14 = vadd.f32 %v7676_v47, %v14967_v13  ;;  %v7668_v32 = vadd.f32 %v13852_v20, %v7667_v30 }
 0xecd   : > { %v8832_v54 = vpop.f32.mrf.mxu1 }
 0xece   : > { %7768 = vst.msk [vmem:[%s13871_s1 + $0xb0] sm:$0xff] %vm14968_vm4, %v7736_v14  ;;  %v7734_v22 = vadd.f32 %v7668_v32, %v14969_v1  ;;  %v7679_v44 = vadd.f32 %v8832_v54, %v13852_v20 }
 0xecf   : > { %v7670_v51 = vpop.f32.mrf.mxu1 }
 0xed0   : > { %7766 = vst.msk [vmem:[%s13871_s1 + $0xa0] sm:$0xff] %vm14970_vm5, %v7734_v22  ;;  %v7737_v31 = vadd.f32 %v7679_v44, %v14971_v50  ;;  %v7671_v59 = vadd.f32 %v13852_v20, %v7670_v51 }
 0xed2   : > { %7769 = vst.msk [vmem:[%s13871_s1 + $0xb8] sm:$0xff] %vm14972_vm3, %v7737_v31  ;;  %v7735_v45 = vadd.f32 %v7671_v59, %v14973_v24 }
 0xed4   : > { %7767 = vst.msk [vmem:[%s13871_s1 + $0xa8] sm:$0xff] %vm14974_vm7, %v7735_v45 }
 0xeec   : > { %v8835_v29 = vpop.f32.mrf.mxu1 }
 0xeed   : > { %v7692_v42 = vadd.f32 %v8835_v29, %v13852_v20 }
 0xeee   : > { %v7683_v5 = vpop.f32.mrf.mxu1 }
 0xeef   : > { %v7740_v61 = vadd.f32 %v7692_v42, %v14975_v53  ;;  %v7684_v46 = vadd.f32 %v13852_v20, %v7683_v5 }
 0xef0   : > { %v8836_v36 = vpop.f32.mrf.mxu1 }
 0xef1   : > { %7772 = vst.msk [vmem:[%s13871_s1 + $0xd0] sm:$0xff] %vm14976_vm15, %v7740_v61  ;;  %v7738_v37 = vadd.f32 %v7684_v46, %v14977_v40  ;;  %v7695_v23 = vadd.f32 %v8836_v36, %v13852_v20 }
 0xef2   : > { %v7686_v25 = vpop.f32.mrf.mxu1 }
 0xef3   : > { %7770 = vst.msk [vmem:[%s13871_s1 + $0xc0] sm:$0xff] %vm14978_vm9, %v7738_v37  ;;  %v7741_v35 = vadd.f32 %v7695_v23, %v14979_v19  ;;  %v7687_v15 = vadd.f32 %v13852_v20, %v7686_v25 }
 0xef5   : > { %7773 = vst.msk [vmem:[%s13871_s1 + $0xd8] sm:$0xff] %vm14980_vm1, %v7741_v35  ;;  %v7739_v58 = vadd.f32 %v7687_v15, %v14981_v2 }
 0xef7   : > { %7771 = vst.msk [vmem:[%s13871_s1 + $0xc8] sm:$0xff] %vm14982_vm11, %v7739_v58 }
 0xf10   : > { %v8839_v12 = vpop.f32.mrf.mxu1 }
 0xf11   : > { %v7708_v4 = vadd.f32 %v8839_v12, %v13852_v20 }
 0xf12   : > { %v7699_v8 = vpop.f32.mrf.mxu1 }
 0xf13   : > { %v7744_v10 = vadd.f32 %v7708_v4, %v14983_v16  ;;  %v7700_v28 = vadd.f32 %v13852_v20, %v7699_v8 }
 0xf14   : > { %v8840_v9 = vpop.f32.mrf.mxu1 }
 0xf15   : > { %7776 = vst.msk [vmem:[%s13871_s1 + $0xf0] sm:$0xff] %vm14984_vm13, %v7744_v10  ;;  %v7742_v55 = vadd.f32 %v7700_v28, %v14985_v33  ;;  %v7711_v26 = vadd.f32 %v8840_v9, %v13852_v20 }
 0xf16   : > { %v7702_v21 = vpop.f32.mrf.mxu1 }
 0xf17   : > { %7774 = vst.msk [vmem:[%s13871_s1 + $0xe0] sm:$0xff] %vm14986_vm2, %v7742_v55  ;;  %v7745_v41 = vadd.f32 %v7711_v26, %v14987_v56  ;;  %v7703_v39 = vadd.f32 %v13852_v20, %v7702_v21 }
 0xf19   : > { %7777 = vst.msk [vmem:[%s13871_s1 + $0xf8] sm:$0xff] %vm14988_vm12, %v7745_v41  ;;  %v7743_v60 = vadd.f32 %v7703_v39, %v14989_v43 }
 0xf1b   : > { %7775 = vst.msk [vmem:[%s13871_s1 + $0xe8] sm:$0xff] %vm14990_vm6, %v7743_v60 }
 0xf1c PF: > { %p8857_p5 = scmp.ge.s32.totalorder %s9469_s25, 2  ;;  %s7823_s7 = sand.u32 1, %s9457_s4  }
 0xf1d   : > { %s7824_s26 = scalar_lea.sflag [#allocation3], %s7823_s7 }
 0xf1e   : > { %p8854_p13 = pnand %p8857_p5, %p9637_p6 }
 0xf20   : > { %p8855_p0 = pneg %p8854_p13 }
 0xf22   : > { %9452 = dma.done.wait (%p8855_p0), %s7824_s26, 2048  }
 0xf23   : > { %9454 = vsyncadd (%p8855_p0), %s7824_s26, 4294965248  ;;  %s14992_s25 = sld [smem:[#allocation6_spill]]  ;;  %s14995_s4 = smov %s9461_s30 }
 0xf24   : > { %s14993_s28 = sld [smem:[#allocation5_spill]] }
 0xf25   : > { %s14994_s24 = sld [smem:[#allocation7_spill]] }
 0xf29   : > { %p34_p1 = scmp.ge.s32.totalorder %s14992_s25, 4  }
 0xf2a   : > { %s14996_s30 = smov %s14993_s28 }
 0xf2b   :  { %36 = sbr.rel (!%p34_p1) target bundleno = 14 (0xe), region = 158 }
 0xf30   :  { %7829 = vsyncpa [#allocation3], 1 }
 0xf31   :  { %7831 = vsyncpa [#allocation3 + $0x1], 1 }

</bundles_post_ra>
